<compile_context>
chip_gen: v7x
topology: tpu7x:2x2x1
jax: 0.10.0
libtpu: 0.0.40
codegen_flags: <defaults>
</compile_context>

<pallas_src>
import math

import jax
import jax.numpy as jnp
from jax import lax
from jax.experimental import pallas as pl
from jax.experimental.pallas import tpu as pltpu


def _make_mha_kernel(n_heads, h_dim):
    inv_sqrt_d = 1.0 / math.sqrt(h_dim)

    def kernel(mask_ref, q_ref, k_ref, v_ref, wo_ref, bo_ref, out_ref, ctx_ref):
        q = q_ref[0]            # (H, tq, D) bf16
        k = k_ref[0]            # (H, Sk, D) bf16
        v = v_ref[0]            # (H, Sk, D) bf16
        mask_add = mask_ref[0]  # (1, Sk)   f32  (already (m-1)*1e9)

        # ---- scores for all heads in one batched MXU pass: (H, tq, Sk) f32 ----
        s = jnp.einsum("hqd,hkd->hqk", q, k,
                       preferred_element_type=jnp.float32) * inv_sqrt_d
        s = s + mask_add                      # broadcast (1,Sk) -> (H,tq,Sk)

        # ---- softmax in f32; approx reciprocal on the EUP ----
        s = s - jnp.max(s, axis=-1, keepdims=True)
        p = jnp.exp(s)
        p = p * pl.reciprocal(jnp.sum(p, axis=-1, keepdims=True), approx=True)
        # attention dropout: eval-mode identity

        # ---- context for all heads: (H, tq, D) f32 ----
        ctx = jnp.einsum("hqk,hkd->hqd", p.astype(jnp.bfloat16), v,
                         preferred_element_type=jnp.float32)

        # ---- gather heads into lane slices of a (tq, E) bf16 scratch ----
        for h in range(n_heads):              # static unrolled, static slices
            ctx_ref[:, h * h_dim:(h + 1) * h_dim] = ctx[h].astype(jnp.bfloat16)

        # ---- single depth-E output projection + bias ----
        out_ref[0] = (jnp.dot(ctx_ref[...], wo_ref[...],
                              preferred_element_type=jnp.float32)
                      + bo_ref[...]).astype(out_ref.dtype)

    return kernel


def multi_head_attention(q_in, k_in, v_in, mask, params, *, n_heads, q_tile=128):
    """Encoder-style multi-head attention with a 0/1 padding mask.

    q_in/k_in/v_in: (B, S, E) float32.  mask: (B, S_k) float32 of 0/1 (1 = keep).
    Linear weights in `params` are stored transposed as (in_features, out_features).
    """
    B, Sq, E = q_in.shape
    Sk = k_in.shape[1]
    D = E // n_heads
    cdt = jnp.bfloat16

    # ---- full-width Q/K/V projections in the wrapper (bf16 MXU, f32 acc) ----
    def proj(x, w, b):
        y = jnp.dot(x.astype(cdt), w.astype(cdt),
                    preferred_element_type=jnp.float32) + b
        return y.astype(cdt)

    def to_heads(y, S):       # (B, S, E) -> (B, H, S, D)
        return jnp.transpose(y.reshape(B, S, n_heads, D), (0, 2, 1, 3))

    q_h = to_heads(proj(q_in, params["wq"], params["bq"]), Sq)
    k_h = to_heads(proj(k_in, params["wk"], params["bk"]), Sk)
    v_h = to_heads(proj(v_in, params["wv"], params["bv"]), Sk)

    # ---- pad the query length to a multiple of the tile (tail discarded) ----
    tq = min(q_tile, ((Sq + 7) // 8) * 8)
    Sq_pad = pl.cdiv(Sq, tq) * tq
    if Sq_pad != Sq:
        q_h = jnp.pad(q_h, ((0, 0), (0, 0), (0, Sq_pad - Sq), (0, 0)))

    # ---- additive mask precomputed once: keep(1)->0, pad(0)->-1e9 ----
    mask_add = ((mask.astype(jnp.float32) - 1.0) * 1e9).reshape(B, 1, Sk)

    wo = params["wo"].astype(cdt)                 # (E, E)
    bo = params["bo"].reshape(1, E).astype(jnp.float32)

    grid = (B, Sq_pad // tq)

    in_specs = [
        pl.BlockSpec((1, 1, Sk), lambda b, qi: (b, 0, 0)),       # additive mask
        pl.BlockSpec((1, n_heads, tq, D), lambda b, qi: (b, 0, qi, 0)),  # Q tile
        pl.BlockSpec((1, n_heads, Sk, D), lambda b, qi: (b, 0, 0, 0)),   # K (full)
        pl.BlockSpec((1, n_heads, Sk, D), lambda b, qi: (b, 0, 0, 0)),   # V (full)
        pl.BlockSpec((E, E), lambda b, qi: (0, 0)),              # Wo
        pl.BlockSpec((1, E), lambda b, qi: (0, 0)),              # bo
    ]

    kernel = _make_mha_kernel(n_heads, D)

    out = pl.pallas_call(
        kernel,
        out_shape=jax.ShapeDtypeStruct((B, Sq_pad, E), jnp.float32),
        grid_spec=pltpu.PrefetchScalarGridSpec(
            num_scalar_prefetch=0,
            grid=grid,
            in_specs=in_specs,
            out_specs=pl.BlockSpec((1, tq, E), lambda b, qi: (b, qi, 0)),
            scratch_shapes=[pltpu.VMEM((tq, E), jnp.bfloat16)],  # head-concat scratch
        ),
        compiler_params=pltpu.CompilerParams(
            dimension_semantics=("parallel", "parallel"),
            vmem_limit_bytes=32 * 1024 * 1024,
        ),
    )(mask_add, q_h, k_h, v_h, wo, bo)

    return out[:, :Sq, :]


def reference_forward(q_in, k_in, v_in, mask, params, *, n_heads):
    """Pure-JAX f32 reference mirroring the PyTorch forward (eval mode)."""
    B, Sq, E = q_in.shape
    Sk = k_in.shape[1]
    D = E // n_heads

    q = q_in @ params["wq"] + params["bq"]
    k = k_in @ params["wk"] + params["bk"]
    v = v_in @ params["wv"] + params["bv"]
    q = q.reshape(B, Sq, n_heads, D).transpose(0, 2, 1, 3)
    k = k.reshape(B, Sk, n_heads, D).transpose(0, 2, 1, 3)
    v = v.reshape(B, Sk, n_heads, D).transpose(0, 2, 1, 3)

    scores = jnp.einsum("bhqd,bhkd->bhqk", q, k) / math.sqrt(D)
    am = jnp.where(mask == 0.0, -1e9, jnp.where(mask == 1.0, 0.0, mask))  # (B, Sk)
    scores = scores + am[:, None, None, :]
    attn = jax.nn.softmax(scores, axis=-1)
    ctx = jnp.einsum("bhqk,bhkd->bhqd", attn, v)
    ctx = ctx.transpose(0, 2, 1, 3).reshape(B, Sq, E)
    return ctx @ params["wo"] + params["bo"]


if __name__ == "__main__":
    # Small shapes consistent with the module: embed_dim=128, n_heads=8 (h_dim=16).
    B, S, E, H = 2, 256, 128, 8

    key = jax.random.PRNGKey(0)
    ks = jax.random.split(key, 12)
    std = 0.05

    def w(k_, shape):
        return (std * jax.random.normal(k_, shape)).astype(jnp.float32)

    # Linear weights stored transposed: y = x @ W + b.
    params = {
        "wq": w(ks[0], (E, E)), "bq": w(ks[1], (E,)),
        "wk": w(ks[2], (E, E)), "bk": w(ks[3], (E,)),
        "wv": w(ks[4], (E, E)), "bv": w(ks[5], (E,)),
        "wo": w(ks[6], (E, E)), "bo": w(ks[7], (E,)),
    }

    xq = jax.random.normal(ks[8], (B, S, E), dtype=jnp.float32)
    xk = jax.random.normal(ks[9], (B, S, E), dtype=jnp.float32)
    xv = jax.random.normal(ks[10], (B, S, E), dtype=jnp.float32)

    # padding mask: 1 = keep, 0 = pad (different padded tails per batch row)
    lengths = jnp.array([S - 64, S - 32], dtype=jnp.int32)
    mask = (jnp.arange(S)[None, :] < lengths[:, None]).astype(jnp.float32)

    out = multi_head_attention(xq, xk, xv, mask, params, n_heads=H)
    out = jax.block_until_ready(out)

    ref = reference_forward(xq, xk, xv, mask, params, n_heads=H)
    max_err = jnp.max(jnp.abs(out - ref))
    assert out.shape == (B, S, E)
    # bf16 matmuls + approx reciprocal => relaxed (but still tight) tolerance.
    assert jnp.allclose(out, ref, atol=5e-3, rtol=5e-2), f"max abs err {max_err}"

    print("KERNEL_OK")
</pallas_src>

<mosaic_0001>
module attributes {stable_mosaic.version = 11 : i64} {
  func.func @kernel(%arg0: i32, %arg1: i32, %arg2: memref<1x1x256xf32, #tpu.memory_space<vmem>>, %arg3: memref<1x8x128x16xbf16, #tpu.memory_space<vmem>>, %arg4: memref<1x8x256x16xbf16, #tpu.memory_space<vmem>>, %arg5: memref<1x8x256x16xbf16, #tpu.memory_space<vmem>>, %arg6: memref<128x128xbf16, #tpu.memory_space<vmem>>, %arg7: memref<1x128xf32, #tpu.memory_space<vmem>>, %arg8: memref<1x128x128xf32, #tpu.memory_space<vmem>>, %arg9: memref<128x128xbf16, #tpu.memory_space<vmem>>) attributes {dimension_semantics = [#tpu.dimension_semantics<parallel>, #tpu.dimension_semantics<parallel>], iteration_bounds = array<i64: 2, 2>, scalar_prefetch = 0 : i64, scratch_operands = 1 : i64, tpu.core_type = #tpu.core_type<tc>, window_params = [{transform_indices = @transform_0, window_bounds = array<i64: 1, 1, 256>}, {transform_indices = @transform_1, window_bounds = array<i64: 1, 8, 128, 16>}, {transform_indices = @transform_2, window_bounds = array<i64: 1, 8, 256, 16>}, {transform_indices = @transform_3, window_bounds = array<i64: 1, 8, 256, 16>}, {pipeline_mode = #tpu.pipeline_mode<synchronous>, transform_indices = @transform_4, window_bounds = array<i64: 128, 128>}, {pipeline_mode = #tpu.pipeline_mode<synchronous>, transform_indices = @transform_5, window_bounds = array<i64: 1, 128>}, {transform_indices = @transform_6, window_bounds = array<i64: 1, 128, 128>}]} {
    %c0 = arith.constant 0 : index
    %c0_0 = arith.constant 0 : index
    %c0_1 = arith.constant 0 : index
    %c0_2 = arith.constant 0 : index
    %0 = vector.load %arg3[%c0, %c0_0, %c0_1, %c0_2] : memref<1x8x128x16xbf16, #tpu.memory_space<vmem>>, vector<1x8x128x16xbf16>
    %1 = vector.shape_cast %0 : vector<1x8x128x16xbf16> to vector<8x128x16xbf16>
    %c0_3 = arith.constant 0 : index
    %c0_4 = arith.constant 0 : index
    %c0_5 = arith.constant 0 : index
    %c0_6 = arith.constant 0 : index
    %2 = vector.load %arg4[%c0_3, %c0_4, %c0_5, %c0_6] : memref<1x8x256x16xbf16, #tpu.memory_space<vmem>>, vector<1x8x256x16xbf16>
    %3 = vector.shape_cast %2 : vector<1x8x256x16xbf16> to vector<8x256x16xbf16>
    %c0_7 = arith.constant 0 : index
    %c0_8 = arith.constant 0 : index
    %c0_9 = arith.constant 0 : index
    %c0_10 = arith.constant 0 : index
    %4 = vector.load %arg5[%c0_7, %c0_8, %c0_9, %c0_10] : memref<1x8x256x16xbf16, #tpu.memory_space<vmem>>, vector<1x8x256x16xbf16>
    %5 = vector.shape_cast %4 : vector<1x8x256x16xbf16> to vector<8x256x16xbf16>
    %c0_11 = arith.constant 0 : index
    %c0_12 = arith.constant 0 : index
    %c0_13 = arith.constant 0 : index
    %6 = vector.load %arg2[%c0_11, %c0_12, %c0_13] : memref<1x1x256xf32, #tpu.memory_space<vmem>>, vector<1x1x256xf32>
    %7 = vector.shape_cast %6 : vector<1x1x256xf32> to vector<1x256xf32>
    "tpu.trace_start"() <{level = 10 : i32, message = "hqd,hkd->hqk"}> : () -> ()
    %cst = arith.constant dense<0.000000e+00> : vector<8x128x256xf32>
    %8 = tpu.matmul %1, %3, %cst {dimension_numbers = #tpu.dot_dimension_numbers<[2], [2], [1], [1], [0, 0, 0, 1, 1, 1], [0], [0]>} : vector<8x128x16xbf16>, vector<8x256x16xbf16>, vector<8x128x256xf32> -> vector<8x128x256xf32>
    "tpu.trace_stop"() : () -> ()
    %cst_14 = arith.constant 2.500000e-01 : f32
    %9 = vector.broadcast %cst_14 : f32 to vector<8x128x256xf32>
    %10 = arith.mulf %8, %9 : vector<8x128x256xf32>
    %11 = vector.shape_cast %7 : vector<1x256xf32> to vector<1x1x256xf32>
    %12 = vector.broadcast %11 : vector<1x1x256xf32> to vector<8x128x256xf32>
    %13 = arith.addf %10, %12 : vector<8x128x256xf32>
    %cst_15 = arith.constant dense<0xFF800000> : vector<8x128xf32>
    %14 = vector.multi_reduction <maximumf>, %13, %cst_15 [2] : vector<8x128x256xf32> to vector<8x128xf32>
    %15 = vector.shape_cast %14 : vector<8x128xf32> to vector<8x128x1xf32>
    %16 = vector.broadcast %15 : vector<8x128x1xf32> to vector<8x128x256xf32>
    %17 = arith.subf %13, %16 : vector<8x128x256xf32>
    %18 = math.exp %17 : vector<8x128x256xf32>
    %cst_16 = arith.constant dense<0.000000e+00> : vector<8x128xf32>
    %19 = vector.multi_reduction <add>, %18, %cst_16 [2] : vector<8x128x256xf32> to vector<8x128xf32>
    %20 = vector.shape_cast %19 : vector<8x128xf32> to vector<8x128x1xf32>
    %21 = tpu.reciprocal %20 {approx = true} : vector<8x128x1xf32> -> vector<8x128x1xf32>
    %22 = vector.broadcast %21 : vector<8x128x1xf32> to vector<8x128x256xf32>
    %23 = arith.mulf %18, %22 : vector<8x128x256xf32>
    %24 = arith.truncf %23 : vector<8x128x256xf32> to vector<8x128x256xbf16>
    "tpu.trace_start"() <{level = 10 : i32, message = "hqk,hkd->hqd"}> : () -> ()
    %cst_17 = arith.constant dense<0.000000e+00> : vector<8x128x16xf32>
    %25 = tpu.matmul %24, %5, %cst_17 {dimension_numbers = #tpu.dot_dimension_numbers<[2], [1], [1], [2], [0, 0, 0, 1, 1, 2], [0], [0]>} : vector<8x128x256xbf16>, vector<8x256x16xbf16>, vector<8x128x16xf32> -> vector<8x128x16xf32>
    "tpu.trace_stop"() : () -> ()
    %26 = vector.extract_strided_slice %25 {offsets = [0, 0, 0], sizes = [1, 128, 16], strides = [1, 1, 1]} : vector<8x128x16xf32> to vector<1x128x16xf32>
    %27 = vector.shape_cast %26 : vector<1x128x16xf32> to vector<128x16xf32>
    %28 = arith.truncf %27 : vector<128x16xf32> to vector<128x16xbf16>
    %c0_18 = arith.constant 0 : index
    %c0_19 = arith.constant 0 : index
    %29 = vector.load %arg9[%c0_18, %c0_19] : memref<128x128xbf16, #tpu.memory_space<vmem>>, vector<128x16xbf16>
    tpu.vector_store %arg9[%c0_18, %c0_19], %28 {strides = array<i32>} : memref<128x128xbf16, #tpu.memory_space<vmem>>, vector<128x16xbf16>,
    %30 = vector.extract_strided_slice %25 {offsets = [1, 0, 0], sizes = [1, 128, 16], strides = [1, 1, 1]} : vector<8x128x16xf32> to vector<1x128x16xf32>
    %31 = vector.shape_cast %30 : vector<1x128x16xf32> to vector<128x16xf32>
    %32 = arith.truncf %31 : vector<128x16xf32> to vector<128x16xbf16>
    %c0_20 = arith.constant 0 : index
    %c16 = arith.constant 16 : index
    %33 = vector.load %arg9[%c0_20, %c16] : memref<128x128xbf16, #tpu.memory_space<vmem>>, vector<128x16xbf16>
    tpu.vector_store %arg9[%c0_20, %c16], %32 {strides = array<i32>} : memref<128x128xbf16, #tpu.memory_space<vmem>>, vector<128x16xbf16>,
    %34 = vector.extract_strided_slice %25 {offsets = [2, 0, 0], sizes = [1, 128, 16], strides = [1, 1, 1]} : vector<8x128x16xf32> to vector<1x128x16xf32>
    %35 = vector.shape_cast %34 : vector<1x128x16xf32> to vector<128x16xf32>
    %36 = arith.truncf %35 : vector<128x16xf32> to vector<128x16xbf16>
    %c0_21 = arith.constant 0 : index
    %c32 = arith.constant 32 : index
    %37 = vector.load %arg9[%c0_21, %c32] : memref<128x128xbf16, #tpu.memory_space<vmem>>, vector<128x16xbf16>
    tpu.vector_store %arg9[%c0_21, %c32], %36 {strides = array<i32>} : memref<128x128xbf16, #tpu.memory_space<vmem>>, vector<128x16xbf16>,
    %38 = vector.extract_strided_slice %25 {offsets = [3, 0, 0], sizes = [1, 128, 16], strides = [1, 1, 1]} : vector<8x128x16xf32> to vector<1x128x16xf32>
    %39 = vector.shape_cast %38 : vector<1x128x16xf32> to vector<128x16xf32>
    %40 = arith.truncf %39 : vector<128x16xf32> to vector<128x16xbf16>
    %c0_22 = arith.constant 0 : index
    %c48 = arith.constant 48 : index
    %41 = vector.load %arg9[%c0_22, %c48] : memref<128x128xbf16, #tpu.memory_space<vmem>>, vector<128x16xbf16>
    tpu.vector_store %arg9[%c0_22, %c48], %40 {strides = array<i32>} : memref<128x128xbf16, #tpu.memory_space<vmem>>, vector<128x16xbf16>,
    %42 = vector.extract_strided_slice %25 {offsets = [4, 0, 0], sizes = [1, 128, 16], strides = [1, 1, 1]} : vector<8x128x16xf32> to vector<1x128x16xf32>
    %43 = vector.shape_cast %42 : vector<1x128x16xf32> to vector<128x16xf32>
    %44 = arith.truncf %43 : vector<128x16xf32> to vector<128x16xbf16>
    %c0_23 = arith.constant 0 : index
    %c64 = arith.constant 64 : index
    %45 = vector.load %arg9[%c0_23, %c64] : memref<128x128xbf16, #tpu.memory_space<vmem>>, vector<128x16xbf16>
    tpu.vector_store %arg9[%c0_23, %c64], %44 {strides = array<i32>} : memref<128x128xbf16, #tpu.memory_space<vmem>>, vector<128x16xbf16>,
    %46 = vector.extract_strided_slice %25 {offsets = [5, 0, 0], sizes = [1, 128, 16], strides = [1, 1, 1]} : vector<8x128x16xf32> to vector<1x128x16xf32>
    %47 = vector.shape_cast %46 : vector<1x128x16xf32> to vector<128x16xf32>
    %48 = arith.truncf %47 : vector<128x16xf32> to vector<128x16xbf16>
    %c0_24 = arith.constant 0 : index
    %c80 = arith.constant 80 : index
    %49 = vector.load %arg9[%c0_24, %c80] : memref<128x128xbf16, #tpu.memory_space<vmem>>, vector<128x16xbf16>
    tpu.vector_store %arg9[%c0_24, %c80], %48 {strides = array<i32>} : memref<128x128xbf16, #tpu.memory_space<vmem>>, vector<128x16xbf16>,
    %50 = vector.extract_strided_slice %25 {offsets = [6, 0, 0], sizes = [1, 128, 16], strides = [1, 1, 1]} : vector<8x128x16xf32> to vector<1x128x16xf32>
    %51 = vector.shape_cast %50 : vector<1x128x16xf32> to vector<128x16xf32>
    %52 = arith.truncf %51 : vector<128x16xf32> to vector<128x16xbf16>
    %c0_25 = arith.constant 0 : index
    %c96 = arith.constant 96 : index
    %53 = vector.load %arg9[%c0_25, %c96] : memref<128x128xbf16, #tpu.memory_space<vmem>>, vector<128x16xbf16>
    tpu.vector_store %arg9[%c0_25, %c96], %52 {strides = array<i32>} : memref<128x128xbf16, #tpu.memory_space<vmem>>, vector<128x16xbf16>,
    %54 = vector.extract_strided_slice %25 {offsets = [7, 0, 0], sizes = [1, 128, 16], strides = [1, 1, 1]} : vector<8x128x16xf32> to vector<1x128x16xf32>
    %55 = vector.shape_cast %54 : vector<1x128x16xf32> to vector<128x16xf32>
    %56 = arith.truncf %55 : vector<128x16xf32> to vector<128x16xbf16>
    %c0_26 = arith.constant 0 : index
    %c112 = arith.constant 112 : index
    %57 = vector.load %arg9[%c0_26, %c112] : memref<128x128xbf16, #tpu.memory_space<vmem>>, vector<128x16xbf16>
    tpu.vector_store %arg9[%c0_26, %c112], %56 {strides = array<i32>} : memref<128x128xbf16, #tpu.memory_space<vmem>>, vector<128x16xbf16>,
    %c0_27 = arith.constant 0 : index
    %c0_28 = arith.constant 0 : index
    %58 = vector.load %arg9[%c0_27, %c0_28] : memref<128x128xbf16, #tpu.memory_space<vmem>>, vector<128x128xbf16>
    %c0_29 = arith.constant 0 : index
    %c0_30 = arith.constant 0 : index
    %59 = vector.load %arg6[%c0_29, %c0_30] : memref<128x128xbf16, #tpu.memory_space<vmem>>, vector<128x128xbf16>
    %cst_31 = arith.constant dense<0.000000e+00> : vector<128x128xf32>
    %60 = tpu.matmul %58, %59, %cst_31 {dimension_numbers = #tpu.dot_dimension_numbers<[1], [0], [0], [1], [0, 0, 1, 1], [], []>} : vector<128x128xbf16>, vector<128x128xbf16>, vector<128x128xf32> -> vector<128x128xf32>
    %c0_32 = arith.constant 0 : index
    %c0_33 = arith.constant 0 : index
    %61 = vector.load %arg7[%c0_32, %c0_33] : memref<1x128xf32, #tpu.memory_space<vmem>>, vector<1x128xf32>
    %62 = vector.broadcast %61 : vector<1x128xf32> to vector<128x128xf32>
    %63 = arith.addf %60, %62 : vector<128x128xf32>
    %c0_34 = arith.constant 0 : index
    %c0_35 = arith.constant 0 : index
    %c0_36 = arith.constant 0 : index
    %64 = vector.load %arg8[%c0_34, %c0_35, %c0_36] : memref<1x128x128xf32, #tpu.memory_space<vmem>>, vector<1x128x128xf32>
    %65 = vector.shape_cast %64 : vector<1x128x128xf32> to vector<128x128xf32>
    %66 = vector.shape_cast %63 : vector<128x128xf32> to vector<1x128x128xf32>
    tpu.vector_store %arg8[%c0_34, %c0_35, %c0_36], %66 {strides = array<i32>} : memref<1x128x128xf32, #tpu.memory_space<vmem>>, vector<1x128x128xf32>,
    return
  }
  func.func @transform_0(%arg0: i32, %arg1: i32) -> (i32, i32, i32) {
    %c0_i32 = arith.constant 0 : i32
    %c0_i32_0 = arith.constant 0 : i32
    %c0_i32_1 = arith.constant 0 : i32
    return %arg0, %c0_i32, %c0_i32_0 : i32, i32, i32
  }
  func.func @transform_1(%arg0: i32, %arg1: i32) -> (i32, i32, i32, i32) {
    %c0_i32 = arith.constant 0 : i32
    %c0_i32_0 = arith.constant 0 : i32
    %c0_i32_1 = arith.constant 0 : i32
    return %arg0, %c0_i32, %arg1, %c0_i32_0 : i32, i32, i32, i32
  }
  func.func @transform_2(%arg0: i32, %arg1: i32) -> (i32, i32, i32, i32) {
    %c0_i32 = arith.constant 0 : i32
    %c0_i32_0 = arith.constant 0 : i32
    %c0_i32_1 = arith.constant 0 : i32
    %c0_i32_2 = arith.constant 0 : i32
    return %arg0, %c0_i32, %c0_i32_0, %c0_i32_1 : i32, i32, i32, i32
  }
  func.func @transform_3(%arg0: i32, %arg1: i32) -> (i32, i32, i32, i32) {
    %c0_i32 = arith.constant 0 : i32
    %c0_i32_0 = arith.constant 0 : i32
    %c0_i32_1 = arith.constant 0 : i32
    %c0_i32_2 = arith.constant 0 : i32
    return %arg0, %c0_i32, %c0_i32_0, %c0_i32_1 : i32, i32, i32, i32
  }
  func.func @transform_4(%arg0: i32, %arg1: i32) -> (i32, i32) {
    %c0_i32 = arith.constant 0 : i32
    %c0_i32_0 = arith.constant 0 : i32
    %c0_i32_1 = arith.constant 0 : i32
    return %c0_i32, %c0_i32_0 : i32, i32
  }
  func.func @transform_5(%arg0: i32, %arg1: i32) -> (i32, i32) {
    %c0_i32 = arith.constant 0 : i32
    %c0_i32_0 = arith.constant 0 : i32
    %c0_i32_1 = arith.constant 0 : i32
    return %c0_i32, %c0_i32_0 : i32, i32
  }
  func.func @transform_6(%arg0: i32, %arg1: i32) -> (i32, i32, i32) {
    %c0_i32 = arith.constant 0 : i32
    %c0_i32_0 = arith.constant 0 : i32
    return %arg0, %arg1, %c0_i32 : i32, i32, i32
  }
}

</mosaic_0001>

<bundles_post_ra>
// kernel: tpu_custom_call.1
= control target key start
LH: loop header
LB: loop body
LE: loop exit
PB: predicated region body
PF: predicated region fallthrough
CT: control target
= control target key end

     0   :  { %11 = vsyncpa [#allocation5], 0  ;;  %s15467_s0 = inlined_call_operand.vmem [shape: f32[2,1,256], index: 0, kind: input, shape index: {}]   ;;  %s15468_s1 = inlined_call_operand.vmem [shape: bf16[2,8,256,16], index: 1, kind: input, shape index: {}]   ;;  %s15469_s2 = inlined_call_operand.vmem [shape: bf16[2,8,256,16], index: 2, kind: input, shape index: {}]   ;;  %s15470_s3 = inlined_call_operand.vmem [shape: bf16[2,8,256,16], index: 3, kind: input, shape index: {}]   ;;  %s15471_s4 = inlined_call_operand.vmem [shape: bf16[128,128], index: 4, kind: input, shape index: {}]   ;;  %s15472_s5 = inlined_call_operand.vmem [shape: f32[1,128], index: 5, kind: input, shape index: {}]   ;;  %s15473_s6 = inlined_call_operand.hbm [shape: f32[2,256,128], index: 6, kind: output, shape index: {}]  }
   0x1   :  { %13 = vsyncpa [#allocation5 + $0x1], 0  ;;  %s11393_s21 = smov 0   ;;  %s11395_s22 = smov 0  }
   0x2   :  { %s11397_s23 = smov 0   ;;  %s11399_s24 = smov 0  }
   0x3   :  { %s11401_s25 = smov 0   ;;  %s11403_s26 = smov 0  }
   0x4   :  { %s11405_s27 = smov 0   ;;  %s11407_s28 = smov 0  }
   0x5 LB: > { %s8763_s29 = sadd.s32 4294967295, %s11346_s28   ;;  %s8764_s30 = sadd.s32 4294967294, %s11346_s28   ;;  %s11346_s28 = sphi %s11407_s28, %s19_s28   ;;  %s11342_s27 = sphi %s11405_s27, %s16987_s27   ;;  %s11338_s26 = sphi %s11403_s26, %s16986_s26   ;;  %s11334_s25 = sphi %s11401_s25, %s16985_s25   ;;  %s11330_s24 = sphi %s11399_s24, %s16984_s24   ;;  %s11326_s23 = sphi %s11397_s23, %s16983_s23   ;;  %s11322_s22 = sphi %s11395_s22, %s16982_s22   ;;  %s11318_s21 = sphi %s11393_s21, %s16981_s21  }
   0x6   : > { %s28_s7 = sadd.s32 1, %s11338_s26  ;;  %s31_s8 = sadd.s32 1, %s11342_s27 }
   0x7   : > { %p29_p0 = scmp.ge.s32.totalorder %s28_s7, 2  ;;  %p73_p1 = scmp.ne.s32.totalorder %s11326_s23, %s11322_s22 }
   0x8   : > { %p74_p2 = scmp.eq.s32.totalorder %s11346_s28, 0  ;;  %p199_p5 = scmp.eq.s32.totalorder %s8763_s29, 3 }
   0x9   : > { %s16989_s7 = smov (%p29_p0, %s28_s7), 0  ;;  %s16991_s8 = smov (!%p29_p0, %s31_s8), %s11342_s27 }
   0xa   : > { %s62_s9 = ssub.s32 %s11338_s26, %s16989_s7  ;;  %p11445_p3 = por %p74_p2, %p73_p1 }
   0xb   : > { %p33_p4 = scmp.ge.s32.totalorder %s16991_s8, 2  ;;  %p204_p6 = scmp.ne.s32.totalorder %s11322_s22, %s11318_s21 }
   0xc   : > { %p205_p7 = scmp.eq.s32.totalorder %s8764_s30, 3  ;;  %p11453_p8 = por %p199_p5, %p73_p1 }
   0xd   : > { %s16993_s8 = smov (%p33_p4, %s16991_s8), 0  ;;  %s66_s15 = sadd.s32 1, %s11326_s23 }
   0xe   : > { %p11457_p9 = por %p205_p7, %p204_p6  ;;  %s61_s13 = ssub.s32 %s11342_s27, %s16993_s8 }
   0xf   : > { %s63_s14 = sor.u32 %s62_s9, %s61_s13  ;;  %p8766_p11 = scmp.ge.s32.totalorder %s11346_s28, 4 }
  0x10   : > { %p64_p10 = scmp.eq.s32.totalorder %s63_s14, 0 }
  0x11   : > { %227 = sbr.rel (%p8766_p11) target bundleno = 63 (0x3f), region = 24 }
  0x12   : > { %s11465_s16 = scalar_select %p64_p10, %s11326_s23, %s66_s15  }
  0x18   : > { %237 = sbr.rel (!%p11445_p3) target bundleno = 63 (0x3f), region = 32  ;;  %s239_s17 = sand.u32 (%p11445_p3), 1, %s11326_s23  }
  0x19   : > { %s8768_s18 = sshll.u32 (%p11445_p3), %s11338_s26, 4  ;;  %s8767_s19 = sshll.u32 (%p11445_p3), %s239_s17, 9 }
  0x1a   : > { %s8769_s20 = sshll.u32 (%p11445_p3), %s11342_s27, 8  ;;  %s11481_s10 = scalar_lea.vmem (%p11445_p3), [#allocation3], %s8767_s19 }
  0x1b   : > { %s244_s29 = sadd.s32 (%p11445_p3), %s8769_s20, %s8768_s18 }
  0x1c   : > { %s8770_s30 = sshll.u32 (%p11445_p3), %s244_s29, 2 }
  0x1d   : > { %s11476_s14 = scalar_lea.vmem (%p11445_p3), %s15468_s1, %s8770_s30 }
  0x1e   : > { %v262_v0 = vld [vmem:[%s11476_s14] sm:$0xff] (%p11445_p3)   ;;  %v266_v1 = vld [vmem:[%s11476_s14 + $0x8] sm:$0xff] (%p11445_p3)   ;;  %v270_v2 = vld [vmem:[%s11476_s14 + $0x10] sm:$0xff] (%p11445_p3)  }
  0x1f   : > { %263 = vst [vmem:[%s11481_s10] sm:$0xff] %v262_v0   ;;  %267 = vst [vmem:[%s11481_s10 + $0x8] sm:$0xff] %v266_v1   ;;  %v274_v3 = vld [vmem:[%s11476_s14 + $0x18] sm:$0xff]   ;;  %v278_v4 = vld [vmem:[%s11476_s14 + $0x20] sm:$0xff]  }
  0x20   : > { %271 = vst [vmem:[%s11481_s10 + $0x10] sm:$0xff] %v270_v2   ;;  %v282_v5 = vld [vmem:[%s11476_s14 + $0x28] sm:$0xff]   ;;  %275 = vst [vmem:[%s11481_s10 + $0x18] sm:$0xff] %v274_v3   ;;  %v286_v6 = vld [vmem:[%s11476_s14 + $0x30] sm:$0xff]  }
  0x21   : > { %279 = vst [vmem:[%s11481_s10 + $0x20] sm:$0xff] %v278_v4   ;;  %283 = vst [vmem:[%s11481_s10 + $0x28] sm:$0xff] %v282_v5   ;;  %v290_v7 = vld [vmem:[%s11476_s14 + $0x38] sm:$0xff]   ;;  %v294_v8 = vld [vmem:[%s11476_s14 + $0x80] sm:$0xff]  }
  0x22   : > { %287 = vst [vmem:[%s11481_s10 + $0x30] sm:$0xff] %v286_v6   ;;  %291 = vst [vmem:[%s11481_s10 + $0x38] sm:$0xff] %v290_v7   ;;  %v298_v9 = vld [vmem:[%s11476_s14 + $0x88] sm:$0xff]   ;;  %v302_v10 = vld [vmem:[%s11476_s14 + $0x90] sm:$0xff]  }
  0x23   : > { %295 = vst [vmem:[%s11481_s10 + $0x40] sm:$0xff] %v294_v8   ;;  %v306_v11 = vld [vmem:[%s11476_s14 + $0x98] sm:$0xff]   ;;  %299 = vst [vmem:[%s11481_s10 + $0x48] sm:$0xff] %v298_v9   ;;  %v310_v12 = vld [vmem:[%s11476_s14 + $0xa0] sm:$0xff]  }
  0x24   : > { %303 = vst [vmem:[%s11481_s10 + $0x50] sm:$0xff] %v302_v10   ;;  %307 = vst [vmem:[%s11481_s10 + $0x58] sm:$0xff] %v306_v11   ;;  %v314_v13 = vld [vmem:[%s11476_s14 + $0xa8] sm:$0xff]   ;;  %v318_v14 = vld [vmem:[%s11476_s14 + $0xb0] sm:$0xff]  }
  0x25   : > { %311 = vst [vmem:[%s11481_s10 + $0x60] sm:$0xff] %v310_v12   ;;  %315 = vst [vmem:[%s11481_s10 + $0x68] sm:$0xff] %v314_v13   ;;  %v322_v15 = vld [vmem:[%s11476_s14 + $0xb8] sm:$0xff]   ;;  %v326_v16 = vld [vmem:[%s11476_s14 + $0x100] sm:$0xff]  }
  0x26   : > { %319 = vst [vmem:[%s11481_s10 + $0x70] sm:$0xff] %v318_v14   ;;  %v330_v17 = vld [vmem:[%s11476_s14 + $0x108] sm:$0xff]   ;;  %323 = vst [vmem:[%s11481_s10 + $0x78] sm:$0xff] %v322_v15   ;;  %v334_v18 = vld [vmem:[%s11476_s14 + $0x110] sm:$0xff]  }
  0x27   : > { %327 = vst [vmem:[%s11481_s10 + $0x80] sm:$0xff] %v326_v16   ;;  %331 = vst [vmem:[%s11481_s10 + $0x88] sm:$0xff] %v330_v17   ;;  %v338_v19 = vld [vmem:[%s11476_s14 + $0x118] sm:$0xff]   ;;  %v342_v20 = vld [vmem:[%s11476_s14 + $0x120] sm:$0xff]  }
  0x28   : > { %335 = vst [vmem:[%s11481_s10 + $0x90] sm:$0xff] %v334_v18   ;;  %339 = vst [vmem:[%s11481_s10 + $0x98] sm:$0xff] %v338_v19   ;;  %v346_v21 = vld [vmem:[%s11476_s14 + $0x128] sm:$0xff]   ;;  %v350_v22 = vld [vmem:[%s11476_s14 + $0x130] sm:$0xff]  }
  0x29   : > { %343 = vst [vmem:[%s11481_s10 + $0xa0] sm:$0xff] %v342_v20   ;;  %v354_v23 = vld [vmem:[%s11476_s14 + $0x138] sm:$0xff]   ;;  %347 = vst [vmem:[%s11481_s10 + $0xa8] sm:$0xff] %v346_v21   ;;  %v358_v24 = vld [vmem:[%s11476_s14 + $0x180] sm:$0xff]  }
  0x2a   : > { %351 = vst [vmem:[%s11481_s10 + $0xb0] sm:$0xff] %v350_v22   ;;  %355 = vst [vmem:[%s11481_s10 + $0xb8] sm:$0xff] %v354_v23   ;;  %v362_v25 = vld [vmem:[%s11476_s14 + $0x188] sm:$0xff]   ;;  %v366_v26 = vld [vmem:[%s11476_s14 + $0x190] sm:$0xff]  }
  0x2b   : > { %359 = vst [vmem:[%s11481_s10 + $0xc0] sm:$0xff] %v358_v24   ;;  %363 = vst [vmem:[%s11481_s10 + $0xc8] sm:$0xff] %v362_v25   ;;  %v370_v27 = vld [vmem:[%s11476_s14 + $0x198] sm:$0xff]   ;;  %v374_v28 = vld [vmem:[%s11476_s14 + $0x1a0] sm:$0xff]  }
  0x2c   : > { %367 = vst [vmem:[%s11481_s10 + $0xd0] sm:$0xff] %v366_v26   ;;  %v378_v29 = vld [vmem:[%s11476_s14 + $0x1a8] sm:$0xff]   ;;  %371 = vst [vmem:[%s11481_s10 + $0xd8] sm:$0xff] %v370_v27   ;;  %v382_v30 = vld [vmem:[%s11476_s14 + $0x1b0] sm:$0xff]  }
  0x2d   : > { %375 = vst [vmem:[%s11481_s10 + $0xe0] sm:$0xff] %v374_v28   ;;  %379 = vst [vmem:[%s11481_s10 + $0xe8] sm:$0xff] %v378_v29   ;;  %v386_v31 = vld [vmem:[%s11476_s14 + $0x1b8] sm:$0xff]   ;;  %v390_v32 = vld [vmem:[%s11476_s14 + $0x200] sm:$0xff]  }
  0x2e   : > { %383 = vst [vmem:[%s11481_s10 + $0xf0] sm:$0xff] %v382_v30   ;;  %387 = vst [vmem:[%s11481_s10 + $0xf8] sm:$0xff] %v386_v31   ;;  %v394_v33 = vld [vmem:[%s11476_s14 + $0x208] sm:$0xff]   ;;  %v398_v34 = vld [vmem:[%s11476_s14 + $0x210] sm:$0xff]  }
  0x2f   : > { %391 = vst [vmem:[%s11481_s10 + $0x100] sm:$0xff] %v390_v32   ;;  %v402_v35 = vld [vmem:[%s11476_s14 + $0x218] sm:$0xff]   ;;  %395 = vst [vmem:[%s11481_s10 + $0x108] sm:$0xff] %v394_v33   ;;  %v406_v36 = vld [vmem:[%s11476_s14 + $0x220] sm:$0xff]  }
  0x30   : > { %399 = vst [vmem:[%s11481_s10 + $0x110] sm:$0xff] %v398_v34   ;;  %403 = vst [vmem:[%s11481_s10 + $0x118] sm:$0xff] %v402_v35   ;;  %v410_v37 = vld [vmem:[%s11476_s14 + $0x228] sm:$0xff]   ;;  %v414_v38 = vld [vmem:[%s11476_s14 + $0x230] sm:$0xff]  }
  0x31   : > { %407 = vst [vmem:[%s11481_s10 + $0x120] sm:$0xff] %v406_v36   ;;  %411 = vst [vmem:[%s11481_s10 + $0x128] sm:$0xff] %v410_v37   ;;  %v418_v39 = vld [vmem:[%s11476_s14 + $0x238] sm:$0xff]   ;;  %v422_v40 = vld [vmem:[%s11476_s14 + $0x280] sm:$0xff]  }
  0x32   : > { %415 = vst [vmem:[%s11481_s10 + $0x130] sm:$0xff] %v414_v38   ;;  %v426_v41 = vld [vmem:[%s11476_s14 + $0x288] sm:$0xff]   ;;  %419 = vst [vmem:[%s11481_s10 + $0x138] sm:$0xff] %v418_v39   ;;  %v430_v42 = vld [vmem:[%s11476_s14 + $0x290] sm:$0xff]  }
  0x33   : > { %423 = vst [vmem:[%s11481_s10 + $0x140] sm:$0xff] %v422_v40   ;;  %427 = vst [vmem:[%s11481_s10 + $0x148] sm:$0xff] %v426_v41   ;;  %v434_v43 = vld [vmem:[%s11476_s14 + $0x298] sm:$0xff]   ;;  %v438_v44 = vld [vmem:[%s11476_s14 + $0x2a0] sm:$0xff]  }
  0x34   : > { %431 = vst [vmem:[%s11481_s10 + $0x150] sm:$0xff] %v430_v42   ;;  %435 = vst [vmem:[%s11481_s10 + $0x158] sm:$0xff] %v434_v43   ;;  %v442_v45 = vld [vmem:[%s11476_s14 + $0x2a8] sm:$0xff]   ;;  %v446_v46 = vld [vmem:[%s11476_s14 + $0x2b0] sm:$0xff]  }
  0x35   : > { %439 = vst [vmem:[%s11481_s10 + $0x160] sm:$0xff] %v438_v44   ;;  %v450_v47 = vld [vmem:[%s11476_s14 + $0x2b8] sm:$0xff]   ;;  %443 = vst [vmem:[%s11481_s10 + $0x168] sm:$0xff] %v442_v45   ;;  %v454_v48 = vld [vmem:[%s11476_s14 + $0x300] sm:$0xff]  }
  0x36   : > { %447 = vst [vmem:[%s11481_s10 + $0x170] sm:$0xff] %v446_v46   ;;  %451 = vst [vmem:[%s11481_s10 + $0x178] sm:$0xff] %v450_v47   ;;  %v458_v49 = vld [vmem:[%s11476_s14 + $0x308] sm:$0xff]   ;;  %v462_v50 = vld [vmem:[%s11476_s14 + $0x310] sm:$0xff]  }
  0x37   : > { %455 = vst [vmem:[%s11481_s10 + $0x180] sm:$0xff] %v454_v48   ;;  %459 = vst [vmem:[%s11481_s10 + $0x188] sm:$0xff] %v458_v49   ;;  %v466_v51 = vld [vmem:[%s11476_s14 + $0x318] sm:$0xff]   ;;  %v470_v52 = vld [vmem:[%s11476_s14 + $0x320] sm:$0xff]  }
  0x38   : > { %463 = vst [vmem:[%s11481_s10 + $0x190] sm:$0xff] %v462_v50   ;;  %v474_v53 = vld [vmem:[%s11476_s14 + $0x328] sm:$0xff]   ;;  %467 = vst [vmem:[%s11481_s10 + $0x198] sm:$0xff] %v466_v51   ;;  %v478_v54 = vld [vmem:[%s11476_s14 + $0x330] sm:$0xff]  }
  0x39   : > { %471 = vst [vmem:[%s11481_s10 + $0x1a0] sm:$0xff] %v470_v52   ;;  %475 = vst [vmem:[%s11481_s10 + $0x1a8] sm:$0xff] %v474_v53   ;;  %v482_v55 = vld [vmem:[%s11476_s14 + $0x338] sm:$0xff]   ;;  %v486_v56 = vld [vmem:[%s11476_s14 + $0x380] sm:$0xff]  }
  0x3a   : > { %479 = vst [vmem:[%s11481_s10 + $0x1b0] sm:$0xff] %v478_v54   ;;  %483 = vst [vmem:[%s11481_s10 + $0x1b8] sm:$0xff] %v482_v55   ;;  %v490_v57 = vld [vmem:[%s11476_s14 + $0x388] sm:$0xff]   ;;  %v494_v58 = vld [vmem:[%s11476_s14 + $0x390] sm:$0xff]  }
  0x3b   : > { %487 = vst [vmem:[%s11481_s10 + $0x1c0] sm:$0xff] %v486_v56   ;;  %v498_v59 = vld [vmem:[%s11476_s14 + $0x398] sm:$0xff]   ;;  %491 = vst [vmem:[%s11481_s10 + $0x1c8] sm:$0xff] %v490_v57   ;;  %v502_v60 = vld [vmem:[%s11476_s14 + $0x3a0] sm:$0xff]  }
  0x3c   : > { %495 = vst [vmem:[%s11481_s10 + $0x1d0] sm:$0xff] %v494_v58   ;;  %499 = vst [vmem:[%s11481_s10 + $0x1d8] sm:$0xff] %v498_v59   ;;  %v506_v61 = vld [vmem:[%s11476_s14 + $0x3a8] sm:$0xff]   ;;  %v510_v62 = vld [vmem:[%s11476_s14 + $0x3b0] sm:$0xff]  }
  0x3d   : > { %503 = vst [vmem:[%s11481_s10 + $0x1e0] sm:$0xff] %v502_v60   ;;  %507 = vst [vmem:[%s11481_s10 + $0x1e8] sm:$0xff] %v506_v61   ;;  %v514_v63 = vld [vmem:[%s11476_s14 + $0x3b8] sm:$0xff]  }
  0x3e   : > { %511 = vst [vmem:[%s11481_s10 + $0x1f0] sm:$0xff] %v510_v62   ;;  %515 = vst [vmem:[%s11481_s10 + $0x1f8] sm:$0xff] %v514_v63  }
  0x3f PF: > { %p8771_p12 = scmp.ge.s32.totalorder %s11346_s28, 1  ;;  %p811_p13 = scmp.lt.s32.totalorder %s11346_s28, 5 }
  0x41   : > { %p812_p0 = pnand %p8771_p12, %p811_p13 }
  0x43   : > { %815 = sbr.rel (%p812_p0) target bundleno = 1645 (0x66d), region = 81 }
  0x4a   : > { %p861_p1 = scmp.lt.s32.totalorder %s11334_s25, 1  ;;  %s11612_s15 = sand.u32 1, %s11322_s22   ;;  %vm1639_vm0 = vcmask 130048   ;;  %vm8131_vm1 = vcmask 261248   ;;  %vm8180_vm2 = vcmask 392448   ;;  %vm8229_vm3 = vcmask 523648  }
  0x4b   : > { %s8772_s17 = sshll.u32 %s11612_s15, 9  ;;  %s11351_s13 = smov 64   ;;  %vm8278_vm4 = vcmask 654848   ;;  %vm8327_vm5 = vcmask 786048   ;;  %vm8376_vm6 = vcmask 917248   ;;  %vm8425_vm7 = vcmask 1048448  }
  0x4c   : > { %s11616_s18 = scalar_select %p861_p1, %s11334_s25, 1 }
  0x4d   : > { %s11619_s20 = scalar_lea.vmem [#allocation3], %s8772_s17  ;;  %s11352_s14 = smov 80  }
  0x4e   : > { %s9178_s19 = sshll.u32 %s11616_s18, 10  ;;  %v11622_v0 = vld [vmem:[%s11619_s20] sm:$0xff]   ;;  %v10194_v54 = vld [vmem:[%s11619_s20 + $0x8] sm:$0xff]   ;;  %v10200_v62 = vld [vmem:[%s11619_s20 + $0x10] sm:$0xff]   ;;  %s8774_s17 = sshll.u32 %s11616_s18, 1 }
  0x4f   : > { %s11629_s9 = scalar_lea.vmem %s15469_s2, %s9178_s19  ;;  %v11632_v1 = vld [vmem:[%s11619_s20 + $0x40] sm:$0xff]   ;;  %9196 = vmatprep.mubr.msk.bf16.mxu0 %vm1639_vm0, %v11622_v0  ;;  %v10196_v58 = vld [vmem:[%s11619_s20 + $0x48] sm:$0xff]   ;;  %s11938_s10 = scalar_lea.vmem %s15470_s3, %s9178_s19 }
  0x50   : > { %v10156_v2 = vld [vmem:[%s11629_s9 + $0x40] sm:$0xff]   ;;  %9228 = vmatprep.mubr.msk.bf16.mxu1 %vm1639_vm0, %v11632_v1  ;;  %v10160_v7 = vld [vmem:[%s11629_s9 + $0x48] sm:$0xff]   ;;  %v10164_v13 = vld [vmem:[%s11629_s9 + $0x50] sm:$0xff]   ;;  %s864_s30 = scalar_lea.vmem %s15467_s0, %s8774_s17  ;;  %s11348_s18 = smov 16  }
  0x51   : > { %v10157_v3 = vld [vmem:[%s11629_s9 + $0xc0] sm:$0xff]   ;;  %10012 = vmatprep.subr.msk.bf16.mxu0 %vm1639_vm0, %v10156_v2  ;;  %v10161_v9 = vld [vmem:[%s11629_s9 + $0xc8] sm:$0xff]   ;;  %v10165_v15 = vld [vmem:[%s11629_s9 + $0xd0] sm:$0xff]   ;;  %s11355_s19 = smov [#allocation4]  }
  0x52   : > { %v10158_v4 = vld [vmem:[%s11629_s9] sm:$0xff]   ;;  %10020 = vmatprep.subr.msk.bf16.mxu1 %vm1639_vm0, %v10157_v3  ;;  %v10162_v10 = vld [vmem:[%s11629_s9 + $0x8] sm:$0xff]   ;;  %v10166_v16 = vld [vmem:[%s11629_s9 + $0x10] sm:$0xff]  }
  0x53   : > { %v10159_v5 = vld [vmem:[%s11629_s9 + $0x80] sm:$0xff]   ;;  %v1665_v6 = vsel %vm1639_vm0, %v10158_v4, 0  ;;  %v10163_v11 = vld [vmem:[%s11629_s9 + $0x88] sm:$0xff]   ;;  %v1668_v12 = vsel %vm1639_vm0, %v10162_v10, 0  ;;  %v10167_v17 = vld [vmem:[%s11629_s9 + $0x90] sm:$0xff]   ;;  %v1671_v18 = vsel %vm1639_vm0, %v10166_v16, 0 }
  0x54   : > { %9181 = vmatpush3.bf16.xpose.msra.mxu0 %v1665_v6  ;;  %v1970_v8 = vsel %vm1639_vm0, %v10159_v5, 0  ;;  %v1973_v14 = vsel %vm1639_vm0, %v10163_v11, 0  ;;  %v10168_v19 = vld [vmem:[%s11629_s9 + $0x58] sm:$0xff]   ;;  %v1976_v20 = vsel %vm1639_vm0, %v10167_v17, 0  ;;  %v10172_v25 = vld [vmem:[%s11629_s9 + $0x60] sm:$0xff]   ;;  %v10176_v31 = vld [vmem:[%s11629_s9 + $0x68] sm:$0xff]  }
  0x55   : > { %9213 = vmatpush3.bf16.xpose.msra.mxu1 %v1970_v8  ;;  %10013 = vmatprep.subr.msk.bf16.mxu0 %vm1639_vm0, %v10160_v7  ;;  %v10169_v21 = vld [vmem:[%s11629_s9 + $0xd8] sm:$0xff]   ;;  %v10173_v27 = vld [vmem:[%s11629_s9 + $0xe0] sm:$0xff]   ;;  %v10177_v33 = vld [vmem:[%s11629_s9 + $0xe8] sm:$0xff]  }
  0x56   : > { %10021 = vmatprep.subr.msk.bf16.mxu1 %vm1639_vm0, %v10161_v9  ;;  %v10170_v22 = vld [vmem:[%s11629_s9 + $0x18] sm:$0xff]   ;;  %v10174_v28 = vld [vmem:[%s11629_s9 + $0x20] sm:$0xff]   ;;  %v10178_v34 = vld [vmem:[%s11629_s9 + $0x28] sm:$0xff]  }
  0x57   : > { %v10171_v23 = vld [vmem:[%s11629_s9 + $0x98] sm:$0xff]   ;;  %v1674_v24 = vsel %vm1639_vm0, %v10170_v22, 0  ;;  %v10175_v29 = vld [vmem:[%s11629_s9 + $0xa0] sm:$0xff]   ;;  %v1677_v30 = vsel %vm1639_vm0, %v10174_v28, 0  ;;  %v10179_v35 = vld [vmem:[%s11629_s9 + $0xa8] sm:$0xff]   ;;  %v1680_v36 = vsel %vm1639_vm0, %v10178_v34, 0 }
  0x58   : > { %v1979_v26 = vsel %vm1639_vm0, %v10171_v23, 0  ;;  %v1982_v32 = vsel %vm1639_vm0, %v10175_v29, 0  ;;  %v10180_v37 = vld [vmem:[%s11629_s9 + $0x70] sm:$0xff]   ;;  %v1985_v38 = vsel %vm1639_vm0, %v10179_v35, 0  ;;  %v10184_v43 = vld [vmem:[%s11629_s9 + $0x78] sm:$0xff]   ;;  %v10190_v49 = vld [vmem:[%s11629_s9 + $0x140] sm:$0xff]  }
  0x59   : > { %v10181_v39 = vld [vmem:[%s11629_s9 + $0xf0] sm:$0xff]   ;;  %v10185_v45 = vld [vmem:[%s11629_s9 + $0xf8] sm:$0xff]   ;;  %v10192_v51 = vld [vmem:[%s11629_s9 + $0x1c0] sm:$0xff]  }
  0x5a   : > { %v10182_v40 = vld [vmem:[%s11629_s9 + $0x30] sm:$0xff]   ;;  %v10186_v46 = vld [vmem:[%s11629_s9 + $0x38] sm:$0xff]   ;;  %v10191_v52 = vld [vmem:[%s11629_s9 + $0x100] sm:$0xff]  }
  0x5b   : > { %v10183_v41 = vld [vmem:[%s11629_s9 + $0xb0] sm:$0xff]   ;;  %v1683_v42 = vsel %vm1639_vm0, %v10182_v40, 0  ;;  %v10187_v47 = vld [vmem:[%s11629_s9 + $0xb8] sm:$0xff]   ;;  %v1686_v48 = vsel %vm1639_vm0, %v10186_v46, 0  ;;  %v10193_v53 = vld [vmem:[%s11629_s9 + $0x180] sm:$0xff]   ;;  %v2275_v55 = vsel %vm1639_vm0, %v10191_v52, 0 }
  0x5c   : > { %9183 = vmatpush3.bf16.xpose.msra.mxu0 %v1668_v12  ;;  %v1988_v44 = vsel %vm1639_vm0, %v10183_v41, 0  ;;  %v1991_v50 = vsel %vm1639_vm0, %v10187_v47, 0  ;;  %v10195_v56 = vld [vmem:[%s11629_s9 + $0x148] sm:$0xff]   ;;  %v2580_v57 = vsel %vm1639_vm0, %v10193_v53, 0  ;;  %v10202_v2 = vld [vmem:[%s11619_s20 + $0x50] sm:$0xff]   ;;  %v10206_v6 = vld [vmem:[%s11619_s20 + $0x18] sm:$0xff]  }
  0x5d   : > { %9215 = vmatpush3.bf16.xpose.msra.mxu1 %v1973_v14  ;;  %10014 = vmatprep.subr.msk.bf16.mxu0 %vm1639_vm0, %v10164_v13  ;;  %v10198_v59 = vld [vmem:[%s11629_s9 + $0x1c8] sm:$0xff]   ;;  %v10204_v3 = vld [vmem:[%s11629_s9 + $0x1d0] sm:$0xff]   ;;  %v10207_v8 = vld [vmem:[%s11629_s9 + $0x158] sm:$0xff]  }
  0x5e   : > { %10022 = vmatprep.subr.msk.bf16.mxu1 %vm1639_vm0, %v10165_v15  ;;  %v10197_v60 = vld [vmem:[%s11629_s9 + $0x108] sm:$0xff]   ;;  %v10203_v4 = vld [vmem:[%s11629_s9 + $0x110] sm:$0xff]   ;;  %v10208_v10 = vld [vmem:[%s11619_s20 + $0x58] sm:$0xff]  }
  0x5f   : > { %v10199_v61 = vld [vmem:[%s11629_s9 + $0x188] sm:$0xff]   ;;  %v2278_v63 = vsel %vm1639_vm0, %v10197_v60, 0  ;;  %v10205_v5 = vld [vmem:[%s11629_s9 + $0x190] sm:$0xff]   ;;  %v2281_v7 = vsel %vm1639_vm0, %v10203_v4, 0  ;;  %v10210_v11 = vld [vmem:[%s11629_s9 + $0x1d8] sm:$0xff]  }
  0x60   : > { %v2586_v9 = vsel %vm1639_vm0, %v10205_v5, 0  ;;  %v10209_v12 = vld [vmem:[%s11629_s9 + $0x118] sm:$0xff]   ;;  %v10212_v14 = vld [vmem:[%s11619_s20 + $0x20] sm:$0xff]   ;;  %v10218_v22 = vld [vmem:[%s11619_s20 + $0x28] sm:$0xff]  }
  0x61   : > { %v10211_v13 = vld [vmem:[%s11629_s9 + $0x198] sm:$0xff]   ;;  %v2284_v15 = vsel %vm1639_vm0, %v10209_v12, 0  ;;  %v10213_v16 = vld [vmem:[%s11629_s9 + $0x160] sm:$0xff]   ;;  %v10221_v28 = vld [vmem:[%s11629_s9 + $0x128] sm:$0xff]  }
  0x62   : > { %v2589_v17 = vsel %vm1639_vm0, %v10211_v13, 0  ;;  %v10223_v29 = vld [vmem:[%s11629_s9 + $0x1a8] sm:$0xff]   ;;  %v10226_v34 = vld [vmem:[%s11619_s20 + $0x70] sm:$0xff]   ;;  %v10231_v40 = vld [vmem:[%s11629_s9 + $0x178] sm:$0xff]  }
  0x63   : > { %v10228_v35 = vld [vmem:[%s11629_s9 + $0x1f0] sm:$0xff]   ;;  %v10236_v46 = vld [vmem:[%s11619_s20 + $0x80] sm:$0xff]   ;;  %v10245_v60 = vld [vmem:[%s11629_s9 + $0x208] sm:$0xff]  }
  0x64   : > { %9185 = vmatpush3.bf16.xpose.msra.mxu0 %v1671_v18  ;;  %v10214_v18 = vld [vmem:[%s11619_s20 + $0x60] sm:$0xff]   ;;  %v10251_v4 = vld [vmem:[%s11629_s9 + $0x210] sm:$0xff]   ;;  %v10257_v12 = vld [vmem:[%s11629_s9 + $0x218] sm:$0xff]  }
  0x65   : > { %9217 = vmatpush3.bf16.xpose.msra.mxu1 %v1976_v20  ;;  %10015 = vmatprep.subr.msk.bf16.mxu0 %vm1639_vm0, %v10168_v19  ;;  %v10216_v19 = vld [vmem:[%s11629_s9 + $0x1e0] sm:$0xff]   ;;  %v10253_v5 = vld [vmem:[%s11629_s9 + $0x290] sm:$0xff]   ;;  %v10259_v13 = vld [vmem:[%s11629_s9 + $0x298] sm:$0xff]  }
  0x66   : > { %10023 = vmatprep.subr.msk.bf16.mxu1 %vm1639_vm0, %v10169_v21  ;;  %v10215_v20 = vld [vmem:[%s11629_s9 + $0x120] sm:$0xff]  }
  0x67   : > { %v10217_v21 = vld [vmem:[%s11629_s9 + $0x1a0] sm:$0xff]   ;;  %v2287_v23 = vsel %vm1639_vm0, %v10215_v20, 0 }
  0x68   : > { %v10239_v52 = vld [vmem:[%s11629_s9 + $0x200] sm:$0xff]  }
  0x69   : > { %v10241_v53 = vld [vmem:[%s11629_s9 + $0x280] sm:$0xff]  }
  0x6a   : > { %v10263_v20 = vld [vmem:[%s11629_s9 + $0x220] sm:$0xff]  }
  0x6c   : > { %9187 = vmatpush3.bf16.xpose.msra.mxu0 %v1674_v24  ;;  %v10219_v24 = vld [vmem:[%s11629_s9 + $0x168] sm:$0xff]  }
  0x6d   : > { %9219 = vmatpush3.bf16.xpose.msra.mxu1 %v1979_v26  ;;  %10016 = vmatprep.subr.msk.bf16.mxu0 %vm1639_vm0, %v10172_v25  ;;  %v2592_v25 = vsel %vm1639_vm0, %v10217_v21, 0  ;;  %v10220_v26 = vld [vmem:[%s11619_s20 + $0x68] sm:$0xff]   ;;  %v10265_v21 = vld [vmem:[%s11629_s9 + $0x2a0] sm:$0xff]  }
  0x6e   : > { %10024 = vmatprep.subr.msk.bf16.mxu1 %vm1639_vm0, %v10173_v27  ;;  %v10222_v27 = vld [vmem:[%s11629_s9 + $0x1e8] sm:$0xff]  }
  0x74   : > { %9189 = vmatpush3.bf16.xpose.msra.mxu0 %v1677_v30  ;;  %v10224_v30 = vld [vmem:[%s11619_s20 + $0x30] sm:$0xff]  }
  0x75   : > { %9221 = vmatpush3.bf16.xpose.msra.mxu1 %v1982_v32  ;;  %10017 = vmatprep.subr.msk.bf16.mxu0 %vm1639_vm0, %v10176_v31  ;;  %v2290_v31 = vsel %vm1639_vm0, %v10221_v28, 0  ;;  %v10225_v32 = vld [vmem:[%s11629_s9 + $0x170] sm:$0xff]   ;;  %v10269_v28 = vld [vmem:[%s11629_s9 + $0x228] sm:$0xff]  }
  0x76   : > { %10025 = vmatprep.subr.msk.bf16.mxu1 %vm1639_vm0, %v10177_v33  ;;  %v2595_v33 = vsel %vm1639_vm0, %v10223_v29, 0  ;;  %v10271_v29 = vld [vmem:[%s11629_s9 + $0x2a8] sm:$0xff]  }
  0x7c   : > { %9191 = vmatpush3.bf16.xpose.msra.mxu0 %v1680_v36  ;;  %v10227_v36 = vld [vmem:[%s11629_s9 + $0x130] sm:$0xff]  }
  0x7d   : > { %9223 = vmatpush3.bf16.xpose.msra.mxu1 %v1985_v38  ;;  %10018 = vmatprep.subr.msk.bf16.mxu0 %vm1639_vm0, %v10180_v37  ;;  %v10229_v37 = vld [vmem:[%s11629_s9 + $0x1b0] sm:$0xff]   ;;  %v10230_v38 = vld [vmem:[%s11619_s20 + $0x38] sm:$0xff]  }
  0x7e   : > { %10026 = vmatprep.subr.msk.bf16.mxu1 %vm1639_vm0, %v10181_v39  ;;  %v2293_v39 = vsel %vm1639_vm0, %v10227_v36, 0  ;;  %v2598_v41 = vsel %vm1639_vm0, %v10229_v37, 0  ;;  %v10283_v36 = vld [vmem:[%s11629_s9 + $0x2b8] sm:$0xff]   ;;  %v2900_v37 = vsel %vm1639_vm0, %v10269_v28, 0  ;;  %v10302_v28 = vld [vmem:[%s11619_s20 + $0x128] sm:$0xff]  }
  0x84   : > { %9193 = vmatpush3.bf16.xpose.msra.mxu0 %v1683_v42  ;;  %v10232_v42 = vld [vmem:[%s11619_s20 + $0x78] sm:$0xff]  }
  0x85   : > { %9225 = vmatpush3.bf16.xpose.msra.mxu1 %v1988_v44  ;;  %10019 = vmatprep.subr.msk.bf16.mxu0 %vm1639_vm0, %v10184_v43  ;;  %v10234_v43 = vld [vmem:[%s11629_s9 + $0x1f8] sm:$0xff]  }
  0x86   : > { %10027 = vmatprep.subr.msk.bf16.mxu1 %vm1639_vm0, %v10185_v45  ;;  %v10233_v44 = vld [vmem:[%s11629_s9 + $0x138] sm:$0xff]  }
  0x87   : > { %v10235_v45 = vld [vmem:[%s11629_s9 + $0x1b8] sm:$0xff]   ;;  %v2296_v47 = vsel %vm1639_vm0, %v10233_v44, 0 }
  0x8c   : > { %9195 = vmatpush3.bf16.xpose.msra.mxu0 %v1686_v48  ;;  %v10237_v48 = vld [vmem:[%s11629_s9 + $0x240] sm:$0xff]  }
  0x8d   : > { %9227 = vmatpush3.bf16.xpose.msra.mxu1 %v1991_v50  ;;  %10028 = vmatprep.subr.msk.bf16.mxu0 %vm1639_vm0, %v10190_v49  ;;  %v2601_v49 = vsel %vm1639_vm0, %v10235_v45, 0  ;;  %v10238_v50 = vld [vmem:[%s11619_s20 + $0xc0] sm:$0xff]  }
  0x8e   : > { %10036 = vmatprep.subr.msk.bf16.mxu1 %vm1639_vm0, %v10192_v51  ;;  %v10240_v51 = vld [vmem:[%s11629_s9 + $0x2c0] sm:$0xff]  }
  0x93   : > { %9197 = vmatmul.mubr.msk.bf16.vlgmr.msra.gmra.mrb[0].mxu0 %vm1639_vm0, %v11622_v0  ;;  %v10201_v0 = vld [vmem:[%s11629_s9 + $0x150] sm:$0xff]  }
  0x94   : > { %9229 = vmatmul.mubr.msk.bf16.vlgmr.msra.gmra.mrb[0].mxu1 %vm1639_vm0, %v11632_v1  ;;  %9245 = vmatpush3.bf16.xpose.msra.mxu0 %v2275_v55  ;;  %v2583_v1 = vsel %vm1639_vm0, %v10199_v61, 0  ;;  %v2885_v55 = vsel %vm1639_vm0, %v10239_v52, 0  ;;  %v10247_v61 = vld [vmem:[%s11629_s9 + $0x288] sm:$0xff]   ;;  %v10280_v52 = vld [vmem:[%s11619_s20 + $0xf8] sm:$0xff]  }
  0x95   : > { %9277 = vmatpush3.bf16.xpose.msra.mxu1 %v2580_v57  ;;  %9198 = vmatprep.mubr.msk.bf16.mxu0 %vm1639_vm0, %v10194_v54  ;;  %v3190_v57 = vsel %vm1639_vm0, %v10241_v53, 0  ;;  %v10282_v53 = vld [vmem:[%s11629_s9 + $0x2f8] sm:$0xff]  }
  0x96   : > { %10029 = vmatprep.subr.msk.bf16.mxu0 %vm1639_vm0, %v10195_v56  ;;  %9230 = vmatprep.mubr.msk.bf16.mxu1 %vm1639_vm0, %v10196_v58  ;;  %v10243_v56 = vld [vmem:[%s11629_s9 + $0x248] sm:$0xff]  }
  0x97   : > { %10037 = vmatprep.subr.msk.bf16.mxu1 %vm1639_vm0, %v10198_v59  ;;  %v10246_v59 = vld [vmem:[%s11629_s9 + $0x2c8] sm:$0xff]  }
  0x9b   : > { %9199 = vmatmul.mubr.msk.bf16.gmra.mrb[4].mxu0 %vm1639_vm0, %v10194_v54  ;;  %v10242_v54 = vld [vmem:[%s11619_s20 + $0x88] sm:$0xff]  }
  0x9c   : > { %9247 = vmatpush3.bf16.xpose.msra.mxu0 %v2278_v63  ;;  %9231 = vmatmul.mubr.msk.bf16.gmra.mrb[4].mxu1 %vm1639_vm0, %v10196_v58  ;;  %v10244_v58 = vld [vmem:[%s11619_s20 + $0xc8] sm:$0xff]   ;;  %v2888_v63 = vsel %vm1639_vm0, %v10245_v60, 0  ;;  %v10293_v60 = vld [vmem:[%s11629_s9 + $0x340] sm:$0xff]  }
  0x9d   : > { %9279 = vmatpush3.bf16.xpose.msra.mxu1 %v2583_v1  ;;  %9200 = vmatprep.mubr.msk.bf16.mxu0 %vm1639_vm0, %v10200_v62  ;;  %v3193_v1 = vsel %vm1639_vm0, %v10247_v61, 0  ;;  %v10296_v61 = vld [vmem:[%s11629_s9 + $0x3c0] sm:$0xff]  }
  0x9e   : > { %10030 = vmatprep.subr.msk.bf16.mxu0 %vm1639_vm0, %v10201_v0  ;;  %9232 = vmatprep.mubr.msk.bf16.mxu1 %vm1639_vm0, %v10202_v2  ;;  %v10249_v0 = vld [vmem:[%s11629_s9 + $0x250] sm:$0xff]  }
  0x9f   : > { %10038 = vmatprep.subr.msk.bf16.mxu1 %vm1639_vm0, %v10204_v3  ;;  %v10252_v3 = vld [vmem:[%s11629_s9 + $0x2d0] sm:$0xff]  }
  0xa3   : > { %9201 = vmatmul.mubr.msk.bf16.gmra.mrb[8].mxu0 %vm1639_vm0, %v10200_v62  ;;  %v10248_v62 = vld [vmem:[%s11619_s20 + $0x90] sm:$0xff]  }
  0xa4   : > { %9249 = vmatpush3.bf16.xpose.msra.mxu0 %v2281_v7  ;;  %9233 = vmatmul.mubr.msk.bf16.gmra.mrb[8].mxu1 %vm1639_vm0, %v10202_v2  ;;  %v10250_v2 = vld [vmem:[%s11619_s20 + $0xd0] sm:$0xff]   ;;  %v2891_v7 = vsel %vm1639_vm0, %v10251_v4, 0  ;;  %v10309_v4 = vld [vmem:[%s11629_s9 + $0x318] sm:$0xff]  }
  0xa5   : > { %9281 = vmatpush3.bf16.xpose.msra.mxu1 %v2586_v9  ;;  %9202 = vmatprep.mubr.msk.bf16.mxu0 %vm1639_vm0, %v10206_v6  ;;  %v3196_v9 = vsel %vm1639_vm0, %v10253_v5, 0  ;;  %v10311_v5 = vld [vmem:[%s11629_s9 + $0x398] sm:$0xff]  }
  0xa6   : > { %10031 = vmatprep.subr.msk.bf16.mxu0 %vm1639_vm0, %v10207_v8  ;;  %9234 = vmatprep.mubr.msk.bf16.mxu1 %vm1639_vm0, %v10208_v10  ;;  %v10255_v8 = vld [vmem:[%s11629_s9 + $0x258] sm:$0xff]  }
  0xa7   : > { %10039 = vmatprep.subr.msk.bf16.mxu1 %vm1639_vm0, %v10210_v11  ;;  %v10258_v11 = vld [vmem:[%s11629_s9 + $0x2d8] sm:$0xff]  }
  0xab   : > { %9203 = vmatmul.mubr.msk.bf16.gmra.mrb[12].mxu0 %vm1639_vm0, %v10206_v6  ;;  %v10254_v6 = vld [vmem:[%s11619_s20 + $0x98] sm:$0xff]  }
  0xac   : > { %9251 = vmatpush3.bf16.xpose.msra.mxu0 %v2284_v15  ;;  %9235 = vmatmul.mubr.msk.bf16.gmra.mrb[12].mxu1 %vm1639_vm0, %v10208_v10  ;;  %v10256_v10 = vld [vmem:[%s11619_s20 + $0xd8] sm:$0xff]   ;;  %v2894_v15 = vsel %vm1639_vm0, %v10257_v12, 0  ;;  %v3809_v12 = vsel %vm1639_vm0, %v10311_v5, 0 }
  0xad   : > { %9283 = vmatpush3.bf16.xpose.msra.mxu1 %v2589_v17  ;;  %9204 = vmatprep.mubr.msk.bf16.mxu0 %vm1639_vm0, %v10212_v14  ;;  %v3199_v17 = vsel %vm1639_vm0, %v10259_v13, 0 }
  0xae   : > { %10032 = vmatprep.subr.msk.bf16.mxu0 %vm1639_vm0, %v10213_v16  ;;  %9236 = vmatprep.mubr.msk.bf16.mxu1 %vm1639_vm0, %v10214_v18  ;;  %v10261_v16 = vld [vmem:[%s11629_s9 + $0x260] sm:$0xff]  }
  0xaf   : > { %10040 = vmatprep.subr.msk.bf16.mxu1 %vm1639_vm0, %v10216_v19  ;;  %v10264_v19 = vld [vmem:[%s11629_s9 + $0x2e0] sm:$0xff]  }
  0xb3   : > { %9205 = vmatmul.mubr.msk.bf16.gmra.mrb[16].mxu0 %vm1639_vm0, %v10212_v14  ;;  %v10260_v14 = vld [vmem:[%s11619_s20 + $0xa0] sm:$0xff]  }
  0xb4   : > { %9253 = vmatpush3.bf16.xpose.msra.mxu0 %v2287_v23  ;;  %9237 = vmatmul.mubr.msk.bf16.gmra.mrb[16].mxu1 %vm1639_vm0, %v10214_v18  ;;  %v10262_v18 = vld [vmem:[%s11619_s20 + $0xe0] sm:$0xff]   ;;  %v2897_v23 = vsel %vm1639_vm0, %v10263_v20, 0 }
  0xb5   : > { %9285 = vmatpush3.bf16.xpose.msra.mxu1 %v2592_v25  ;;  %9206 = vmatprep.mubr.msk.bf16.mxu0 %vm1639_vm0, %v10218_v22  ;;  %v3202_v25 = vsel %vm1639_vm0, %v10265_v21, 0  ;;  %v10292_v20 = vld [vmem:[%s11619_s20 + $0x120] sm:$0xff]  }
  0xb6   : > { %10033 = vmatprep.subr.msk.bf16.mxu0 %vm1639_vm0, %v10219_v24  ;;  %9238 = vmatprep.mubr.msk.bf16.mxu1 %vm1639_vm0, %v10220_v26  ;;  %v10267_v24 = vld [vmem:[%s11629_s9 + $0x268] sm:$0xff]   ;;  %v10295_v21 = vld [vmem:[%s11619_s20 + $0x160] sm:$0xff]  }
  0xb7   : > { %10041 = vmatprep.subr.msk.bf16.mxu1 %vm1639_vm0, %v10222_v27  ;;  %v10270_v27 = vld [vmem:[%s11629_s9 + $0x2e8] sm:$0xff]  }
  0xbb   : > { %9207 = vmatmul.mubr.msk.bf16.gmra.mrb[20].mxu0 %vm1639_vm0, %v10218_v22  ;;  %v10266_v22 = vld [vmem:[%s11619_s20 + $0xa8] sm:$0xff]  }
  0xbc   : > { %9255 = vmatpush3.bf16.xpose.msra.mxu0 %v2290_v31  ;;  %9239 = vmatmul.mubr.msk.bf16.gmra.mrb[20].mxu1 %vm1639_vm0, %v10220_v26  ;;  %v10268_v26 = vld [vmem:[%s11619_s20 + $0xe8] sm:$0xff]   ;;  %v10272_v31 = vld [vmem:[%s11619_s20 + $0xb0] sm:$0xff]  }
  0xbd   : > { %9287 = vmatpush3.bf16.xpose.msra.mxu1 %v2595_v33  ;;  %9208 = vmatprep.mubr.msk.bf16.mxu0 %vm1639_vm0, %v10224_v30  ;;  %v10281_v33 = vld [vmem:[%s11629_s9 + $0x238] sm:$0xff]  }
  0xbe   : > { %10034 = vmatprep.subr.msk.bf16.mxu0 %vm1639_vm0, %v10225_v32  ;;  %9240 = vmatprep.mubr.msk.bf16.mxu1 %vm1639_vm0, %v10226_v34  ;;  %v10277_v32 = vld [vmem:[%s11629_s9 + $0x2b0] sm:$0xff]   ;;  %v2906_v45 = vsel %vm1639_vm0, %v10281_v33, 0 }
  0xbf   : > { %10042 = vmatprep.subr.msk.bf16.mxu1 %vm1639_vm0, %v10228_v35  ;;  %v10274_v35 = vld [vmem:[%s11619_s20 + $0xf0] sm:$0xff]   ;;  %v3208_v44 = vsel %vm1639_vm0, %v10277_v32, 0 }
  0xc0   : > { %v10324_v32 = vld [vmem:[%s11629_s9 + $0x330] sm:$0xff]  }
  0xc1   : > { %v10312_v33 = vld [vmem:[%s11619_s20 + $0x130] sm:$0xff]  }
  0xc3   : > { %9209 = vmatmul.mubr.msk.bf16.gmra.mrb[24].mxu0 %vm1639_vm0, %v10224_v30  ;;  %v10275_v30 = vld [vmem:[%s11629_s9 + $0x230] sm:$0xff]  }
  0xc4   : > { %9257 = vmatpush3.bf16.xpose.msra.mxu0 %v2293_v39  ;;  %9241 = vmatmul.mubr.msk.bf16.gmra.mrb[24].mxu1 %vm1639_vm0, %v10226_v34  ;;  %v10273_v34 = vld [vmem:[%s11629_s9 + $0x270] sm:$0xff]   ;;  %v10294_v39 = vld [vmem:[%s11629_s9 + $0x300] sm:$0xff]  }
  0xc5   : > { %9289 = vmatpush3.bf16.xpose.msra.mxu1 %v2598_v41  ;;  %9210 = vmatprep.mubr.msk.bf16.mxu0 %vm1639_vm0, %v10230_v38  ;;  %v10297_v41 = vld [vmem:[%s11629_s9 + $0x380] sm:$0xff]  }
  0xc6   : > { %10035 = vmatprep.subr.msk.bf16.mxu0 %vm1639_vm0, %v10231_v40  ;;  %9242 = vmatprep.mubr.msk.bf16.mxu1 %vm1639_vm0, %v10232_v42  ;;  %v3205_v40 = vsel %vm1639_vm0, %v10271_v29, 0  ;;  %v10305_v29 = vld [vmem:[%s11619_s20 + $0x168] sm:$0xff]  }
  0xc7   : > { %10043 = vmatprep.subr.msk.bf16.mxu1 %vm1639_vm0, %v10234_v43  ;;  %v2903_v43 = vsel %vm1639_vm0, %v10275_v30, 0  ;;  %v10318_v30 = vld [vmem:[%s11629_s9 + $0x368] sm:$0xff]  }
  0xcb   : > { %9211 = vmatmul.mubr.msk.bf16.gmra.mrb[28].mxu0 %vm1639_vm0, %v10230_v38  ;;  %v10276_v38 = vld [vmem:[%s11629_s9 + $0x2f0] sm:$0xff]  }
  0xcc   : > { %9259 = vmatpush3.bf16.xpose.msra.mxu0 %v2296_v47  ;;  %9243 = vmatmul.mubr.msk.bf16.gmra.mrb[28].mxu1 %vm1639_vm0, %v10232_v42  ;;  %v10299_v42 = vld [vmem:[%s11629_s9 + $0x308] sm:$0xff]   ;;  %v3495_v47 = vsel %vm1639_vm0, %v10294_v39, 0 }
  0xcd   : > { %9291 = vmatpush3.bf16.xpose.msra.mxu1 %v2601_v49  ;;  %9260 = vmatprep.mubr.msk.bf16.mxu0 %vm1639_vm0, %v10236_v46  ;;  %v3800_v49 = vsel %vm1639_vm0, %v10297_v41, 0  ;;  %v10325_v41 = vld [vmem:[%s11619_s20 + $0x178] sm:$0xff]  }
  0xce   : > { %10044 = vmatprep.subr.msk.bf16.mxu0 %vm1639_vm0, %v10237_v48  ;;  %9292 = vmatprep.mubr.msk.bf16.mxu1 %vm1639_vm0, %v10238_v50  ;;  %v10278_v48 = vld [vmem:[%s11619_s20 + $0xb8] sm:$0xff]  }
  0xcf   : > { %10052 = vmatprep.subr.msk.bf16.mxu1 %vm1639_vm0, %v10240_v51  ;;  %v10279_v51 = vld [vmem:[%s11629_s9 + $0x278] sm:$0xff]  }
  0xd3   : > { %9261 = vmatmul.mubr.msk.bf16.vlgmr.msra.gmra.mrb[32].mxu0 %vm1639_vm0, %v10236_v46  ;;  %v3211_v46 = vsel %vm1639_vm0, %v10283_v36, 0  ;;  %v10327_v36 = vld [vmem:[%s11629_s9 + $0x3b0] sm:$0xff]  }
  0xd4   : > { %9309 = vmatpush3.bf16.xpose.msra.mxu0 %v2885_v55  ;;  %9293 = vmatmul.mubr.msk.bf16.vlgmr.msra.gmra.mrb[32].mxu1 %vm1639_vm0, %v10238_v50  ;;  %v3498_v50 = vsel %vm1639_vm0, %v10299_v42, 0  ;;  %v10304_v55 = vld [vmem:[%s11629_s9 + $0x310] sm:$0xff]   ;;  %v3818_v39 = vsel %vm1639_vm0, %v10327_v36, 0  ;;  %v10328_v42 = vld [vmem:[%s11629_s9 + $0x378] sm:$0xff]  }
  0xd5   : > { %9341 = vmatpush3.bf16.xpose.msra.mxu1 %v3190_v57  ;;  %9262 = vmatprep.mubr.msk.bf16.mxu0 %vm1639_vm0, %v10242_v54 }
  0xd6   : > { %10045 = vmatprep.subr.msk.bf16.mxu0 %vm1639_vm0, %v10243_v56  ;;  %9294 = vmatprep.mubr.msk.bf16.mxu1 %vm1639_vm0, %v10244_v58  ;;  %v10284_v56 = vld [vmem:[%s11619_s20 + $0x100] sm:$0xff]  }
  0xd7   : > { %10053 = vmatprep.subr.msk.bf16.mxu1 %vm1639_vm0, %v10246_v59  ;;  %v10285_v59 = vld [vmem:[%s11619_s20 + $0x140] sm:$0xff]  }
  0xdb   : > { %9263 = vmatmul.mubr.msk.bf16.gmra.mrb[36].mxu0 %vm1639_vm0, %v10242_v54  ;;  %v10301_v54 = vld [vmem:[%s11629_s9 + $0x388] sm:$0xff]  }
  0xdc   : > { %9311 = vmatpush3.bf16.xpose.msra.mxu0 %v2888_v63  ;;  %9295 = vmatmul.mubr.msk.bf16.gmra.mrb[36].mxu1 %vm1639_vm0, %v10244_v58  ;;  %v3803_v57 = vsel %vm1639_vm0, %v10301_v54, 0  ;;  %v10307_v58 = vld [vmem:[%s11629_s9 + $0x390] sm:$0xff]  }
  0xdd   : > { %9343 = vmatpush3.bf16.xpose.msra.mxu1 %v3193_v1  ;;  %9264 = vmatprep.mubr.msk.bf16.mxu0 %vm1639_vm0, %v10248_v62  ;;  %v3806_v63 = vsel %vm1639_vm0, %v10307_v58, 0  ;;  %v10287_v1 = vld [vmem:[%s11619_s20 + $0x148] sm:$0xff]   ;;  %v10336_v54 = vld [vmem:[%s11619_s20 + $0x190] sm:$0xff]   ;;  %v10338_v58 = vld [vmem:[%s11619_s20 + $0x198] sm:$0xff]  }
  0xde   : > { %10046 = vmatprep.subr.msk.bf16.mxu0 %vm1639_vm0, %v10249_v0  ;;  %9296 = vmatprep.mubr.msk.bf16.mxu1 %vm1639_vm0, %v10250_v2  ;;  %v10286_v0 = vld [vmem:[%s11619_s20 + $0x108] sm:$0xff]  }
  0xdf   : > { %10054 = vmatprep.subr.msk.bf16.mxu1 %vm1639_vm0, %v10252_v3  ;;  %v10300_v3 = vld [vmem:[%s11629_s9 + $0x3c8] sm:$0xff]  }
  0xe3   : > { %9265 = vmatmul.mubr.msk.bf16.gmra.mrb[40].mxu0 %vm1639_vm0, %v10248_v62  ;;  %v3501_v62 = vsel %vm1639_vm0, %v10304_v55, 0  ;;  %v10337_v55 = vld [vmem:[%s11619_s20 + $0x1d0] sm:$0xff]  }
  0xe4   : > { %9313 = vmatpush3.bf16.xpose.msra.mxu0 %v2891_v7  ;;  %9297 = vmatmul.mubr.msk.bf16.gmra.mrb[40].mxu1 %vm1639_vm0, %v10250_v2  ;;  %v10298_v2 = vld [vmem:[%s11629_s9 + $0x348] sm:$0xff]   ;;  %v10289_v7 = vld [vmem:[%s11619_s20 + $0x150] sm:$0xff]  }
  0xe5   : > { %9345 = vmatpush3.bf16.xpose.msra.mxu1 %v3196_v9  ;;  %9266 = vmatprep.mubr.msk.bf16.mxu0 %vm1639_vm0, %v10254_v6  ;;  %v10314_v9 = vld [vmem:[%s11629_s9 + $0x320] sm:$0xff]  }
  0xe6   : > { %10047 = vmatprep.subr.msk.bf16.mxu0 %vm1639_vm0, %v10255_v8  ;;  %9298 = vmatprep.mubr.msk.bf16.mxu1 %vm1639_vm0, %v10256_v10  ;;  %v3504_v8 = vsel %vm1639_vm0, %v10309_v4, 0  ;;  %v3507_v13 = vsel %vm1639_vm0, %v10314_v9, 0 }
  0xe7   : > { %10055 = vmatprep.subr.msk.bf16.mxu1 %vm1639_vm0, %v10258_v11  ;;  %v10306_v11 = vld [vmem:[%s11629_s9 + $0x3d0] sm:$0xff]  }
  0xeb   : > { %9267 = vmatmul.mubr.msk.bf16.gmra.mrb[44].mxu0 %vm1639_vm0, %v10254_v6  ;;  %v10288_v6 = vld [vmem:[%s11619_s20 + $0x110] sm:$0xff]  }
  0xec   : > { %9315 = vmatpush3.bf16.xpose.msra.mxu0 %v2894_v15  ;;  %9299 = vmatmul.mubr.msk.bf16.gmra.mrb[44].mxu1 %vm1639_vm0, %v10256_v10  ;;  %v10303_v10 = vld [vmem:[%s11629_s9 + $0x350] sm:$0xff]   ;;  %v10291_v15 = vld [vmem:[%s11619_s20 + $0x158] sm:$0xff]  }
  0xed   : > { %9347 = vmatpush3.bf16.xpose.msra.mxu1 %v3199_v17  ;;  %9268 = vmatprep.mubr.msk.bf16.mxu0 %vm1639_vm0, %v10260_v14  ;;  %v10310_v17 = vld [vmem:[%s11629_s9 + $0x3d8] sm:$0xff]  }
  0xee   : > { %10048 = vmatprep.subr.msk.bf16.mxu0 %vm1639_vm0, %v10261_v16  ;;  %9300 = vmatprep.mubr.msk.bf16.mxu1 %vm1639_vm0, %v10262_v18  ;;  %v10308_v16 = vld [vmem:[%s11629_s9 + $0x358] sm:$0xff]  }
  0xef   : > { %10056 = vmatprep.subr.msk.bf16.mxu1 %vm1639_vm0, %v10264_v19  ;;  %v10319_v19 = vld [vmem:[%s11629_s9 + $0x328] sm:$0xff]  }
  0xf3   : > { %9269 = vmatmul.mubr.msk.bf16.gmra.mrb[48].mxu0 %vm1639_vm0, %v10260_v14  ;;  %v10290_v14 = vld [vmem:[%s11619_s20 + $0x118] sm:$0xff]  }
  0xf4   : > { %9317 = vmatpush3.bf16.xpose.msra.mxu0 %v2897_v23  ;;  %9301 = vmatmul.mubr.msk.bf16.gmra.mrb[48].mxu1 %vm1639_vm0, %v10262_v18  ;;  %v10317_v18 = vld [vmem:[%s11629_s9 + $0x3a0] sm:$0xff]   ;;  %v10321_v23 = vld [vmem:[%s11629_s9 + $0x3a8] sm:$0xff]  }
  0xf5   : > { %9349 = vmatpush3.bf16.xpose.msra.mxu1 %v3202_v25  ;;  %9270 = vmatprep.mubr.msk.bf16.mxu0 %vm1639_vm0, %v10266_v22  ;;  %v10316_v25 = vld [vmem:[%s11629_s9 + $0x3e0] sm:$0xff]  }
  0xf6   : > { %10049 = vmatprep.subr.msk.bf16.mxu0 %vm1639_vm0, %v10267_v24  ;;  %9302 = vmatprep.mubr.msk.bf16.mxu1 %vm1639_vm0, %v10268_v26  ;;  %v10313_v24 = vld [vmem:[%s11629_s9 + $0x360] sm:$0xff]  }
  0xf7   : > { %10057 = vmatprep.subr.msk.bf16.mxu1 %vm1639_vm0, %v10270_v27  ;;  %v3815_v27 = vsel %vm1639_vm0, %v10321_v23, 0 }
  0xfb   : > { %9271 = vmatmul.mubr.msk.bf16.gmra.mrb[52].mxu0 %vm1639_vm0, %v10266_v22  ;;  %v3812_v22 = vsel %vm1639_vm0, %v10317_v18, 0  ;;  %v10341_v18 = vld [vmem:[%s11619_s20 + $0x1e0] sm:$0xff]  }
  0xfc   : > { %9319 = vmatpush3.bf16.xpose.msra.mxu0 %v2900_v37  ;;  %9303 = vmatmul.mubr.msk.bf16.gmra.mrb[52].mxu1 %vm1639_vm0, %v10268_v26  ;;  %v3510_v26 = vsel %vm1639_vm0, %v10319_v19, 0  ;;  %v10323_v37 = vld [vmem:[%s11629_s9 + $0x370] sm:$0xff]  }
  0xfd   : > { %9351 = vmatpush3.bf16.xpose.msra.mxu1 %v3205_v40  ;;  %9272 = vmatprep.mubr.msk.bf16.mxu0 %vm1639_vm0, %v10272_v31  ;;  %v10322_v40 = vld [vmem:[%s11619_s20 + $0x138] sm:$0xff]  }
  0xfe   : > { %10050 = vmatprep.subr.msk.bf16.mxu0 %vm1639_vm0, %v10273_v34  ;;  %9304 = vmatprep.mubr.msk.bf16.mxu1 %vm1639_vm0, %v10274_v35  ;;  %v10315_v34 = vld [vmem:[%s11619_s20 + $0x170] sm:$0xff]  }
  0xff   : > { %10058 = vmatprep.subr.msk.bf16.mxu1 %vm1639_vm0, %v10276_v38  ;;  %v10326_v38 = vld [vmem:[%s11629_s9 + $0x3f0] sm:$0xff]  }
 0x103   : > { %9273 = vmatmul.mubr.msk.bf16.gmra.mrb[56].mxu0 %vm1639_vm0, %v10272_v31  ;;  %v10320_v31 = vld [vmem:[%s11629_s9 + $0x3e8] sm:$0xff]  }
 0x104   : > { %9321 = vmatpush3.bf16.xpose.msra.mxu0 %v2903_v43  ;;  %9305 = vmatmul.mubr.msk.bf16.gmra.mrb[56].mxu1 %vm1639_vm0, %v10274_v35  ;;  %v3513_v35 = vsel %vm1639_vm0, %v10324_v32, 0  ;;  %v10329_v43 = vld [vmem:[%s11629_s9 + $0x338] sm:$0xff]  }
 0x105   : > { %9353 = vmatpush3.bf16.xpose.msra.mxu1 %v3208_v44  ;;  %9274 = vmatprep.mubr.msk.bf16.mxu0 %vm1639_vm0, %v10278_v48  ;;  %v10330_v44 = vld [vmem:[%s11629_s9 + $0x3f8] sm:$0xff]  }
 0x106   : > { %10051 = vmatprep.subr.msk.bf16.mxu0 %vm1639_vm0, %v10279_v51  ;;  %9306 = vmatprep.mubr.msk.bf16.mxu1 %vm1639_vm0, %v10280_v52 }
 0x107   : > { %10059 = vmatprep.subr.msk.bf16.mxu1 %vm1639_vm0, %v10282_v53  ;;  %v10335_v53 = vld [vmem:[%s11619_s20 + $0x1c8] sm:$0xff]  }
 0x10b   : > { %9275 = vmatmul.mubr.msk.bf16.gmra.mrb[60].mxu0 %vm1639_vm0, %v10278_v48  ;;  %v3516_v48 = vsel %vm1639_vm0, %v10329_v43, 0 }
 0x10c   : > { %9323 = vmatpush3.bf16.xpose.msra.mxu0 %v2906_v45  ;;  %9307 = vmatmul.mubr.msk.bf16.gmra.mrb[60].mxu1 %vm1639_vm0, %v10280_v52  ;;  %v10331_v45 = vld [vmem:[%s11629_s9 + $0x3b8] sm:$0xff]   ;;  %v10334_v52 = vld [vmem:[%s11619_s20 + $0x188] sm:$0xff]   ;;  %s11350_s9 = smov 48  }
 0x10d   : > { %9355 = vmatpush3.bf16.xpose.msra.mxu1 %v3211_v46  ;;  %9324 = vmatprep.mubr.msk.bf16.mxu0 %vm1639_vm0, %v10284_v56  ;;  %v10332_v46 = vld [vmem:[%s11619_s20 + $0x180] sm:$0xff]   ;;  %v3821_v51 = vsel %vm1639_vm0, %v10331_v45, 0 }
 0x10e   : > { %9356 = vmatprep.mubr.msk.bf16.mxu1 %vm1639_vm0, %v10285_v59  ;;  %10060 = vmatprep.subr.msk.bf16.mxu0 %vm1639_vm0, %v10293_v60  ;;  %v10339_v60 = vld [vmem:[%s11619_s20 + $0x1d8] sm:$0xff]  }
 0x10f   : > { %10068 = vmatprep.subr.msk.bf16.mxu1 %vm1639_vm0, %v10296_v61 }
 0x113   : > { %9325 = vmatmul.mubr.msk.bf16.vlgmr.msra.gmra.mrb[64].mxu0 %vm1639_vm0, %v10284_v56 }
 0x114   : > { %9357 = vmatmul.mubr.msk.bf16.vlgmr.msra.gmra.mrb[64].mxu1 %vm1639_vm0, %v10285_v59  ;;  %9326 = vmatprep.mubr.msk.bf16.mxu0 %vm1639_vm0, %v10286_v0  ;;  %v1518_v59 = vld [vmem:[%s864_s30] sm:$0x3]  ;;  %s9174_s30 = sshll.u32 %s11334_s25, 5 }
 0x115   : > { %9358 = vmatprep.mubr.msk.bf16.mxu1 %vm1639_vm0, %v10287_v1  ;;  %9373 = vmatpush3.bf16.xpose.msra.mxu0 %v3495_v47  ;;  %v4217_v47 = vlaneseq }
 0x116   : > { %9405 = vmatpush3.bf16.xpose.msra.mxu1 %v3800_v49  ;;  %10061 = vmatprep.subr.msk.bf16.mxu0 %vm1639_vm0, %v10298_v2  ;;  %v10333_v49 = vld [vmem:[%s11619_s20 + $0x1c0] sm:$0xff]  }
 0x117   : > { %10069 = vmatprep.subr.msk.bf16.mxu1 %vm1639_vm0, %v10300_v3 }
 0x11b   : > { %9327 = vmatmul.mubr.msk.bf16.gmra.mrb[68].mxu0 %vm1639_vm0, %v10286_v0 }
 0x11c   : > { %9359 = vmatmul.mubr.msk.bf16.gmra.mrb[68].mxu1 %vm1639_vm0, %v10287_v1  ;;  %9328 = vmatprep.mubr.msk.bf16.mxu0 %vm1639_vm0, %v10288_v6 }
 0x11d   : > { %9360 = vmatprep.mubr.msk.bf16.mxu1 %vm1639_vm0, %v10289_v7  ;;  %9375 = vmatpush3.bf16.xpose.msra.mxu0 %v3498_v50  ;;  %v4218_v50 = vshrl.u32 %v4217_v47, 7 }
 0x11e   : > { %9407 = vmatpush3.bf16.xpose.msra.mxu1 %v3803_v57  ;;  %10062 = vmatprep.subr.msk.bf16.mxu0 %vm1639_vm0, %v10303_v10 }
 0x11f   : > { %10070 = vmatprep.subr.msk.bf16.mxu1 %vm1639_vm0, %v10306_v11  ;;  %v4219_v56 = vsub.s32 0, %v4218_v50  ;;  %v4223_v57 = vsub.s32 1, %v4218_v50 }
 0x121   : > { %v12066_v61 = vrot.slane %v1518_v59, %v4219_v56 }
 0x123   : > { %9329 = vmatmul.mubr.msk.bf16.gmra.mrb[72].mxu0 %vm1639_vm0, %v10288_v6 }
 0x124   : > { %9361 = vmatmul.mubr.msk.bf16.gmra.mrb[72].mxu1 %vm1639_vm0, %v10289_v7  ;;  %9330 = vmatprep.mubr.msk.bf16.mxu0 %vm1639_vm0, %v10290_v14 }
 0x125   : > { %9362 = vmatprep.mubr.msk.bf16.mxu1 %vm1639_vm0, %v10291_v15  ;;  %9377 = vmatpush3.bf16.xpose.msra.mxu0 %v3501_v62 }
 0x126   : > { %9409 = vmatpush3.bf16.xpose.msra.mxu1 %v3806_v63  ;;  %10063 = vmatprep.subr.msk.bf16.mxu0 %vm1639_vm0, %v10308_v16  ;;  %v12070_v63 = vrot.slane %v1518_v59, %v4223_v57 }
 0x127   : > { %10071 = vmatprep.subr.msk.bf16.mxu1 %vm1639_vm0, %v10310_v17 }
 0x12b   : > { %9331 = vmatmul.mubr.msk.bf16.gmra.mrb[76].mxu0 %vm1639_vm0, %v10290_v14 }
 0x12c   : > { %9363 = vmatmul.mubr.msk.bf16.gmra.mrb[76].mxu1 %vm1639_vm0, %v10291_v15  ;;  %9332 = vmatprep.mubr.msk.bf16.mxu0 %vm1639_vm0, %v10292_v20 }
 0x12d   : > { %9364 = vmatprep.mubr.msk.bf16.mxu1 %vm1639_vm0, %v10295_v21  ;;  %9379 = vmatpush3.bf16.xpose.msra.mxu0 %v3504_v8 }
 0x12e   : > { %9411 = vmatpush3.bf16.xpose.msra.mxu1 %v3809_v12  ;;  %10064 = vmatprep.subr.msk.bf16.mxu0 %vm1639_vm0, %v10313_v24  ;;  %v10340_v12 = vld [vmem:[%s11619_s20 + $0x1a0] sm:$0xff]  }
 0x12f   : > { %10072 = vmatprep.subr.msk.bf16.mxu1 %vm1639_vm0, %v10316_v25 }
 0x133   : > { %9333 = vmatmul.mubr.msk.bf16.gmra.mrb[80].mxu0 %vm1639_vm0, %v10292_v20 }
 0x134   : > { %9365 = vmatmul.mubr.msk.bf16.gmra.mrb[80].mxu1 %vm1639_vm0, %v10295_v21  ;;  %9334 = vmatprep.mubr.msk.bf16.mxu0 %vm1639_vm0, %v10302_v28 }
 0x135   : > { %9366 = vmatprep.mubr.msk.bf16.mxu1 %vm1639_vm0, %v10305_v29  ;;  %9381 = vmatpush3.bf16.xpose.msra.mxu0 %v3507_v13 }
 0x136   : > { %9413 = vmatpush3.bf16.xpose.msra.mxu1 %v3812_v22  ;;  %10065 = vmatprep.subr.msk.bf16.mxu0 %vm1639_vm0, %v10318_v30 }
 0x137   : > { %10073 = vmatprep.subr.msk.bf16.mxu1 %vm1639_vm0, %v10320_v31 }
 0x13b   : > { %9335 = vmatmul.mubr.msk.bf16.gmra.mrb[84].mxu0 %vm1639_vm0, %v10302_v28 }
 0x13c   : > { %9367 = vmatmul.mubr.msk.bf16.gmra.mrb[84].mxu1 %vm1639_vm0, %v10305_v29  ;;  %9336 = vmatprep.mubr.msk.bf16.mxu0 %vm1639_vm0, %v10312_v33 }
 0x13d   : > { %9368 = vmatprep.mubr.msk.bf16.mxu1 %vm1639_vm0, %v10315_v34  ;;  %9383 = vmatpush3.bf16.xpose.msra.mxu0 %v3510_v26 }
 0x13e   : > { %9415 = vmatpush3.bf16.xpose.msra.mxu1 %v3815_v27  ;;  %10066 = vmatprep.subr.msk.bf16.mxu0 %vm1639_vm0, %v10323_v37 }
 0x13f   : > { %10074 = vmatprep.subr.msk.bf16.mxu1 %vm1639_vm0, %v10326_v38 }
 0x143   : > { %9337 = vmatmul.mubr.msk.bf16.gmra.mrb[88].mxu0 %vm1639_vm0, %v10312_v33 }
 0x144   : > { %9369 = vmatmul.mubr.msk.bf16.gmra.mrb[88].mxu1 %vm1639_vm0, %v10315_v34  ;;  %9338 = vmatprep.mubr.msk.bf16.mxu0 %vm1639_vm0, %v10322_v40 }
 0x145   : > { %9385 = vmatpush3.bf16.xpose.msra.mxu0 %v3513_v35  ;;  %9370 = vmatprep.mubr.msk.bf16.mxu1 %vm1639_vm0, %v10325_v41 }
 0x146   : > { %9417 = vmatpush3.bf16.xpose.msra.mxu1 %v3818_v39  ;;  %10067 = vmatprep.subr.msk.bf16.mxu0 %vm1639_vm0, %v10328_v42  ;;  %v10342_v42 = vld [vmem:[%s11619_s20 + $0x1a8] sm:$0xff]  }
 0x147   : > { %10075 = vmatprep.subr.msk.bf16.mxu1 %vm1639_vm0, %v10330_v44 }
 0x14b   : > { %9339 = vmatmul.mubr.msk.bf16.gmra.mrb[92].mxu0 %vm1639_vm0, %v10322_v40 }
 0x14c   : > { %9371 = vmatmul.mubr.msk.bf16.gmra.mrb[92].mxu1 %vm1639_vm0, %v10325_v41  ;;  %9388 = vmatprep.mubr.msk.bf16.mxu0 %vm1639_vm0, %v10332_v46 }
 0x14d   : > { %9387 = vmatpush3.bf16.xpose.msra.mxu0 %v3516_v48  ;;  %9420 = vmatprep.mubr.msk.bf16.mxu1 %vm1639_vm0, %v10333_v49  ;;  %v10343_v48 = vld [vmem:[%s11619_s20 + $0x1e8] sm:$0xff]  }
 0x14e   : > { %9419 = vmatpush3.bf16.xpose.msra.mxu1 %v3821_v51 }
 0x154   : > { %9389 = vmatmul.mubr.msk.bf16.vlgmr.msra.gmra.mrb[96].mxu0 %vm1639_vm0, %v10332_v46 }
 0x155   : > { %9421 = vmatmul.mubr.msk.bf16.vlgmr.msra.gmra.mrb[96].mxu1 %vm1639_vm0, %v10333_v49  ;;  %9390 = vmatprep.mubr.msk.bf16.mxu0 %vm1639_vm0, %v10334_v52 }
 0x156   : > { %9422 = vmatprep.mubr.msk.bf16.mxu1 %vm1639_vm0, %v10335_v53 }
 0x15c   : > { %9391 = vmatmul.mubr.msk.bf16.gmra.mrb[100].mxu0 %vm1639_vm0, %v10334_v52 }
 0x15d   : > { %9423 = vmatmul.mubr.msk.bf16.gmra.mrb[100].mxu1 %vm1639_vm0, %v10335_v53  ;;  %9392 = vmatprep.mubr.msk.bf16.mxu0 %vm1639_vm0, %v10336_v54 }
 0x15e   : > { %9424 = vmatprep.mubr.msk.bf16.mxu1 %vm1639_vm0, %v10337_v55 }
 0x164   : > { %9393 = vmatmul.mubr.msk.bf16.gmra.mrb[104].mxu0 %vm1639_vm0, %v10336_v54 }
 0x165   : > { %9425 = vmatmul.mubr.msk.bf16.gmra.mrb[104].mxu1 %vm1639_vm0, %v10337_v55  ;;  %9394 = vmatprep.mubr.msk.bf16.mxu0 %vm1639_vm0, %v10338_v58 }
 0x166   : > { %v1746_v62 = vpop.f32.mrb[0].mxu0  ;;  %9426 = vmatprep.mubr.msk.bf16.mxu1 %vm1639_vm0, %v10339_v60 }
 0x167   : > { %v3960_v0 = vmul.f32 0.25, %v1746_v62  ;;  %v2051_v1 = vpop.f32.mrb[0].mxu1  ;;  %v1748_v2 = vpop.f32.mrb[1].mxu0 }
 0x168   : > { %v3992_v3 = vmul.f32 0.25, %v2051_v1  ;;  %v3961_v4 = vmul.f32 0.25, %v1748_v2  ;;  %v2053_v5 = vpop.f32.mrb[1].mxu1  ;;  %v1750_v6 = vpop.f32.mrb[2].mxu0 }
 0x169   : > { %v3993_v7 = vmul.f32 0.25, %v2053_v5  ;;  %v3962_v8 = vmul.f32 0.25, %v1750_v6  ;;  %v2055_v9 = vpop.f32.mrb[2].mxu1  ;;  %v1752_v10 = vpop.f32.mrb[3].mxu0  ;;  %v12074_v11 = vadd.f32 %v12066_v61, %v3960_v0 }
 0x16a   : > { %v3994_v13 = vmul.f32 0.25, %v2055_v9  ;;  %v3963_v14 = vmul.f32 0.25, %v1752_v10  ;;  %v2057_v15 = vpop.f32.mrb[3].mxu1  ;;  %v12078_v16 = vadd.f32 %v12066_v61, %v3992_v3  ;;  %v12081_v17 = vadd.f32 %v12070_v63, %v3961_v4  ;;  %v10344_v10 = vld [vmem:[%s11619_s20 + $0x1b0] sm:$0xff]  }
 0x16b   : > { %v3995_v19 = vmul.f32 0.25, %v2057_v15  ;;  %v12085_v20 = vadd.f32 %v12070_v63, %v3993_v7  ;;  %v12090_v22 = vadd.f32 %v12066_v61, %v3962_v8 }
 0x16c   : > { %v4483_v21 = vmax.f32 %v12074_v11, %v12081_v17  ;;  %v12093_v23 = vadd.f32 %v12070_v63, %v3963_v14  ;;  %9395 = vmatmul.mubr.msk.bf16.gmra.mrb[108].mxu0 %vm1639_vm0, %v10338_v58  ;;  %v12099_v25 = vadd.f32 %v12066_v61, %v3994_v13 }
 0x16d   : > { %v4531_v24 = vmax.f32 %v12078_v16, %v12085_v20  ;;  %v12102_v26 = vadd.f32 %v12070_v63, %v3995_v19  ;;  %9427 = vmatmul.mubr.msk.bf16.gmra.mrb[108].mxu1 %vm1639_vm0, %v10339_v60  ;;  %9396 = vmatprep.mubr.msk.bf16.mxu0 %vm1639_vm0, %v10340_v12  ;;  %v10345_v19 = vld [vmem:[%s11619_s20 + $0x1f0] sm:$0xff]  }
 0x16e   : > { %4484 = vmax.xlane.f32.xlu0 %v4483_v21  ;;  %v1756_v27 = vpop.f32.mrb[4].mxu0  ;;  %9428 = vmatprep.mubr.msk.bf16.mxu1 %vm1639_vm0, %v10341_v18  ;;  %v4486_v35 = vmax.f32 %v12090_v22, %v12093_v23 }
 0x16f   : > { %4532 = vmax.xlane.f32.xlu1 %v4531_v24  ;;  %v3964_v28 = vmul.f32 0.25, %v1756_v27  ;;  %v1758_v29 = vpop.f32.mrb[5].mxu0  ;;  %v2061_v30 = vpop.f32.mrb[4].mxu1  ;;  %v4534_v39 = vmax.f32 %v12099_v25, %v12102_v26 }
 0x170   : > { %v3965_v31 = vmul.f32 0.25, %v1758_v29  ;;  %v1760_v32 = vpop.f32.mrb[6].mxu0  ;;  %v3996_v33 = vmul.f32 0.25, %v2061_v30  ;;  %v2063_v34 = vpop.f32.mrb[5].mxu1 }
 0x171   : > { %v3966_v36 = vmul.f32 0.25, %v1760_v32  ;;  %v1762_v37 = vpop.f32.mrb[7].mxu0  ;;  %v3997_v38 = vmul.f32 0.25, %v2063_v34  ;;  %v2065_v40 = vpop.f32.mrb[6].mxu1  ;;  %v12112_v41 = vadd.f32 %v12066_v61, %v3964_v28 }
 0x172   : > { %v3967_v43 = vmul.f32 0.25, %v1762_v37  ;;  %v3998_v44 = vmul.f32 0.25, %v2065_v40  ;;  %4487 = vmax.xlane.f32.xlu0 %v4486_v35  ;;  %v2067_v45 = vpop.f32.mrb[7].mxu1  ;;  %v12116_v46 = vadd.f32 %v12070_v63, %v3965_v31  ;;  %v12119_v47 = vadd.f32 %v12066_v61, %v3996_v33 }
 0x173   : > { %4535 = vmax.xlane.f32.xlu1 %v4534_v39  ;;  %v3999_v49 = vmul.f32 0.25, %v2067_v45  ;;  %v12123_v50 = vadd.f32 %v12066_v61, %v3966_v36  ;;  %v12126_v51 = vadd.f32 %v12070_v63, %v3997_v38 }
 0x174   : > { %v4489_v52 = vmax.f32 %v12112_v41, %v12116_v46  ;;  %v12131_v53 = vadd.f32 %v12070_v63, %v3967_v43  ;;  %9397 = vmatmul.mubr.msk.bf16.gmra.mrb[112].mxu0 %vm1639_vm0, %v10340_v12  ;;  %v12135_v54 = vadd.f32 %v12066_v61, %v3998_v44 }
 0x175   : > { %v12138_v55 = vadd.f32 %v12070_v63, %v3999_v49  ;;  %9429 = vmatmul.mubr.msk.bf16.gmra.mrb[112].mxu1 %vm1639_vm0, %v10341_v18  ;;  %9398 = vmatprep.mubr.msk.bf16.mxu0 %vm1639_vm0, %v10342_v42  ;;  %v4537_v58 = vmax.f32 %v12119_v47, %v12126_v51 }
 0x176   : > { %4490 = vmax.xlane.f32.xlu0 %v4489_v52  ;;  %v1766_v56 = vpop.f32.mrb[8].mxu0  ;;  %v4492_v57 = vmax.f32 %v12123_v50, %v12131_v53  ;;  %9430 = vmatprep.mubr.msk.bf16.mxu1 %vm1639_vm0, %v10343_v48 }
 0x177   : > { %v3968_v59 = vmul.f32 0.25, %v1766_v56  ;;  %v1768_v60 = vpop.f32.mrb[9].mxu0  ;;  %v2071_v62 = vpop.f32.mrb[8].mxu1  ;;  %v4540_v9 = vmax.f32 %v12135_v54, %v12138_v55  ;;  %v10346_v56 = vld [vmem:[%s11619_s20 + $0x1b8] sm:$0xff]  }
 0x178   : > { %v3969_v0 = vmul.f32 0.25, %v1768_v60  ;;  %v4000_v1 = vmul.f32 0.25, %v2071_v62  ;;  %4493 = vmax.xlane.f32.xlu1 %v4492_v57  ;;  %v1770_v2 = vpop.f32.mrb[10].mxu0  ;;  %v2073_v3 = vpop.f32.mrb[9].mxu1 }
 0x179   : > { %v12148_v4 = vadd.f32 %v12066_v61, %v3968_v59  ;;  %v3970_v5 = vmul.f32 0.25, %v1770_v2  ;;  %v1772_v6 = vpop.f32.mrb[11].mxu0  ;;  %v4001_v7 = vmul.f32 0.25, %v2073_v3  ;;  %v2075_v8 = vpop.f32.mrb[10].mxu1 }
 0x17a   : > { %v12154_v12 = vadd.f32 %v12070_v63, %v3969_v0  ;;  %v12157_v13 = vadd.f32 %v12066_v61, %v4000_v1  ;;  %v3971_v14 = vmul.f32 0.25, %v1772_v6  ;;  %v4002_v15 = vmul.f32 0.25, %v2075_v8  ;;  %4538 = vmax.xlane.f32.xlu0 %v4537_v58  ;;  %v2077_v18 = vpop.f32.mrb[11].mxu1  ;;  %v10347_v0 = vld [vmem:[%s11619_s20 + $0x1f8] sm:$0xff]   ;;  %s11349_s20 = smov 32  }
 0x17b   : > { %v12161_v21 = vadd.f32 %v12066_v61, %v3970_v5  ;;  %v12164_v24 = vadd.f32 %v12070_v63, %v4001_v7  ;;  %v4003_v27 = vmul.f32 0.25, %v2077_v18 }
 0x17c   : > { %v12167_v28 = vadd.f32 %v12070_v63, %v3971_v14  ;;  %4541 = vmax.xlane.f32.xlu1 %v4540_v9  ;;  %v4495_v29 = vmax.f32 %v12148_v4, %v12154_v12  ;;  %9399 = vmatmul.mubr.msk.bf16.gmra.mrb[116].mxu0 %vm1639_vm0, %v10342_v42  ;;  %v12173_v30 = vadd.f32 %v12066_v61, %v4002_v15 }
 0x17d   : > { %v12176_v31 = vadd.f32 %v12070_v63, %v4003_v27  ;;  %9431 = vmatmul.mubr.msk.bf16.gmra.mrb[116].mxu1 %vm1639_vm0, %v10343_v48  ;;  %9400 = vmatprep.mubr.msk.bf16.mxu0 %vm1639_vm0, %v10344_v10  ;;  %v4543_v34 = vmax.f32 %v12157_v13, %v12164_v24 }
 0x17e   : > { %4496 = vmax.xlane.f32.xlu0 %v4495_v29  ;;  %v1776_v32 = vpop.f32.mrb[12].mxu0  ;;  %v4498_v33 = vmax.f32 %v12161_v21, %v12167_v28  ;;  %9432 = vmatprep.mubr.msk.bf16.mxu1 %vm1639_vm0, %v10345_v19 }
 0x17f   : > { %v3972_v35 = vmul.f32 0.25, %v1776_v32  ;;  %v1778_v36 = vpop.f32.mrb[13].mxu0  ;;  %v2081_v37 = vpop.f32.mrb[12].mxu1  ;;  %v4546_v52 = vmax.f32 %v12173_v30, %v12176_v31 }
 0x180   : > { %v3973_v38 = vmul.f32 0.25, %v1778_v36  ;;  %v4004_v39 = vmul.f32 0.25, %v2081_v37  ;;  %4499 = vmax.xlane.f32.xlu1 %v4498_v33  ;;  %v1780_v40 = vpop.f32.mrb[14].mxu0  ;;  %v2083_v42 = vpop.f32.mrb[13].mxu1 }
 0x181   : > { %v12186_v43 = vadd.f32 %v12066_v61, %v3972_v35  ;;  %v3974_v44 = vmul.f32 0.25, %v1780_v40  ;;  %v1782_v45 = vpop.f32.mrb[15].mxu0  ;;  %v4005_v48 = vmul.f32 0.25, %v2083_v42  ;;  %v2085_v49 = vpop.f32.mrb[14].mxu1 }
 0x182   : > { %v12192_v57 = vadd.f32 %v12070_v63, %v3973_v38  ;;  %v12195_v58 = vadd.f32 %v12066_v61, %v4004_v39  ;;  %v3975_v59 = vmul.f32 0.25, %v1782_v45  ;;  %v4006_v60 = vmul.f32 0.25, %v2085_v49  ;;  %4544 = vmax.xlane.f32.xlu0 %v4543_v34  ;;  %v2087_v62 = vpop.f32.mrb[15].mxu1 }
 0x183   : > { %v12199_v1 = vadd.f32 %v12066_v61, %v3974_v44  ;;  %v12202_v2 = vadd.f32 %v12070_v63, %v4005_v48  ;;  %v4007_v3 = vmul.f32 0.25, %v2087_v62 }
 0x184   : > { %v12205_v5 = vadd.f32 %v12070_v63, %v3975_v59  ;;  %4547 = vmax.xlane.f32.xlu1 %v4546_v52  ;;  %v4501_v6 = vmax.f32 %v12186_v43, %v12192_v57  ;;  %9401 = vmatmul.mubr.msk.bf16.gmra.mrb[120].mxu0 %vm1639_vm0, %v10344_v10  ;;  %v12211_v7 = vadd.f32 %v12066_v61, %v4006_v60 }
 0x185   : > { %v12214_v8 = vadd.f32 %v12070_v63, %v4007_v3  ;;  %9433 = vmatmul.mubr.msk.bf16.gmra.mrb[120].mxu1 %vm1639_vm0, %v10345_v19  ;;  %9402 = vmatprep.mubr.msk.bf16.mxu0 %vm1639_vm0, %v10346_v56  ;;  %v4549_v15 = vmax.f32 %v12195_v58, %v12202_v2 }
 0x186   : > { %4502 = vmax.xlane.f32.xlu0 %v4501_v6  ;;  %v1786_v9 = vpop.f32.mrb[16].mxu0  ;;  %v4504_v14 = vmax.f32 %v12199_v1, %v12205_v5  ;;  %9434 = vmatprep.mubr.msk.bf16.mxu1 %vm1639_vm0, %v10347_v0 }
 0x187   : > { %v3976_v10 = vmul.f32 0.25, %v1786_v9  ;;  %v1788_v18 = vpop.f32.mrb[17].mxu0  ;;  %v2091_v27 = vpop.f32.mrb[16].mxu1  ;;  %v4552_v39 = vmax.f32 %v12211_v7, %v12214_v8 }
 0x188   : > { %v3977_v29 = vmul.f32 0.25, %v1788_v18  ;;  %v4008_v32 = vmul.f32 0.25, %v2091_v27  ;;  %4505 = vmax.xlane.f32.xlu1 %v4504_v14  ;;  %v1790_v33 = vpop.f32.mrb[18].mxu0  ;;  %v2093_v19 = vpop.f32.mrb[17].mxu1 }
 0x189   : > { %v12224_v34 = vadd.f32 %v12066_v61, %v3976_v10  ;;  %v3978_v35 = vmul.f32 0.25, %v1790_v33  ;;  %v1792_v36 = vpop.f32.mrb[19].mxu0  ;;  %v4009_v37 = vmul.f32 0.25, %v2093_v19  ;;  %v2095_v38 = vpop.f32.mrb[18].mxu1 }
 0x18a   : > { %v12229_v40 = vadd.f32 %v12070_v63, %v3977_v29  ;;  %v12232_v42 = vadd.f32 %v12066_v61, %v4008_v32  ;;  %v3979_v44 = vmul.f32 0.25, %v1792_v36  ;;  %v4010_v45 = vmul.f32 0.25, %v2095_v38  ;;  %4550 = vmax.xlane.f32.xlu0 %v4549_v15  ;;  %v2097_v48 = vpop.f32.mrb[19].mxu1 }
 0x18b   : > { %v12235_v49 = vadd.f32 %v12066_v61, %v3978_v35  ;;  %v12238_v52 = vadd.f32 %v12070_v63, %v4009_v37  ;;  %v4011_v59 = vmul.f32 0.25, %v2097_v48 }
 0x18c   : > { %v12241_v60 = vadd.f32 %v12070_v63, %v3979_v44  ;;  %4553 = vmax.xlane.f32.xlu1 %v4552_v39  ;;  %v4507_v62 = vmax.f32 %v12224_v34, %v12229_v40  ;;  %9403 = vmatmul.mubr.msk.bf16.gmra.mrb[124].mxu0 %vm1639_vm0, %v10346_v56  ;;  %v12247_v3 = vadd.f32 %v12066_v61, %v4010_v45 }
 0x18d   : > { %v12250_v6 = vadd.f32 %v12070_v63, %v4011_v59  ;;  %9435 = vmatmul.mubr.msk.bf16.gmra.mrb[124].mxu1 %vm1639_vm0, %v10347_v0  ;;  %v4555_v15 = vmax.f32 %v12232_v42, %v12238_v52 }
 0x18e   : > { %4508 = vmax.xlane.f32.xlu0 %v4507_v62  ;;  %v1796_v9 = vpop.f32.mrb[20].mxu0  ;;  %v4510_v14 = vmax.f32 %v12235_v49, %v12241_v60 }
 0x18f   : > { %v3980_v10 = vmul.f32 0.25, %v1796_v9  ;;  %v1798_v18 = vpop.f32.mrb[21].mxu0  ;;  %v2101_v27 = vpop.f32.mrb[20].mxu1  ;;  %v4558_v38 = vmax.f32 %v12247_v3, %v12250_v6 }
 0x190   : > { %v3981_v56 = vmul.f32 0.25, %v1798_v18  ;;  %v4012_v29 = vmul.f32 0.25, %v2101_v27  ;;  %4511 = vmax.xlane.f32.xlu1 %v4510_v14  ;;  %v1800_v32 = vpop.f32.mrb[22].mxu0  ;;  %v2103_v33 = vpop.f32.mrb[21].mxu1 }
 0x191   : > { %v12258_v19 = vadd.f32 %v12066_v61, %v3980_v10  ;;  %v3982_v0 = vmul.f32 0.25, %v1800_v32  ;;  %v1802_v35 = vpop.f32.mrb[23].mxu0  ;;  %v4013_v36 = vmul.f32 0.25, %v2103_v33  ;;  %v2105_v37 = vpop.f32.mrb[22].mxu1 }
 0x192   : > { %v12263_v39 = vadd.f32 %v12070_v63, %v3981_v56  ;;  %v12266_v44 = vadd.f32 %v12066_v61, %v4012_v29  ;;  %v3983_v45 = vmul.f32 0.25, %v1802_v35  ;;  %v4014_v48 = vmul.f32 0.25, %v2105_v37  ;;  %4556 = vmax.xlane.f32.xlu0 %v4555_v15  ;;  %v2107_v59 = vpop.f32.mrb[23].mxu1 }
 0x193   : > { %v12269_v62 = vadd.f32 %v12066_v61, %v3982_v0  ;;  %v12272_v9 = vadd.f32 %v12070_v63, %v4013_v36  ;;  %v4015_v14 = vmul.f32 0.25, %v2107_v59 }
 0x194   : > { %15915 = vst [vmem:[#allocation7_spill] sm:$0xff] %v12263_v39  ;;  %15916 = vst [vmem:[#allocation8_spill] sm:$0xff] %v12266_v44  ;;  %v12275_v10 = vadd.f32 %v12070_v63, %v3983_v45  ;;  %4559 = vmax.xlane.f32.xlu1 %v4558_v38  ;;  %v4513_v18 = vmax.f32 %v12258_v19, %v12263_v39  ;;  %v12280_v27 = vadd.f32 %v12066_v61, %v4014_v48 }
 0x195   : > { %15917 = vst [vmem:[#allocation9_spill] sm:$0xff] %v12269_v62  ;;  %15918 = vst [vmem:[#allocation10_spill] sm:$0xff] %v12272_v9  ;;  %v12283_v15 = vadd.f32 %v12070_v63, %v4015_v14  ;;  %v4561_v32 = vmax.f32 %v12266_v44, %v12272_v9 }
 0x196   : > { %15919 = vst [vmem:[#allocation11_spill] sm:$0xff] %v12275_v10  ;;  %15920 = vst [vmem:[#allocation12_spill] sm:$0xff] %v12280_v27  ;;  %4514 = vmax.xlane.f32.xlu0 %v4513_v18  ;;  %v1806_v56 = vpop.f32.mrb[24].mxu0  ;;  %v4516_v29 = vmax.f32 %v12269_v62, %v12275_v10 }
 0x197   : > { %15921 = vst [vmem:[#allocation13_spill] sm:$0xff] %v12283_v15  ;;  %v3984_v33 = vmul.f32 0.25, %v1806_v56  ;;  %v1808_v0 = vpop.f32.mrb[25].mxu0  ;;  %v2111_v35 = vpop.f32.mrb[24].mxu1  ;;  %v4564_v10 = vmax.f32 %v12280_v27, %v12283_v15 }
 0x198   : > { %v3985_v36 = vmul.f32 0.25, %v1808_v0  ;;  %v4016_v37 = vmul.f32 0.25, %v2111_v35  ;;  %4517 = vmax.xlane.f32.xlu1 %v4516_v29  ;;  %v1810_v38 = vpop.f32.mrb[26].mxu0  ;;  %v2113_v45 = vpop.f32.mrb[25].mxu1 }
 0x199   : > { %v12290_v48 = vadd.f32 %v12066_v61, %v3984_v33  ;;  %v3986_v59 = vmul.f32 0.25, %v1810_v38  ;;  %v1812_v14 = vpop.f32.mrb[27].mxu0  ;;  %v4017_v18 = vmul.f32 0.25, %v2113_v45  ;;  %v2115_v39 = vpop.f32.mrb[26].mxu1 }
 0x19a   : > { %v12295_v9 = vadd.f32 %v12070_v63, %v3985_v36  ;;  %v12298_v56 = vadd.f32 %v12066_v61, %v4016_v37  ;;  %v3987_v0 = vmul.f32 0.25, %v1812_v14  ;;  %v4018_v29 = vmul.f32 0.25, %v2115_v39  ;;  %4562 = vmax.xlane.f32.xlu0 %v4561_v32  ;;  %v2117_v35 = vpop.f32.mrb[27].mxu1 }
 0x19b   : > { %15922 = vst [vmem:[#allocation14_spill] sm:$0xff] %v12290_v48  ;;  %v12301_v33 = vadd.f32 %v12066_v61, %v3986_v59  ;;  %v12304_v38 = vadd.f32 %v12070_v63, %v4017_v18  ;;  %v4019_v45 = vmul.f32 0.25, %v2117_v35 }
 0x19c   : > { %15923 = vst [vmem:[#allocation15_spill] sm:$0xff] %v12295_v9  ;;  %15924 = vst [vmem:[#allocation16_spill] sm:$0xff] %v12298_v56  ;;  %v12307_v44 = vadd.f32 %v12070_v63, %v3987_v0  ;;  %4565 = vmax.xlane.f32.xlu1 %v4564_v10  ;;  %v4519_v36 = vmax.f32 %v12290_v48, %v12295_v9  ;;  %v12312_v37 = vadd.f32 %v12066_v61, %v4018_v29 }
 0x19d   : > { %15925 = vst [vmem:[#allocation17_spill] sm:$0xff] %v12301_v33  ;;  %15926 = vst [vmem:[#allocation18_spill] sm:$0xff] %v12304_v38  ;;  %v12315_v39 = vadd.f32 %v12070_v63, %v4019_v45  ;;  %v4567_v14 = vmax.f32 %v12298_v56, %v12304_v38 }
 0x19e   : > { %15927 = vst [vmem:[#allocation19_spill] sm:$0xff] %v12307_v44  ;;  %15928 = vst [vmem:[#allocation20_spill] sm:$0xff] %v12312_v37  ;;  %4520 = vmax.xlane.f32.xlu0 %v4519_v36  ;;  %v1816_v32 = vpop.f32.mrb[28].mxu0  ;;  %v4522_v59 = vmax.f32 %v12301_v33, %v12307_v44 }
 0x19f   : > { %15929 = vst [vmem:[#allocation21_spill] sm:$0xff] %v12315_v39  ;;  %v3988_v18 = vmul.f32 0.25, %v1816_v32  ;;  %v1818_v0 = vpop.f32.mrb[29].mxu0  ;;  %v2121_v10 = vpop.f32.mrb[28].mxu1  ;;  %v4570_v44 = vmax.f32 %v12312_v37, %v12315_v39 }
 0x1a0   : > { %v3989_v35 = vmul.f32 0.25, %v1818_v0  ;;  %v4020_v15 = vmul.f32 0.25, %v2121_v10  ;;  %4523 = vmax.xlane.f32.xlu1 %v4522_v59  ;;  %v1820_v9 = vpop.f32.mrb[30].mxu0  ;;  %v2123_v29 = vpop.f32.mrb[29].mxu1 }
 0x1a1   : > { %v12322_v48 = vadd.f32 %v12066_v61, %v3988_v18  ;;  %v3990_v45 = vmul.f32 0.25, %v1820_v9  ;;  %v1822_v36 = vpop.f32.mrb[31].mxu0  ;;  %v4021_v27 = vmul.f32 0.25, %v2123_v29  ;;  %v2125_v62 = vpop.f32.mrb[30].mxu1 }
 0x1a2   : > { %v12327_v38 = vadd.f32 %v12070_v63, %v3989_v35  ;;  %v12330_v32 = vadd.f32 %v12066_v61, %v4020_v15  ;;  %v3991_v0 = vmul.f32 0.25, %v1822_v36  ;;  %v4022_v59 = vmul.f32 0.25, %v2125_v62  ;;  %4568 = vmax.xlane.f32.xlu0 %v4567_v14  ;;  %v2127_v10 = vpop.f32.mrb[31].mxu1 }
 0x1a3   : > { %15930 = vst [vmem:[#allocation22_spill] sm:$0xff] %v12322_v48  ;;  %v12333_v18 = vadd.f32 %v12066_v61, %v3990_v45  ;;  %v12336_v9 = vadd.f32 %v12070_v63, %v4021_v27  ;;  %v4023_v29 = vmul.f32 0.25, %v2127_v10 }
 0x1a4   : > { %15931 = vst [vmem:[#allocation23_spill] sm:$0xff] %v12327_v38  ;;  %15932 = vst [vmem:[#allocation24_spill] sm:$0xff] %v12330_v32  ;;  %v12339_v56 = vadd.f32 %v12070_v63, %v3991_v0  ;;  %4571 = vmax.xlane.f32.xlu1 %v4570_v44  ;;  %v4525_v35 = vmax.f32 %v12322_v48, %v12327_v38  ;;  %v12344_v15 = vadd.f32 %v12066_v61, %v4022_v59 }
 0x1a5   : > { %15933 = vst [vmem:[#allocation25_spill] sm:$0xff] %v12333_v18  ;;  %15934 = vst [vmem:[#allocation26_spill] sm:$0xff] %v12336_v9  ;;  %v12347_v62 = vadd.f32 %v12070_v63, %v4023_v29  ;;  %v4573_v45 = vmax.f32 %v12330_v32, %v12336_v9 }
 0x1a6   : > { %15935 = vst [vmem:[#allocation27_spill] sm:$0xff] %v12339_v56  ;;  %15936 = vst [vmem:[#allocation28_spill] sm:$0xff] %v12344_v15  ;;  %4526 = vmax.xlane.f32.xlu0 %v4525_v35  ;;  %v2356_v14 = vpop.f32.mrb[32].mxu0  ;;  %v4528_v27 = vmax.f32 %v12333_v18, %v12339_v56 }
 0x1a7   : > { %15937 = vst [vmem:[#allocation29_spill] sm:$0xff] %v12347_v62  ;;  %v4024_v36 = vmul.f32 0.25, %v2356_v14  ;;  %v2358_v0 = vpop.f32.mrb[33].mxu0  ;;  %v2661_v44 = vpop.f32.mrb[32].mxu1  ;;  %v4576_v56 = vmax.f32 %v12344_v15, %v12347_v62 }
 0x1a8   : > { %v4025_v10 = vmul.f32 0.25, %v2358_v0  ;;  %v4056_v39 = vmul.f32 0.25, %v2661_v44  ;;  %4529 = vmax.xlane.f32.xlu1 %v4528_v27  ;;  %v2360_v38 = vpop.f32.mrb[34].mxu0  ;;  %v2663_v59 = vpop.f32.mrb[33].mxu1 }
 0x1a9   : > { %v12354_v48 = vadd.f32 %v12066_v61, %v4024_v36  ;;  %v4026_v29 = vmul.f32 0.25, %v2360_v38  ;;  %v2362_v35 = vpop.f32.mrb[35].mxu0  ;;  %v4057_v37 = vmul.f32 0.25, %v2663_v59  ;;  %v2665_v33 = vpop.f32.mrb[34].mxu1 }
 0x1aa   : > { %v12359_v9 = vadd.f32 %v12070_v63, %v4025_v10  ;;  %v12362_v14 = vadd.f32 %v12066_v61, %v4056_v39  ;;  %v4027_v0 = vmul.f32 0.25, %v2362_v35  ;;  %v4058_v27 = vmul.f32 0.25, %v2665_v33  ;;  %4574 = vmax.xlane.f32.xlu0 %v4573_v45  ;;  %v2667_v44 = vpop.f32.mrb[35].mxu1 }
 0x1ab   : > { %15938 = vst [vmem:[#allocation30_spill] sm:$0xff] %v12354_v48  ;;  %v12365_v36 = vadd.f32 %v12066_v61, %v4026_v29  ;;  %v12368_v38 = vadd.f32 %v12070_v63, %v4057_v37  ;;  %v4059_v59 = vmul.f32 0.25, %v2667_v44 }
 0x1ac   : > { %15939 = vst [vmem:[#allocation31_spill] sm:$0xff] %v12359_v9  ;;  %15940 = vst [vmem:[#allocation32_spill] sm:$0xff] %v12362_v14  ;;  %v12371_v32 = vadd.f32 %v12070_v63, %v4027_v0  ;;  %4577 = vmax.xlane.f32.xlu1 %v4576_v56  ;;  %v4579_v10 = vmax.f32 %v12354_v48, %v12359_v9  ;;  %v12376_v39 = vadd.f32 %v12066_v61, %v4058_v27 }
 0x1ad   : > { %15941 = vst [vmem:[#allocation33_spill] sm:$0xff] %v12365_v36  ;;  %15942 = vst [vmem:[#allocation34_spill] sm:$0xff] %v12368_v38  ;;  %v12379_v33 = vadd.f32 %v12070_v63, %v4059_v59  ;;  %v4627_v29 = vmax.f32 %v12362_v14, %v12368_v38 }
 0x1ae   : > { %15943 = vst [vmem:[#allocation35_spill] sm:$0xff] %v12371_v32  ;;  %15944 = vst [vmem:[#allocation36_spill] sm:$0xff] %v12376_v39  ;;  %4580 = vmax.xlane.f32.xlu0 %v4579_v10  ;;  %v2366_v45 = vpop.f32.mrb[36].mxu0  ;;  %v4582_v37 = vmax.f32 %v12365_v36, %v12371_v32 }
 0x1af   : > { %15945 = vst [vmem:[#allocation37_spill] sm:$0xff] %v12379_v33  ;;  %v4028_v35 = vmul.f32 0.25, %v2366_v45  ;;  %v2368_v0 = vpop.f32.mrb[37].mxu0  ;;  %v2671_v56 = vpop.f32.mrb[36].mxu1  ;;  %v4630_v32 = vmax.f32 %v12376_v39, %v12379_v33 }
 0x1b0   : > { %v4029_v44 = vmul.f32 0.25, %v2368_v0  ;;  %v4060_v62 = vmul.f32 0.25, %v2671_v56  ;;  %4583 = vmax.xlane.f32.xlu1 %v4582_v37  ;;  %v2370_v9 = vpop.f32.mrb[38].mxu0  ;;  %v2673_v27 = vpop.f32.mrb[37].mxu1 }
 0x1b1   : > { %v12386_v48 = vadd.f32 %v12066_v61, %v4028_v35  ;;  %v4030_v59 = vmul.f32 0.25, %v2370_v9  ;;  %v2372_v10 = vpop.f32.mrb[39].mxu0  ;;  %v4061_v15 = vmul.f32 0.25, %v2673_v27  ;;  %v2675_v18 = vpop.f32.mrb[38].mxu1 }
 0x1b2   : > { %v12391_v38 = vadd.f32 %v12070_v63, %v4029_v44  ;;  %v12394_v45 = vadd.f32 %v12066_v61, %v4060_v62  ;;  %v4031_v0 = vmul.f32 0.25, %v2372_v10  ;;  %v4062_v37 = vmul.f32 0.25, %v2675_v18  ;;  %4628 = vmax.xlane.f32.xlu0 %v4627_v29  ;;  %v2677_v56 = vpop.f32.mrb[39].mxu1 }
 0x1b3   : > { %15946 = vst [vmem:[#allocation38_spill] sm:$0xff] %v12386_v48  ;;  %v12397_v35 = vadd.f32 %v12066_v61, %v4030_v59  ;;  %v12400_v9 = vadd.f32 %v12070_v63, %v4061_v15  ;;  %v4063_v27 = vmul.f32 0.25, %v2677_v56 }
 0x1b4   : > { %15947 = vst [vmem:[#allocation39_spill] sm:$0xff] %v12391_v38  ;;  %15948 = vst [vmem:[#allocation40_spill] sm:$0xff] %v12394_v45  ;;  %v12403_v14 = vadd.f32 %v12070_v63, %v4031_v0  ;;  %4631 = vmax.xlane.f32.xlu1 %v4630_v32  ;;  %v4585_v44 = vmax.f32 %v12386_v48, %v12391_v38  ;;  %v12408_v62 = vadd.f32 %v12066_v61, %v4062_v37 }
 0x1b5   : > { %15949 = vst [vmem:[#allocation41_spill] sm:$0xff] %v12397_v35  ;;  %15950 = vst [vmem:[#allocation42_spill] sm:$0xff] %v12400_v9  ;;  %v12411_v18 = vadd.f32 %v12070_v63, %v4063_v27  ;;  %v4633_v59 = vmax.f32 %v12394_v45, %v12400_v9 }
 0x1b6   : > { %15951 = vst [vmem:[#allocation43_spill] sm:$0xff] %v12403_v14  ;;  %15952 = vst [vmem:[#allocation44_spill] sm:$0xff] %v12408_v62  ;;  %4586 = vmax.xlane.f32.xlu0 %v4585_v44  ;;  %v2376_v29 = vpop.f32.mrb[40].mxu0  ;;  %v4588_v15 = vmax.f32 %v12397_v35, %v12403_v14 }
 0x1b7   : > { %15953 = vst [vmem:[#allocation45_spill] sm:$0xff] %v12411_v18  ;;  %v4032_v10 = vmul.f32 0.25, %v2376_v29  ;;  %v2378_v0 = vpop.f32.mrb[41].mxu0  ;;  %v2681_v32 = vpop.f32.mrb[40].mxu1  ;;  %v4636_v14 = vmax.f32 %v12408_v62, %v12411_v18 }
 0x1b8   : > { %v4033_v56 = vmul.f32 0.25, %v2378_v0  ;;  %v4064_v33 = vmul.f32 0.25, %v2681_v32  ;;  %4589 = vmax.xlane.f32.xlu1 %v4588_v15  ;;  %v2380_v38 = vpop.f32.mrb[42].mxu0  ;;  %v2683_v37 = vpop.f32.mrb[41].mxu1 }
 0x1b9   : > { %v12418_v48 = vadd.f32 %v12066_v61, %v4032_v10  ;;  %v4034_v27 = vmul.f32 0.25, %v2380_v38  ;;  %v2382_v44 = vpop.f32.mrb[43].mxu0  ;;  %v4065_v39 = vmul.f32 0.25, %v2683_v37  ;;  %v2685_v36 = vpop.f32.mrb[42].mxu1 }
 0x1ba   : > { %v12423_v9 = vadd.f32 %v12070_v63, %v4033_v56  ;;  %v12426_v29 = vadd.f32 %v12066_v61, %v4064_v33  ;;  %v4035_v0 = vmul.f32 0.25, %v2382_v44  ;;  %v4066_v15 = vmul.f32 0.25, %v2685_v36  ;;  %4634 = vmax.xlane.f32.xlu0 %v4633_v59  ;;  %v2687_v32 = vpop.f32.mrb[43].mxu1 }
 0x1bb   : > { %15954 = vst [vmem:[#allocation46_spill] sm:$0xff] %v12418_v48  ;;  %v12429_v10 = vadd.f32 %v12066_v61, %v4034_v27  ;;  %v12432_v38 = vadd.f32 %v12070_v63, %v4065_v39  ;;  %v4067_v37 = vmul.f32 0.25, %v2687_v32 }
 0x1bc   : > { %15955 = vst [vmem:[#allocation47_spill] sm:$0xff] %v12423_v9  ;;  %15956 = vst [vmem:[#allocation48_spill] sm:$0xff] %v12426_v29  ;;  %v12435_v45 = vadd.f32 %v12070_v63, %v4035_v0  ;;  %4637 = vmax.xlane.f32.xlu1 %v4636_v14  ;;  %v4591_v56 = vmax.f32 %v12418_v48, %v12423_v9  ;;  %v12440_v33 = vadd.f32 %v12066_v61, %v4066_v15 }
 0x1bd   : > { %15957 = vst [vmem:[#allocation49_spill] sm:$0xff] %v12429_v10  ;;  %15958 = vst [vmem:[#allocation50_spill] sm:$0xff] %v12432_v38  ;;  %v12443_v36 = vadd.f32 %v12070_v63, %v4067_v37  ;;  %v4639_v27 = vmax.f32 %v12426_v29, %v12432_v38 }
 0x1be   : > { %15959 = vst [vmem:[#allocation51_spill] sm:$0xff] %v12435_v45  ;;  %15960 = vst [vmem:[#allocation52_spill] sm:$0xff] %v12440_v33  ;;  %4592 = vmax.xlane.f32.xlu0 %v4591_v56  ;;  %v2386_v59 = vpop.f32.mrb[44].mxu0  ;;  %v4594_v39 = vmax.f32 %v12429_v10, %v12435_v45 }
 0x1bf   : > { %15961 = vst [vmem:[#allocation53_spill] sm:$0xff] %v12443_v36  ;;  %v4036_v44 = vmul.f32 0.25, %v2386_v59  ;;  %v2388_v0 = vpop.f32.mrb[45].mxu0  ;;  %v2691_v14 = vpop.f32.mrb[44].mxu1  ;;  %v4642_v45 = vmax.f32 %v12440_v33, %v12443_v36 }
 0x1c0   : > { %v4037_v32 = vmul.f32 0.25, %v2388_v0  ;;  %v4068_v18 = vmul.f32 0.25, %v2691_v14  ;;  %4595 = vmax.xlane.f32.xlu1 %v4594_v39  ;;  %v2390_v9 = vpop.f32.mrb[46].mxu0  ;;  %v2693_v15 = vpop.f32.mrb[45].mxu1 }
 0x1c1   : > { %v12450_v48 = vadd.f32 %v12066_v61, %v4036_v44  ;;  %v4038_v37 = vmul.f32 0.25, %v2390_v9  ;;  %v2392_v56 = vpop.f32.mrb[47].mxu0  ;;  %v4069_v62 = vmul.f32 0.25, %v2693_v15  ;;  %v2695_v35 = vpop.f32.mrb[46].mxu1 }
 0x1c2   : > { %v12455_v38 = vadd.f32 %v12070_v63, %v4037_v32  ;;  %v12458_v59 = vadd.f32 %v12066_v61, %v4068_v18  ;;  %v4039_v0 = vmul.f32 0.25, %v2392_v56  ;;  %v4070_v39 = vmul.f32 0.25, %v2695_v35  ;;  %4640 = vmax.xlane.f32.xlu0 %v4639_v27  ;;  %v2697_v14 = vpop.f32.mrb[47].mxu1 }
 0x1c3   : > { %15962 = vst [vmem:[#allocation54_spill] sm:$0xff] %v12450_v48  ;;  %v12461_v44 = vadd.f32 %v12066_v61, %v4038_v37  ;;  %v12464_v9 = vadd.f32 %v12070_v63, %v4069_v62  ;;  %v4071_v15 = vmul.f32 0.25, %v2697_v14 }
 0x1c4   : > { %15963 = vst [vmem:[#allocation55_spill] sm:$0xff] %v12455_v38  ;;  %15964 = vst [vmem:[#allocation56_spill] sm:$0xff] %v12458_v59  ;;  %v12467_v29 = vadd.f32 %v12070_v63, %v4039_v0  ;;  %4643 = vmax.xlane.f32.xlu1 %v4642_v45  ;;  %v4597_v32 = vmax.f32 %v12450_v48, %v12455_v38  ;;  %v12472_v18 = vadd.f32 %v12066_v61, %v4070_v39 }
 0x1c5   : > { %15965 = vst [vmem:[#allocation57_spill] sm:$0xff] %v12461_v44  ;;  %15966 = vst [vmem:[#allocation58_spill] sm:$0xff] %v12464_v9  ;;  %v12475_v35 = vadd.f32 %v12070_v63, %v4071_v15  ;;  %v4645_v37 = vmax.f32 %v12458_v59, %v12464_v9 }
 0x1c6   : > { %15967 = vst [vmem:[#allocation59_spill] sm:$0xff] %v12467_v29  ;;  %15968 = vst [vmem:[#allocation60_spill] sm:$0xff] %v12472_v18  ;;  %4598 = vmax.xlane.f32.xlu0 %v4597_v32  ;;  %v2396_v27 = vpop.f32.mrb[48].mxu0  ;;  %v4600_v62 = vmax.f32 %v12461_v44, %v12467_v29 }
 0x1c7   : > { %15969 = vst [vmem:[#allocation61_spill] sm:$0xff] %v12475_v35  ;;  %v4040_v56 = vmul.f32 0.25, %v2396_v27  ;;  %v2398_v0 = vpop.f32.mrb[49].mxu0  ;;  %v2701_v45 = vpop.f32.mrb[48].mxu1  ;;  %v4648_v29 = vmax.f32 %v12472_v18, %v12475_v35 }
 0x1c8   : > { %v4041_v14 = vmul.f32 0.25, %v2398_v0  ;;  %v4072_v36 = vmul.f32 0.25, %v2701_v45  ;;  %4601 = vmax.xlane.f32.xlu1 %v4600_v62  ;;  %v2400_v38 = vpop.f32.mrb[50].mxu0  ;;  %v2703_v39 = vpop.f32.mrb[49].mxu1 }
 0x1c9   : > { %v12482_v48 = vadd.f32 %v12066_v61, %v4040_v56  ;;  %v4042_v15 = vmul.f32 0.25, %v2400_v38  ;;  %v2402_v32 = vpop.f32.mrb[51].mxu0  ;;  %v4073_v33 = vmul.f32 0.25, %v2703_v39  ;;  %v2705_v10 = vpop.f32.mrb[50].mxu1 }
 0x1ca   : > { %v12487_v9 = vadd.f32 %v12070_v63, %v4041_v14  ;;  %v12490_v27 = vadd.f32 %v12066_v61, %v4072_v36  ;;  %v4043_v0 = vmul.f32 0.25, %v2402_v32  ;;  %v4074_v62 = vmul.f32 0.25, %v2705_v10  ;;  %4646 = vmax.xlane.f32.xlu0 %v4645_v37  ;;  %v2707_v45 = vpop.f32.mrb[51].mxu1 }
 0x1cb   : > { %15970 = vst [vmem:[#allocation62_spill] sm:$0xff] %v12482_v48  ;;  %v12493_v56 = vadd.f32 %v12066_v61, %v4042_v15  ;;  %v12496_v38 = vadd.f32 %v12070_v63, %v4073_v33  ;;  %v4075_v39 = vmul.f32 0.25, %v2707_v45 }
 0x1cc   : > { %15971 = vst [vmem:[#allocation63_spill] sm:$0xff] %v12487_v9  ;;  %15972 = vst [vmem:[#allocation64_spill] sm:$0xff] %v12490_v27  ;;  %v12499_v59 = vadd.f32 %v12070_v63, %v4043_v0  ;;  %4649 = vmax.xlane.f32.xlu1 %v4648_v29  ;;  %v4603_v14 = vmax.f32 %v12482_v48, %v12487_v9  ;;  %v12504_v36 = vadd.f32 %v12066_v61, %v4074_v62 }
 0x1cd   : > { %15973 = vst [vmem:[#allocation65_spill] sm:$0xff] %v12493_v56  ;;  %15974 = vst [vmem:[#allocation66_spill] sm:$0xff] %v12496_v38  ;;  %v12507_v10 = vadd.f32 %v12070_v63, %v4075_v39  ;;  %v4651_v15 = vmax.f32 %v12490_v27, %v12496_v38 }
 0x1ce   : > { %15975 = vst [vmem:[#allocation67_spill] sm:$0xff] %v12499_v59  ;;  %15976 = vst [vmem:[#allocation68_spill] sm:$0xff] %v12504_v36  ;;  %4604 = vmax.xlane.f32.xlu0 %v4603_v14  ;;  %v2406_v37 = vpop.f32.mrb[52].mxu0  ;;  %v4606_v33 = vmax.f32 %v12493_v56, %v12499_v59 }
 0x1cf   : > { %15977 = vst [vmem:[#allocation69_spill] sm:$0xff] %v12507_v10  ;;  %v4044_v32 = vmul.f32 0.25, %v2406_v37  ;;  %v2408_v0 = vpop.f32.mrb[53].mxu0  ;;  %v2711_v29 = vpop.f32.mrb[52].mxu1  ;;  %v4654_v59 = vmax.f32 %v12504_v36, %v12507_v10 }
 0x1d0   : > { %v4045_v45 = vmul.f32 0.25, %v2408_v0  ;;  %v4076_v35 = vmul.f32 0.25, %v2711_v29  ;;  %4607 = vmax.xlane.f32.xlu1 %v4606_v33  ;;  %v2410_v9 = vpop.f32.mrb[54].mxu0  ;;  %v2713_v62 = vpop.f32.mrb[53].mxu1 }
 0x1d1   : > { %v12514_v48 = vadd.f32 %v12066_v61, %v4044_v32  ;;  %v4046_v39 = vmul.f32 0.25, %v2410_v9  ;;  %v2412_v14 = vpop.f32.mrb[55].mxu0  ;;  %v4077_v18 = vmul.f32 0.25, %v2713_v62  ;;  %v2715_v44 = vpop.f32.mrb[54].mxu1 }
 0x1d2   : > { %v12519_v38 = vadd.f32 %v12070_v63, %v4045_v45  ;;  %v12522_v37 = vadd.f32 %v12066_v61, %v4076_v35  ;;  %v4047_v0 = vmul.f32 0.25, %v2412_v14  ;;  %v4078_v33 = vmul.f32 0.25, %v2715_v44  ;;  %4652 = vmax.xlane.f32.xlu0 %v4651_v15  ;;  %v2717_v29 = vpop.f32.mrb[55].mxu1 }
 0x1d3   : > { %15978 = vst [vmem:[#allocation70_spill] sm:$0xff] %v12514_v48  ;;  %v12525_v32 = vadd.f32 %v12066_v61, %v4046_v39  ;;  %v12528_v9 = vadd.f32 %v12070_v63, %v4077_v18  ;;  %v4079_v62 = vmul.f32 0.25, %v2717_v29 }
 0x1d4   : > { %15979 = vst [vmem:[#allocation71_spill] sm:$0xff] %v12519_v38  ;;  %15980 = vst [vmem:[#allocation72_spill] sm:$0xff] %v12522_v37  ;;  %v12531_v27 = vadd.f32 %v12070_v63, %v4047_v0  ;;  %4655 = vmax.xlane.f32.xlu1 %v4654_v59  ;;  %v4609_v45 = vmax.f32 %v12514_v48, %v12519_v38  ;;  %v12536_v35 = vadd.f32 %v12066_v61, %v4078_v33 }
 0x1d5   : > { %15981 = vst [vmem:[#allocation73_spill] sm:$0xff] %v12525_v32  ;;  %15982 = vst [vmem:[#allocation74_spill] sm:$0xff] %v12528_v9  ;;  %v12539_v44 = vadd.f32 %v12070_v63, %v4079_v62  ;;  %v4657_v39 = vmax.f32 %v12522_v37, %v12528_v9 }
 0x1d6   : > { %15983 = vst [vmem:[#allocation75_spill] sm:$0xff] %v12531_v27  ;;  %15984 = vst [vmem:[#allocation76_spill] sm:$0xff] %v12536_v35  ;;  %4610 = vmax.xlane.f32.xlu0 %v4609_v45  ;;  %v2416_v15 = vpop.f32.mrb[56].mxu0  ;;  %v4612_v18 = vmax.f32 %v12525_v32, %v12531_v27 }
 0x1d7   : > { %15985 = vst [vmem:[#allocation77_spill] sm:$0xff] %v12539_v44  ;;  %v4048_v14 = vmul.f32 0.25, %v2416_v15  ;;  %v2418_v0 = vpop.f32.mrb[57].mxu0  ;;  %v2721_v59 = vpop.f32.mrb[56].mxu1  ;;  %v4660_v27 = vmax.f32 %v12536_v35, %v12539_v44 }
 0x1d8   : > { %v4049_v29 = vmul.f32 0.25, %v2418_v0  ;;  %v4080_v10 = vmul.f32 0.25, %v2721_v59  ;;  %4613 = vmax.xlane.f32.xlu1 %v4612_v18  ;;  %v2420_v38 = vpop.f32.mrb[58].mxu0  ;;  %v2723_v33 = vpop.f32.mrb[57].mxu1 }
 0x1d9   : > { %v12546_v48 = vadd.f32 %v12066_v61, %v4048_v14  ;;  %v4050_v62 = vmul.f32 0.25, %v2420_v38  ;;  %v2422_v45 = vpop.f32.mrb[59].mxu0  ;;  %v4081_v36 = vmul.f32 0.25, %v2723_v33  ;;  %v2725_v56 = vpop.f32.mrb[58].mxu1 }
 0x1da   : > { %v12551_v9 = vadd.f32 %v12070_v63, %v4049_v29  ;;  %v12554_v15 = vadd.f32 %v12066_v61, %v4080_v10  ;;  %v4051_v0 = vmul.f32 0.25, %v2422_v45  ;;  %v4082_v18 = vmul.f32 0.25, %v2725_v56  ;;  %4658 = vmax.xlane.f32.xlu0 %v4657_v39  ;;  %v2727_v59 = vpop.f32.mrb[59].mxu1 }
 0x1db   : > { %15986 = vst [vmem:[#allocation78_spill] sm:$0xff] %v12546_v48  ;;  %v12557_v14 = vadd.f32 %v12066_v61, %v4050_v62  ;;  %v12560_v38 = vadd.f32 %v12070_v63, %v4081_v36  ;;  %v4083_v33 = vmul.f32 0.25, %v2727_v59 }
 0x1dc   : > { %15987 = vst [vmem:[#allocation79_spill] sm:$0xff] %v12551_v9  ;;  %15988 = vst [vmem:[#allocation80_spill] sm:$0xff] %v12554_v15  ;;  %v12563_v37 = vadd.f32 %v12070_v63, %v4051_v0  ;;  %4661 = vmax.xlane.f32.xlu1 %v4660_v27  ;;  %v4615_v29 = vmax.f32 %v12546_v48, %v12551_v9  ;;  %v12568_v10 = vadd.f32 %v12066_v61, %v4082_v18 }
 0x1dd   : > { %15989 = vst [vmem:[#allocation81_spill] sm:$0xff] %v12557_v14  ;;  %15990 = vst [vmem:[#allocation82_spill] sm:$0xff] %v12560_v38  ;;  %v12571_v56 = vadd.f32 %v12070_v63, %v4083_v33  ;;  %v4663_v62 = vmax.f32 %v12554_v15, %v12560_v38 }
 0x1de   : > { %15991 = vst [vmem:[#allocation83_spill] sm:$0xff] %v12563_v37  ;;  %15992 = vst [vmem:[#allocation84_spill] sm:$0xff] %v12568_v10  ;;  %4616 = vmax.xlane.f32.xlu0 %v4615_v29  ;;  %v2426_v39 = vpop.f32.mrb[60].mxu0  ;;  %v4618_v36 = vmax.f32 %v12557_v14, %v12563_v37 }
 0x1df   : > { %15993 = vst [vmem:[#allocation85_spill] sm:$0xff] %v12571_v56  ;;  %v4052_v45 = vmul.f32 0.25, %v2426_v39  ;;  %v2428_v0 = vpop.f32.mrb[61].mxu0  ;;  %v2731_v27 = vpop.f32.mrb[60].mxu1  ;;  %v4666_v37 = vmax.f32 %v12568_v10, %v12571_v56 }
 0x1e0   : > { %v4053_v59 = vmul.f32 0.25, %v2428_v0  ;;  %v4084_v44 = vmul.f32 0.25, %v2731_v27  ;;  %4619 = vmax.xlane.f32.xlu1 %v4618_v36  ;;  %v2430_v9 = vpop.f32.mrb[62].mxu0  ;;  %v2733_v18 = vpop.f32.mrb[61].mxu1 }
 0x1e1   : > { %v12578_v48 = vadd.f32 %v12066_v61, %v4052_v45  ;;  %v4054_v33 = vmul.f32 0.25, %v2430_v9  ;;  %v2432_v29 = vpop.f32.mrb[63].mxu0  ;;  %v4085_v35 = vmul.f32 0.25, %v2733_v18  ;;  %v2735_v32 = vpop.f32.mrb[62].mxu1 }
 0x1e2   : > { %v12583_v38 = vadd.f32 %v12070_v63, %v4053_v59  ;;  %v12586_v39 = vadd.f32 %v12066_v61, %v4084_v44  ;;  %v4055_v0 = vmul.f32 0.25, %v2432_v29  ;;  %v4086_v36 = vmul.f32 0.25, %v2735_v32  ;;  %4664 = vmax.xlane.f32.xlu0 %v4663_v62  ;;  %v2737_v27 = vpop.f32.mrb[63].mxu1 }
 0x1e3   : > { %15994 = vst [vmem:[#allocation86_spill] sm:$0xff] %v12578_v48  ;;  %v12589_v45 = vadd.f32 %v12066_v61, %v4054_v33  ;;  %v12592_v9 = vadd.f32 %v12070_v63, %v4085_v35  ;;  %v4087_v18 = vmul.f32 0.25, %v2737_v27 }
 0x1e4   : > { %15995 = vst [vmem:[#allocation87_spill] sm:$0xff] %v12583_v38  ;;  %15996 = vst [vmem:[#allocation88_spill] sm:$0xff] %v12586_v39  ;;  %v12595_v15 = vadd.f32 %v12070_v63, %v4055_v0  ;;  %4667 = vmax.xlane.f32.xlu1 %v4666_v37  ;;  %v4621_v59 = vmax.f32 %v12578_v48, %v12583_v38  ;;  %v12600_v44 = vadd.f32 %v12066_v61, %v4086_v36 }
 0x1e5   : > { %15997 = vst [vmem:[#allocation89_spill] sm:$0xff] %v12589_v45  ;;  %15998 = vst [vmem:[#allocation90_spill] sm:$0xff] %v12592_v9  ;;  %v12603_v32 = vadd.f32 %v12070_v63, %v4087_v18  ;;  %v4669_v33 = vmax.f32 %v12586_v39, %v12592_v9 }
 0x1e6   : > { %15999 = vst [vmem:[#allocation91_spill] sm:$0xff] %v12595_v15  ;;  %16000 = vst [vmem:[#allocation92_spill] sm:$0xff] %v12600_v44  ;;  %4622 = vmax.xlane.f32.xlu0 %v4621_v59  ;;  %v2966_v62 = vpop.f32.mrb[64].mxu0  ;;  %v4624_v35 = vmax.f32 %v12589_v45, %v12595_v15 }
 0x1e7   : > { %16001 = vst [vmem:[#allocation93_spill] sm:$0xff] %v12603_v32  ;;  %v4088_v29 = vmul.f32 0.25, %v2966_v62  ;;  %v2968_v0 = vpop.f32.mrb[65].mxu0  ;;  %v3271_v37 = vpop.f32.mrb[64].mxu1  ;;  %v4672_v15 = vmax.f32 %v12600_v44, %v12603_v32 }
 0x1e8   : > { %v4089_v27 = vmul.f32 0.25, %v2968_v0  ;;  %v4120_v56 = vmul.f32 0.25, %v3271_v37  ;;  %4625 = vmax.xlane.f32.xlu1 %v4624_v35  ;;  %v2970_v38 = vpop.f32.mrb[66].mxu0  ;;  %v3273_v36 = vpop.f32.mrb[65].mxu1 }
 0x1e9   : > { %v12610_v48 = vadd.f32 %v12066_v61, %v4088_v29  ;;  %v4090_v18 = vmul.f32 0.25, %v2970_v38  ;;  %v2972_v59 = vpop.f32.mrb[67].mxu0  ;;  %v4121_v10 = vmul.f32 0.25, %v3273_v36  ;;  %v3275_v14 = vpop.f32.mrb[66].mxu1 }
 0x1ea   : > { %v12615_v9 = vadd.f32 %v12070_v63, %v4089_v27  ;;  %v12618_v62 = vadd.f32 %v12066_v61, %v4120_v56  ;;  %v4091_v0 = vmul.f32 0.25, %v2972_v59  ;;  %v4122_v35 = vmul.f32 0.25, %v3275_v14  ;;  %4670 = vmax.xlane.f32.xlu0 %v4669_v33  ;;  %v3277_v37 = vpop.f32.mrb[67].mxu1 }
 0x1eb   : > { %16002 = vst [vmem:[#allocation94_spill] sm:$0xff] %v12610_v48  ;;  %v12621_v29 = vadd.f32 %v12066_v61, %v4090_v18  ;;  %v12624_v38 = vadd.f32 %v12070_v63, %v4121_v10  ;;  %v4123_v36 = vmul.f32 0.25, %v3277_v37 }
 0x1ec   : > { %16003 = vst [vmem:[#allocation95_spill] sm:$0xff] %v12615_v9  ;;  %16004 = vst [vmem:[#allocation96_spill] sm:$0xff] %v12618_v62  ;;  %v12627_v39 = vadd.f32 %v12070_v63, %v4091_v0  ;;  %4673 = vmax.xlane.f32.xlu1 %v4672_v15  ;;  %v4675_v27 = vmax.f32 %v12610_v48, %v12615_v9  ;;  %v12632_v56 = vadd.f32 %v12066_v61, %v4122_v35 }
 0x1ed   : > { %16005 = vst [vmem:[#allocation97_spill] sm:$0xff] %v12621_v29  ;;  %16006 = vst [vmem:[#allocation98_spill] sm:$0xff] %v12624_v38  ;;  %v12635_v14 = vadd.f32 %v12070_v63, %v4123_v36  ;;  %v4723_v18 = vmax.f32 %v12618_v62, %v12624_v38 }
 0x1ee   : > { %16007 = vst [vmem:[#allocation99_spill] sm:$0xff] %v12627_v39  ;;  %16008 = vst [vmem:[#allocation100_spill] sm:$0xff] %v12632_v56  ;;  %4676 = vmax.xlane.f32.xlu0 %v4675_v27  ;;  %v2976_v33 = vpop.f32.mrb[68].mxu0  ;;  %v4678_v10 = vmax.f32 %v12621_v29, %v12627_v39 }
 0x1ef   : > { %16009 = vst [vmem:[#allocation101_spill] sm:$0xff] %v12635_v14  ;;  %v4092_v59 = vmul.f32 0.25, %v2976_v33  ;;  %v2978_v0 = vpop.f32.mrb[69].mxu0  ;;  %v3281_v15 = vpop.f32.mrb[68].mxu1  ;;  %v4726_v39 = vmax.f32 %v12632_v56, %v12635_v14 }
 0x1f0   : > { %v4093_v37 = vmul.f32 0.25, %v2978_v0  ;;  %v4124_v32 = vmul.f32 0.25, %v3281_v15  ;;  %4679 = vmax.xlane.f32.xlu1 %v4678_v10  ;;  %v2980_v9 = vpop.f32.mrb[70].mxu0  ;;  %v3283_v35 = vpop.f32.mrb[69].mxu1 }
 0x1f1   : > { %v12642_v48 = vadd.f32 %v12066_v61, %v4092_v59  ;;  %v4094_v36 = vmul.f32 0.25, %v2980_v9  ;;  %v2982_v27 = vpop.f32.mrb[71].mxu0  ;;  %v4125_v44 = vmul.f32 0.25, %v3283_v35  ;;  %v3285_v45 = vpop.f32.mrb[70].mxu1 }
 0x1f2   : > { %v12647_v38 = vadd.f32 %v12070_v63, %v4093_v37  ;;  %v12650_v33 = vadd.f32 %v12066_v61, %v4124_v32  ;;  %v4095_v0 = vmul.f32 0.25, %v2982_v27  ;;  %v4126_v10 = vmul.f32 0.25, %v3285_v45  ;;  %4724 = vmax.xlane.f32.xlu0 %v4723_v18  ;;  %v3287_v15 = vpop.f32.mrb[71].mxu1 }
 0x1f3   : > { %16010 = vst [vmem:[#allocation102_spill] sm:$0xff] %v12642_v48  ;;  %v12653_v59 = vadd.f32 %v12066_v61, %v4094_v36  ;;  %v12656_v9 = vadd.f32 %v12070_v63, %v4125_v44  ;;  %v4127_v35 = vmul.f32 0.25, %v3287_v15 }
 0x1f4   : > { %16011 = vst [vmem:[#allocation103_spill] sm:$0xff] %v12647_v38  ;;  %16012 = vst [vmem:[#allocation104_spill] sm:$0xff] %v12650_v33  ;;  %v12659_v62 = vadd.f32 %v12070_v63, %v4095_v0  ;;  %4727 = vmax.xlane.f32.xlu1 %v4726_v39  ;;  %v4681_v37 = vmax.f32 %v12642_v48, %v12647_v38  ;;  %v12664_v32 = vadd.f32 %v12066_v61, %v4126_v10 }
 0x1f5   : > { %16013 = vst [vmem:[#allocation105_spill] sm:$0xff] %v12653_v59  ;;  %16014 = vst [vmem:[#allocation106_spill] sm:$0xff] %v12656_v9  ;;  %v12667_v45 = vadd.f32 %v12070_v63, %v4127_v35  ;;  %v4729_v36 = vmax.f32 %v12650_v33, %v12656_v9 }
 0x1f6   : > { %16015 = vst [vmem:[#allocation107_spill] sm:$0xff] %v12659_v62  ;;  %16016 = vst [vmem:[#allocation108_spill] sm:$0xff] %v12664_v32  ;;  %4682 = vmax.xlane.f32.xlu0 %v4681_v37  ;;  %v2986_v18 = vpop.f32.mrb[72].mxu0  ;;  %v4684_v44 = vmax.f32 %v12653_v59, %v12659_v62 }
 0x1f7   : > { %16017 = vst [vmem:[#allocation109_spill] sm:$0xff] %v12667_v45  ;;  %v4096_v27 = vmul.f32 0.25, %v2986_v18  ;;  %v2988_v0 = vpop.f32.mrb[73].mxu0  ;;  %v3291_v39 = vpop.f32.mrb[72].mxu1  ;;  %v4732_v62 = vmax.f32 %v12664_v32, %v12667_v45 }
 0x1f8   : > { %v4097_v15 = vmul.f32 0.25, %v2988_v0  ;;  %v4128_v14 = vmul.f32 0.25, %v3291_v39  ;;  %4685 = vmax.xlane.f32.xlu1 %v4684_v44  ;;  %v2990_v38 = vpop.f32.mrb[74].mxu0  ;;  %v3293_v10 = vpop.f32.mrb[73].mxu1 }
 0x1f9   : > { %v12674_v48 = vadd.f32 %v12066_v61, %v4096_v27  ;;  %v4098_v35 = vmul.f32 0.25, %v2990_v38  ;;  %v2992_v37 = vpop.f32.mrb[75].mxu0  ;;  %v4129_v56 = vmul.f32 0.25, %v3293_v10  ;;  %v3295_v29 = vpop.f32.mrb[74].mxu1 }
 0x1fa   : > { %v12679_v9 = vadd.f32 %v12070_v63, %v4097_v15  ;;  %v12682_v18 = vadd.f32 %v12066_v61, %v4128_v14  ;;  %v4099_v0 = vmul.f32 0.25, %v2992_v37  ;;  %v4130_v44 = vmul.f32 0.25, %v3295_v29  ;;  %4730 = vmax.xlane.f32.xlu0 %v4729_v36  ;;  %v3297_v39 = vpop.f32.mrb[75].mxu1 }
 0x1fb   : > { %16018 = vst [vmem:[#allocation110_spill] sm:$0xff] %v12674_v48  ;;  %v12685_v27 = vadd.f32 %v12066_v61, %v4098_v35  ;;  %v12688_v38 = vadd.f32 %v12070_v63, %v4129_v56  ;;  %v4131_v10 = vmul.f32 0.25, %v3297_v39  ;;  %v4485_v33 = vpop.xlane.xlu0 %4484 }
 0x1fc   : > { %16019 = vst [vmem:[#allocation111_spill] sm:$0xff] %v12679_v9  ;;  %16020 = vst [vmem:[#allocation112_spill] sm:$0xff] %v12682_v18  ;;  %v12691_v45 = vadd.f32 %v12070_v63, %v4099_v0  ;;  %v12694_v15 = vadd.f32 %v12066_v61, %v4130_v44  ;;  %v4533_v14 = vpop.xlane.xlu1 %4532  ;;  %v4867_v37 = vsub.f32 %v12074_v11, %v4485_v33  ;;  %4733 = vmax.xlane.f32.xlu1 %v4732_v62 }
 0x1fd   : > { %16021 = vst [vmem:[#allocation113_spill] sm:$0xff] %v12685_v27  ;;  %16022 = vst [vmem:[#allocation114_spill] sm:$0xff] %v12688_v38  ;;  %v4868_v29 = vsub.f32 %v12081_v17, %v4485_v33  ;;  %v4899_v36 = vsub.f32 %v12078_v16, %v4533_v14  ;;  %v4900_v35 = vsub.f32 %v12085_v20, %v4533_v14 }
 0x1fe   : > { %16023 = vst [vmem:[#allocation115_spill] sm:$0xff] %v12691_v45  ;;  %16024 = vst [vmem:[#allocation116_spill] sm:$0xff] %v12694_v15  ;;  %v12701_v56 = vadd.f32 %v12070_v63, %v4131_v10  ;;  %v4687_v0 = vmax.f32 %v12674_v48, %v12679_v9  ;;  %v5123_v39 = vmul.f32 1.442695, %v4867_v37  ;;  %v2996_v44 = vpop.f32.mrb[76].mxu0  ;;  %v4690_v59 = vmax.f32 %v12685_v27, %v12691_v45  ;;  %v16086_v48 = vld [vmem:[#allocation11_spill] sm:$0xff] }
 0x1ff   : > { %v5125_v32 = vmul.f32 1.442695, %v4868_v29  ;;  %v4735_v11 = vmax.f32 %v12682_v18, %v12688_v38  ;;  %v5187_v17 = vmul.f32 1.442695, %v4899_v36  ;;  %v5189_v62 = vmul.f32 1.442695, %v4900_v35  ;;  %v4488_v20 = vpop.xlane.xlu0 %4487 }
 0x200   : > { %16025 = vst [vmem:[#allocation117_spill] sm:$0xff] %v12701_v56  ;;  %4688 = vmax.xlane.f32.xlu0 %v4687_v0  ;;  %v4100_v16 = vmul.f32 0.25, %v2996_v44  ;;  %v2998_v33 = vpop.f32.mrb[77].mxu0  ;;  %v4738_v10 = vmax.f32 %v12694_v15, %v12701_v56  ;;  %10484 = vpow2.f32 %v5123_v39  ;;  %v4536_v14 = vpop.xlane.xlu1 %4535  ;;  %v4869_v37 = vsub.f32 %v12090_v22, %v4488_v20  ;;  %4691 = vmax.xlane.f32.xlu1 %v4690_v59 }
 0x201   : > { %v4870_v29 = vsub.f32 %v12093_v23, %v4488_v20  ;;  %v4101_v9 = vmul.f32 0.25, %v2998_v33  ;;  %v3301_v45 = vpop.f32.mrb[76].mxu1  ;;  %10486 = vpow2.f32 %v5187_v17  ;;  %v4901_v35 = vsub.f32 %v12099_v25, %v4536_v14  ;;  %v3000_v44 = vpop.f32.mrb[78].mxu0 }
 0x202   : > { %v12714_v36 = vadd.f32 %v12066_v61, %v4100_v16  ;;  %v4902_v0 = vsub.f32 %v12102_v26, %v4536_v14  ;;  %v3303_v38 = vpop.f32.mrb[77].mxu1  ;;  %10488 = vpow2.f32 %v5189_v62  ;;  %v5127_v39 = vmul.f32 1.442695, %v4869_v37  ;;  %v3002_v23 = vpop.f32.mrb[79].mxu0 }
 0x203   : > { %v5129_v56 = vmul.f32 1.442695, %v4870_v29  ;;  %v12719_v22 = vadd.f32 %v12070_v63, %v4101_v9  ;;  %v3305_v20 = vpop.f32.mrb[78].mxu1  ;;  %10490 = vpow2.f32 %v5125_v32  ;;  %v5191_v59 = vmul.f32 1.442695, %v4901_v35  ;;  %v4491_v15 = vpop.xlane.xlu0 %4490 }
 0x204   : > { %16026 = vst [vmem:[#allocation118_spill] sm:$0xff] %v12714_v36  ;;  %v5193_v17 = vmul.f32 1.442695, %v4902_v0  ;;  %v4132_v33 = vmul.f32 0.25, %v3301_v45  ;;  %4736 = vmax.xlane.f32.xlu0 %v4735_v11  ;;  %v3307_v16 = vpop.f32.mrb[79].mxu1  ;;  %10492 = vpow2.f32 %v5127_v39  ;;  %v4102_v25 = vmul.f32 0.25, %v3000_v44  ;;  %4739 = vmax.xlane.f32.xlu1 %v4738_v10 }
 0x205   : > { %16027 = vst [vmem:[#allocation119_spill] sm:$0xff] %v12719_v22  ;;  %v4103_v26 = vmul.f32 0.25, %v3002_v23  ;;  %v4133_v14 = vmul.f32 0.25, %v3303_v38  ;;  %10494 = vpow2.f32 %v5191_v59  ;;  %v4134_v9 = vmul.f32 0.25, %v3305_v20  ;;  %v4494_v29 = vpop.xlane.xlu1 %4493 }
 0x206   : > { %v12722_v62 = vadd.f32 %v12066_v61, %v4132_v33  ;;  %v4135_v37 = vmul.f32 0.25, %v3307_v16  ;;  %10496 = vpow2.f32 %v5193_v17  ;;  %v12725_v32 = vadd.f32 %v12066_v61, %v4102_v25  ;;  %v3006_v35 = vpop.f32.mrb[80].mxu0 }
 0x207   : > { %v12728_v45 = vadd.f32 %v12070_v63, %v4103_v26  ;;  %v12731_v11 = vadd.f32 %v12070_v63, %v4133_v14  ;;  %10498 = vpow2.f32 %v5129_v56  ;;  %v12734_v38 = vadd.f32 %v12066_v61, %v4134_v9  ;;  %v4539_v44 = vpop.xlane.xlu0 %4538  ;;  %v3008_v39 = vpop.f32.mrb[81].mxu0 }
 0x208   : > { %16028 = vst [vmem:[#allocation120_spill] sm:$0xff] %v12722_v62  ;;  %16029 = vst [vmem:[#allocation121_spill] sm:$0xff] %v12725_v32  ;;  %v12737_v10 = vadd.f32 %v12070_v63, %v4135_v37  ;;  %v4871_v0 = vsub.f32 %v12112_v41, %v4491_v15  ;;  %v4872_v23 = vsub.f32 %v12116_v46, %v4491_v15  ;;  %v3010_v56 = vpop.f32.mrb[82].mxu0  ;;  %v12745_v33 = vpop.f32.mrb[80].mxu1 }
 0x209   : > { %16030 = vst [vmem:[#allocation122_spill] sm:$0xff] %v12728_v45  ;;  %16031 = vst [vmem:[#allocation123_spill] sm:$0xff] %v12731_v11  ;;  %v4873_v20 = vsub.f32 %v12123_v50, %v4494_v29  ;;  %v4874_v59 = vsub.f32 %v12131_v53, %v4494_v29  ;;  %v4693_v17 = vmax.f32 %v12714_v36, %v12719_v22  ;;  %v4542_v14 = vpop.xlane.xlu1 %4541  ;;  %v3012_v46 = vpop.f32.mrb[83].mxu0 }
 0x20a   : > { %16032 = vst [vmem:[#allocation124_spill] sm:$0xff] %v12734_v38  ;;  %16033 = vst [vmem:[#allocation125_spill] sm:$0xff] %v12737_v10  ;;  %v5131_v16 = vmul.f32 1.442695, %v4871_v0  ;;  %v4903_v25 = vsub.f32 %v12119_v47, %v4539_v44  ;;  %v4904_v26 = vsub.f32 %v12126_v51, %v4539_v44  ;;  %v4696_v41 = vmax.f32 %v12725_v32, %v12728_v45  ;;  %v12751_v15 = vpop.eup %10484  ;;  %v3313_v45 = vpop.f32.mrb[81].mxu1 }
 0x20b   : > { %16034 = vst [vmem:[#allocation126_spill] sm:$0xff] %v12751_v15  ;;  %v5133_v50 = vmul.f32 1.442695, %v4872_v23  ;;  %v5135_v53 = vmul.f32 1.442695, %v4873_v20  ;;  %4694 = vmax.xlane.f32.xlu0 %v4693_v17  ;;  %v4905_v37 = vsub.f32 %v12135_v54, %v4542_v14  ;;  %v12754_v29 = vpop.eup %10486  ;;  %v4906_v51 = vsub.f32 %v12138_v55, %v4542_v14  ;;  %v4497_v44 = vpop.xlane.xlu0 %4496 }
 0x20c   : > { %v5137_v9 = vmul.f32 1.442695, %v4874_v59  ;;  %16035 = vst [vmem:[#allocation127_spill] sm:$0xff] %v12754_v29  ;;  %10500 = vpow2.f32 %v5131_v16  ;;  %v5195_v0 = vmul.f32 1.442695, %v4903_v25  ;;  %4697 = vmax.xlane.f32.xlu1 %v4696_v41  ;;  %v12757_v32 = vpop.eup %10488  ;;  %v4741_v23 = vmax.f32 %v12722_v62, %v12731_v11  ;;  %v12762_v54 = vpop.f32.mrb[82].mxu1 }
 0x20d   : > { %v5197_v47 = vmul.f32 1.442695, %v4904_v26  ;;  %16036 = vst [vmem:[#allocation128_spill] sm:$0xff] %v12757_v32  ;;  %10502 = vpow2.f32 %v5133_v50  ;;  %v5199_v22 = vmul.f32 1.442695, %v4905_v37  ;;  %v4875_v20 = vsub.f32 %v12148_v4, %v4497_v44  ;;  %v12764_v59 = vpop.eup %10490  ;;  %v4500_v25 = vpop.xlane.xlu1 %4499 }
 0x20e   : > { %16037 = vst [vmem:[#allocation129_spill] sm:$0xff] %v12764_v59  ;;  %10504 = vpow2.f32 %v5135_v53  ;;  %v5201_v17 = vmul.f32 1.442695, %v4906_v51  ;;  %v4876_v16 = vsub.f32 %v12154_v12, %v4497_v44  ;;  %v4744_v55 = vmax.f32 %v12734_v38, %v12737_v10  ;;  %v12769_v26 = vpop.f32.mrb[83].mxu1  ;;  %v12771_v41 = vpop.eup %10492 }
 0x20f   : > { %16038 = vst [vmem:[#allocation130_spill] sm:$0xff] %v12771_v41  ;;  %10506 = vpow2.f32 %v5137_v9  ;;  %4742 = vmax.xlane.f32.xlu0 %v4741_v23  ;;  %v5139_v14 = vmul.f32 1.442695, %v4875_v20  ;;  %v4104_v4 = vmul.f32 0.25, %v3006_v35  ;;  %v4877_v50 = vsub.f32 %v12161_v21, %v4500_v25  ;;  %v12774_v37 = vpop.f32.mrb[84].mxu0  ;;  %v12776_v53 = vpop.eup %10494 }
 0x210   : > { %16039 = vst [vmem:[#allocation131_spill] sm:$0xff] %v12776_v53  ;;  %10508 = vpow2.f32 %v5195_v0  ;;  %v5141_v12 = vmul.f32 1.442695, %v4876_v16  ;;  %4745 = vmax.xlane.f32.xlu1 %v4744_v55  ;;  %v4878_v51 = vsub.f32 %v12167_v28, %v4500_v25  ;;  %v4105_v44 = vmul.f32 0.25, %v3008_v39  ;;  %v4545_v10 = vpop.xlane.xlu0 %4544  ;;  %v12779_v38 = vpop.f32.mrb[85].mxu0 }
 0x211   : > { %v12781_v11 = vpop.eup %10496  ;;  %10510 = vpow2.f32 %v5197_v47  ;;  %v12784_v35 = vadd.f32 %v12066_v61, %v4104_v4  ;;  %v5143_v21 = vmul.f32 1.442695, %v4877_v50  ;;  %v5635_v9 = vadd.f32 %v12764_v59, %v12751_v15  ;;  %v12788_v23 = vpop.f32.mrb[86].mxu0 }
 0x212   : > { %16040 = vst [vmem:[#allocation132_spill] sm:$0xff] %v12781_v11  ;;  %v12790_v0 = vpop.f32.mrb[84].mxu1  ;;  %v12792_v20 = vpop.eup %10498  ;;  %10512 = vpow2.f32 %v5199_v22  ;;  %v5145_v28 = vmul.f32 1.442695, %v4878_v51  ;;  %v12795_v39 = vadd.f32 %v12070_v63, %v4105_v44  ;;  %v4106_v16 = vmul.f32 0.25, %v3010_v56 }
 0x213   : > { %16041 = vst [vmem:[#allocation133_spill] sm:$0xff] %v12784_v35  ;;  %16042 = vst [vmem:[#allocation134_spill] sm:$0xff] %v12792_v20  ;;  %v4548_v47 = vpop.xlane.xlu1 %4547  ;;  %v12797_v55 = vpop.f32.mrb[87].mxu0  ;;  %10514 = vpow2.f32 %v5201_v17  ;;  %5636 = vadd.xlane.f32.xlu0 %v5635_v9  ;;  %v4907_v25 = vsub.f32 %v12157_v13, %v4545_v10  ;;  %v4908_v4 = vsub.f32 %v12164_v24, %v4545_v10  ;;  %v4107_v50 = vmul.f32 0.25, %v3012_v46 }
 0x214   : > { %16043 = vst [vmem:[#allocation135_spill] sm:$0xff] %v12795_v39  ;;  %v12801_v62 = vpop.f32.mrb[85].mxu1  ;;  %10516 = vpow2.f32 %v5139_v14  ;;  %v12804_v22 = vadd.f32 %v12066_v61, %v4106_v16  ;;  %v4136_v51 = vmul.f32 0.25, %v12745_v33  ;;  %v4137_v44 = vmul.f32 0.25, %v3313_v45  ;;  %v4503_v56 = vpop.xlane.xlu0 %4502 }
 0x215   : > { %v12807_v36 = vpop.f32.mrb[86].mxu1  ;;  %10518 = vpow2.f32 %v5141_v12  ;;  %v5203_v17 = vmul.f32 1.442695, %v4907_v25  ;;  %v5205_v9 = vmul.f32 1.442695, %v4908_v4  ;;  %v12810_v13 = vadd.f32 %v12070_v63, %v4107_v50 }
 0x216   : > { %16044 = vst [vmem:[#allocation136_spill] sm:$0xff] %v12804_v22  ;;  %v12812_v24 = vpop.f32.mrb[87].mxu1  ;;  %v12814_v10 = vpop.eup %10500  ;;  %10520 = vpow2.f32 %v5143_v21  ;;  %v12817_v46 = vadd.f32 %v12066_v61, %v4136_v51  ;;  %v12820_v33 = vadd.f32 %v12070_v63, %v4137_v44  ;;  %v4909_v45 = vsub.f32 %v12173_v30, %v4548_v47 }
 0x217   : > { %16045 = vst [vmem:[#allocation137_spill] sm:$0xff] %v12810_v13  ;;  %16046 = vst [vmem:[#allocation138_spill] sm:$0xff] %v12814_v10  ;;  %v4506_v14 = vpop.xlane.xlu1 %4505  ;;  %v12823_v12 = vpop.eup %10502  ;;  %10522 = vpow2.f32 %v5145_v28  ;;  %v4910_v16 = vsub.f32 %v12176_v31, %v4548_v47  ;;  %v5638_v25 = vadd.f32 %v12792_v20, %v12771_v41  ;;  %v4138_v4 = vmul.f32 0.25, %v12762_v54 }
 0x218   : > { %16047 = vst [vmem:[#allocation139_spill] sm:$0xff] %v12817_v46  ;;  %16048 = vst [vmem:[#allocation140_spill] sm:$0xff] %v12820_v33  ;;  %v12829_v21 = vpop.f32.mrb[88].mxu0  ;;  %v12831_v50 = vpop.eup %10504  ;;  %10524 = vpow2.f32 %v5203_v17  ;;  %v5207_v51 = vmul.f32 1.442695, %v4909_v45  ;;  %v5683_v30 = vadd.f32 %v12757_v32, %v12754_v29  ;;  %v4139_v44 = vmul.f32 0.25, %v12769_v26 }
 0x219   : > { %16049 = vst [vmem:[#allocation141_spill] sm:$0xff] %v12823_v12  ;;  %16050 = vst [vmem:[#allocation142_spill] sm:$0xff] %v12831_v50  ;;  %v4551_v18 = vpop.xlane.xlu0 %4550  ;;  %v12836_v28 = vpop.f32.mrb[89].mxu0  ;;  %10526 = vpow2.f32 %v5205_v9  ;;  %v5209_v47 = vmul.f32 1.442695, %v4910_v16  ;;  %5639 = vadd.xlane.f32.xlu1 %v5638_v25  ;;  %v12841_v54 = vadd.f32 %v12066_v61, %v4138_v4  ;;  %v4879_v20 = vsub.f32 %v12186_v43, %v4503_v56 }
 0x21a   : > { %v12838_v31 = vpop.eup %10506  ;;  %v12844_v17 = vpop.f32.mrb[90].mxu0  ;;  %10528 = vpow2.f32 %v5207_v51  ;;  %5684 = vadd.xlane.f32.xlu0 %v5683_v30  ;;  %v12851_v26 = vadd.f32 %v12070_v63, %v4139_v44  ;;  %v4880_v9 = vsub.f32 %v12192_v57, %v4503_v56  ;;  %v4881_v16 = vsub.f32 %v12199_v1, %v4506_v14 }
 0x21b   : > { %16051 = vst [vmem:[#allocation143_spill] sm:$0xff] %v12838_v31  ;;  %16052 = vst [vmem:[#allocation144_spill] sm:$0xff] %v12841_v54  ;;  %v12846_v45 = vpop.f32.mrb[88].mxu1  ;;  %v12848_v32 = vpop.eup %10508  ;;  %10530 = vpow2.f32 %v5209_v47  ;;  %v5147_v43 = vmul.f32 1.442695, %v4879_v20  ;;  %v4882_v59 = vsub.f32 %v12205_v5, %v4506_v14  ;;  %v5686_v51 = vadd.f32 %v12781_v11, %v12776_v53 }
 0x21c   : > { %16053 = vst [vmem:[#allocation145_spill] sm:$0xff] %v12848_v32  ;;  %16054 = vst [vmem:[#allocation146_spill] sm:$0xff] %v12851_v26  ;;  %v4554_v25 = vpop.xlane.xlu1 %4553  ;;  %v12855_v4 = vpop.f32.mrb[91].mxu0  ;;  %v5149_v41 = vmul.f32 1.442695, %v4880_v9  ;;  %v4699_v1 = vmax.f32 %v12784_v35, %v12795_v39  ;;  %v4911_v56 = vsub.f32 %v12195_v58, %v4551_v18  ;;  %v4912_v14 = vsub.f32 %v12202_v2, %v4551_v18 }
 0x21d   : > { %v12857_v29 = vpop.eup %10510  ;;  %v12862_v30 = vpop.f32.mrb[89].mxu1  ;;  %v5151_v57 = vmul.f32 1.442695, %v4881_v16  ;;  %10532 = vpow2.f32 %v5147_v43  ;;  %v5153_v5 = vmul.f32 1.442695, %v4882_v59  ;;  %5687 = vadd.xlane.f32.xlu1 %v5686_v51  ;;  %v4913_v47 = vsub.f32 %v12211_v7, %v4554_v25 }
 0x21e   : > { %16055 = vst [vmem:[#allocation147_spill] sm:$0xff] %v12857_v29  ;;  %v12864_v44 = vpop.eup %10512  ;;  %v4509_v15 = vpop.xlane.xlu0 %4508  ;;  %10534 = vpow2.f32 %v5149_v41  ;;  %4700 = vmax.xlane.f32.xlu0 %v4699_v1  ;;  %v5211_v16 = vmul.f32 1.442695, %v4911_v56  ;;  %v4914_v58 = vsub.f32 %v12214_v8, %v4554_v25  ;;  %v4702_v39 = vmax.f32 %v12804_v22, %v12810_v13 }
 0x21f   : > { %16056 = vst [vmem:[#allocation148_spill] sm:$0xff] %v12864_v44  ;;  %v12869_v27 = vpop.f32.mrb[90].mxu1  ;;  %v12871_v20 = vpop.eup %10514  ;;  %10536 = vpow2.f32 %v5151_v57  ;;  %v5213_v59 = vmul.f32 1.442695, %v4912_v14  ;;  %v5215_v2 = vmul.f32 1.442695, %v4913_v47  ;;  %v4747_v7 = vmax.f32 %v12817_v46, %v12820_v33 }
 0x220   : > { %16057 = vst [vmem:[#allocation149_spill] sm:$0xff] %v12871_v20  ;;  %v12875_v11 = vpop.f32.mrb[91].mxu1  ;;  %v12877_v9 = vpop.eup %10516  ;;  %10538 = vpow2.f32 %v5153_v5  ;;  %v4883_v41 = vsub.f32 %v12224_v34, %v4509_v15  ;;  %v4884_v8 = vsub.f32 %v12229_v40, %v4509_v15  ;;  %v5217_v57 = vmul.f32 1.442695, %v4914_v58 }
 0x221   : > { %16058 = vst [vmem:[#allocation150_spill] sm:$0xff] %v12877_v9  ;;  %v4512_v35 = vpop.xlane.xlu1 %4511  ;;  %v12882_v43 = vpop.eup %10518  ;;  %10540 = vpow2.f32 %v5211_v16  ;;  %4703 = vmax.xlane.f32.xlu1 %v4702_v39  ;;  %v4108_v40 = vmul.f32 0.25, %v12774_v37  ;;  %v5641_v37 = vadd.f32 %v12823_v12, %v12814_v10 }
 0x222   : > { %16059 = vst [vmem:[#allocation151_spill] sm:$0xff] %v12882_v43  ;;  %v12886_v18 = vpop.f32.mrb[92].mxu0  ;;  %v12888_v51 = vpop.eup %10520  ;;  %v4885_v14 = vsub.f32 %v12235_v49, %v4512_v35  ;;  %v4886_v47 = vsub.f32 %v12241_v60, %v4512_v35  ;;  %10542 = vpow2.f32 %v5213_v59  ;;  %4748 = vmax.xlane.f32.xlu0 %v4747_v7  ;;  %v5155_v34 = vmul.f32 1.442695, %v4883_v41 }
 0x223   : > { %16060 = vst [vmem:[#allocation152_spill] sm:$0xff] %v12888_v51  ;;  %v4557_v25 = vpop.xlane.xlu0 %4556  ;;  %v12892_v1 = vpop.f32.mrb[93].mxu0  ;;  %10544 = vpow2.f32 %v5215_v2  ;;  %v5157_v49 = vmul.f32 1.442695, %v4884_v8  ;;  %v4750_v60 = vmax.f32 %v12841_v54, %v12851_v26  ;;  %v4109_v7 = vmul.f32 0.25, %v12779_v38 }
 0x224   : > { %v12894_v56 = vpop.eup %10522  ;;  %v12898_v33 = vpop.f32.mrb[94].mxu0  ;;  %v5159_v39 = vmul.f32 1.442695, %v4885_v14  ;;  %v5161_v59 = vmul.f32 1.442695, %v4886_v47  ;;  %v4110_v41 = vmul.f32 0.25, %v12788_v23  ;;  %10546 = vpow2.f32 %v5217_v57 }
 0x225   : > { %16061 = vst [vmem:[#allocation153_spill] sm:$0xff] %v12894_v56  ;;  %v12900_v46 = vpop.f32.mrb[92].mxu1  ;;  %v12902_v5 = vpop.eup %10524  ;;  %4751 = vmax.xlane.f32.xlu1 %v4750_v60  ;;  %v4915_v14 = vsub.f32 %v12232_v42, %v4557_v25  ;;  %v4916_v47 = vsub.f32 %v12238_v52, %v4557_v25  ;;  %v4111_v38 = vmul.f32 0.25, %v12797_v55  ;;  %10548 = vpow2.f32 %v5155_v34  ;;  %v10348_v57 = vld [vmem:[%s11938_s10 + $0x40] sm:$0xff]  }
 0x226   : > { %16062 = vst [vmem:[#allocation154_spill] sm:$0xff] %v12902_v5  ;;  %v4560_v15 = vpop.xlane.xlu1 %4559  ;;  %v12905_v13 = vpop.f32.mrb[95].mxu0  ;;  %v12931_v54 = vadd.f32 %v12066_v61, %v4108_v40  ;;  %5642 = vadd.xlane.f32.xlu0 %v5641_v37  ;;  %v4140_v23 = vmul.f32 0.25, %v12790_v0  ;;  %10550 = vpow2.f32 %v5157_v49  ;;  %v12940_v42 = vadd.f32 %v12070_v63, %v4109_v7  ;;  %9436 = vmatprep.subr.bf16.mxu0 %v10348_v57  ;;  %v10349_v49 = vld [vmem:[%s11938_s10] sm:$0xff]  }
 0x227   : > { %v12907_v16 = vpop.eup %10526  ;;  %v12911_v35 = vpop.f32.mrb[93].mxu1  ;;  %v5219_v52 = vmul.f32 1.442695, %v4915_v14  ;;  %v5221_v55 = vmul.f32 1.442695, %v4916_v47  ;;  %10552 = vpow2.f32 %v5159_v39  ;;  %v12945_v34 = vadd.f32 %v12066_v61, %v4110_v41  ;;  %9437 = vmatpush3.bf16.msra.mxu0 %v10349_v49 }
 0x228   : > { %16063 = vst [vmem:[#allocation155_spill] sm:$0xff] %v12907_v16  ;;  %v12913_v58 = vpop.eup %10528  ;;  %v12919_v22 = vpop.xlane.xlu0 %4514  ;;  %16066 = vst [vmem:[#allocation158_spill] sm:$0xff] %v12931_v54  ;;  %v4141_v0 = vmul.f32 0.25, %v12801_v62  ;;  %v4917_v40 = vsub.f32 %v12247_v3, %v4560_v15  ;;  %10554 = vpow2.f32 %v5161_v59  ;;  %v12957_v14 = vadd.f32 %v12070_v63, %v4111_v38 }
 0x229   : > { %16064 = vst [vmem:[#allocation156_spill] sm:$0xff] %v12913_v58  ;;  %v12921_v2 = vpop.f32.mrb[94].mxu1  ;;  %v12923_v8 = vpop.eup %10530  ;;  %16068 = vst [vmem:[#allocation160_spill] sm:$0xff] %v12940_v42  ;;  %v4918_v39 = vsub.f32 %v12250_v6, %v4560_v15  ;;  %v5644_v41 = vadd.f32 %v12838_v31, %v12831_v50  ;;  %10556 = vpow2.f32 %v5219_v52  ;;  %v12969_v57 = vadd.f32 %v12066_v61, %v4140_v23 }
 0x22a   : > { %16065 = vst [vmem:[#allocation157_spill] sm:$0xff] %v12923_v8  ;;  %v12928_v26 = vpop.f32.mrb[95].mxu1  ;;  %v12934_v10 = vpop.xlane.xlu1 %4517  ;;  %16070 = vst [vmem:[#allocation162_spill] sm:$0xff] %v12945_v34  ;;  %v5223_v59 = vmul.f32 1.442695, %v4917_v40  ;;  %v5689_v38 = vadd.f32 %v12857_v29, %v12848_v32  ;;  %10558 = vpow2.f32 %v5221_v55  ;;  %v4142_v52 = vmul.f32 0.25, %v12807_v36 }
 0x22b   : > { %v12937_v60 = vpop.eup %10532  ;;  %v12951_v12 = vpop.f32.mrb[96].mxu0  ;;  %16073 = vst [vmem:[#allocation165_spill] sm:$0xff] %v12957_v14  ;;  %16077 = vst [vmem:[#allocation169_spill] sm:$0xff] %v12969_v57  ;;  %v5225_v50 = vmul.f32 1.442695, %v4918_v39  ;;  %5645 = vadd.xlane.f32.xlu1 %v5644_v41  ;;  %v4887_v23 = vsub.f32 %v12258_v19, %v12919_v22  ;;  %v10350_v32 = vld [vmem:[%s11938_s10 + $0x48] sm:$0xff]   ;;  %v12990_v49 = vadd.f32 %v12070_v63, %v4141_v0 }
 0x22c   : > { %16067 = vst [vmem:[#allocation159_spill] sm:$0xff] %v12937_v60  ;;  %v12942_v25 = vpop.eup %10534  ;;  %v12949_v37 = vpop.xlane.xlu0 %4562  ;;  %16071 = vst [vmem:[#allocation163_spill] sm:$0xff] %v12951_v12  ;;  %5690 = vadd.xlane.f32.xlu0 %v5689_v38  ;;  %v16084_v55 = vld [vmem:[#allocation7_spill] sm:$0xff]  ;;  %v16085_v41 = vld [vmem:[#allocation9_spill] sm:$0xff]  ;;  %v4890_v19 = vsub.f32 %v16086_v48, %v12934_v10  ;;  %10560 = vpow2.f32 %v5223_v59  ;;  %v4143_v0 = vmul.f32 0.25, %v12812_v24  ;;  %9438 = vmatprep.subr.bf16.mxu0 %v10350_v32 }
 0x22d   : > { %16069 = vst [vmem:[#allocation161_spill] sm:$0xff] %v12942_v25  ;;  %v12954_v7 = vpop.eup %10536  ;;  %v12962_v62 = vpop.f32.mrb[97].mxu0  ;;  %16083 = vst [vmem:[#allocation175_spill] sm:$0xff] %v12990_v49  ;;  %v4888_v39 = vsub.f32 %v16084_v55, %v12919_v22  ;;  %v4889_v36 = vsub.f32 %v16085_v41, %v12934_v10  ;;  %v5163_v38 = vmul.f32 1.442695, %v4887_v23  ;;  %v5692_v22 = vadd.f32 %v12871_v20, %v12864_v44  ;;  %v16091_v23 = vld [vmem:[#allocation8_spill] sm:$0xff] }
 0x22e   : > { %16072 = vst [vmem:[#allocation164_spill] sm:$0xff] %v12954_v7  ;;  %16074 = vst [vmem:[#allocation166_spill] sm:$0xff] %v12962_v62  ;;  %v12964_v3 = vpop.f32.mrb[96].mxu1  ;;  %v12966_v47 = vpop.eup %10538  ;;  %10562 = vpow2.f32 %v5225_v50  ;;  %v4705_v41 = vmax.f32 %v12931_v54, %v12940_v42  ;;  %v5169_v24 = vmul.f32 1.442695, %v4890_v19  ;;  %v4919_v44 = vsub.f32 %v16091_v23, %v12949_v37  ;;  %v16092_v32 = vld [vmem:[#allocation10_spill] sm:$0xff] }
 0x22f   : > { %16075 = vst [vmem:[#allocation167_spill] sm:$0xff] %v12964_v3  ;;  %16076 = vst [vmem:[#allocation168_spill] sm:$0xff] %v12966_v47  ;;  %v12973_v53 = vpop.xlane.xlu1 %4565  ;;  %v12975_v6 = vpop.f32.mrb[98].mxu0  ;;  %v5165_v48 = vmul.f32 1.442695, %v4888_v39  ;;  %5693 = vadd.xlane.f32.xlu1 %v5692_v22  ;;  %v4920_v50 = vsub.f32 %v16092_v32, %v12949_v37  ;;  %v16093_v39 = vld [vmem:[#allocation12_spill] sm:$0xff]  ;;  %10564 = vpow2.f32 %v5163_v38  ;;  %v4753_v23 = vmax.f32 %v12969_v57, %v12990_v49 }
 0x230   : > { %16078 = vst [vmem:[#allocation170_spill] sm:$0xff] %v12975_v6  ;;  %v12977_v15 = vpop.eup %10540  ;;  %v12982_v40 = vpop.f32.mrb[99].mxu0  ;;  %v5167_v10 = vmul.f32 1.442695, %v4889_v36  ;;  %v4921_v36 = vsub.f32 %v16093_v39, %v12973_v53  ;;  %v10352_v20 = vld [vmem:[%s11938_s10 + $0x8] sm:$0xff]   ;;  %v10353_v42 = vld [vmem:[%s11938_s10 + $0x80] sm:$0xff]   ;;  %4706 = vmax.xlane.f32.xlu0 %v4705_v41 }
 0x231   : > { %16079 = vst [vmem:[#allocation171_spill] sm:$0xff] %v12977_v15  ;;  %16080 = vst [vmem:[#allocation172_spill] sm:$0xff] %v12982_v40  ;;  %v12984_v31 = vpop.f32.mrb[97].mxu1  ;;  %v12987_v29 = vpop.eup %10542  ;;  %v16096_v19 = vld [vmem:[#allocation13_spill] sm:$0xff]  ;;  %v10355_v39 = vld [vmem:[%s11938_s10 + $0xc8] sm:$0xff]   ;;  %10566 = vpow2.f32 %v5165_v48  ;;  %9439 = vmatpush3.bf16.msra.mxu0 %v10352_v20 }
 0x232   : > { %16081 = vst [vmem:[#allocation173_spill] sm:$0xff] %v12984_v31  ;;  %16082 = vst [vmem:[#allocation174_spill] sm:$0xff] %v12987_v29  ;;  %v12998_v3 = vpop.xlane.xlu0 %4520  ;;  %v13000_v40 = vpop.f32.mrb[98].mxu1  ;;  %v10351_v31 = vld [vmem:[%s11938_s10 + $0xc0] sm:$0xff]   ;;  %v4922_v22 = vsub.f32 %v16096_v19, %v12973_v53  ;;  %v10354_v32 = vld [vmem:[%s11938_s10 + $0x50] sm:$0xff]   ;;  %v4708_v53 = vmax.f32 %v12945_v34, %v12957_v14  ;;  %10568 = vpow2.f32 %v5167_v10  ;;  %v4112_v34 = vmul.f32 0.25, %v12829_v21 }
 0x233   : > { %16087 = vst [vmem:[#allocation7_spill] sm:$0xff] %v13000_v40  ;;  %v13003_v6 = vpop.eup %10544  ;;  %v13008_v55 = vpop.f32.mrb[99].mxu1  ;;  %9500 = vmatprep.subr.bf16.mxu1 %v10351_v31  ;;  %v13027_v31 = vadd.f32 %v12066_v61, %v4142_v52  ;;  %v13042_v52 = vadd.f32 %v12070_v63, %v4143_v0  ;;  %v5227_v38 = vmul.f32 1.442695, %v4919_v44  ;;  %v5229_v19 = vmul.f32 1.442695, %v4920_v50  ;;  %9440 = vmatprep.subr.bf16.mxu0 %v10354_v32 }
 0x234   : > { %16088 = vst [vmem:[#allocation9_spill] sm:$0xff] %v13003_v6  ;;  %16089 = vst [vmem:[#allocation11_spill] sm:$0xff] %v13008_v55  ;;  %v13012_v40 = vpop.xlane.xlu1 %4523  ;;  %v13014_v59 = vpop.eup %10546  ;;  %9501 = vmatpush3.bf16.msra.mxu1 %v10353_v42  ;;  %v16101_v49 = vld [vmem:[#allocation14_spill] sm:$0xff]  ;;  %v10356_v44 = vld [vmem:[%s11938_s10 + $0x10] sm:$0xff]   ;;  %10570 = vpow2.f32 %v5169_v24  ;;  %v5231_v48 = vmul.f32 1.442695, %v4921_v36  ;;  %4709 = vmax.xlane.f32.xlu1 %v4708_v53 }
 0x235   : > { %16090 = vst [vmem:[#allocation176_spill] sm:$0xff] %v13014_v59  ;;  %v13024_v54 = vpop.eup %10548  ;;  %16095 = vst [vmem:[#allocation10_spill] sm:$0xff] %v13027_v31  ;;  %v13035_v37 = vpop.f32.mrb[100].mxu0  ;;  %v4891_v57 = vsub.f32 %v16101_v49, %v12998_v3  ;;  %9502 = vmatprep.subr.bf16.mxu1 %v10355_v39  ;;  %v10357_v20 = vld [vmem:[%s11938_s10 + $0x88] sm:$0xff]   ;;  %10572 = vpow2.f32 %v5227_v38  ;;  %4754 = vmax.xlane.f32.xlu0 %v4753_v23  ;;  %v10358_v24 = vld [vmem:[%s11938_s10 + $0x58] sm:$0xff]  }
 0x236   : > { %16094 = vst [vmem:[#allocation8_spill] sm:$0xff] %v13024_v54  ;;  %v13033_v55 = vpop.xlane.xlu0 %4568  ;;  %16097 = vst [vmem:[#allocation12_spill] sm:$0xff] %v13035_v37  ;;  %v13039_v62 = vpop.eup %10550  ;;  %v16102_v37 = vld [vmem:[#allocation15_spill] sm:$0xff]  ;;  %9441 = vmatpush3.bf16.msra.mxu0 %v10356_v44  ;;  %v10359_v38 = vld [vmem:[%s11938_s10 + $0xd0] sm:$0xff]   ;;  %10574 = vpow2.f32 %v5229_v19  ;;  %v4114_v44 = vmul.f32 0.25, %v12844_v17 }
 0x237   : > { %16098 = vst [vmem:[#allocation13_spill] sm:$0xff] %v13039_v62  ;;  %16099 = vst [vmem:[#allocation177_spill] sm:$0xff] %v13042_v52  ;;  %v13046_v41 = vpop.eup %10552  ;;  %v4892_v12 = vsub.f32 %v16102_v37, %v12998_v3  ;;  %v13054_v62 = vpop.f32.mrb[101].mxu0  ;;  %v5233_v3 = vmul.f32 1.442695, %v4922_v22  ;;  %v16108_v37 = vld [vmem:[#allocation17_spill] sm:$0xff]  ;;  %v4756_v22 = vmax.f32 %v13027_v31, %v13042_v52  ;;  %9442 = vmatprep.subr.bf16.mxu0 %v10358_v24  ;;  %10576 = vpow2.f32 %v5231_v48 }
 0x238   : > { %16100 = vst [vmem:[#allocation178_spill] sm:$0xff] %v13046_v41  ;;  %v13052_v0 = vpop.xlane.xlu1 %4571  ;;  %16103 = vst [vmem:[#allocation14_spill] sm:$0xff] %v13054_v62  ;;  %v13058_v42 = vpop.eup %10554  ;;  %v4893_v32 = vsub.f32 %v16108_v37, %v13012_v40  ;;  %v5171_v53 = vmul.f32 1.442695, %v4891_v57  ;;  %9503 = vmatpush3.bf16.msra.mxu1 %v10357_v20  ;;  %v16114_v20 = vld [vmem:[#allocation16_spill] sm:$0xff]  ;;  %v16117_v24 = vld [vmem:[#allocation18_spill] sm:$0xff] }
 0x239   : > { %16104 = vst [vmem:[#allocation15_spill] sm:$0xff] %v13058_v42  ;;  %v13060_v10 = vpop.f32.mrb[102].mxu0  ;;  %v13062_v49 = vpop.f32.mrb[100].mxu1  ;;  %v5173_v37 = vmul.f32 1.442695, %v4892_v12  ;;  %4757 = vmax.xlane.f32.xlu1 %v4756_v22  ;;  %v4923_v19 = vsub.f32 %v16114_v20, %v13033_v55  ;;  %9504 = vmatprep.subr.bf16.mxu1 %v10359_v38  ;;  %10578 = vpow2.f32 %v5233_v3  ;;  %v4924_v31 = vsub.f32 %v16117_v24, %v13033_v55 }
 0x23a   : > { %16105 = vst [vmem:[#allocation179_spill] sm:$0xff] %v13060_v10  ;;  %16106 = vst [vmem:[#allocation180_spill] sm:$0xff] %v13062_v49  ;;  %v13064_v50 = vpop.eup %10556  ;;  %v13068_v39 = vpop.xlane.xlu0 %4526  ;;  %v16111_v49 = vld [vmem:[#allocation19_spill] sm:$0xff]  ;;  %v5175_v52 = vmul.f32 1.442695, %v4893_v32  ;;  %10580 = vpow2.f32 %v5171_v53  ;;  %v4115_v20 = vmul.f32 0.25, %v12855_v4 }
 0x23b   : > { %16107 = vst [vmem:[#allocation181_spill] sm:$0xff] %v13064_v50  ;;  %v13070_v14 = vpop.f32.mrb[103].mxu0  ;;  %v13073_v36 = vpop.eup %10558  ;;  %v4894_v10 = vsub.f32 %v16111_v49, %v13012_v40  ;;  %v4113_v40 = vmul.f32 0.25, %v12836_v28  ;;  %v13106_v28 = vadd.f32 %v12066_v61, %v4112_v34  ;;  %10582 = vpow2.f32 %v5173_v37  ;;  %v16123_v32 = vld [vmem:[#allocation20_spill] sm:$0xff] }
 0x23c   : > { %16109 = vst [vmem:[#allocation17_spill] sm:$0xff] %v13070_v14  ;;  %16110 = vst [vmem:[#allocation182_spill] sm:$0xff] %v13073_v36  ;;  %v13080_v23 = vpop.f32.mrb[101].mxu1  ;;  %v5647_v14 = vadd.f32 %v12882_v43, %v12877_v9  ;;  %v13085_v62 = vpop.xlane.xlu1 %4529  ;;  %v4145_v55 = vmul.f32 0.25, %v12862_v30  ;;  %v4925_v53 = vsub.f32 %v16123_v32, %v13052_v0  ;;  %v13129_v43 = vadd.f32 %v12066_v61, %v4114_v44 }
 0x23d   : > { %v13087_v57 = vpop.f32.mrb[102].mxu1  ;;  %v13089_v21 = vpop.eup %10560  ;;  %16119 = vst [vmem:[#allocation185_spill] sm:$0xff] %v13106_v28  ;;  %v5177_v17 = vmul.f32 1.442695, %v4894_v10  ;;  %v13126_v4 = vadd.f32 %v12070_v63, %v4113_v40  ;;  %v5235_v37 = vmul.f32 1.442695, %v4923_v19  ;;  %10584 = vpow2.f32 %v5175_v52 }
 0x23e   : > { %16112 = vst [vmem:[#allocation19_spill] sm:$0xff] %v13087_v57  ;;  %16113 = vst [vmem:[#allocation183_spill] sm:$0xff] %v13089_v21  ;;  %v13095_v12 = vpop.f32.mrb[103].mxu1  ;;  %v13097_v49 = vpop.eup %10562  ;;  %5648 = vadd.xlane.f32.xlu0 %v5647_v14  ;;  %v4144_v14 = vmul.f32 0.25, %v12846_v45  ;;  %v5650_v45 = vadd.f32 %v12894_v56, %v12888_v51  ;;  %v5695_v40 = vadd.f32 %v12907_v16, %v12902_v5  ;;  %v4146_v52 = vmul.f32 0.25, %v12869_v27 }
 0x23f   : > { %16115 = vst [vmem:[#allocation16_spill] sm:$0xff] %v13095_v12  ;;  %16116 = vst [vmem:[#allocation184_spill] sm:$0xff] %v13097_v49  ;;  %v13101_v48 = vpop.xlane.xlu0 %4574  ;;  %v13103_v22 = vpop.f32.mrb[104].mxu0  ;;  %10586 = vpow2.f32 %v5177_v17  ;;  %v13150_v51 = vadd.f32 %v12070_v63, %v4115_v20  ;;  %v13163_v16 = vadd.f32 %v12070_v63, %v4145_v55  ;;  %v5239_v17 = vmul.f32 1.442695, %v4925_v53  ;;  %v16140_v20 = vld [vmem:[#allocation23_spill] sm:$0xff] }
 0x240   : > { %16118 = vst [vmem:[#allocation18_spill] sm:$0xff] %v13103_v22  ;;  %v13109_v38 = vpop.f32.mrb[105].mxu0  ;;  %v13111_v9 = vpop.f32.mrb[104].mxu1  ;;  %16126 = vst [vmem:[#allocation190_spill] sm:$0xff] %v13126_v4  ;;  %5651 = vadd.xlane.f32.xlu1 %v5650_v45  ;;  %v13160_v5 = vadd.f32 %v12066_v61, %v4144_v14  ;;  %v4896_v45 = vsub.f32 %v16140_v20, %v13068_v39  ;;  %10588 = vpow2.f32 %v5235_v37  ;;  %v4147_v27 = vmul.f32 0.25, %v12875_v11 }
 0x241   : > { %16120 = vst [vmem:[#allocation186_spill] sm:$0xff] %v13109_v38  ;;  %16121 = vst [vmem:[#allocation187_spill] sm:$0xff] %v13111_v9  ;;  %v13113_v3 = vpop.eup %10564  ;;  %v13119_v24 = vpop.xlane.xlu1 %4577  ;;  %v16131_v38 = vld [vmem:[#allocation21_spill] sm:$0xff]  ;;  %v5698_v14 = vadd.f32 %v12923_v8, %v12913_v58  ;;  %v4711_v37 = vmax.f32 %v13106_v28, %v13126_v4  ;;  %v16146_v58 = vld [vmem:[#allocation24_spill] sm:$0xff] }
 0x242   : > { %16122 = vst [vmem:[#allocation188_spill] sm:$0xff] %v13113_v3  ;;  %v13121_v34 = vpop.f32.mrb[106].mxu0  ;;  %v13123_v10 = vpop.eup %10566  ;;  %16127 = vst [vmem:[#allocation191_spill] sm:$0xff] %v13129_v43  ;;  %v4926_v22 = vsub.f32 %v16131_v38, %v13052_v0  ;;  %5696 = vadd.xlane.f32.xlu0 %v5695_v40  ;;  %v10362_v4 = vld [vmem:[%s11938_s10 + $0x60] sm:$0xff]  }
 0x243   : > { %16124 = vst [vmem:[#allocation20_spill] sm:$0xff] %v13121_v34  ;;  %16125 = vst [vmem:[#allocation189_spill] sm:$0xff] %v13123_v10  ;;  %v13133_v30 = vpop.f32.mrb[107].mxu0  ;;  %v13135_v9 = vpop.f32.mrb[105].mxu1  ;;  %v5237_v34 = vmul.f32 1.442695, %v4924_v31 }
 0x244   : > { %16128 = vst [vmem:[#allocation192_spill] sm:$0xff] %v13133_v30  ;;  %16129 = vst [vmem:[#allocation193_spill] sm:$0xff] %v13135_v9  ;;  %v13137_v32 = vpop.eup %10568  ;;  %v13143_v44 = vpop.xlane.xlu0 %4580  ;;  %v16135_v31 = vld [vmem:[#allocation22_spill] sm:$0xff]  ;;  %v5241_v53 = vmul.f32 1.442695, %v4926_v22  ;;  %5699 = vadd.xlane.f32.xlu1 %v5698_v14  ;;  %v4927_v22 = vsub.f32 %v16146_v58, %v13101_v48  ;;  %v4759_v58 = vmax.f32 %v13160_v5, %v13163_v16 }
 0x245   : > { %16130 = vst [vmem:[#allocation194_spill] sm:$0xff] %v13137_v32  ;;  %v13145_v19 = vpop.f32.mrb[106].mxu1  ;;  %v13147_v12 = vpop.eup %10570  ;;  %16134 = vst [vmem:[#allocation196_spill] sm:$0xff] %v13150_v51  ;;  %v4895_v56 = vsub.f32 %v16135_v31, %v13068_v39  ;;  %v16141_v31 = vld [vmem:[#allocation25_spill] sm:$0xff]  ;;  %v16143_v39 = vld [vmem:[#allocation27_spill] sm:$0xff]  ;;  %10590 = vpow2.f32 %v5237_v34 }
 0x246   : > { %16132 = vst [vmem:[#allocation21_spill] sm:$0xff] %v13145_v19  ;;  %16133 = vst [vmem:[#allocation195_spill] sm:$0xff] %v13147_v12  ;;  %v13155_v0 = vpop.f32.mrb[107].mxu1  ;;  %v13157_v38 = vpop.eup %10572  ;;  %v4898_v20 = vsub.f32 %v16143_v39, %v13085_v62  ;;  %v10361_v39 = vld [vmem:[%s11938_s10 + $0x90] sm:$0xff]   ;;  %10592 = vpow2.f32 %v5239_v17  ;;  %v5181_v34 = vmul.f32 1.442695, %v4896_v45  ;;  %4712 = vmax.xlane.f32.xlu0 %v4711_v37 }
 0x247   : > { %16136 = vst [vmem:[#allocation22_spill] sm:$0xff] %v13155_v0  ;;  %16137 = vst [vmem:[#allocation197_spill] sm:$0xff] %v13157_v38  ;;  %v13167_v19 = vpop.xlane.xlu1 %4583  ;;  %v4897_v0 = vsub.f32 %v16141_v31, %v13085_v62  ;;  %v13174_v55 = vpop.eup %10574  ;;  %v5179_v40 = vmul.f32 1.442695, %v4895_v56  ;;  %v13185_v31 = vadd.f32 %v12066_v61, %v4146_v52  ;;  %v10360_v62 = vld [vmem:[%s11938_s10 + $0x18] sm:$0xff]   ;;  %v16154_v45 = vld [vmem:[#allocation28_spill] sm:$0xff]  ;;  %9505 = vmatpush3.bf16.msra.mxu1 %v10361_v39  ;;  %10594 = vpow2.f32 %v5241_v53 }
 0x248   : > { %16138 = vst [vmem:[#allocation198_spill] sm:$0xff] %v13160_v5  ;;  %16139 = vst [vmem:[#allocation199_spill] sm:$0xff] %v13163_v16  ;;  %v13180_v11 = vpop.xlane.xlu0 %4628  ;;  %v13182_v30 = vpop.eup %10576  ;;  %v16150_v52 = vld [vmem:[#allocation26_spill] sm:$0xff]  ;;  %v4929_v37 = vsub.f32 %v16154_v45, %v13119_v24  ;;  %9443 = vmatpush3.bf16.msra.mxu0 %v10360_v62  ;;  %v10366_v45 = vld [vmem:[%s11938_s10 + $0x68] sm:$0xff]   ;;  %v5243_v62 = vmul.f32 1.442695, %v4927_v22 }
 0x249   : > { %16142 = vst [vmem:[#allocation23_spill] sm:$0xff] %v13174_v55  ;;  %16144 = vst [vmem:[#allocation25_spill] sm:$0xff] %v13182_v30  ;;  %v13189_v56 = vpop.f32.mrb[108].mxu0  ;;  %v13191_v8 = vpop.f32.mrb[108].mxu1  ;;  %v4928_v14 = vsub.f32 %v16150_v52, %v13101_v48  ;;  %v5183_v17 = vmul.f32 1.442695, %v4897_v0  ;;  %v4714_v48 = vmax.f32 %v13129_v43, %v13150_v51  ;;  %9444 = vmatprep.subr.bf16.mxu0 %v10362_v4  ;;  %10596 = vpow2.f32 %v5179_v40 }
 0x24a   : > { %16145 = vst [vmem:[#allocation27_spill] sm:$0xff] %v13185_v31  ;;  %16147 = vst [vmem:[#allocation24_spill] sm:$0xff] %v13189_v56  ;;  %v13196_v28 = vpop.eup %10578  ;;  %v13204_v56 = vpop.f32.mrb[109].mxu0  ;;  %v10364_v52 = vld [vmem:[%s11938_s10 + $0x20] sm:$0xff]   ;;  %v10365_v16 = vld [vmem:[%s11938_s10 + $0x98] sm:$0xff]   ;;  %10598 = vpow2.f32 %v5181_v34  ;;  %4760 = vmax.xlane.f32.xlu0 %v4759_v58 }
 0x24b   : > { %16148 = vst [vmem:[#allocation200_spill] sm:$0xff] %v13191_v8  ;;  %16149 = vst [vmem:[#allocation201_spill] sm:$0xff] %v13196_v28  ;;  %v13202_v9 = vpop.xlane.xlu1 %4631  ;;  %v10363_v8 = vld [vmem:[%s11938_s10 + $0xd8] sm:$0xff]   ;;  %v13207_v30 = vpop.eup %10580  ;;  %v13210_v28 = vadd.f32 %v12070_v63, %v4147_v27  ;;  %v16156_v27 = vld [vmem:[#allocation29_spill] sm:$0xff]  ;;  %4715 = vmax.xlane.f32.xlu1 %v4714_v48  ;;  %10600 = vpow2.f32 %v5183_v17  ;;  %v5653_v17 = vadd.f32 %v12942_v25, %v12937_v60 }
 0x24c   : > { %16151 = vst [vmem:[#allocation26_spill] sm:$0xff] %v13204_v56  ;;  %16152 = vst [vmem:[#allocation202_spill] sm:$0xff] %v13207_v30  ;;  %v13218_v5 = vpop.eup %10582  ;;  %v5185_v56 = vmul.f32 1.442695, %v4898_v20  ;;  %v4930_v30 = vsub.f32 %v16156_v27, %v13119_v24  ;;  %v13222_v57 = vpop.xlane.xlu0 %4586  ;;  %9506 = vmatprep.subr.bf16.mxu1 %v10363_v8  ;;  %v10367_v55 = vld [vmem:[%s11938_s10 + $0xe0] sm:$0xff]   ;;  %v16157_v39 = vld [vmem:[#allocation30_spill] sm:$0xff]  ;;  %9445 = vmatpush3.bf16.msra.mxu0 %v10364_v52 }
 0x24d   : > { %16153 = vst [vmem:[#allocation203_spill] sm:$0xff] %v13210_v28  ;;  %16155 = vst [vmem:[#allocation28_spill] sm:$0xff] %v13218_v5  ;;  %v13224_v0 = vpop.f32.mrb[110].mxu0  ;;  %v4931_v51 = vsub.f32 %v16157_v39, %v13143_v44  ;;  %v13232_v53 = vpop.f32.mrb[109].mxu1  ;;  %v5245_v20 = vmul.f32 1.442695, %v4928_v14  ;;  %v4762_v34 = vmax.f32 %v13185_v31, %v13210_v28  ;;  %9507 = vmatpush3.bf16.msra.mxu1 %v10365_v16  ;;  %9446 = vmatprep.subr.bf16.mxu0 %v10366_v45 }
 0x24e   : > { %v13230_v43 = vpop.f32.mrb[111].mxu0  ;;  %v13234_v24 = vpop.eup %10584  ;;  %v16160_v8 = vld [vmem:[#allocation31_spill] sm:$0xff]  ;;  %v5247_v27 = vmul.f32 1.442695, %v4929_v37  ;;  %v16163_v39 = vld [vmem:[#allocation33_spill] sm:$0xff]  ;;  %10602 = vpow2.f32 %v5185_v56  ;;  %9508 = vmatprep.subr.bf16.mxu1 %v10367_v55  ;;  %v10371_v31 = vld [vmem:[%s11938_s10 + $0xe8] sm:$0xff]   ;;  %5654 = vadd.xlane.f32.xlu0 %v5653_v17 }
 0x24f   : > { %16158 = vst [vmem:[#allocation29_spill] sm:$0xff] %v13230_v43  ;;  %16159 = vst [vmem:[#allocation30_spill] sm:$0xff] %v13234_v24  ;;  %v4932_v4 = vsub.f32 %v16160_v8, %v13143_v44  ;;  %v13238_v40 = vpop.xlane.xlu1 %4589  ;;  %v13240_v22 = vpop.f32.mrb[110].mxu1  ;;  %v4933_v43 = vsub.f32 %v16163_v39, %v13167_v19  ;;  %v10368_v44 = vld [vmem:[%s11938_s10 + $0x28] sm:$0xff]   ;;  %v10369_v58 = vld [vmem:[%s11938_s10 + $0xa0] sm:$0xff]   ;;  %10604 = vpow2.f32 %v5243_v62  ;;  %4763 = vmax.xlane.f32.xlu1 %v4762_v34  ;;  %v4117_v45 = vmul.f32 0.25, %v12892_v1 }
 0x250   : > { %16161 = vst [vmem:[#allocation31_spill] sm:$0xff] %v13240_v22  ;;  %v13242_v48 = vpop.eup %10586  ;;  %v13248_v14 = vpop.f32.mrb[111].mxu1  ;;  %v5249_v8 = vmul.f32 1.442695, %v4930_v30  ;;  %v4116_v22 = vmul.f32 0.25, %v12886_v18  ;;  %v10370_v28 = vld [vmem:[%s11938_s10 + $0x70] sm:$0xff]   ;;  %10606 = vpow2.f32 %v5245_v20  ;;  %9447 = vmatpush3.bf16.msra.mxu0 %v10368_v44 }
 0x251   : > { %16162 = vst [vmem:[#allocation204_spill] sm:$0xff] %v13242_v48  ;;  %16164 = vst [vmem:[#allocation33_spill] sm:$0xff] %v13248_v14  ;;  %v13255_v37 = vpop.xlane.xlu0 %4634  ;;  %v13257_v39 = vpop.f32.mrb[112].mxu0  ;;  %v5251_v16 = vmul.f32 1.442695, %v4931_v51  ;;  %v16167_v56 = vld [vmem:[#allocation35_spill] sm:$0xff]  ;;  %10608 = vpow2.f32 %v5247_v27  ;;  %9509 = vmatpush3.bf16.msra.mxu1 %v10369_v58  ;;  %9448 = vmatprep.subr.bf16.mxu0 %v10370_v28 }
 0x252   : > { %16165 = vst [vmem:[#allocation205_spill] sm:$0xff] %v13257_v39  ;;  %v13261_v14 = vpop.eup %10588  ;;  %v4934_v30 = vsub.f32 %v16167_v56, %v13167_v19  ;;  %v13265_v18 = vpop.f32.mrb[113].mxu0  ;;  %v5253_v60 = vmul.f32 1.442695, %v4932_v4  ;;  %v5255_v51 = vmul.f32 1.442695, %v4933_v43  ;;  %10610 = vpow2.f32 %v5249_v8  ;;  %9510 = vmatprep.subr.bf16.mxu1 %v10371_v31 }
 0x253   : > { %16166 = vst [vmem:[#allocation206_spill] sm:$0xff] %v13261_v14  ;;  %16168 = vst [vmem:[#allocation35_spill] sm:$0xff] %v13265_v18  ;;  %v13267_v52 = vpop.f32.mrb[112].mxu1  ;;  %v13270_v55 = vpop.xlane.xlu1 %4637  ;;  %v4118_v19 = vmul.f32 0.25, %v12898_v33  ;;  %v16172_v34 = vld [vmem:[#allocation32_spill] sm:$0xff]  ;;  %v10372_v1 = vld [vmem:[%s11938_s10 + $0x30] sm:$0xff]   ;;  %v13287_v43 = vadd.f32 %v12066_v61, %v4116_v22  ;;  %10612 = vpow2.f32 %v5251_v16  ;;  %v5656_v8 = vadd.f32 %v12966_v47, %v12954_v7 }
 0x254   : > { %16169 = vst [vmem:[#allocation207_spill] sm:$0xff] %v13267_v52  ;;  %v13272_v25 = vpop.f32.mrb[114].mxu0  ;;  %v13274_v62 = vpop.eup %10590  ;;  %v4963_v56 = vsub.f32 %v16172_v34, %v13180_v11  ;;  %v4148_v33 = vmul.f32 0.25, %v12900_v46  ;;  %v4149_v27 = vmul.f32 0.25, %v12911_v35  ;;  %v10373_v44 = vld [vmem:[%s11938_s10 + $0xa8] sm:$0xff]   ;;  %v10374_v46 = vld [vmem:[%s11938_s10 + $0x78] sm:$0xff]   ;;  %10614 = vpow2.f32 %v5253_v60  ;;  %9449 = vmatpush3.bf16.msra.mxu0 %v10372_v1 }
 0x255   : > { %16170 = vst [vmem:[#allocation208_spill] sm:$0xff] %v13272_v25  ;;  %16171 = vst [vmem:[#allocation209_spill] sm:$0xff] %v13274_v62  ;;  %v13279_v52 = vpop.f32.mrb[115].mxu0  ;;  %v13281_v20 = vpop.f32.mrb[113].mxu1  ;;  %v5257_v58 = vmul.f32 1.442695, %v4934_v30  ;;  %10616 = vpow2.f32 %v5255_v51  ;;  %v13317_v7 = vadd.f32 %v12066_v61, %v4118_v19  ;;  %5657 = vadd.xlane.f32.xlu1 %v5656_v8  ;;  %9511 = vmatpush3.bf16.msra.mxu1 %v10373_v44 }
 0x256   : > { %16173 = vst [vmem:[#allocation32_spill] sm:$0xff] %v13279_v52  ;;  %16174 = vst [vmem:[#allocation210_spill] sm:$0xff] %v13281_v20  ;;  %v13284_v4 = vpop.eup %10592  ;;  %v13291_v17 = vpop.xlane.xlu0 %4592  ;;  %v4119_v52 = vmul.f32 0.25, %v12905_v13  ;;  %v10375_v20 = vld [vmem:[%s11938_s10 + $0xf0] sm:$0xff]   ;;  %v16181_v28 = vld [vmem:[#allocation34_spill] sm:$0xff]  ;;  %v5701_v13 = vadd.f32 %v12987_v29, %v12977_v15  ;;  %v13328_v15 = vadd.f32 %v12070_v63, %v4149_v27  ;;  %v4150_v19 = vmul.f32 0.25, %v12921_v2  ;;  %9450 = vmatprep.subr.bf16.mxu0 %v10374_v46 }
 0x257   : > { %16175 = vst [vmem:[#allocation211_spill] sm:$0xff] %v13284_v4  ;;  %16176 = vst [vmem:[#allocation212_spill] sm:$0xff] %v13287_v43  ;;  %v13293_v34 = vpop.f32.mrb[114].mxu1  ;;  %v13303_v35 = vpop.eup %10594  ;;  %v4964_v31 = vsub.f32 %v16181_v28, %v13180_v11  ;;  %v5315_v47 = vmul.f32 1.442695, %v4963_v56  ;;  %v16184_v60 = vld [vmem:[#allocation36_spill] sm:$0xff]  ;;  %v13325_v28 = vadd.f32 %v12066_v61, %v4148_v33  ;;  %v5704_v2 = vadd.f32 %v13014_v59, %v13003_v6 }
 0x258   : > { %16177 = vst [vmem:[#allocation213_spill] sm:$0xff] %v13293_v34  ;;  %v13299_v22 = vpop.f32.mrb[115].mxu1  ;;  %16179 = vst [vmem:[#allocation215_spill] sm:$0xff] %v13303_v35  ;;  %v13306_v34 = vadd.f32 %v12070_v63, %v4117_v45  ;;  %v13312_v16 = vpop.xlane.xlu1 %4595  ;;  %v4965_v45 = vsub.f32 %v16184_v60, %v13202_v9  ;;  %v16188_v51 = vld [vmem:[#allocation37_spill] sm:$0xff]  ;;  %5702 = vadd.xlane.f32.xlu0 %v5701_v13  ;;  %v13341_v33 = vadd.f32 %v12070_v63, %v4119_v52  ;;  %v16192_v25 = vld [vmem:[#allocation38_spill] sm:$0xff] }
 0x259   : > { %16178 = vst [vmem:[#allocation214_spill] sm:$0xff] %v13299_v22  ;;  %v13314_v30 = vpop.eup %10596  ;;  %16183 = vst [vmem:[#allocation217_spill] sm:$0xff] %v13317_v7  ;;  %v10376_v22 = vld [vmem:[%s11938_s10 + $0x38] sm:$0xff]   ;;  %v4966_v29 = vsub.f32 %v16188_v51, %v13202_v9  ;;  %v13335_v8 = vpop.f32.mrb[116].mxu0  ;;  %v10377_v1 = vld [vmem:[%s11938_s10 + $0xb0] sm:$0xff]   ;;  %v4151_v27 = vmul.f32 0.25, %v12928_v26  ;;  %v4935_v9 = vsub.f32 %v16192_v25, %v13222_v57  ;;  %9512 = vmatprep.subr.bf16.mxu1 %v10375_v20  ;;  %10618 = vpow2.f32 %v5257_v58 }
 0x25a   : > { %16180 = vst [vmem:[#allocation216_spill] sm:$0xff] %v13306_v34  ;;  %16182 = vst [vmem:[#allocation34_spill] sm:$0xff] %v13314_v30  ;;  %v13322_v11 = vpop.eup %10598  ;;  %v13333_v56 = vpop.xlane.xlu0 %4640  ;;  %v10378_v44 = vld [vmem:[%s11938_s10 + $0xf8] sm:$0xff]   ;;  %v5317_v52 = vmul.f32 1.442695, %v4964_v31  ;;  %v16196_v18 = vld [vmem:[#allocation39_spill] sm:$0xff]  ;;  %v4717_v25 = vmax.f32 %v13287_v43, %v13306_v34  ;;  %10620 = vpow2.f32 %v5315_v47  ;;  %5705 = vadd.xlane.f32.xlu1 %v5704_v2  ;;  %9451 = vmatpush3.bf16.msra.mxu0 %v10376_v22 }
 0x25b   : > { %16185 = vst [vmem:[#allocation36_spill] sm:$0xff] %v13322_v11  ;;  %16186 = vst [vmem:[#allocation218_spill] sm:$0xff] %v13325_v28  ;;  %v13338_v60 = vpop.eup %10600  ;;  %v13348_v13 = vpop.f32.mrb[117].mxu0  ;;  %v4936_v26 = vsub.f32 %v16196_v18, %v13222_v57  ;;  %v5319_v59 = vmul.f32 1.442695, %v4965_v45  ;;  %v16198_v20 = vld [vmem:[#allocation41_spill] sm:$0xff]  ;;  %v13372_v31 = vadd.f32 %v12066_v61, %v4150_v19  ;;  %v4765_v45 = vmax.f32 %v13325_v28, %v13328_v15 }
 0x25c   : > { %16187 = vst [vmem:[#allocation219_spill] sm:$0xff] %v13328_v15  ;;  %16189 = vst [vmem:[#allocation37_spill] sm:$0xff] %v13335_v8  ;;  %v13350_v51 = vpop.f32.mrb[116].mxu1  ;;  %v13353_v8 = vpop.eup %10602  ;;  %v4937_v46 = vsub.f32 %v16198_v20, %v13238_v40  ;;  %v5321_v18 = vmul.f32 1.442695, %v4966_v29  ;;  %v16203_v34 = vld [vmem:[#allocation43_spill] sm:$0xff]  ;;  %4718 = vmax.xlane.f32.xlu0 %v4717_v25  ;;  %9513 = vmatpush3.bf16.msra.mxu1 %v10377_v1  ;;  %v13386_v29 = vadd.f32 %v12070_v63, %v4151_v27 }
 0x25d   : > { %16190 = vst [vmem:[#allocation220_spill] sm:$0xff] %v13338_v60  ;;  %16191 = vst [vmem:[#allocation221_spill] sm:$0xff] %v13341_v33  ;;  %v13359_v39 = vpop.xlane.xlu1 %4643  ;;  %v13361_v6 = vpop.eup %10604  ;;  %v4938_v47 = vsub.f32 %v16203_v34, %v13238_v40  ;;  %v10379_v43 = vld [vmem:[%s11938_s10 + $0xb8] sm:$0xff]   ;;  %v5259_v19 = vmul.f32 1.442695, %v4935_v9  ;;  %v4720_v40 = vmax.f32 %v13317_v7, %v13341_v33  ;;  %9514 = vmatprep.subr.bf16.mxu1 %v10378_v44  ;;  %10622 = vpow2.f32 %v5317_v52  ;;  %v16214_v52 = vld [vmem:[#allocation44_spill] sm:$0xff] }
 0x25e   : > { %16193 = vst [vmem:[#allocation38_spill] sm:$0xff] %v13348_v13  ;;  %16194 = vst [vmem:[#allocation222_spill] sm:$0xff] %v13350_v51  ;;  %v13365_v51 = vpop.f32.mrb[118].mxu0  ;;  %v13367_v58 = vpop.f32.mrb[117].mxu1  ;;  %v5261_v25 = vmul.f32 1.442695, %v4936_v26  ;;  %10624 = vpow2.f32 %v5319_v59  ;;  %v4969_v26 = vsub.f32 %v16214_v52, %v13270_v55 }
 0x25f   : > { %16195 = vst [vmem:[#allocation223_spill] sm:$0xff] %v13353_v8  ;;  %16197 = vst [vmem:[#allocation39_spill] sm:$0xff] %v13361_v6  ;;  %v13369_v57 = vpop.eup %10606  ;;  %v13378_v20 = vpop.xlane.xlu0 %4598  ;;  %v5263_v27 = vmul.f32 1.442695, %v4937_v46  ;;  %v16211_v9 = vld [vmem:[#allocation42_spill] sm:$0xff]  ;;  %4721 = vmax.xlane.f32.xlu1 %v4720_v40  ;;  %10626 = vpow2.f32 %v5321_v18  ;;  %v16217_v46 = vld [vmem:[#allocation45_spill] sm:$0xff]  ;;  %v4768_v18 = vmax.f32 %v13372_v31, %v13386_v29 }
 0x260   : > { %16199 = vst [vmem:[#allocation41_spill] sm:$0xff] %v13365_v51  ;;  %16200 = vst [vmem:[#allocation224_spill] sm:$0xff] %v13367_v58  ;;  %v13380_v2 = vpop.f32.mrb[119].mxu0  ;;  %v13383_v22 = vpop.eup %10608  ;;  %v16207_v51 = vld [vmem:[#allocation40_spill] sm:$0xff]  ;;  %v5265_v44 = vmul.f32 1.442695, %v4938_v47  ;;  %4766 = vmax.xlane.f32.xlu0 %v4765_v45  ;;  %9515 = vmatpush3.bf16.msra.mxu1 %v10379_v43  ;;  %10628 = vpow2.f32 %v5259_v19  ;;  %v4970_v40 = vsub.f32 %v16217_v46, %v13270_v55 }
 0x261   : > { %16201 = vst [vmem:[#allocation225_spill] sm:$0xff] %v13369_v57  ;;  %16202 = vst [vmem:[#allocation226_spill] sm:$0xff] %v13372_v31  ;;  %v4967_v58 = vsub.f32 %v16207_v51, %v13255_v37  ;;  %v13392_v34 = vpop.eup %10610  ;;  %v13394_v15 = vpop.xlane.xlu1 %4601  ;;  %10630 = vpow2.f32 %v5261_v25  ;;  %v16220_v45 = vld [vmem:[#allocation13_spill] sm:$0xff]  ;;  %v16222_v19 = vld [vmem:[#allocation46_spill] sm:$0xff]  ;;  %v5327_v25 = vmul.f32 1.442695, %v4969_v26 }
 0x262   : > { %16204 = vst [vmem:[#allocation43_spill] sm:$0xff] %v13380_v2  ;;  %16205 = vst [vmem:[#allocation227_spill] sm:$0xff] %v13383_v22  ;;  %v13396_v1 = vpop.f32.mrb[118].mxu1  ;;  %v13398_v28 = vpop.eup %10612  ;;  %v4968_v2 = vsub.f32 %v16211_v9, %v13255_v37  ;;  %v5659_v52 = vadd.f32 %v16220_v45, %v13024_v54  ;;  %10632 = vpow2.f32 %v5263_v27  ;;  %v4939_v55 = vsub.f32 %v16222_v19, %v13291_v17  ;;  %v16227_v45 = vld [vmem:[#allocation166_spill] sm:$0xff]  ;;  %v16230_v19 = vld [vmem:[#allocation47_spill] sm:$0xff] }
 0x263   : > { %16206 = vst [vmem:[#allocation228_spill] sm:$0xff] %v13386_v29  ;;  %16208 = vst [vmem:[#allocation40_spill] sm:$0xff] %v13392_v34  ;;  %v13402_v51 = vpop.f32.mrb[119].mxu1  ;;  %v13404_v33 = vpop.eup %10614  ;;  %v5323_v37 = vmul.f32 1.442695, %v4967_v58  ;;  %4769 = vmax.xlane.f32.xlu1 %v4768_v18  ;;  %10634 = vpow2.f32 %v5265_v44  ;;  %v16232_v44 = vld [vmem:[#allocation49_spill] sm:$0xff] }
 0x264   : > { %16209 = vst [vmem:[#allocation229_spill] sm:$0xff] %v13396_v1  ;;  %16210 = vst [vmem:[#allocation230_spill] sm:$0xff] %v13398_v28  ;;  %v13408_v7 = vpop.xlane.xlu0 %4646  ;;  %v13410_v1 = vpop.f32.mrb[120].mxu0  ;;  %v5325_v58 = vmul.f32 1.442695, %v4968_v2  ;;  %5660 = vadd.xlane.f32.xlu0 %v5659_v52  ;;  %v4941_v26 = vsub.f32 %v16232_v44, %v13312_v16  ;;  %v16235_v13 = vld [vmem:[#allocation173_spill] sm:$0xff] }
 0x265   : > { %16212 = vst [vmem:[#allocation42_spill] sm:$0xff] %v13402_v51  ;;  %16213 = vst [vmem:[#allocation231_spill] sm:$0xff] %v13404_v33  ;;  %v13412_v59 = vpop.eup %10616  ;;  %v13418_v47 = vpop.f32.mrb[121].mxu0  ;;  %10636 = vpow2.f32 %v5323_v37  ;;  %v5329_v18 = vmul.f32 1.442695, %v4970_v40  ;;  %v16236_v37 = vld [vmem:[#allocation172_spill] sm:$0xff] }
 0x266   : > { %16215 = vst [vmem:[#allocation44_spill] sm:$0xff] %v13410_v1  ;;  %16216 = vst [vmem:[#allocation232_spill] sm:$0xff] %v13412_v59  ;;  %v13420_v9 = vpop.f32.mrb[120].mxu1  ;;  %v13424_v1 = vpop.xlane.xlu1 %4649  ;;  %10638 = vpow2.f32 %v5325_v58  ;;  %v4155_v40 = vmul.f32 0.25, %v16236_v37 }
 0x267   : > { %16218 = vst [vmem:[#allocation45_spill] sm:$0xff] %v13418_v47  ;;  %16219 = vst [vmem:[#allocation233_spill] sm:$0xff] %v13420_v9  ;;  %v13426_v43 = vpop.f32.mrb[122].mxu0  ;;  %v13432_v29 = vpop.f32.mrb[121].mxu1  ;;  %v16226_v9 = vld [vmem:[#allocation163_spill] sm:$0xff]  ;;  %v4153_v47 = vmul.f32 0.25, %v16227_v45  ;;  %10640 = vpow2.f32 %v5327_v25 }
 0x268   : > { %16221 = vst [vmem:[#allocation234_spill] sm:$0xff] %v13426_v43  ;;  %v13430_v46 = vpop.f32.mrb[123].mxu0  ;;  %16224 = vst [vmem:[#allocation235_spill] sm:$0xff] %v13432_v29  ;;  %v13434_v31 = vpop.eup %10618  ;;  %v4152_v54 = vmul.f32 0.25, %v16226_v9  ;;  %v16233_v9 = vld [vmem:[#allocation170_spill] sm:$0xff]  ;;  %v16234_v45 = vld [vmem:[#allocation167_spill] sm:$0xff]  ;;  %10642 = vpow2.f32 %v5329_v18 }
 0x269   : > { %16223 = vst [vmem:[#allocation46_spill] sm:$0xff] %v13430_v46  ;;  %16225 = vst [vmem:[#allocation236_spill] sm:$0xff] %v13434_v31  ;;  %v13438_v43 = vpop.xlane.xlu0 %4604  ;;  %v13440_v2 = vpop.f32.mrb[122].mxu1  ;;  %v4940_v46 = vsub.f32 %v16230_v19, %v13291_v17  ;;  %v4154_v51 = vmul.f32 0.25, %v16233_v9  ;;  %v4184_v52 = vmul.f32 0.25, %v16234_v45  ;;  %v4185_v31 = vmul.f32 0.25, %v16235_v13 }
 0x26a   : > { %16228 = vst [vmem:[#allocation163_spill] sm:$0xff] %v13440_v2  ;;  %v13442_v27 = vpop.eup %10620  ;;  %v13446_v29 = vpop.f32.mrb[123].mxu1  ;;  %v5267_v2 = vmul.f32 1.442695, %v4939_v55  ;;  %v5662_v17 = vadd.f32 %v13058_v42, %v13046_v41  ;;  %v13461_v44 = vadd.f32 %v12066_v61, %v4152_v54  ;;  %v13464_v9 = vadd.f32 %v12070_v63, %v4153_v47  ;;  %v16242_v41 = vld [vmem:[#allocation51_spill] sm:$0xff]  ;;  %v16243_v54 = vld [vmem:[#allocation48_spill] sm:$0xff] }
 0x26b   : > { %16229 = vst [vmem:[#allocation166_spill] sm:$0xff] %v13442_v27  ;;  %16231 = vst [vmem:[#allocation47_spill] sm:$0xff] %v13446_v29  ;;  %v13453_v59 = vpop.xlane.xlu1 %4607  ;;  %v13458_v19 = vpop.eup %10622  ;;  %v5707_v13 = vadd.f32 %v13073_v36, %v13064_v50  ;;  %v5269_v37 = vmul.f32 1.442695, %v4940_v46  ;;  %v4942_v25 = vsub.f32 %v16242_v41, %v13312_v16  ;;  %v4971_v42 = vsub.f32 %v16243_v54, %v13333_v56 }
 0x26c   : > { %16237 = vst [vmem:[#allocation49_spill] sm:$0xff] %v13458_v19  ;;  %16238 = vst [vmem:[#allocation170_spill] sm:$0xff] %v13461_v44  ;;  %v13470_v58 = vpop.f32.mrb[124].mxu0  ;;  %v13472_v55 = vpop.eup %10624  ;;  %5663 = vadd.xlane.f32.xlu1 %v5662_v17  ;;  %v13485_v36 = vadd.f32 %v12066_v61, %v4154_v51  ;;  %v13490_v46 = vadd.f32 %v12066_v61, %v4184_v52  ;;  %v13493_v41 = vadd.f32 %v12070_v63, %v4185_v31  ;;  %v16254_v51 = vld [vmem:[#allocation7_spill] sm:$0xff] }
 0x26d   : > { %16239 = vst [vmem:[#allocation167_spill] sm:$0xff] %v13464_v9  ;;  %v13468_v45 = vpop.xlane.xlu0 %4652  ;;  %16240 = vst [vmem:[#allocation173_spill] sm:$0xff] %v13470_v58  ;;  %v13478_v47 = vpop.f32.mrb[125].mxu0  ;;  %v16248_v58 = vld [vmem:[#allocation50_spill] sm:$0xff]  ;;  %5708 = vadd.xlane.f32.xlu0 %v5707_v13  ;;  %v5710_v52 = vadd.f32 %v13097_v49, %v13089_v21  ;;  %10644 = vpow2.f32 %v5267_v2  ;;  %v5273_v21 = vmul.f32 1.442695, %v4942_v25 }
 0x26e   : > { %16241 = vst [vmem:[#allocation172_spill] sm:$0xff] %v13472_v55  ;;  %16244 = vst [vmem:[#allocation51_spill] sm:$0xff] %v13478_v47  ;;  %v13480_v29 = vpop.f32.mrb[124].mxu1  ;;  %v13482_v50 = vpop.eup %10626  ;;  %v4972_v18 = vsub.f32 %v16248_v58, %v13333_v56  ;;  %v4186_v47 = vmul.f32 0.25, %v16254_v51  ;;  %10646 = vpow2.f32 %v5269_v37  ;;  %v16261_v49 = vld [vmem:[#allocation53_spill] sm:$0xff] }
 0x26f   : > { %16245 = vst [vmem:[#allocation48_spill] sm:$0xff] %v13480_v29  ;;  %16246 = vst [vmem:[#allocation237_spill] sm:$0xff] %v13482_v50  ;;  %v13495_v16 = vpop.xlane.xlu1 %4655  ;;  %v13497_v17 = vpop.f32.mrb[126].mxu0  ;;  %v13502_v29 = vadd.f32 %v12070_v63, %v4155_v40  ;;  %v16255_v50 = vld [vmem:[#allocation11_spill] sm:$0xff]  ;;  %v4771_v40 = vmax.f32 %v13461_v44, %v13464_v9  ;;  %v4819_v9 = vmax.f32 %v13490_v46, %v13493_v41 }
 0x270   : > { %16247 = vst [vmem:[#allocation238_spill] sm:$0xff] %v13485_v36  ;;  %16249 = vst [vmem:[#allocation50_spill] sm:$0xff] %v13490_v46  ;;  %v13499_v54 = vpop.eup %10628  ;;  %v4187_v56 = vmul.f32 0.25, %v16255_v50  ;;  %v13508_v58 = vpop.f32.mrb[127].mxu0  ;;  %5711 = vadd.xlane.f32.xlu1 %v5710_v52 }
 0x271   : > { %16250 = vst [vmem:[#allocation239_spill] sm:$0xff] %v13493_v41  ;;  %16251 = vst [vmem:[#allocation240_spill] sm:$0xff] %v13497_v17  ;;  %v13510_v31 = vpop.f32.mrb[125].mxu1  ;;  %v13512_v13 = vpop.eup %10630  ;;  %v5271_v17 = vmul.f32 1.442695, %v4941_v26  ;;  %4772 = vmax.xlane.f32.xlu0 %v4771_v40  ;;  %v4774_v52 = vmax.f32 %v13485_v36, %v13502_v29 }
 0x272   : > { %16252 = vst [vmem:[#allocation241_spill] sm:$0xff] %v13499_v54  ;;  %16253 = vst [vmem:[#allocation242_spill] sm:$0xff] %v13502_v29  ;;  %v16259_v54 = vld [vmem:[#allocation52_spill] sm:$0xff]  ;;  %v13518_v51 = vpop.xlane.xlu0 %4610  ;;  %v13520_v50 = vpop.eup %10632  ;;  %v5331_v26 = vmul.f32 1.442695, %v4971_v42  ;;  %v16269_v42 = vld [vmem:[#allocation55_spill] sm:$0xff] }
 0x273   : > { %16256 = vst [vmem:[#allocation7_spill] sm:$0xff] %v13508_v58  ;;  %16257 = vst [vmem:[#allocation11_spill] sm:$0xff] %v13510_v31  ;;  %v4973_v55 = vsub.f32 %v16259_v54, %v13359_v39  ;;  %v4974_v58 = vsub.f32 %v16261_v49, %v13359_v39  ;;  %v13524_v31 = vpop.f32.mrb[126].mxu1  ;;  %v13526_v2 = vpop.eup %10634  ;;  %v16264_v54 = vld [vmem:[#allocation54_spill] sm:$0xff]  ;;  %v13539_v49 = vadd.f32 %v12066_v61, %v4186_v47  ;;  %10648 = vpow2.f32 %v5271_v17  ;;  %v16271_v47 = vld [vmem:[#allocation57_spill] sm:$0xff] }
 0x274   : > { %16258 = vst [vmem:[#allocation243_spill] sm:$0xff] %v13512_v13  ;;  %16260 = vst [vmem:[#allocation52_spill] sm:$0xff] %v13520_v50  ;;  %v5333_v13 = vmul.f32 1.442695, %v4972_v18  ;;  %v4943_v19 = vsub.f32 %v16264_v54, %v13378_v20  ;;  %v13532_v44 = vpop.xlane.xlu1 %4613  ;;  %v13534_v37 = vpop.f32.mrb[127].mxu1  ;;  %v13542_v39 = vadd.f32 %v12070_v63, %v4187_v56  ;;  %v4944_v18 = vsub.f32 %v16269_v42, %v13378_v20  ;;  %v16274_v17 = vld [vmem:[#allocation59_spill] sm:$0xff] }
 0x275   : > { %16262 = vst [vmem:[#allocation53_spill] sm:$0xff] %v13524_v31  ;;  %16263 = vst [vmem:[#allocation244_spill] sm:$0xff] %v13526_v2  ;;  %v13536_v25 = vpop.eup %10636  ;;  %v5335_v40 = vmul.f32 1.442695, %v4973_v55  ;;  %10650 = vpow2.f32 %v5273_v21  ;;  %v5337_v46 = vmul.f32 1.442695, %v4974_v58  ;;  %4775 = vmax.xlane.f32.xlu1 %v4774_v52  ;;  %4820 = vmax.xlane.f32.xlu0 %v4819_v9  ;;  %v4946_v29 = vsub.f32 %v16274_v17, %v13394_v15 }
 0x276   : > { %16265 = vst [vmem:[#allocation54_spill] sm:$0xff] %v13534_v37  ;;  %16266 = vst [vmem:[#allocation245_spill] sm:$0xff] %v13536_v25  ;;  %v13548_v54 = vpop.xlane.xlu0 %4658  ;;  %v13550_v41 = vpop.eup %10638  ;;  %v4945_v37 = vsub.f32 %v16271_v47, %v13394_v15  ;;  %10652 = vpow2.f32 %v5331_v26  ;;  %v5275_v31 = vmul.f32 1.442695, %v4943_v19  ;;  %v5277_v55 = vmul.f32 1.442695, %v4944_v18 }
 0x277   : > { %16267 = vst [vmem:[#allocation246_spill] sm:$0xff] %v13539_v49  ;;  %16268 = vst [vmem:[#allocation247_spill] sm:$0xff] %v13542_v39  ;;  %v13554_v56 = vpop.eup %10640  ;;  %10654 = vpow2.f32 %v5333_v13  ;;  %v4822_v21 = vmax.f32 %v13539_v49, %v13542_v39  ;;  %v5665_v58 = vadd.f32 %v13123_v10, %v13113_v3  ;;  %v16275_v9 = vld [vmem:[#allocation56_spill] sm:$0xff]  ;;  %v16277_v15 = vld [vmem:[#allocation58_spill] sm:$0xff] }
 0x278   : > { %16270 = vst [vmem:[#allocation55_spill] sm:$0xff] %v13550_v41  ;;  %16272 = vst [vmem:[#allocation57_spill] sm:$0xff] %v13554_v56  ;;  %v13556_v20 = vpop.xlane.xlu1 %4661  ;;  %v13558_v42 = vpop.eup %10642  ;;  %10656 = vpow2.f32 %v5335_v40  ;;  %v5279_v19 = vmul.f32 1.442695, %v4945_v37  ;;  %v4975_v26 = vsub.f32 %v16275_v9, %v13408_v7  ;;  %v4976_v18 = vsub.f32 %v16277_v15, %v13408_v7  ;;  %v16278_v47 = vld [vmem:[#allocation12_spill] sm:$0xff]  ;;  %v16279_v40 = vld [vmem:[#allocation14_spill] sm:$0xff] }
 0x279   : > { %16273 = vst [vmem:[#allocation248_spill] sm:$0xff] %v13558_v42  ;;  %10658 = vpow2.f32 %v5337_v46  ;;  %4823 = vmax.xlane.f32.xlu1 %v4822_v21  ;;  %v13570_v13 = vpop.eup %10644  ;;  %v4156_v17 = vmul.f32 0.25, %v16278_v47  ;;  %v4157_v39 = vmul.f32 0.25, %v16279_v40  ;;  %5666 = vadd.xlane.f32.xlu0 %v5665_v58  ;;  %v5281_v46 = vmul.f32 1.442695, %v4946_v29  ;;  %v16281_v37 = vld [vmem:[#allocation60_spill] sm:$0xff] }
 0x27a   : > { %v13566_v52 = vpop.xlane.xlu0 %4616  ;;  %16276 = vst [vmem:[#allocation59_spill] sm:$0xff] %v13570_v13  ;;  %10660 = vpow2.f32 %v5275_v31  ;;  %v13578_v36 = vpop.eup %10646  ;;  %v4977_v21 = vsub.f32 %v16281_v37, %v13424_v1  ;;  %v16282_v9 = vld [vmem:[#allocation61_spill] sm:$0xff]  ;;  %v16283_v3 = vld [vmem:[#allocation179_spill] sm:$0xff]  ;;  %v16284_v7 = vld [vmem:[#allocation180_spill] sm:$0xff]  ;;  %v4189_v47 = vmul.f32 0.25, %v13080_v23  ;;  %v5668_v29 = vadd.f32 %v13147_v12, %v13137_v32 }
 0x27b   : > { %16280 = vst [vmem:[#allocation56_spill] sm:$0xff] %v13578_v36  ;;  %10662 = vpow2.f32 %v5277_v55  ;;  %v4978_v31 = vsub.f32 %v16282_v9, %v13424_v1  ;;  %v4158_v10 = vmul.f32 0.25, %v16283_v3  ;;  %v4188_v15 = vmul.f32 0.25, %v16284_v7  ;;  %v16285_v13 = vld [vmem:[#allocation17_spill] sm:$0xff]  ;;  %v16289_v23 = vld [vmem:[#allocation23_spill] sm:$0xff]  ;;  %v16307_v25 = vld [vmem:[#allocation64_spill] sm:$0xff] }
 0x27c   : > { %v13576_v49 = vpop.xlane.xlu1 %4619  ;;  %10664 = vpow2.f32 %v5279_v19  ;;  %v5339_v58 = vmul.f32 1.442695, %v4975_v26  ;;  %v4159_v36 = vmul.f32 0.25, %v16285_v13  ;;  %v5341_v37 = vmul.f32 1.442695, %v4976_v18  ;;  %v16291_v13 = vld [vmem:[#allocation62_spill] sm:$0xff] }
 0x27d   : > { %v13592_v55 = vpop.eup %10648  ;;  %v13595_v1 = vadd.f32 %v12066_v61, %v4156_v17  ;;  %v13598_v3 = vadd.f32 %v12070_v63, %v4157_v39  ;;  %v5713_v9 = vadd.f32 %v16289_v23, %v13157_v38  ;;  %10666 = vpow2.f32 %v5281_v46  ;;  %v16292_v18 = vld [vmem:[#allocation63_spill] sm:$0xff]  ;;  %5669 = vadd.xlane.f32.xlu1 %v5668_v29  ;;  %v16294_v39 = vld [vmem:[#allocation65_spill] sm:$0xff] }
 0x27e   : > { %v13587_v40 = vpop.xlane.xlu0 %4664  ;;  %16286 = vst [vmem:[#allocation58_spill] sm:$0xff] %v13592_v55  ;;  %v5343_v26 = vmul.f32 1.442695, %v4977_v21  ;;  %v4947_v32 = vsub.f32 %v16291_v13, %v13438_v43  ;;  %v4948_v12 = vsub.f32 %v16292_v18, %v13438_v43  ;;  %v4949_v55 = vsub.f32 %v16294_v39, %v13453_v59  ;;  %v16300_v29 = vld [vmem:[#allocation19_spill] sm:$0xff]  ;;  %v16301_v39 = vld [vmem:[#allocation16_spill] sm:$0xff] }
 0x27f   : > { %16287 = vst [vmem:[#allocation12_spill] sm:$0xff] %v13595_v1  ;;  %16288 = vst [vmem:[#allocation14_spill] sm:$0xff] %v13598_v3  ;;  %v13604_v19 = vpop.eup %10650  ;;  %v13615_v38 = vadd.f32 %v12066_v61, %v4158_v10  ;;  %v13618_v23 = vadd.f32 %v12066_v61, %v4188_v15  ;;  %v13621_v46 = vadd.f32 %v12070_v63, %v4189_v47  ;;  %5714 = vadd.xlane.f32.xlu0 %v5713_v9  ;;  %v16302_v10 = vld [vmem:[#allocation25_spill] sm:$0xff]  ;;  %v16305_v9 = vld [vmem:[#allocation67_spill] sm:$0xff] }
 0x280   : > { %v13602_v7 = vpop.xlane.xlu1 %4667  ;;  %16290 = vst [vmem:[#allocation60_spill] sm:$0xff] %v13604_v19  ;;  %v13610_v17 = vpop.eup %10652  ;;  %v13628_v43 = vadd.f32 %v12070_v63, %v4159_v36  ;;  %v4190_v18 = vmul.f32 0.25, %v16300_v29  ;;  %v16303_v19 = vld [vmem:[#allocation201_spill] sm:$0xff]  ;;  %10668 = vpow2.f32 %v5339_v58  ;;  %v5345_v47 = vmul.f32 1.442695, %v4978_v31 }
 0x281   : > { %16293 = vst [vmem:[#allocation61_spill] sm:$0xff] %v13610_v17  ;;  %16295 = vst [vmem:[#allocation179_spill] sm:$0xff] %v13615_v38  ;;  %v13625_v13 = vpop.eup %10654  ;;  %v4191_v17 = vmul.f32 0.25, %v16301_v39  ;;  %v5716_v42 = vadd.f32 %v16303_v19, %v16302_v10  ;;  %v4950_v56 = vsub.f32 %v16305_v9, %v13453_v59  ;;  %10670 = vpow2.f32 %v5341_v37  ;;  %v16309_v59 = vld [vmem:[#allocation66_spill] sm:$0xff] }
 0x282   : > { %16296 = vst [vmem:[#allocation180_spill] sm:$0xff] %v13618_v23  ;;  %16297 = vst [vmem:[#allocation17_spill] sm:$0xff] %v13621_v46  ;;  %v13623_v21 = vpop.xlane.xlu0 %4622  ;;  %v13634_v15 = vpop.eup %10656  ;;  %v5283_v29 = vmul.f32 1.442695, %v4947_v32  ;;  %v5285_v39 = vmul.f32 1.442695, %v4948_v12  ;;  %v4979_v10 = vsub.f32 %v16307_v25, %v13468_v45  ;;  %10672 = vpow2.f32 %v5343_v26 }
 0x283   : > { %16298 = vst [vmem:[#allocation62_spill] sm:$0xff] %v13625_v13  ;;  %16299 = vst [vmem:[#allocation63_spill] sm:$0xff] %v13628_v43  ;;  %v4777_v13 = vmax.f32 %v13595_v1, %v13598_v3  ;;  %v13642_v36 = vpop.eup %10658  ;;  %5717 = vadd.xlane.f32.xlu1 %v5716_v42  ;;  %v5287_v31 = vmul.f32 1.442695, %v4949_v55  ;;  %v4980_v58 = vsub.f32 %v16309_v59, %v13468_v45  ;;  %v16311_v12 = vld [vmem:[#allocation68_spill] sm:$0xff]  ;;  %10674 = vpow2.f32 %v5345_v47  ;;  %v16314_v26 = vld [vmem:[#allocation69_spill] sm:$0xff] }
 0x284   : > { %16304 = vst [vmem:[#allocation65_spill] sm:$0xff] %v13634_v15  ;;  %v13640_v41 = vpop.xlane.xlu1 %4625  ;;  %16306 = vst [vmem:[#allocation19_spill] sm:$0xff] %v13642_v36  ;;  %v13646_v19 = vpop.eup %10660  ;;  %v4825_v9 = vmax.f32 %v13618_v23, %v13621_v46  ;;  %v4981_v32 = vsub.f32 %v16311_v12, %v13495_v16  ;;  %v13659_v25 = vadd.f32 %v12066_v61, %v4190_v18  ;;  %v5289_v55 = vmul.f32 1.442695, %v4950_v56  ;;  %v16317_v56 = vld [vmem:[#allocation70_spill] sm:$0xff] }
 0x285   : > { %16308 = vst [vmem:[#allocation16_spill] sm:$0xff] %v13646_v19  ;;  %4778 = vmax.xlane.f32.xlu0 %v4777_v13  ;;  %v13654_v37 = vpop.eup %10662  ;;  %v13662_v42 = vadd.f32 %v12070_v63, %v4191_v17  ;;  %v4780_v45 = vmax.f32 %v13615_v38, %v13628_v43  ;;  %v4982_v13 = vsub.f32 %v16314_v26, %v13495_v16  ;;  %10676 = vpow2.f32 %v5283_v29  ;;  %v16318_v29 = vld [vmem:[#allocation202_spill] sm:$0xff] }
 0x286   : > { %v13652_v3 = vpop.xlane.xlu0 %4670  ;;  %16310 = vst [vmem:[#allocation67_spill] sm:$0xff] %v13654_v37  ;;  %16312 = vst [vmem:[#allocation64_spill] sm:$0xff] %v13659_v25  ;;  %v13670_v46 = vpop.eup %10664  ;;  %v5347_v12 = vmul.f32 1.442695, %v4979_v10  ;;  %10678 = vpow2.f32 %v5285_v39  ;;  %v5349_v18 = vmul.f32 1.442695, %v4980_v58  ;;  %v4951_v43 = vsub.f32 %v16317_v56, %v13518_v51 }
 0x287   : > { %16313 = vst [vmem:[#allocation66_spill] sm:$0xff] %v13662_v42  ;;  %16315 = vst [vmem:[#allocation68_spill] sm:$0xff] %v13670_v46  ;;  %4781 = vmax.xlane.f32.xlu1 %v4780_v45  ;;  %v13674_v23 = vpop.eup %10666  ;;  %10680 = vpow2.f32 %v5287_v31  ;;  %v5351_v47 = vmul.f32 1.442695, %v4981_v32  ;;  %v4828_v16 = vmax.f32 %v13659_v25, %v13662_v42  ;;  %v5353_v26 = vmul.f32 1.442695, %v4982_v13 }
 0x288   : > { %v13668_v59 = vpop.xlane.xlu1 %4673  ;;  %16316 = vst [vmem:[#allocation69_spill] sm:$0xff] %v13674_v23  ;;  %10682 = vpow2.f32 %v5289_v55  ;;  %v5671_v10 = vadd.f32 %v13218_v5, %v16318_v29  ;;  %v16319_v58 = vld [vmem:[#allocation71_spill] sm:$0xff]  ;;  %v16320_v31 = vld [vmem:[#allocation73_spill] sm:$0xff]  ;;  %v16322_v56 = vld [vmem:[#allocation18_spill] sm:$0xff] }
 0x289   : > { %4826 = vmax.xlane.f32.xlu0 %v4825_v9  ;;  %10684 = vpow2.f32 %v5347_v12  ;;  %v4952_v9 = vsub.f32 %v16319_v58, %v13518_v51  ;;  %v4953_v32 = vsub.f32 %v16320_v31, %v13532_v44  ;;  %v4160_v42 = vmul.f32 0.25, %v16322_v56  ;;  %v16323_v55 = vld [vmem:[#allocation186_spill] sm:$0xff]  ;;  %v16325_v51 = vld [vmem:[#allocation75_spill] sm:$0xff]  ;;  %v16329_v56 = vld [vmem:[#allocation193_spill] sm:$0xff] }
 0x28a   : > { %v13672_v17 = vpop.xlane.xlu0 %4676  ;;  %v13688_v45 = vpop.eup %10668  ;;  %10686 = vpow2.f32 %v5349_v18  ;;  %v4161_v13 = vmul.f32 0.25, %v16323_v55  ;;  %v5291_v12 = vmul.f32 1.442695, %v4951_v43  ;;  %v4954_v58 = vsub.f32 %v16325_v51, %v13532_v44  ;;  %v16328_v18 = vld [vmem:[#allocation187_spill] sm:$0xff]  ;;  %v16330_v23 = vld [vmem:[#allocation192_spill] sm:$0xff] }
 0x28b   : > { %4829 = vmax.xlane.f32.xlu1 %v4828_v16  ;;  %16321 = vst [vmem:[#allocation70_spill] sm:$0xff] %v13688_v45  ;;  %v13694_v38 = vpop.eup %10670  ;;  %10688 = vpow2.f32 %v5351_v47  ;;  %v16327_v16 = vld [vmem:[#allocation20_spill] sm:$0xff]  ;;  %v4192_v1 = vmul.f32 0.25, %v16328_v18  ;;  %v4193_v5 = vmul.f32 0.25, %v16329_v56  ;;  %v5295_v45 = vmul.f32 1.442695, %v4953_v32 }
 0x28c   : > { %v13682_v39 = vpop.xlane.xlu1 %4679  ;;  %16324 = vst [vmem:[#allocation71_spill] sm:$0xff] %v13694_v38  ;;  %v13698_v29 = vpop.eup %10672  ;;  %10690 = vpow2.f32 %v5353_v26  ;;  %v4162_v31 = vmul.f32 0.25, %v16327_v16  ;;  %v4163_v38 = vmul.f32 0.25, %v16330_v23  ;;  %v5674_v43 = vadd.f32 %v13242_v48, %v13234_v24  ;;  %v16332_v44 = vld [vmem:[#allocation72_spill] sm:$0xff]  ;;  %v16336_v56 = vld [vmem:[#allocation74_spill] sm:$0xff] }
 0x28d   : > { %5672 = vadd.xlane.f32.xlu0 %v5671_v10  ;;  %16326 = vst [vmem:[#allocation73_spill] sm:$0xff] %v13698_v29  ;;  %v5293_v10 = vmul.f32 1.442695, %v4952_v9  ;;  %v13708_v47 = vpop.eup %10674  ;;  %v4983_v26 = vsub.f32 %v16332_v44, %v13548_v54  ;;  %v13713_v51 = vadd.f32 %v12066_v61, %v4160_v42  ;;  %v13716_v16 = vadd.f32 %v12070_v63, %v4161_v13  ;;  %v16337_v44 = vld [vmem:[#allocation76_spill] sm:$0xff]  ;;  %v16339_v13 = vld [vmem:[#allocation77_spill] sm:$0xff]  ;;  %v16350_v29 = vld [vmem:[#allocation79_spill] sm:$0xff] }
 0x28e   : > { %v13692_v25 = vpop.xlane.xlu0 %4724  ;;  %16331 = vst [vmem:[#allocation18_spill] sm:$0xff] %v13708_v47  ;;  %v5719_v9 = vadd.f32 %v13274_v62, %v13261_v14  ;;  %10692 = vpow2.f32 %v5291_v12  ;;  %v5297_v18 = vmul.f32 1.442695, %v4954_v58  ;;  %v4984_v24 = vsub.f32 %v16336_v56, %v13548_v54  ;;  %v16345_v56 = vld [vmem:[#allocation21_spill] sm:$0xff] }
 0x28f   : > { %16333 = vst [vmem:[#allocation186_spill] sm:$0xff] %v13713_v51  ;;  %16334 = vst [vmem:[#allocation75_spill] sm:$0xff] %v13716_v16  ;;  %v13722_v23 = vpop.eup %10676  ;;  %v4985_v48 = vsub.f32 %v16337_v44, %v13556_v20  ;;  %5675 = vadd.xlane.f32.xlu1 %v5674_v43  ;;  %v4986_v47 = vsub.f32 %v16339_v13, %v13556_v20  ;;  %v13733_v14 = vadd.f32 %v12066_v61, %v4162_v31  ;;  %v16346_v20 = vld [vmem:[#allocation22_spill] sm:$0xff] }
 0x290   : > { %v13703_v55 = vpop.xlane.xlu1 %4727  ;;  %16335 = vst [vmem:[#allocation20_spill] sm:$0xff] %v13722_v23  ;;  %v13728_v42 = vpop.eup %10678  ;;  %v13736_v62 = vadd.f32 %v12066_v61, %v4192_v1  ;;  %v13739_v12 = vadd.f32 %v12070_v63, %v4193_v5  ;;  %v13746_v43 = vadd.f32 %v12070_v63, %v4163_v38  ;;  %v4194_v44 = vmul.f32 0.25, %v16345_v56 }
 0x291   : > { %16338 = vst [vmem:[#allocation187_spill] sm:$0xff] %v13728_v42  ;;  %16340 = vst [vmem:[#allocation193_spill] sm:$0xff] %v13733_v14  ;;  %5720 = vadd.xlane.f32.xlu0 %v5719_v9  ;;  %v13743_v58 = vpop.eup %10680  ;;  %v4195_v13 = vmul.f32 0.25, %v16346_v20  ;;  %v5722_v31 = vadd.f32 %v13303_v35, %v13284_v4  ;;  %10694 = vpow2.f32 %v5293_v10  ;;  %v5355_v5 = vmul.f32 1.442695, %v4983_v26  ;;  %v16348_v9 = vld [vmem:[#allocation78_spill] sm:$0xff] }
 0x292   : > { %v13720_v32 = vpop.xlane.xlu0 %4682  ;;  %16341 = vst [vmem:[#allocation192_spill] sm:$0xff] %v13736_v62  ;;  %16342 = vst [vmem:[#allocation72_spill] sm:$0xff] %v13739_v12  ;;  %v13752_v1 = vpop.eup %10682  ;;  %v4955_v42 = vsub.f32 %v16348_v9, %v13566_v52  ;;  %10696 = vpow2.f32 %v5295_v45  ;;  %v5357_v56 = vmul.f32 1.442695, %v4984_v24  ;;  %v5359_v20 = vmul.f32 1.442695, %v4985_v48 }
 0x293   : > { %16343 = vst [vmem:[#allocation74_spill] sm:$0xff] %v13743_v58  ;;  %16344 = vst [vmem:[#allocation76_spill] sm:$0xff] %v13746_v43  ;;  %v4783_v58 = vmax.f32 %v13713_v51, %v13716_v16  ;;  %v13760_v38 = vpop.eup %10684  ;;  %v4956_v4 = vsub.f32 %v16350_v29, %v13566_v52  ;;  %5723 = vadd.xlane.f32.xlu1 %v5722_v31  ;;  %10698 = vpow2.f32 %v5297_v18  ;;  %v5361_v10 = vmul.f32 1.442695, %v4986_v47  ;;  %v16352_v26 = vld [vmem:[#allocation81_spill] sm:$0xff]  ;;  %v16354_v24 = vld [vmem:[#allocation83_spill] sm:$0xff] }
 0x294   : > { %v13741_v54 = vpop.xlane.xlu1 %4685  ;;  %16347 = vst [vmem:[#allocation77_spill] sm:$0xff] %v13752_v1  ;;  %16349 = vst [vmem:[#allocation21_spill] sm:$0xff] %v13760_v38  ;;  %v13764_v35 = vpop.eup %10686  ;;  %v4957_v9 = vsub.f32 %v16352_v26, %v13576_v49  ;;  %v4831_v16 = vmax.f32 %v13736_v62, %v13739_v12  ;;  %v4958_v48 = vsub.f32 %v16354_v24, %v13576_v49  ;;  %10700 = vpow2.f32 %v5355_v5  ;;  %v16358_v31 = vld [vmem:[#allocation80_spill] sm:$0xff]  ;;  %v16359_v49 = vld [vmem:[#allocation82_spill] sm:$0xff] }
 0x295   : > { %16351 = vst [vmem:[#allocation22_spill] sm:$0xff] %v13764_v35  ;;  %4784 = vmax.xlane.f32.xlu0 %v4783_v58  ;;  %v13772_v45 = vpop.eup %10688  ;;  %v13777_v52 = vadd.f32 %v12066_v61, %v4194_v44  ;;  %v13780_v29 = vadd.f32 %v12070_v63, %v4195_v13  ;;  %v4786_v47 = vmax.f32 %v13733_v14, %v13746_v43  ;;  %v5299_v58 = vmul.f32 1.442695, %v4955_v42 }
 0x296   : > { %v13758_v23 = vpop.xlane.xlu0 %4730  ;;  %16353 = vst [vmem:[#allocation78_spill] sm:$0xff] %v13772_v45  ;;  %v13784_v18 = vpop.eup %10690  ;;  %v4987_v26 = vsub.f32 %v16358_v31, %v13587_v40  ;;  %10702 = vpow2.f32 %v5357_v56  ;;  %v5301_v12 = vmul.f32 1.442695, %v4956_v4  ;;  %v4988_v24 = vsub.f32 %v16359_v49, %v13587_v40 }
 0x297   : > { %16355 = vst [vmem:[#allocation79_spill] sm:$0xff] %v13777_v52  ;;  %16356 = vst [vmem:[#allocation81_spill] sm:$0xff] %v13780_v29  ;;  %4787 = vmax.xlane.f32.xlu1 %v4786_v47  ;;  %10704 = vpow2.f32 %v5359_v20  ;;  %v5303_v13 = vmul.f32 1.442695, %v4957_v9  ;;  %v5305_v42 = vmul.f32 1.442695, %v4958_v48  ;;  %v4834_v5 = vmax.f32 %v13777_v52, %v13780_v29 }
 0x298   : > { %v13770_v51 = vpop.xlane.xlu1 %4733  ;;  %16357 = vst [vmem:[#allocation83_spill] sm:$0xff] %v13784_v18  ;;  %v13794_v43 = vpop.eup %10692  ;;  %10706 = vpow2.f32 %v5361_v10  ;;  %v5363_v4 = vmul.f32 1.442695, %v4987_v26  ;;  %v5677_v40 = vadd.f32 %v13322_v11, %v13314_v30  ;;  %v5365_v56 = vmul.f32 1.442695, %v4988_v24  ;;  %v16361_v20 = vld [vmem:[#allocation84_spill] sm:$0xff] }
 0x299   : > { %4832 = vmax.xlane.f32.xlu0 %v4831_v16  ;;  %16360 = vst [vmem:[#allocation80_spill] sm:$0xff] %v13794_v43  ;;  %10708 = vpow2.f32 %v5299_v58  ;;  %v4989_v9 = vsub.f32 %v16361_v20, %v13602_v7  ;;  %v16363_v47 = vld [vmem:[#allocation24_spill] sm:$0xff]  ;;  %v16364_v48 = vld [vmem:[#allocation26_spill] sm:$0xff]  ;;  %v16377_v11 = vld [vmem:[#allocation91_spill] sm:$0xff] }
 0x29a   : > { %v13790_v44 = vpop.xlane.xlu0 %4688  ;;  %10710 = vpow2.f32 %v5301_v12  ;;  %v4164_v10 = vmul.f32 0.25, %v16363_v47  ;;  %v4165_v31 = vmul.f32 0.25, %v16364_v48  ;;  %v16366_v12 = vld [vmem:[#allocation85_spill] sm:$0xff]  ;;  %v16367_v24 = vld [vmem:[#allocation86_spill] sm:$0xff]  ;;  %v16369_v47 = vld [vmem:[#allocation200_spill] sm:$0xff]  ;;  %v4962_v14 = vsub.f32 %v16377_v11, %v13640_v41 }
 0x29b   : > { %4835 = vmax.xlane.f32.xlu1 %v4834_v5  ;;  %v13802_v16 = vpop.eup %10694  ;;  %10712 = vpow2.f32 %v5303_v13  ;;  %v4990_v26 = vsub.f32 %v16366_v12, %v13602_v7  ;;  %v4959_v20 = vsub.f32 %v16367_v24, %v13623_v21  ;;  %v4166_v13 = vmul.f32 0.25, %v13224_v0  ;;  %v16372_v24 = vld [vmem:[#allocation87_spill] sm:$0xff] }
 0x29c   : > { %v13792_v62 = vpop.xlane.xlu1 %4691  ;;  %16362 = vst [vmem:[#allocation82_spill] sm:$0xff] %v13802_v16  ;;  %v13808_v58 = vpop.eup %10696  ;;  %10714 = vpow2.f32 %v5305_v42  ;;  %v4196_v29 = vmul.f32 0.25, %v16369_v47  ;;  %v5367_v52 = vmul.f32 1.442695, %v4989_v9  ;;  %v16370_v42 = vld [vmem:[#allocation29_spill] sm:$0xff]  ;;  %v5680_v7 = vadd.f32 %v13353_v8, %v13338_v60 }
 0x29d   : > { %5678 = vadd.xlane.f32.xlu0 %v5677_v40  ;;  %16365 = vst [vmem:[#allocation84_spill] sm:$0xff] %v13808_v58  ;;  %v13814_v5 = vpop.eup %10698  ;;  %10716 = vpow2.f32 %v5363_v4  ;;  %v4197_v40 = vmul.f32 0.25, %v13232_v53  ;;  %v4167_v30 = vmul.f32 0.25, %v16370_v42  ;;  %v4960_v4 = vsub.f32 %v16372_v24, %v13623_v21  ;;  %v16376_v60 = vld [vmem:[#allocation89_spill] sm:$0xff] }
 0x29e   : > { %v13806_v49 = vpop.xlane.xlu0 %4736  ;;  %16368 = vst [vmem:[#allocation24_spill] sm:$0xff] %v13814_v5  ;;  %10718 = vpow2.f32 %v5365_v56  ;;  %v13824_v12 = vpop.eup %10700  ;;  %v13829_v0 = vadd.f32 %v12066_v61, %v4164_v10  ;;  %v13832_v47 = vadd.f32 %v12070_v63, %v4165_v31  ;;  %v5725_v53 = vadd.f32 %v13369_v57, %v13361_v6  ;;  %v16379_v10 = vld [vmem:[#allocation88_spill] sm:$0xff] }
 0x29f   : > { %16371 = vst [vmem:[#allocation26_spill] sm:$0xff] %v13824_v12  ;;  %v5369_v9 = vmul.f32 1.442695, %v4990_v26  ;;  %v5307_v42 = vmul.f32 1.442695, %v4959_v20  ;;  %v4961_v8 = vsub.f32 %v16376_v60, %v13640_v41  ;;  %5681 = vadd.xlane.f32.xlu1 %v5680_v7  ;;  %v4991_v31 = vsub.f32 %v16379_v10, %v13652_v3  ;;  %v16385_v41 = vld [vmem:[#allocation31_spill] sm:$0xff] }
 0x2a0   : > { %v13819_v48 = vpop.xlane.xlu1 %4739  ;;  %16373 = vst [vmem:[#allocation85_spill] sm:$0xff] %v13829_v0  ;;  %16374 = vst [vmem:[#allocation86_spill] sm:$0xff] %v13832_v47  ;;  %v13836_v56 = vpop.eup %10702  ;;  %v13847_v24 = vadd.f32 %v12066_v61, %v4166_v13  ;;  %v13850_v6 = vadd.f32 %v12066_v61, %v4196_v29  ;;  %v13853_v26 = vadd.f32 %v12070_v63, %v4197_v40  ;;  %v4198_v7 = vmul.f32 0.25, %v16385_v41  ;;  %v16386_v10 = vld [vmem:[#allocation33_spill] sm:$0xff]  ;;  %v16390_v12 = vld [vmem:[#allocation92_spill] sm:$0xff] }
 0x2a1   : > { %16375 = vst [vmem:[#allocation200_spill] sm:$0xff] %v13836_v56  ;;  %v13842_v21 = vpop.eup %10704  ;;  %5726 = vadd.xlane.f32.xlu0 %v5725_v53  ;;  %v13860_v11 = vadd.f32 %v12070_v63, %v4167_v30  ;;  %v4199_v57 = vmul.f32 0.25, %v16386_v10  ;;  %v5728_v13 = vadd.f32 %v13392_v34, %v13383_v22  ;;  %10720 = vpow2.f32 %v5367_v52  ;;  %v16388_v53 = vld [vmem:[#allocation90_spill] sm:$0xff] }
 0x2a2   : > { %16378 = vst [vmem:[#allocation29_spill] sm:$0xff] %v13842_v21  ;;  %16380 = vst [vmem:[#allocation87_spill] sm:$0xff] %v13847_v24  ;;  %v13855_v60 = vpop.xlane.xlu0 %4694  ;;  %v13857_v20 = vpop.eup %10706  ;;  %v5309_v40 = vmul.f32 1.442695, %v4960_v4  ;;  %v4992_v21 = vsub.f32 %v16388_v53, %v13652_v3  ;;  %10722 = vpow2.f32 %v5369_v9  ;;  %v5311_v41 = vmul.f32 1.442695, %v4961_v8 }
 0x2a3   : > { %16381 = vst [vmem:[#allocation89_spill] sm:$0xff] %v13850_v6  ;;  %16382 = vst [vmem:[#allocation91_spill] sm:$0xff] %v13853_v26  ;;  %v13866_v29 = vpop.eup %10708  ;;  %v5313_v10 = vmul.f32 1.442695, %v4962_v14  ;;  %v4993_v22 = vsub.f32 %v16390_v12, %v13668_v59  ;;  %5729 = vadd.xlane.f32.xlu1 %v5728_v13  ;;  %10724 = vpow2.f32 %v5307_v42  ;;  %v5371_v52 = vmul.f32 1.442695, %v4991_v31 }
 0x2a4   : > { %16383 = vst [vmem:[#allocation88_spill] sm:$0xff] %v13857_v20  ;;  %16384 = vst [vmem:[#allocation249_spill] sm:$0xff] %v13860_v11  ;;  %v4789_v20 = vmax.f32 %v13829_v0, %v13832_v47  ;;  %v13872_v56 = vpop.xlane.xlu1 %4697  ;;  %v13874_v30 = vpop.eup %10710  ;;  %v16392_v3 = vld [vmem:[#allocation93_spill] sm:$0xff]  ;;  %v4837_v53 = vmax.f32 %v13850_v6, %v13853_v26  ;;  %v16394_v14 = vld [vmem:[#allocation94_spill] sm:$0xff]  ;;  %v13891_v12 = vadd.f32 %v12066_v61, %v4198_v7  ;;  %10726 = vpow2.f32 %v5309_v40 }
 0x2a5   : > { %16387 = vst [vmem:[#allocation31_spill] sm:$0xff] %v13866_v29  ;;  %16389 = vst [vmem:[#allocation33_spill] sm:$0xff] %v13874_v30  ;;  %v13878_v34 = vpop.eup %10712  ;;  %v4994_v4 = vsub.f32 %v16392_v3, %v13668_v59  ;;  %v4995_v8 = vsub.f32 %v16394_v14, %v13672_v17  ;;  %v13894_v42 = vadd.f32 %v12070_v63, %v4199_v57  ;;  %v16398_v13 = vld [vmem:[#allocation95_spill] sm:$0xff]  ;;  %10728 = vpow2.f32 %v5311_v41  ;;  %v16400_v7 = vld [vmem:[#allocation97_spill] sm:$0xff] }
 0x2a6   : > { %16391 = vst [vmem:[#allocation90_spill] sm:$0xff] %v13878_v34  ;;  %4790 = vmax.xlane.f32.xlu0 %v4789_v20  ;;  %v13884_v47 = vpop.xlane.xlu0 %4742  ;;  %v13886_v9 = vpop.eup %10714  ;;  %16395 = vst [vmem:[#allocation93_spill] sm:$0xff] %v13891_v12  ;;  %v4792_v59 = vmax.f32 %v13847_v24, %v13860_v11  ;;  %v5373_v20 = vmul.f32 1.442695, %v4992_v21  ;;  %v4996_v3 = vsub.f32 %v16398_v13, %v13672_v17  ;;  %v5375_v14 = vmul.f32 1.442695, %v4993_v22 }
 0x2a7   : > { %16393 = vst [vmem:[#allocation92_spill] sm:$0xff] %v13886_v9  ;;  %16396 = vst [vmem:[#allocation94_spill] sm:$0xff] %v13894_v42  ;;  %v13898_v31 = vpop.eup %10716  ;;  %v4997_v6 = vsub.f32 %v16400_v7, %v13682_v39  ;;  %10730 = vpow2.f32 %v5313_v10  ;;  %v5377_v57 = vmul.f32 1.442695, %v4994_v4  ;;  %v5379_v11 = vmul.f32 1.442695, %v4995_v8 }
 0x2a8   : > { %16397 = vst [vmem:[#allocation250_spill] sm:$0xff] %v13898_v31  ;;  %v13902_v26 = vpop.eup %10718  ;;  %4793 = vmax.xlane.f32.xlu1 %v4792_v59  ;;  %v13906_v0 = vpop.xlane.xlu1 %4745  ;;  %10732 = vpow2.f32 %v5371_v52  ;;  %v4840_v21 = vmax.f32 %v13891_v12, %v13894_v42  ;;  %v5381_v17 = vmul.f32 1.442695, %v4996_v3  ;;  %v5731_v22 = vadd.f32 %v13404_v33, %v13398_v28  ;;  %v16401_v41 = vld [vmem:[#allocation99_spill] sm:$0xff]  ;;  %v16403_v52 = vld [vmem:[#allocation205_spill] sm:$0xff]  ;;  %v16406_v3 = vld [vmem:[#allocation96_spill] sm:$0xff] }
 0x2a9   : > { %16399 = vst [vmem:[#allocation95_spill] sm:$0xff] %v13902_v26  ;;  %10734 = vpow2.f32 %v5373_v20  ;;  %v4998_v10 = vsub.f32 %v16401_v41, %v13682_v39  ;;  %v5383_v4 = vmul.f32 1.442695, %v4997_v6  ;;  %v4168_v8 = vmul.f32 0.25, %v16403_v52  ;;  %v16404_v59 = vld [vmem:[#allocation35_spill] sm:$0xff]  ;;  %v16411_v28 = vld [vmem:[#allocation210_spill] sm:$0xff] }
 0x2aa   : > { %4838 = vmax.xlane.f32.xlu0 %v4837_v53  ;;  %v13910_v40 = vpop.xlane.xlu0 %5636  ;;  %10736 = vpow2.f32 %v5375_v14  ;;  %v4169_v13 = vmul.f32 0.25, %v16404_v59  ;;  %v5027_v7 = vsub.f32 %v16406_v3, %v13692_v25  ;;  %v16407_v14 = vld [vmem:[#allocation98_spill] sm:$0xff]  ;;  %v10380_v39 = vld [vmem:[%s11938_s10 + $0x140] sm:$0xff]   ;;  %v4201_v59 = vmul.f32 0.25, %v16411_v28  ;;  %v16412_v42 = vld [vmem:[#allocation32_spill] sm:$0xff] }
 0x2ab   : > { %v13916_v53 = vpop.eup %10720  ;;  %10738 = vpow2.f32 %v5377_v57  ;;  %v5028_v33 = vsub.f32 %v16407_v14, %v13692_v25  ;;  %v16410_v41 = vld [vmem:[#allocation207_spill] sm:$0xff]  ;;  %v4171_v3 = vmul.f32 0.25, %v16412_v42  ;;  %v16413_v12 = vld [vmem:[#allocation232_spill] sm:$0xff]  ;;  %9564 = vmatprep.subr.bf16.mxu0 %v10380_v39  ;;  %v13944_v28 = vadd.f32 %v12066_v61, %v4168_v8  ;;  %v16421_v39 = vld [vmem:[#allocation101_spill] sm:$0xff] }
 0x2ac   : > { %4841 = vmax.xlane.f32.xlu1 %v4840_v21  ;;  %16402 = vst [vmem:[#allocation97_spill] sm:$0xff] %v13916_v53  ;;  %v13920_v20 = vpop.eup %10722  ;;  %10740 = vpow2.f32 %v5379_v11  ;;  %v16409_v21 = vld [vmem:[#allocation208_spill] sm:$0xff]  ;;  %v4200_v52 = vmul.f32 0.25, %v16410_v41  ;;  %v5385_v11 = vmul.f32 1.442695, %v4998_v10  ;;  %v16419_v10 = vld [vmem:[#allocation49_spill] sm:$0xff] }
 0x2ad   : > { %16405 = vst [vmem:[#allocation99_spill] sm:$0xff] %v13920_v20  ;;  %v13927_v6 = vpop.eup %10724  ;;  %10742 = vpow2.f32 %v5381_v17  ;;  %v4170_v57 = vmul.f32 0.25, %v16409_v21  ;;  %v16414_v24 = vld [vmem:[#allocation236_spill] sm:$0xff]  ;;  %16417 = vst [vmem:[#allocation96_spill] sm:$0xff] %v13944_v28  ;;  %v5779_v42 = vadd.f32 %v16419_v10, %v13442_v27  ;;  %v5030_v20 = vsub.f32 %v16421_v39, %v13703_v55  ;;  %v16433_v27 = vld [vmem:[#allocation237_spill] sm:$0xff] }
 0x2ae   : > { %5732 = vadd.xlane.f32.xlu0 %v5731_v22  ;;  %16408 = vst [vmem:[#allocation205_spill] sm:$0xff] %v13927_v6  ;;  %v13932_v22 = vpop.xlane.xlu1 %5639  ;;  %10744 = vpow2.f32 %v5383_v4  ;;  %v5734_v25 = vadd.f32 %v16414_v24, %v16413_v12  ;;  %v13937_v14 = vpop.xlane.xlu0 %5684  ;;  %v16416_v21 = vld [vmem:[#allocation100_spill] sm:$0xff]  ;;  %v13947_v4 = vadd.f32 %v12070_v63, %v4169_v13  ;;  %v5443_v24 = vmul.f32 1.442695, %v5027_v7  ;;  %v16424_v13 = vld [vmem:[#allocation103_spill] sm:$0xff]  ;;  %v16495_v34 = vld [vmem:[#allocation234_spill] sm:$0xff] }
 0x2af   : > { %v13939_v17 = vpop.eup %10726  ;;  %v5029_v41 = vsub.f32 %v16416_v21, %v13703_v55  ;;  %v5445_v12 = vmul.f32 1.442695, %v5028_v33  ;;  %v10382_v21 = vld [vmem:[%s11938_s10 + $0x1c0] sm:$0xff]   ;;  %v5000_v26 = vsub.f32 %v16424_v13, %v13720_v32  ;;  %v13963_v31 = vadd.f32 %v12066_v61, %v4170_v57  ;;  %v16432_v57 = vld [vmem:[#allocation172_spill] sm:$0xff] }
 0x2b0   : > { %16415 = vst [vmem:[#allocation35_spill] sm:$0xff] %v13939_v17  ;;  %16418 = vst [vmem:[#allocation98_spill] sm:$0xff] %v13947_v4  ;;  %v13951_v6 = vpop.eup %10728  ;;  %v16422_v17 = vld [vmem:[#allocation102_spill] sm:$0xff]  ;;  %5735 = vadd.xlane.f32.xlu1 %v5734_v25  ;;  %v13966_v10 = vadd.f32 %v12066_v61, %v4200_v52  ;;  %v13969_v33 = vadd.f32 %v12070_v63, %v4201_v59  ;;  %v13976_v25 = vadd.f32 %v12070_v63, %v4171_v3 }
 0x2b1   : > { %16420 = vst [vmem:[#allocation208_spill] sm:$0xff] %v13951_v6  ;;  %v4999_v53 = vsub.f32 %v16422_v17, %v13720_v32  ;;  %v13958_v8 = vpop.eup %10730  ;;  %16425 = vst [vmem:[#allocation210_spill] sm:$0xff] %v13963_v31  ;;  %v16430_v17 = vld [vmem:[#allocation213_spill] sm:$0xff]  ;;  %v16431_v32 = vld [vmem:[#allocation214_spill] sm:$0xff]  ;;  %9628 = vmatprep.subr.bf16.mxu1 %v10382_v21  ;;  %10746 = vpow2.f32 %v5385_v11  ;;  %v4795_v3 = vmax.f32 %v13944_v28, %v13947_v4  ;;  %v5389_v4 = vmul.f32 1.442695, %v5000_v26 }
 0x2b2   : > { %16423 = vst [vmem:[#allocation207_spill] sm:$0xff] %v13958_v8  ;;  %16426 = vst [vmem:[#allocation32_spill] sm:$0xff] %v13966_v10  ;;  %5780 = vadd.xlane.f32.xlu0 %v5779_v42  ;;  %v13971_v55 = vpop.xlane.xlu1 %5687  ;;  %v13973_v7 = vpop.eup %10732  ;;  %v4202_v39 = vmul.f32 0.25, %v16430_v17  ;;  %v4203_v13 = vmul.f32 0.25, %v16431_v32  ;;  %v5782_v8 = vadd.f32 %v16433_v27, %v16432_v57  ;;  %v5447_v42 = vmul.f32 1.442695, %v5029_v41 }
 0x2b3   : > { %16427 = vst [vmem:[#allocation100_spill] sm:$0xff] %v13969_v33  ;;  %16428 = vst [vmem:[#allocation101_spill] sm:$0xff] %v13973_v7  ;;  %v13982_v52 = vpop.xlane.xlu0 %4700  ;;  %v13984_v59 = vpop.eup %10734  ;;  %v16435_v6 = vld [vmem:[#allocation105_spill] sm:$0xff]  ;;  %10748 = vpow2.f32 %v5443_v24  ;;  %v5449_v17 = vmul.f32 1.442695, %v5030_v20  ;;  %v16438_v21 = vld [vmem:[#allocation107_spill] sm:$0xff]  ;;  %v4843_v11 = vmax.f32 %v13966_v10, %v13969_v33 }
 0x2b4   : > { %16429 = vst [vmem:[#allocation102_spill] sm:$0xff] %v13976_v25  ;;  %16434 = vst [vmem:[#allocation103_spill] sm:$0xff] %v13984_v59  ;;  %v5001_v7 = vsub.f32 %v16435_v6, %v13741_v54  ;;  %v13990_v9 = vpop.eup %10736  ;;  %5783 = vadd.xlane.f32.xlu1 %v5782_v8  ;;  %10750 = vpow2.f32 %v5445_v12  ;;  %v5387_v27 = vmul.f32 1.442695, %v4999_v53  ;;  %v5002_v57 = vsub.f32 %v16438_v21, %v13741_v54  ;;  %v16444_v26 = vld [vmem:[#allocation104_spill] sm:$0xff]  ;;  %v16446_v33 = vld [vmem:[#allocation38_spill] sm:$0xff] }
 0x2b5   : > { %16436 = vst [vmem:[#allocation213_spill] sm:$0xff] %v13990_v9  ;;  %v13992_v32 = vpop.eup %10738  ;;  %v14003_v24 = vadd.f32 %v12066_v61, %v4202_v39  ;;  %v14006_v20 = vadd.f32 %v12070_v63, %v4203_v13  ;;  %v4798_v12 = vmax.f32 %v13963_v31, %v13976_v25  ;;  %10752 = vpow2.f32 %v5447_v42  ;;  %v16445_v39 = vld [vmem:[#allocation37_spill] sm:$0xff]  ;;  %v16493_v9 = vld [vmem:[#allocation59_spill] sm:$0xff] }
 0x2b6   : > { %16437 = vst [vmem:[#allocation214_spill] sm:$0xff] %v13992_v32  ;;  %4796 = vmax.xlane.f32.xlu0 %v4795_v3  ;;  %v13998_v6 = vpop.xlane.xlu1 %4703  ;;  %v14000_v41 = vpop.eup %10740  ;;  %v5391_v8 = vmul.f32 1.442695, %v5001_v7  ;;  %10754 = vpow2.f32 %v5449_v17  ;;  %v5031_v21 = vsub.f32 %v16444_v26, %v13758_v23  ;;  %v4172_v13 = vmul.f32 0.25, %v16445_v39  ;;  %v16447_v17 = vld [vmem:[#allocation106_spill] sm:$0xff]  ;;  %v16450_v39 = vld [vmem:[#allocation243_spill] sm:$0xff] }
 0x2b7   : > { %16439 = vst [vmem:[#allocation105_spill] sm:$0xff] %v14000_v41  ;;  %16440 = vst [vmem:[#allocation107_spill] sm:$0xff] %v14003_v24  ;;  %v14010_v53 = vpop.xlane.xlu0 %4748  ;;  %v14012_v54 = vpop.eup %10742  ;;  %10756 = vpow2.f32 %v5387_v27  ;;  %v4173_v10 = vmul.f32 0.25, %v16446_v33  ;;  %v5393_v31 = vmul.f32 1.442695, %v5002_v57  ;;  %v4846_v7 = vmax.f32 %v14003_v24, %v14006_v20  ;;  %v16448_v27 = vld [vmem:[#allocation108_spill] sm:$0xff] }
 0x2b8   : > { %16441 = vst [vmem:[#allocation251_spill] sm:$0xff] %v14006_v20  ;;  %16442 = vst [vmem:[#allocation252_spill] sm:$0xff] %v14012_v54  ;;  %v14014_v3 = vpop.eup %10744  ;;  %4799 = vmax.xlane.f32.xlu1 %v4798_v12  ;;  %10758 = vpow2.f32 %v5389_v4  ;;  %v5032_v26 = vsub.f32 %v16447_v17, %v13758_v23  ;;  %v16449_v12 = vld [vmem:[#allocation241_spill] sm:$0xff]  ;;  %v5451_v33 = vmul.f32 1.442695, %v5031_v21  ;;  %v16452_v57 = vld [vmem:[#allocation222_spill] sm:$0xff] }
 0x2b9   : > { %16443 = vst [vmem:[#allocation253_spill] sm:$0xff] %v14014_v3  ;;  %10760 = vpow2.f32 %v5391_v8  ;;  %v5737_v28 = vadd.f32 %v16450_v39, %v16449_v12  ;;  %v16451_v3 = vld [vmem:[#allocation109_spill] sm:$0xff]  ;;  %v4204_v20 = vmul.f32 0.25, %v16452_v57  ;;  %v14039_v8 = vadd.f32 %v12066_v61, %v4172_v13  ;;  %v16456_v21 = vld [vmem:[#allocation224_spill] sm:$0xff]  ;;  %v16461_v12 = vld [vmem:[#allocation110_spill] sm:$0xff] }
 0x2ba   : > { %4844 = vmax.xlane.f32.xlu0 %v4843_v11  ;;  %v14020_v25 = vpop.xlane.xlu1 %4751  ;;  %v5033_v11 = vsub.f32 %v16448_v27, %v13770_v51  ;;  %v5034_v4 = vsub.f32 %v16451_v3, %v13770_v51  ;;  %10762 = vrcp.f32 %v13910_v40  ;;  %v14042_v23 = vadd.f32 %v12070_v63, %v4173_v10  ;;  %v16458_v51 = vld [vmem:[#allocation41_spill] sm:$0xff]  ;;  %v16459_v3 = vld [vmem:[#allocation43_spill] sm:$0xff]  ;;  %v16491_v41 = vld [vmem:[#allocation114_spill] sm:$0xff] }
 0x2bb   : > { %v14024_v42 = vpop.xlane.xlu0 %5642  ;;  %v14036_v24 = vpop.eup %10746  ;;  %16454 = vst [vmem:[#allocation37_spill] sm:$0xff] %v14039_v8  ;;  %10764 = vrcp.f32 %v13932_v22  ;;  %v4205_v17 = vmul.f32 0.25, %v16456_v21  ;;  %v4174_v40 = vmul.f32 0.25, %v16458_v51  ;;  %v5740_v13 = vadd.f32 %v13526_v2, %v13520_v50  ;;  %v16463_v21 = vld [vmem:[#allocation55_spill] sm:$0xff] }
 0x2bc   : > { %4847 = vmax.xlane.f32.xlu1 %v4846_v7  ;;  %16453 = vst [vmem:[#allocation104_spill] sm:$0xff] %v14036_v24  ;;  %16455 = vst [vmem:[#allocation38_spill] sm:$0xff] %v14042_v23  ;;  %10766 = vrcp.f32 %v13937_v14  ;;  %v4175_v7 = vmul.f32 0.25, %v16459_v3  ;;  %v5453_v10 = vmul.f32 1.442695, %v5032_v26  ;;  %v5003_v22 = vsub.f32 %v16461_v12, %v13790_v44  ;;  %v16467_v12 = vld [vmem:[#allocation229_spill] sm:$0xff] }
 0x2bd   : > { %v14046_v27 = vpop.eup %10748  ;;  %10768 = vrcp.f32 %v13971_v55  ;;  %v5455_v51 = vmul.f32 1.442695, %v5033_v11  ;;  %v5457_v14 = vmul.f32 1.442695, %v5034_v4  ;;  %v14061_v3 = vadd.f32 %v12066_v61, %v4204_v20  ;;  %v16470_v20 = vld [vmem:[#allocation111_spill] sm:$0xff] }
 0x2be   : > { %5738 = vadd.xlane.f32.xlu0 %v5737_v28  ;;  %16457 = vst [vmem:[#allocation106_spill] sm:$0xff] %v14046_v27  ;;  %v14053_v57 = vpop.eup %10750  ;;  %v16462_v28 = vld [vmem:[#allocation245_spill] sm:$0xff]  ;;  %v5646_v27 = vpop.xlane.xlu1 %5645  ;;  %10770 = vpow2.f32 %v5393_v31  ;;  %v14068_v26 = vadd.f32 %v12070_v63, %v4205_v17  ;;  %v4206_v55 = vmul.f32 0.25, %v16467_v12  ;;  %v4801_v31 = vmax.f32 %v14039_v8, %v14042_v23  ;;  %v10381_v54 = vld [vmem:[%s11938_s10 + $0x100] sm:$0xff]  }
 0x2bf   : > { %16460 = vst [vmem:[#allocation108_spill] sm:$0xff] %v14053_v57  ;;  %v5785_v39 = vadd.f32 %v16463_v21, %v16462_v28  ;;  %16464 = vst [vmem:[#allocation109_spill] sm:$0xff] %v14061_v3  ;;  %v14063_v50 = vpop.xlane.xlu0 %5690  ;;  %v14065_v2 = vpop.eup %10752  ;;  %v16468_v57 = vld [vmem:[#allocation42_spill] sm:$0xff]  ;;  %v5004_v4 = vsub.f32 %v16470_v20, %v13790_v44  ;;  %v14082_v21 = vadd.f32 %v12070_v63, %v4175_v7  ;;  %v16473_v17 = vld [vmem:[#allocation57_spill] sm:$0xff]  ;;  %10772 = vpow2.f32 %v5451_v33 }
 0x2c0   : > { %5741 = vadd.xlane.f32.xlu1 %v5740_v13  ;;  %16465 = vst [vmem:[#allocation222_spill] sm:$0xff] %v14065_v2  ;;  %16466 = vst [vmem:[#allocation224_spill] sm:$0xff] %v14068_v26  ;;  %v4207_v28 = vmul.f32 0.25, %v16468_v57  ;;  %v14074_v11 = vpop.eup %10754  ;;  %v14079_v13 = vadd.f32 %v12066_v61, %v4174_v40  ;;  %v16474_v2 = vld [vmem:[#allocation248_spill] sm:$0xff]  ;;  %v5395_v57 = vmul.f32 1.442695, %v5003_v22  ;;  %10774 = vpow2.f32 %v5453_v10 }
 0x2c1   : > { %16469 = vst [vmem:[#allocation41_spill] sm:$0xff] %v14074_v11  ;;  %16472 = vst [vmem:[#allocation110_spill] sm:$0xff] %v14082_v21  ;;  %v5788_v12 = vadd.f32 %v16474_v2, %v16473_v17  ;;  %v16476_v23 = vld [vmem:[#allocation113_spill] sm:$0xff]  ;;  %v16477_v11 = vld [vmem:[#allocation115_spill] sm:$0xff]  ;;  %10776 = vpow2.f32 %v5455_v51  ;;  %v14101_v33 = vadd.f32 %v12066_v61, %v4206_v55 }
 0x2c2   : > { %5786 = vadd.xlane.f32.xlu0 %v5785_v39  ;;  %16471 = vst [vmem:[#allocation43_spill] sm:$0xff] %v14079_v13  ;;  %v14086_v39 = vpop.eup %10756  ;;  %v5005_v8 = vsub.f32 %v16476_v23, %v13792_v62  ;;  %v5006_v24 = vsub.f32 %v16477_v11, %v13792_v62  ;;  %v14092_v44 = vpop.xlane.xlu1 %5693  ;;  %v14104_v22 = vadd.f32 %v12070_v63, %v4207_v28  ;;  %10778 = vpow2.f32 %v5457_v14  ;;  %v16482_v55 = vld [vmem:[#allocation44_spill] sm:$0xff]  ;;  %v16485_v14 = vld [vmem:[#allocation129_spill] sm:$0xff]  ;;  %v16492_v32 = vld [vmem:[#allocation127_spill] sm:$0xff] }
 0x2c3   : > { %16475 = vst [vmem:[#allocation229_spill] sm:$0xff] %v14086_v39  ;;  %v14094_v40 = vpop.eup %10758  ;;  %v14096_v7 = vpop.xlane.xlu0 %4706  ;;  %16480 = vst [vmem:[#allocation113_spill] sm:$0xff] %v14101_v33  ;;  %v4849_v62 = vmax.f32 %v14061_v3, %v14068_v26  ;;  %v5397_v11 = vmul.f32 1.442695, %v5004_v4  ;;  %v4804_v10 = vmax.f32 %v14079_v13, %v14082_v21  ;;  %10780 = vpow2.f32 %v5395_v57  ;;  %v16484_v39 = vld [vmem:[#allocation130_spill] sm:$0xff] }
 0x2c4   : > { %16478 = vst [vmem:[#allocation42_spill] sm:$0xff] %v14094_v40  ;;  %5789 = vadd.xlane.f32.xlu1 %v5788_v12  ;;  %v14098_v20 = vpop.eup %10760  ;;  %16481 = vst [vmem:[#allocation115_spill] sm:$0xff] %v14104_v22  ;;  %v5399_v17 = vmul.f32 1.442695, %v5005_v8  ;;  %v14110_v51 = vmul.f32 1.442695, %v5006_v24  ;;  %10782 = vrcp.f32 %v14024_v42 }
 0x2c5   : > { %16479 = vst [vmem:[#allocation111_spill] sm:$0xff] %v14098_v20  ;;  %v10763_v23 = vpop.eup %10762  ;;  %v4176_v2 = vmul.f32 0.25, %v16482_v55  ;;  %v16486_v3 = vld [vmem:[#allocation134_spill] sm:$0xff]  ;;  %v16487_v24 = vld [vmem:[#allocation112_spill] sm:$0xff]  ;;  %v4852_v55 = vmax.f32 %v14101_v33, %v14104_v22  ;;  %10784 = vrcp.f32 %v5646_v27  ;;  %v4178_v22 = vmul.f32 0.25, %v16495_v34  ;;  %v16497_v27 = vld [vmem:[#allocation233_spill] sm:$0xff] }
 0x2c6   : > { %4802 = vmax.xlane.f32.xlu0 %v4801_v31  ;;  %v10765_v12 = vpop.eup %10764  ;;  %v14113_v20 = vpop.xlane.xlu1 %4709  ;;  %v16483_v31 = vld [vmem:[#allocation126_spill] sm:$0xff]  ;;  %v6148_v4 = vmul.f32 %v10763_v23, %v16485_v14  ;;  %v5035_v57 = vsub.f32 %v16487_v24, %v13806_v49  ;;  %v5036_v24 = vsub.f32 %v16491_v41, %v13806_v49  ;;  %v16494_v42 = vld [vmem:[#allocation56_spill] sm:$0xff]  ;;  %10786 = vrcp.f32 %v14063_v50 }
 0x2c7   : > { %v10767_v28 = vpop.eup %10766  ;;  %v6147_v40 = vmul.f32 %v10763_v23, %v16483_v31  ;;  %v6149_v26 = vmul.f32 %v10765_v12, %v16484_v39  ;;  %v6150_v21 = vmul.f32 %v10765_v12, %v16486_v3  ;;  %v14119_v13 = vpop.xlane.xlu0 %4754  ;;  %v16488_v39 = vld [vmem:[#allocation45_spill] sm:$0xff]  ;;  %v16490_v23 = vld [vmem:[#allocation131_spill] sm:$0xff]  ;;  %v5743_v59 = vadd.f32 %v16494_v42, %v16493_v9  ;;  %v16499_v49 = vld [vmem:[#allocation132_spill] sm:$0xff] }
 0x2c8   : > { %4805 = vmax.xlane.f32.xlu1 %v4804_v10  ;;  %v10769_v8 = vpop.eup %10768  ;;  %v4177_v31 = vmul.f32 0.25, %v16488_v39  ;;  %v10383_v39 = vld [vmem:[%s11938_s10 + $0x148] sm:$0xff]   ;;  %10788 = vrcp.f32 %v14092_v44  ;;  %v5459_v50 = vmul.f32 1.442695, %v5035_v57  ;;  %v16510_v42 = vld [vmem:[#allocation62_spill] sm:$0xff] }
 0x2c9   : > { %v14127_v10 = vpop.eup %10770  ;;  %v6181_v14 = vmul.f32 %v10769_v8, %v16490_v23  ;;  %v6404_v3 = vpack.c.bf16 %v6150_v21, %v6148_v4  ;;  %v6403_v12 = vpack.c.bf16 %v6149_v26, %v6147_v40  ;;  %v4208_v21 = vmul.f32 0.25, %v16497_v27  ;;  %v16498_v26 = vld [vmem:[#allocation128_spill] sm:$0xff]  ;;  %v16505_v27 = vld [vmem:[#allocation58_spill] sm:$0xff] }
 0x2ca   : > { %4850 = vmax.xlane.f32.xlu0 %v4849_v62  ;;  %16489 = vst [vmem:[#allocation44_spill] sm:$0xff] %v14127_v10  ;;  %v6179_v62 = vmul.f32 %v10767_v28, %v16492_v32  ;;  %v14137_v33 = vpop.xlane.xlu1 %4757  ;;  %v14141_v10 = vadd.f32 %v12066_v61, %v4176_v2  ;;  %v6180_v40 = vmul.f32 %v10767_v28, %v16498_v26  ;;  %v14148_v4 = vpop.eup %10772  ;;  %v16502_v2 = vld [vmem:[#allocation235_spill] sm:$0xff]  ;;  %v16506_v26 = vld [vmem:[#allocation60_spill] sm:$0xff]  ;;  %10790 = vpow2.f32 %v5397_v11 }
 0x2cb   : > { %6659 = vmatprep.mubr.bf16.mxu0 %v6404_v3  ;;  %v6182_v32 = vmul.f32 %v10769_v8, %v16499_v49  ;;  %v14146_v41 = vpop.xlane.xlu0 %5648  ;;  %16500 = vst [vmem:[#allocation130_spill] sm:$0xff] %v14148_v4  ;;  %v14151_v34 = vadd.f32 %v12070_v63, %v4177_v31  ;;  %v14155_v28 = vpop.eup %10774  ;;  %v16504_v8 = vld [vmem:[#allocation46_spill] sm:$0xff]  ;;  %v5746_v49 = vadd.f32 %v16506_v26, %v16505_v27  ;;  %v10385_v31 = vld [vmem:[%s11938_s10 + $0x108] sm:$0xff]   ;;  %10792 = vpow2.f32 %v5399_v17  ;;  %v16517_v17 = vld [vmem:[#allocation47_spill] sm:$0xff] }
 0x2cc   : > { %16496 = vst [vmem:[#allocation126_spill] sm:$0xff] %v14141_v10  ;;  %4853 = vmax.xlane.f32.xlu1 %v4852_v55  ;;  %6660 = vmatmul.mubr.bf16.vlgmr.msra.gmra.mrb[128].mxu0 %v6403_v12  ;;  %v4209_v55 = vmul.f32 0.25, %v16502_v2  ;;  %v6419_v23 = vpack.c.bf16 %v6181_v14, %v6179_v62  ;;  %16503 = vst [vmem:[#allocation134_spill] sm:$0xff] %v14155_v28  ;;  %v4179_v3 = vmul.f32 0.25, %v16504_v8  ;;  %v14163_v12 = vpop.eup %10776  ;;  %v16508_v14 = vld [vmem:[#allocation116_spill] sm:$0xff]  ;;  %v16509_v2 = vld [vmem:[#allocation61_spill] sm:$0xff]  ;;  %10794 = vpow2.f32 %v14110_v51 }
 0x2cd   : > { %16501 = vst [vmem:[#allocation129_spill] sm:$0xff] %v14151_v34  ;;  %v6420_v9 = vpack.c.bf16 %v6182_v32, %v6180_v40  ;;  %9565 = vmatpush3.bf16.msra.mxu0 %v10381_v54  ;;  %16507 = vst [vmem:[#allocation112_spill] sm:$0xff] %v14163_v12  ;;  %v5037_v62 = vsub.f32 %v16508_v14, %v13819_v48  ;;  %v5791_v28 = vadd.f32 %v16510_v42, %v16509_v2  ;;  %v10386_v8 = vld [vmem:[%s11938_s10 + $0x150] sm:$0xff]   ;;  %v10387_v4 = vld [vmem:[%s11938_s10 + $0x1c8] sm:$0xff]   ;;  %v14171_v27 = vpop.eup %10778 }
 0x2ce   : > { %5744 = vadd.xlane.f32.xlu0 %v5743_v59  ;;  %v10384_v59 = vld [vmem:[%s11938_s10 + $0x180] sm:$0xff]   ;;  %9566 = vmatprep.subr.bf16.mxu0 %v10383_v39  ;;  %16511 = vst [vmem:[#allocation45_spill] sm:$0xff] %v14171_v27  ;;  %v5461_v44 = vmul.f32 1.442695, %v5036_v24  ;;  %v16512_v54 = vld [vmem:[#allocation117_spill] sm:$0xff]  ;;  %v14176_v57 = vpop.eup %10780  ;;  %v14179_v14 = vadd.f32 %v12066_v61, %v4208_v21  ;;  %v14182_v39 = vadd.f32 %v12070_v63, %v4209_v55  ;;  %v4211_v24 = vmul.f32 0.25, %v16517_v17 }
 0x2cf   : > { %v5038_v40 = vsub.f32 %v16512_v54, %v13819_v48  ;;  %v16513_v32 = vld [vmem:[#allocation163_spill] sm:$0xff]  ;;  %6852 = vmatprep.mubr.bf16.mxu1 %v6420_v9  ;;  %16514 = vst [vmem:[#allocation131_spill] sm:$0xff] %v14176_v57  ;;  %v4807_v48 = vmax.f32 %v14141_v10, %v14151_v34  ;;  %v14191_v9 = vadd.f32 %v12066_v61, %v4178_v22  ;;  %v10389_v54 = vld [vmem:[%s11938_s10 + $0x188] sm:$0xff]   ;;  %10796 = vpow2.f32 %v5459_v50  ;;  %v10390_v51 = vld [vmem:[%s11938_s10 + $0x158] sm:$0xff]  }
 0x2d0   : > { %5747 = vadd.xlane.f32.xlu1 %v5746_v49  ;;  %v4210_v11 = vmul.f32 0.25, %v16513_v32  ;;  %16515 = vst [vmem:[#allocation114_spill] sm:$0xff] %v14179_v14  ;;  %16516 = vst [vmem:[#allocation127_spill] sm:$0xff] %v14182_v39  ;;  %6853 = vmatmul.mubr.bf16.vlgmr.msra.gmra.mrb[128].mxu1 %v6419_v23  ;;  %v14187_v49 = vpop.xlane.xlu1 %5651  ;;  %v14194_v21 = vadd.f32 %v12070_v63, %v4179_v3  ;;  %v5794_v55 = vadd.f32 %v13642_v36, %v13634_v15  ;;  %v10388_v23 = vld [vmem:[%s11938_s10 + $0x110] sm:$0xff]   ;;  %v10783_v32 = vpop.eup %10782  ;;  %v16520_v3 = vld [vmem:[#allocation118_spill] sm:$0xff] }
 0x2d1   : > { %16518 = vst [vmem:[#allocation234_spill] sm:$0xff] %v14191_v9  ;;  %9629 = vmatpush3.bf16.msra.mxu1 %v10384_v59  ;;  %9567 = vmatpush3.bf16.msra.mxu0 %v10385_v31  ;;  %v5463_v17 = vmul.f32 1.442695, %v5037_v62  ;;  %v10391_v22 = vld [vmem:[%s11938_s10 + $0x1d0] sm:$0xff]   ;;  %v10785_v2 = vpop.eup %10784  ;;  %v5465_v42 = vmul.f32 1.442695, %v5038_v40  ;;  %v5007_v26 = vsub.f32 %v16520_v3, %v13855_v60  ;;  %v14212_v31 = vadd.f32 %v12070_v63, %v4211_v24 }
 0x2d2   : > { %5792 = vadd.xlane.f32.xlu0 %v5791_v28  ;;  %16519 = vst [vmem:[#allocation233_spill] sm:$0xff] %v14194_v21  ;;  %v14198_v28 = vpop.xlane.xlu0 %5696  ;;  %9568 = vmatprep.subr.bf16.mxu0 %v10386_v8  ;;  %v16521_v15 = vld [vmem:[#allocation119_spill] sm:$0xff]  ;;  %v14209_v59 = vadd.f32 %v12066_v61, %v4210_v11  ;;  %v16524_v50 = vld [vmem:[#allocation141_spill] sm:$0xff]  ;;  %10798 = vpow2.f32 %v5461_v44  ;;  %v16529_v10 = vld [vmem:[#allocation142_spill] sm:$0xff] }
 0x2d3   : > { %9630 = vmatprep.subr.bf16.mxu1 %v10387_v4  ;;  %v5008_v36 = vsub.f32 %v16521_v15, %v13855_v60  ;;  %16523 = vst [vmem:[#allocation132_spill] sm:$0xff] %v14212_v31  ;;  %v4855_v4 = vmax.f32 %v14179_v14, %v14182_v39  ;;  %v6152_v62 = vmul.f32 %v10783_v32, %v16524_v50  ;;  %v16525_v8 = vld [vmem:[#allocation143_spill] sm:$0xff]  ;;  %v16526_v60 = vld [vmem:[#allocation173_spill] sm:$0xff]  ;;  %v10787_v50 = vpop.eup %10786  ;;  %10800 = vpow2.f32 %v5463_v17  ;;  %v16528_v14 = vld [vmem:[#allocation138_spill] sm:$0xff] }
 0x2d4   : > { %16522 = vst [vmem:[#allocation128_spill] sm:$0xff] %v14209_v59  ;;  %5795 = vadd.xlane.f32.xlu1 %v5794_v55  ;;  %v6154_v40 = vmul.f32 %v10785_v2, %v16525_v8  ;;  %v5700_v3 = vpop.xlane.xlu1 %5699  ;;  %v4810_v15 = vmax.f32 %v14191_v9, %v14194_v21  ;;  %v4180_v11 = vmul.f32 0.25, %v16526_v60  ;;  %v16527_v55 = vld [vmem:[#allocation51_spill] sm:$0xff]  ;;  %v10393_v39 = vld [vmem:[%s11938_s10 + $0x190] sm:$0xff]   ;;  %v6151_v44 = vmul.f32 %v10783_v32, %v16528_v14  ;;  %v10789_v60 = vpop.eup %10788  ;;  %v10395_v12 = vld [vmem:[%s11938_s10 + $0x1d8] sm:$0xff]  }
 0x2d5   : > { %v4181_v34 = vmul.f32 0.25, %v16527_v55  ;;  %9569 = vmatpush3.bf16.msra.mxu0 %v10388_v23  ;;  %9631 = vmatpush3.bf16.msra.mxu1 %v10389_v54  ;;  %v6153_v57 = vmul.f32 %v10785_v2, %v16529_v10  ;;  %v10394_v21 = vld [vmem:[%s11938_s10 + $0x160] sm:$0xff]   ;;  %10802 = vpow2.f32 %v5465_v42  ;;  %v5403_v55 = vmul.f32 1.442695, %v5007_v26  ;;  %v16530_v9 = vld [vmem:[#allocation121_spill] sm:$0xff]  ;;  %v16531_v54 = vld [vmem:[#allocation122_spill] sm:$0xff]  ;;  %v14234_v17 = vpop.eup %10790 }
 0x2d6   : > { %4808 = vmax.xlane.f32.xlu0 %v4807_v48  ;;  %v14222_v24 = vpop.xlane.xlu0 %4712  ;;  %v10392_v48 = vld [vmem:[%s11938_s10 + $0x118] sm:$0xff]   ;;  %v6406_v8 = vpack.c.bf16 %v6154_v40, %v6152_v62  ;;  %9570 = vmatprep.subr.bf16.mxu0 %v10390_v51  ;;  %v5009_v23 = vsub.f32 %v16530_v9, %v13872_v56  ;;  %v5010_v27 = vsub.f32 %v16531_v54, %v13872_v56  ;;  %v14236_v14 = vmul.f32 1.442695, %v5008_v36  ;;  %v16533_v10 = vld [vmem:[#allocation120_spill] sm:$0xff]  ;;  %v14244_v32 = vpop.eup %10792  ;;  %v16543_v54 = vld [vmem:[#allocation11_spill] sm:$0xff] }
 0x2d7   : > { %9632 = vmatprep.subr.bf16.mxu1 %v10391_v22  ;;  %16532 = vst [vmem:[#allocation235_spill] sm:$0xff] %v14234_v17  ;;  %v5039_v2 = vsub.f32 %v16533_v10, %v13884_v47  ;;  %v4858_v42 = vmax.f32 %v14209_v59, %v14212_v31  ;;  %v6405_v26 = vpack.c.bf16 %v6153_v57, %v6151_v44  ;;  %16534 = vst [vmem:[#allocation46_spill] sm:$0xff] %v14244_v32  ;;  %v10396_v57 = vld [vmem:[%s11938_s10 + $0x120] sm:$0xff]   ;;  %v16542_v44 = vld [vmem:[#allocation48_spill] sm:$0xff] }
 0x2d8   : > { %4811 = vmax.xlane.f32.xlu1 %v4810_v15  ;;  %6667 = vmatprep.mubr.bf16.mxu0 %v6406_v8  ;;  %v14242_v9 = vpop.xlane.xlu1 %4715  ;;  %10804 = vrcp.f32 %v14146_v41  ;;  %v14248_v56 = vadd.f32 %v12066_v61, %v4180_v11  ;;  %v14251_v36 = vadd.f32 %v12070_v63, %v4181_v34  ;;  %v5749_v51 = vadd.f32 %v13654_v37, %v13646_v19  ;;  %v16538_v41 = vld [vmem:[#allocation147_spill] sm:$0xff]  ;;  %v16539_v15 = vld [vmem:[#allocation149_spill] sm:$0xff]  ;;  %v14262_v34 = vpop.eup %10794 }
 0x2d9   : > { %9571 = vmatpush3.bf16.msra.mxu0 %v10392_v48  ;;  %9633 = vmatpush3.bf16.msra.mxu1 %v10393_v39  ;;  %10806 = vrcp.f32 %v14187_v49  ;;  %v6184_v40 = vmul.f32 %v10787_v50, %v16538_v41  ;;  %v6186_v11 = vmul.f32 %v10789_v60, %v16539_v15  ;;  %16540 = vst [vmem:[#allocation163_spill] sm:$0xff] %v14262_v34  ;;  %v16541_v8 = vld [vmem:[#allocation7_spill] sm:$0xff]  ;;  %v4212_v39 = vmul.f32 0.25, %v16542_v44  ;;  %v10397_v49 = vld [vmem:[%s11938_s10 + $0x198] sm:$0xff]  }
 0x2da   : > { %4856 = vmax.xlane.f32.xlu0 %v4855_v4  ;;  %16535 = vst [vmem:[#allocation116_spill] sm:$0xff] %v14248_v56  ;;  %16536 = vst [vmem:[#allocation117_spill] sm:$0xff] %v14251_v36  ;;  %v14255_v22 = vpop.xlane.xlu0 %4760  ;;  %v16537_v4 = vld [vmem:[#allocation240_spill] sm:$0xff]  ;;  %6668 = vmatmul.mubr.bf16.gmra.mrb[132].mxu0 %v6405_v26  ;;  %10808 = vrcp.f32 %v14198_v28  ;;  %v4183_v48 = vmul.f32 0.25, %v16541_v8  ;;  %v4213_v10 = vmul.f32 0.25, %v16543_v54  ;;  %v14269_v26 = vpop.eup %10796  ;;  %v16547_v54 = vld [vmem:[#allocation69_spill] sm:$0xff] }
 0x2db   : > { %v4182_v62 = vmul.f32 0.25, %v16537_v4  ;;  %9572 = vmatprep.subr.bf16.mxu0 %v10394_v21  ;;  %9634 = vmatprep.subr.bf16.mxu1 %v10395_v12  ;;  %16544 = vst [vmem:[#allocation47_spill] sm:$0xff] %v14269_v26  ;;  %v6422_v4 = vpack.c.bf16 %v6186_v11, %v6184_v40  ;;  %10810 = vrcp.f32 %v5700_v3  ;;  %v16545_v21 = vld [vmem:[#allocation145_spill] sm:$0xff]  ;;  %v5407_v8 = vmul.f32 1.442695, %v5009_v23  ;;  %v10399_v40 = vld [vmem:[%s11938_s10 + $0x1e0] sm:$0xff]  }
 0x2dc   : > { %4859 = vmax.xlane.f32.xlu1 %v4858_v42  ;;  %v6183_v41 = vmul.f32 %v10787_v50, %v16545_v21  ;;  %v16546_v42 = vld [vmem:[#allocation148_spill] sm:$0xff]  ;;  %v14273_v15 = vpop.xlane.xlu1 %4763  ;;  %10812 = vpow2.f32 %v5403_v55  ;;  %v5409_v44 = vmul.f32 1.442695, %v5010_v27  ;;  %v5752_v12 = vadd.f32 %v16547_v54, %v13670_v46  ;;  %v16548_v3 = vld [vmem:[#allocation123_spill] sm:$0xff]  ;;  %v16550_v21 = vld [vmem:[#allocation70_spill] sm:$0xff]  ;;  %v14288_v46 = vpop.eup %10798 }
 0x2dd   : > { %v6185_v28 = vmul.f32 %v10789_v60, %v16546_v42  ;;  %9573 = vmatpush3.bf16.msra.mxu0 %v10396_v57  ;;  %v5040_v50 = vsub.f32 %v16548_v3, %v13884_v47  ;;  %v16549_v11 = vld [vmem:[#allocation124_spill] sm:$0xff]  ;;  %6860 = vmatprep.mubr.bf16.mxu1 %v6422_v4  ;;  %v16551_v55 = vld [vmem:[#allocation71_spill] sm:$0xff]  ;;  %16552 = vst [vmem:[#allocation118_spill] sm:$0xff] %v14288_v46  ;;  %v5467_v54 = vmul.f32 1.442695, %v5039_v2  ;;  %v16555_v47 = vld [vmem:[#allocation53_spill] sm:$0xff]  ;;  %10814 = vpow2.f32 %v14236_v14 }
 0x2de   : > { %5750 = vadd.xlane.f32.xlu0 %v5749_v51  ;;  %v14277_v19 = vpop.xlane.xlu0 %5654  ;;  %v10398_v51 = vld [vmem:[%s11938_s10 + $0x168] sm:$0xff]   ;;  %v5041_v60 = vsub.f32 %v16549_v11, %v13906_v0  ;;  %v5797_v23 = vadd.f32 %v16551_v55, %v16550_v21  ;;  %v14291_v57 = vadd.f32 %v12066_v61, %v4182_v62  ;;  %v14294_v37 = vadd.f32 %v12070_v63, %v4183_v48  ;;  %v10401_v4 = vld [vmem:[%s11938_s10 + $0x1a0] sm:$0xff]   ;;  %v14298_v11 = vpop.eup %10800  ;;  %v16559_v2 = vld [vmem:[#allocation54_spill] sm:$0xff] }
 0x2df   : > { %v6421_v27 = vpack.c.bf16 %v6185_v28, %v6183_v41  ;;  %v10400_v42 = vld [vmem:[%s11938_s10 + $0x128] sm:$0xff]   ;;  %v4214_v3 = vmul.f32 0.25, %v16555_v47  ;;  %9635 = vmatpush3.bf16.msra.mxu1 %v10397_v49  ;;  %16556 = vst [vmem:[#allocation143_spill] sm:$0xff] %v14298_v11  ;;  %v14301_v41 = vadd.f32 %v12066_v61, %v4212_v39  ;;  %v14304_v28 = vadd.f32 %v12070_v63, %v4213_v10  ;;  %v14310_v47 = vpop.eup %10802  ;;  %v16561_v49 = vld [vmem:[#allocation73_spill] sm:$0xff]  ;;  %v16562_v21 = vld [vmem:[#allocation18_spill] sm:$0xff] }
 0x2e0   : > { %16553 = vst [vmem:[#allocation119_spill] sm:$0xff] %v14291_v57  ;;  %16554 = vst [vmem:[#allocation141_spill] sm:$0xff] %v14294_v37  ;;  %5753 = vadd.xlane.f32.xlu1 %v5752_v12  ;;  %v4215_v62 = vmul.f32 0.25, %v16559_v2  ;;  %v4813_v48 = vmax.f32 %v14248_v56, %v14251_v36  ;;  %v10402_v12 = vld [vmem:[%s11938_s10 + $0x170] sm:$0xff]   ;;  %v5800_v39 = vadd.f32 %v16562_v21, %v16561_v49  ;;  %9574 = vmatprep.subr.bf16.mxu0 %v10398_v51  ;;  %v10403_v10 = vld [vmem:[%s11938_s10 + $0x1e8] sm:$0xff]  }
 0x2e1   : > { %16557 = vst [vmem:[#allocation173_spill] sm:$0xff] %v14301_v41  ;;  %16558 = vst [vmem:[#allocation51_spill] sm:$0xff] %v14304_v28  ;;  %6861 = vmatmul.mubr.bf16.gmra.mrb[132].mxu1 %v6421_v27  ;;  %9636 = vmatprep.subr.bf16.mxu1 %v10399_v40  ;;  %10816 = vpow2.f32 %v5407_v8  ;;  %v16563_v2 = vld [vmem:[#allocation125_spill] sm:$0xff]  ;;  %v5471_v31 = vmul.f32 1.442695, %v5041_v60  ;;  %v14322_v51 = vadd.f32 %v12066_v61, %v4214_v3  ;;  %v10405_v8 = vld [vmem:[%s11938_s10 + $0x1a8] sm:$0xff]  }
 0x2e2   : > { %5798 = vadd.xlane.f32.xlu0 %v5797_v23  ;;  %16560 = vst [vmem:[#allocation138_spill] sm:$0xff] %v14310_v47  ;;  %v5469_v23 = vmul.f32 1.442695, %v5040_v50  ;;  %v5042_v27 = vsub.f32 %v16563_v2, %v13906_v0  ;;  %v5658_v55 = vpop.xlane.xlu1 %5657  ;;  %9575 = vmatpush3.bf16.msra.mxu0 %v10400_v42  ;;  %v10404_v36 = vld [vmem:[%s11938_s10 + $0x130] sm:$0xff]   ;;  %v10805_v56 = vpop.eup %10804  ;;  %10818 = vpow2.f32 %v5409_v44  ;;  %v14326_v0 = vadd.f32 %v12070_v63, %v4215_v62  ;;  %v10406_v61 = vld [vmem:[%s11938_s10 + $0x178] sm:$0xff]   ;;  %v16567_v3 = vld [vmem:[#allocation151_spill] sm:$0xff] }
 0x2e3   : > { %v16564_v14 = vld [vmem:[#allocation133_spill] sm:$0xff]  ;;  %16565 = vst [vmem:[#allocation142_spill] sm:$0xff] %v14322_v51  ;;  %9637 = vmatpush3.bf16.msra.mxu1 %v10401_v4  ;;  %v10807_v50 = vpop.eup %10806  ;;  %10820 = vpow2.f32 %v5467_v54  ;;  %v4816_v44 = vmax.f32 %v14291_v57, %v14294_v37  ;;  %v4861_v60 = vmax.f32 %v14301_v41, %v14304_v28  ;;  %9576 = vmatprep.subr.bf16.mxu0 %v10402_v12  ;;  %v16570_v54 = vld [vmem:[#allocation152_spill] sm:$0xff]  ;;  %v16571_v37 = vld [vmem:[#allocation135_spill] sm:$0xff] }
 0x2e4   : > { %v5011_v59 = vsub.f32 %v16564_v14, %v13982_v52  ;;  %5801 = vadd.xlane.f32.xlu1 %v5800_v39  ;;  %16566 = vst [vmem:[#allocation121_spill] sm:$0xff] %v14326_v0  ;;  %v10809_v42 = vpop.eup %10808  ;;  %v6156_v39 = vmul.f32 %v10805_v56, %v16567_v3  ;;  %v16568_v4 = vld [vmem:[#allocation153_spill] sm:$0xff]  ;;  %v16569_v14 = vld [vmem:[#allocation150_spill] sm:$0xff]  ;;  %v6157_v21 = vmul.f32 %v10807_v50, %v16570_v54  ;;  %10822 = vpow2.f32 %v5469_v23  ;;  %v16572_v28 = vld [vmem:[#allocation155_spill] sm:$0xff] }
 0x2e5   : > { %v5703_v40 = vpop.xlane.xlu0 %5702  ;;  %v6158_v2 = vmul.f32 %v10807_v50, %v16568_v4  ;;  %v6155_v49 = vmul.f32 %v10805_v56, %v16569_v14  ;;  %9638 = vmatprep.subr.bf16.mxu1 %v10403_v10  ;;  %v10407_v63 = vld [vmem:[%s11938_s10 + $0x1f0] sm:$0xff]   ;;  %v10811_v62 = vpop.eup %10810  ;;  %v5012_v57 = vsub.f32 %v16571_v37, %v13982_v52  ;;  %v6188_v12 = vmul.f32 %v10809_v42, %v16572_v28  ;;  %v16575_v37 = vld [vmem:[#allocation136_spill] sm:$0xff]  ;;  %v16576_v28 = vld [vmem:[#allocation154_spill] sm:$0xff] }
 0x2e6   : > { %4814 = vmax.xlane.f32.xlu0 %v4813_v48  ;;  %v5473_v48 = vmul.f32 1.442695, %v5042_v27  ;;  %9577 = vmatpush3.bf16.msra.mxu0 %v10404_v36  ;;  %v14341_v47 = vpop.eup %10812  ;;  %10824 = vpow2.f32 %v5471_v31  ;;  %v16574_v4 = vld [vmem:[#allocation157_spill] sm:$0xff]  ;;  %v5411_v23 = vmul.f32 1.442695, %v5011_v59  ;;  %v5013_v52 = vsub.f32 %v16575_v37, %v13998_v6  ;;  %v16577_v27 = vld [vmem:[#allocation156_spill] sm:$0xff] }
 0x2e7   : > { %v5706_v41 = vpop.xlane.xlu1 %5705  ;;  %16573 = vst [vmem:[#allocation122_spill] sm:$0xff] %v14341_v47  ;;  %v6408_v3 = vpack.c.bf16 %v6158_v2, %v6156_v39  ;;  %v6407_v56 = vpack.c.bf16 %v6157_v21, %v6155_v49  ;;  %v6190_v10 = vmul.f32 %v10811_v62, %v16574_v4  ;;  %9639 = vmatpush3.bf16.msra.mxu1 %v10405_v8  ;;  %v16578_v31 = vld [vmem:[#allocation137_spill] sm:$0xff]  ;;  %10826 = vrcp.f32 %v14277_v19  ;;  %v10408_v8 = vld [vmem:[%s11938_s10 + $0x138] sm:$0xff]   ;;  %v16580_v39 = vld [vmem:[#allocation20_spill] sm:$0xff] }
 0x2e8   : > { %4817 = vmax.xlane.f32.xlu1 %v4816_v44  ;;  %v6187_v36 = vmul.f32 %v10809_v42, %v16576_v28  ;;  %v6189_v14 = vmul.f32 %v10811_v62, %v16577_v27  ;;  %9578 = vmatprep.subr.bf16.mxu0 %v10406_v61  ;;  %v5014_v21 = vsub.f32 %v16578_v31, %v13998_v6  ;;  %v10409_v44 = vld [vmem:[%s11938_s10 + $0x1b0] sm:$0xff]   ;;  %10828 = vrcp.f32 %v5658_v55  ;;  %v16581_v2 = vld [vmem:[#allocation187_spill] sm:$0xff]  ;;  %v10410_v19 = vld [vmem:[%s11938_s10 + $0x1f8] sm:$0xff]   ;;  %v14364_v62 = vpop.eup %10814 }
 0x2e9   : > { %v14344_v50 = vpop.xlane.xlu0 %4718  ;;  %v4864_v49 = vmax.f32 %v14322_v51, %v14326_v0  ;;  %6675 = vmatprep.mubr.bf16.mxu0 %v6408_v3  ;;  %v6424_v59 = vpack.c.bf16 %v6190_v10, %v6188_v12  ;;  %9640 = vmatprep.subr.bf16.mxu1 %v10407_v63  ;;  %v5755_v61 = vadd.f32 %v16581_v2, %v16580_v39  ;;  %v5413_v4 = vmul.f32 1.442695, %v5012_v57  ;;  %v16583_v12 = vld [vmem:[#allocation140_spill] sm:$0xff]  ;;  %v16586_v57 = vld [vmem:[#allocation74_spill] sm:$0xff]  ;;  %v16672_v39 = vld [vmem:[#allocation229_spill] sm:$0xff] }
 0x2ea   : > { %4862 = vmax.xlane.f32.xlu0 %v4861_v60  ;;  %v16579_v60 = vld [vmem:[#allocation139_spill] sm:$0xff]  ;;  %6676 = vmatmul.mubr.bf16.gmra.mrb[136].mxu0 %v6407_v56  ;;  %v6423_v54 = vpack.c.bf16 %v6189_v14, %v6187_v36  ;;  %16582 = vst [vmem:[#allocation120_spill] sm:$0xff] %v14364_v62  ;;  %v5044_v63 = vsub.f32 %v16583_v12, %v14010_v53  ;;  %10830 = vrcp.f32 %v5703_v40  ;;  %v5415_v10 = vmul.f32 1.442695, %v5013_v52  ;;  %v16588_v27 = vld [vmem:[#allocation144_spill] sm:$0xff]  ;;  %v16589_v31 = vld [vmem:[#allocation146_spill] sm:$0xff] }
 0x2eb   : > { %v5043_v42 = vsub.f32 %v16579_v60, %v14010_v53  ;;  %6868 = vmatprep.mubr.bf16.mxu1 %v6424_v59  ;;  %v14370_v55 = vpop.eup %10816  ;;  %10832 = vrcp.f32 %v5706_v41  ;;  %v5417_v37 = vmul.f32 1.442695, %v5014_v21  ;;  %v5758_v28 = vadd.f32 %v13752_v1, %v16586_v57  ;;  %9579 = vmatpush3.bf16.msra.mxu0 %v10408_v8  ;;  %v10411_v53 = vld [vmem:[%s11938_s10 + $0x1b8] sm:$0xff]   ;;  %v10412_v59 = vld [vmem:[%s11938_s10 + $0x240] sm:$0xff]   ;;  %v16593_v12 = vld [vmem:[#allocation160_spill] sm:$0xff] }
 0x2ec   : > { %v14361_v6 = vpop.xlane.xlu1 %4721  ;;  %4865 = vmax.xlane.f32.xlu1 %v4864_v49  ;;  %16584 = vst [vmem:[#allocation240_spill] sm:$0xff] %v14370_v55  ;;  %6869 = vmatmul.mubr.bf16.gmra.mrb[136].mxu1 %v6423_v54  ;;  %v14372_v56 = vpop.eup %10818  ;;  %10834 = vpow2.f32 %v5473_v48  ;;  %v5803_v52 = vadd.f32 %v13764_v35, %v13760_v38  ;;  %v5477_v48 = vmul.f32 1.442695, %v5044_v63  ;;  %v5045_v14 = vsub.f32 %v16588_v27, %v14020_v25  ;;  %v10414_v60 = vld [vmem:[%s11938_s10 + $0x2c0] sm:$0xff]   ;;  %v16596_v27 = vld [vmem:[#allocation161_spill] sm:$0xff]  ;;  %v16634_v35 = vld [vmem:[#allocation184_spill] sm:$0xff] }
 0x2ed   : > { %v14368_v3 = vpop.xlane.xlu0 %4766  ;;  %16585 = vst [vmem:[#allocation147_spill] sm:$0xff] %v14372_v56  ;;  %9641 = vmatpush3.bf16.msra.mxu1 %v10409_v44  ;;  %v14377_v40 = vpop.eup %10820  ;;  %10836 = vpow2.f32 %v5411_v23  ;;  %v5475_v36 = vmul.f32 1.442695, %v5043_v42  ;;  %v5046_v21 = vsub.f32 %v16589_v31, %v14020_v25  ;;  %v5806_v44 = vadd.f32 %v13784_v18, %v13772_v45  ;;  %9692 = vmatprep.subr.bf16.mxu0 %v10412_v59  ;;  %v16592_v42 = vld [vmem:[#allocation158_spill] sm:$0xff]  ;;  %v16598_v59 = vld [vmem:[#allocation159_spill] sm:$0xff] }
 0x2ee   : > { %5756 = vadd.xlane.f32.xlu0 %v5755_v61  ;;  %16587 = vst [vmem:[#allocation149_spill] sm:$0xff] %v14377_v40  ;;  %9642 = vmatprep.subr.bf16.mxu1 %v10410_v19  ;;  %10838 = vpow2.f32 %v5413_v4  ;;  %v14388_v23 = vpop.eup %10822  ;;  %v5015_v25 = vsub.f32 %v16592_v42, %v14096_v7  ;;  %v5761_v61 = vadd.f32 %v13802_v16, %v13794_v43  ;;  %v5479_v19 = vmul.f32 1.442695, %v5045_v14  ;;  %v16600_v16 = vld [vmem:[#allocation26_spill] sm:$0xff]  ;;  %v16679_v51 = vld [vmem:[#allocation111_spill] sm:$0xff] }
 0x2ef   : > { %16590 = vst [vmem:[#allocation7_spill] sm:$0xff] %v14388_v23  ;;  %10840 = vpow2.f32 %v5415_v10  ;;  %v5481_v4 = vmul.f32 1.442695, %v5046_v21  ;;  %v5016_v63 = vsub.f32 %v16593_v12, %v14096_v7  ;;  %v16597_v21 = vld [vmem:[#allocation168_spill] sm:$0xff]  ;;  %v16678_v0 = vld [vmem:[#allocation194_spill] sm:$0xff] }
 0x2f0   : > { %v14381_v41 = vpop.xlane.xlu1 %4769  ;;  %5759 = vadd.xlane.f32.xlu1 %v5758_v28  ;;  %v14390_v8 = vpop.eup %10824  ;;  %10842 = vpow2.f32 %v5417_v37  ;;  %v16594_v37 = vld [vmem:[#allocation162_spill] sm:$0xff]  ;;  %v5419_v43 = vmul.f32 1.442695, %v5015_v25 }
 0x2f1   : > { %v5661_v49 = vpop.xlane.xlu0 %5660  ;;  %16591 = vst [vmem:[#allocation48_spill] sm:$0xff] %v14390_v8  ;;  %9643 = vmatpush3.bf16.msra.mxu1 %v10411_v53  ;;  %10844 = vpow2.f32 %v5475_v36  ;;  %v10827_v54 = vpop.eup %10826  ;;  %v5017_v28 = vsub.f32 %v16594_v37, %v14113_v20  ;;  %v16595_v53 = vld [vmem:[#allocation165_spill] sm:$0xff] }
 0x2f2   : > { %5804 = vadd.xlane.f32.xlu0 %v5803_v52  ;;  %10846 = vpow2.f32 %v5477_v48  ;;  %9756 = vmatprep.subr.bf16.mxu1 %v10414_v60  ;;  %v10829_v10 = vpop.eup %10828  ;;  %v5018_v36 = vsub.f32 %v16595_v53, %v14113_v20  ;;  %v5764_v52 = vadd.f32 %v13814_v5, %v13808_v58  ;;  %v6160_v48 = vmul.f32 %v10827_v54, %v16596_v27  ;;  %v16599_v60 = vld [vmem:[#allocation164_spill] sm:$0xff]  ;;  %v16602_v53 = vld [vmem:[#allocation174_spill] sm:$0xff] }
 0x2f3   : > { %10848 = vrcp.f32 %v5661_v49  ;;  %v6162_v7 = vmul.f32 %v10829_v10, %v16597_v21  ;;  %v6161_v42 = vmul.f32 %v10829_v10, %v16599_v60  ;;  %v16601_v20 = vld [vmem:[#allocation200_spill] sm:$0xff]  ;;  %v5421_v10 = vmul.f32 1.442695, %v5016_v63 }
 0x2f4   : > { %5807 = vadd.xlane.f32.xlu1 %v5806_v44  ;;  %v10831_v31 = vpop.eup %10830  ;;  %v6159_v44 = vmul.f32 %v10827_v54, %v16598_v59  ;;  %v16603_v21 = vld [vmem:[#allocation176_spill] sm:$0xff]  ;;  %v16605_v59 = vld [vmem:[#allocation169_spill] sm:$0xff] }
 0x2f5   : > { %v10833_v37 = vpop.eup %10832  ;;  %v6192_v58 = vmul.f32 %v10831_v31, %v16602_v53  ;;  %v6410_v27 = vpack.c.bf16 %v6162_v7, %v6160_v48  ;;  %v5047_v25 = vsub.f32 %v16605_v59, %v14119_v13  ;;  %v16610_v7 = vld [vmem:[#allocation29_spill] sm:$0xff] }
 0x2f6   : > { %5762 = vadd.xlane.f32.xlu0 %v5761_v61  ;;  %v5809_v61 = vadd.f32 %v16601_v20, %v16600_v16  ;;  %v14414_v5 = vpop.eup %10834  ;;  %v6409_v49 = vpack.c.bf16 %v6161_v42, %v6159_v44  ;;  %v6194_v45 = vmul.f32 %v10833_v37, %v16603_v21  ;;  %v16606_v16 = vld [vmem:[#allocation171_spill] sm:$0xff]  ;;  %v16607_v20 = vld [vmem:[#allocation9_spill] sm:$0xff]  ;;  %v16611_v44 = vld [vmem:[#allocation88_spill] sm:$0xff] }
 0x2f7   : > { %v14417_v54 = vpop.eup %10836  ;;  %v6193_v53 = vmul.f32 %v10833_v37, %v16607_v20  ;;  %v5812_v42 = vadd.f32 %v16611_v44, %v16610_v7  ;;  %6683 = vmatprep.mubr.bf16.mxu0 %v6410_v27  ;;  %v16614_v20 = vld [vmem:[#allocation10_spill] sm:$0xff] }
 0x2f8   : > { %5765 = vadd.xlane.f32.xlu1 %v5764_v52  ;;  %16604 = vst [vmem:[#allocation11_spill] sm:$0xff] %v14417_v54  ;;  %v14423_v38 = vpop.eup %10838  ;;  %v16609_v52 = vld [vmem:[#allocation175_spill] sm:$0xff]  ;;  %6684 = vmatmul.mubr.bf16.gmra.mrb[140].mxu0 %v6409_v49  ;;  %v5049_v27 = vsub.f32 %v16614_v20, %v14137_v33 }
 0x2f9   : > { %v5664_v14 = vpop.xlane.xlu1 %5663  ;;  %16608 = vst [vmem:[#allocation145_spill] sm:$0xff] %v14423_v38  ;;  %v5048_v48 = vsub.f32 %v16609_v52, %v14119_v13  ;;  %v14431_v21 = vpop.eup %10840  ;;  %v5425_v13 = vmul.f32 1.442695, %v5018_v36  ;;  %v16618_v36 = vld [vmem:[#allocation90_spill] sm:$0xff]  ;;  %v16623_v20 = vld [vmem:[#allocation99_spill] sm:$0xff] }
 0x2fa   : > { %v5709_v12 = vpop.xlane.xlu0 %5708  ;;  %10850 = vrcp.f32 %v5664_v14  ;;  %5810 = vadd.xlane.f32.xlu0 %v5809_v61  ;;  %v6191_v14 = vmul.f32 %v10831_v31, %v16606_v16  ;;  %16612 = vst [vmem:[#allocation148_spill] sm:$0xff] %v14431_v21  ;;  %v5423_v61 = vmul.f32 1.442695, %v5017_v28  ;;  %v5767_v16 = vadd.f32 %v13874_v30, %v13866_v29  ;;  %v14435_v37 = vpop.eup %10842  ;;  %v16620_v52 = vld [vmem:[#allocation250_spill] sm:$0xff] }
 0x2fb   : > { %10852 = vrcp.f32 %v5709_v12  ;;  %v6426_v12 = vpack.c.bf16 %v6194_v45, %v6192_v58  ;;  %16613 = vst [vmem:[#allocation123_spill] sm:$0xff] %v14435_v37  ;;  %v14439_v45 = vpop.eup %10844  ;;  %v5483_v58 = vmul.f32 1.442695, %v5047_v25  ;;  %v16630_v30 = vld [vmem:[#allocation178_spill] sm:$0xff] }
 0x2fc   : > { %v6425_v31 = vpack.c.bf16 %v6193_v53, %v6191_v14  ;;  %5813 = vadd.xlane.f32.xlu1 %v5812_v42  ;;  %16615 = vst [vmem:[#allocation124_spill] sm:$0xff] %v14439_v45  ;;  %v14445_v59 = vpop.eup %10846 }
 0x2fd   : > { %v5712_v60 = vpop.xlane.xlu1 %5711  ;;  %6876 = vmatprep.mubr.bf16.mxu1 %v6426_v12  ;;  %16617 = vst [vmem:[#allocation53_spill] sm:$0xff] %v14445_v59  ;;  %v10849_v42 = vpop.eup %10848 }
 0x2fe   : > { %10854 = vrcp.f32 %v5712_v60  ;;  %v14429_v63 = vpop.xlane.xlu0 %4772  ;;  %5768 = vadd.xlane.f32.xlu0 %v5767_v16  ;;  %6877 = vmatmul.mubr.bf16.gmra.mrb[140].mxu1 %v6425_v31  ;;  %v16619_v60 = vld [vmem:[#allocation92_spill] sm:$0xff] }
 0x2ff   : > { %10856 = vpow2.f32 %v5479_v19  ;;  %v16616_v19 = vld [vmem:[#allocation177_spill] sm:$0xff]  ;;  %v5770_v14 = vadd.f32 %v16619_v60, %v16618_v36  ;;  %v16625_v60 = vld [vmem:[#allocation15_spill] sm:$0xff] }
 0x300   : > { %10858 = vpow2.f32 %v5481_v4  ;;  %v5050_v28 = vsub.f32 %v16616_v19, %v14137_v33  ;;  %v5485_v4 = vmul.f32 1.442695, %v5048_v48  ;;  %v5487_v33 = vmul.f32 1.442695, %v5049_v27  ;;  %v16622_v48 = vld [vmem:[#allocation97_spill] sm:$0xff] }
 0x301   : > { %10860 = vpow2.f32 %v5419_v43  ;;  %v16621_v43 = vld [vmem:[#allocation95_spill] sm:$0xff]  ;;  %5771 = vadd.xlane.f32.xlu1 %v5770_v14  ;;  %v5818_v19 = vadd.f32 %v16623_v20, %v16622_v48  ;;  %v16627_v14 = vld [vmem:[#allocation205_spill] sm:$0xff] }
 0x302   : > { %v14443_v49 = vpop.xlane.xlu1 %4775  ;;  %10862 = vpow2.f32 %v5421_v10  ;;  %v14449_v53 = vpop.xlane.xlu0 %4820  ;;  %v5815_v25 = vadd.f32 %v16621_v43, %v16620_v52  ;;  %v5489_v16 = vmul.f32 1.442695, %v5050_v28  ;;  %v16628_v43 = vld [vmem:[#allocation35_spill] sm:$0xff]  ;;  %v16629_v28 = vld [vmem:[#allocation8_spill] sm:$0xff] }
 0x303   : > { %10864 = vpow2.f32 %v5423_v61  ;;  %v16624_v61 = vld [vmem:[#allocation13_spill] sm:$0xff] }
 0x304   : > { %10866 = vpow2.f32 %v5425_v13  ;;  %v10851_v12 = vpop.eup %10850  ;;  %5816 = vadd.xlane.f32.xlu0 %v5815_v25  ;;  %v6164_v36 = vmul.f32 %v10849_v42, %v16624_v61  ;;  %v16626_v13 = vld [vmem:[#allocation185_spill] sm:$0xff]  ;;  %v6163_v25 = vmul.f32 %v10849_v42, %v16629_v28  ;;  %v16632_v61 = vld [vmem:[#allocation182_spill] sm:$0xff]  ;;  %v16636_v42 = vld [vmem:[#allocation183_spill] sm:$0xff] }
 0x305   : > { %10868 = vpow2.f32 %v5483_v58  ;;  %v10853_v10 = vpop.eup %10852  ;;  %v6166_v52 = vmul.f32 %v10851_v12, %v16625_v60  ;;  %v5019_v27 = vsub.f32 %v16626_v13, %v14222_v24  ;;  %v5773_v58 = vadd.f32 %v16628_v43, %v16627_v14  ;;  %5819 = vadd.xlane.f32.xlu1 %v5818_v19  ;;  %v16635_v14 = vld [vmem:[#allocation181_spill] sm:$0xff]  ;;  %v16641_v19 = vld [vmem:[#allocation207_spill] sm:$0xff] }
 0x306   : > { %v14453_v31 = vpop.xlane.xlu1 %4823  ;;  %10870 = vpow2.f32 %v5485_v4  ;;  %v5667_v29 = vpop.xlane.xlu0 %5666  ;;  %v6165_v7 = vmul.f32 %v10851_v12, %v16630_v30  ;;  %v16631_v4 = vld [vmem:[#allocation190_spill] sm:$0xff]  ;;  %v6196_v18 = vmul.f32 %v10853_v10, %v16632_v61  ;;  %v6195_v43 = vmul.f32 %v10853_v10, %v16635_v14  ;;  %v16640_v12 = vld [vmem:[#allocation208_spill] sm:$0xff]  ;;  %v16644_v10 = vld [vmem:[#allocation103_spill] sm:$0xff] }
 0x307   : > { %10872 = vpow2.f32 %v5487_v33  ;;  %v5020_v48 = vsub.f32 %v16631_v4, %v14222_v24  ;;  %v6412_v20 = vpack.c.bf16 %v6166_v52, %v6164_v36  ;;  %v16638_v33 = vld [vmem:[#allocation191_spill] sm:$0xff]  ;;  %v16639_v36 = vld [vmem:[#allocation196_spill] sm:$0xff]  ;;  %v5776_v4 = vadd.f32 %v16641_v19, %v16640_v12 }
 0x308   : > { %v10855_v44 = vpop.eup %10854  ;;  %5774 = vadd.xlane.f32.xlu0 %v5773_v58  ;;  %v6411_v13 = vpack.c.bf16 %v6165_v7, %v6163_v25  ;;  %10874 = vpow2.f32 %v5489_v16  ;;  %v5021_v24 = vsub.f32 %v16638_v33, %v14242_v9  ;;  %v5022_v52 = vsub.f32 %v16639_v36, %v14242_v9  ;;  %v16643_v58 = vld [vmem:[#allocation101_spill] sm:$0xff] }
 0x309   : > { %v14468_v60 = vpop.eup %10856  ;;  %v6198_v57 = vmul.f32 %v10855_v44, %v16634_v35  ;;  %v6197_v28 = vmul.f32 %v10855_v44, %v16636_v42  ;;  %6691 = vmatprep.mubr.bf16.mxu0 %v6412_v20  ;;  %v5427_v35 = vmul.f32 1.442695, %v5019_v27  ;;  %v5821_v14 = vadd.f32 %v16644_v10, %v16643_v58  ;;  %v16646_v42 = vld [vmem:[#allocation198_spill] sm:$0xff]  ;;  %5777 = vadd.xlane.f32.xlu1 %v5776_v4  ;;  %v16648_v27 = vld [vmem:[#allocation199_spill] sm:$0xff] }
 0x30a   : > { %16633 = vst [vmem:[#allocation54_spill] sm:$0xff] %v14468_v60  ;;  %v14473_v30 = vpop.eup %10858  ;;  %v5670_v44 = vpop.xlane.xlu1 %5669  ;;  %6692 = vmatmul.mubr.bf16.gmra.mrb[144].mxu0 %v6411_v13  ;;  %v5051_v33 = vsub.f32 %v16646_v42, %v14255_v22  ;;  %10876 = vrcp.f32 %v5667_v29  ;;  %v5429_v20 = vmul.f32 1.442695, %v5020_v48  ;;  %v5052_v12 = vsub.f32 %v16648_v27, %v14255_v22  ;;  %v16652_v42 = vld [vmem:[#allocation214_spill] sm:$0xff]  ;;  %v16654_v22 = vld [vmem:[#allocation203_spill] sm:$0xff] }
 0x30b   : > { %16637 = vst [vmem:[#allocation125_spill] sm:$0xff] %v14473_v30  ;;  %v14481_v7 = vpop.eup %10860  ;;  %v6428_v25 = vpack.c.bf16 %v6198_v57, %v6196_v18  ;;  %v6427_v16 = vpack.c.bf16 %v6197_v28, %v6195_v43  ;;  %10878 = vrcp.f32 %v5670_v44  ;;  %v5431_v18 = vmul.f32 1.442695, %v5021_v24  ;;  %v16650_v57 = vld [vmem:[#allocation27_spill] sm:$0xff]  ;;  %v16651_v28 = vld [vmem:[#allocation213_spill] sm:$0xff] }
 0x30c   : > { %16642 = vst [vmem:[#allocation133_spill] sm:$0xff] %v14481_v7  ;;  %v14485_v61 = vpop.eup %10862  ;;  %v5715_v9 = vpop.xlane.xlu0 %5714  ;;  %5822 = vadd.xlane.f32.xlu0 %v5821_v14  ;;  %v5053_v43 = vsub.f32 %v16650_v57, %v14273_v15  ;;  %v5824_v4 = vadd.f32 %v16652_v42, %v16651_v28  ;;  %v5433_v48 = vmul.f32 1.442695, %v5022_v52  ;;  %v5054_v14 = vsub.f32 %v16654_v22, %v14273_v15  ;;  %v16655_v44 = vld [vmem:[#allocation105_spill] sm:$0xff]  ;;  %v16658_v57 = vld [vmem:[#allocation212_spill] sm:$0xff] }
 0x30d   : > { %16645 = vst [vmem:[#allocation151_spill] sm:$0xff] %v14485_v61  ;;  %v14489_v36 = vpop.eup %10864  ;;  %6884 = vmatprep.mubr.bf16.mxu1 %v6428_v25  ;;  %10880 = vrcp.f32 %v5715_v9  ;;  %v16656_v25 = vld [vmem:[#allocation252_spill] sm:$0xff]  ;;  %v5491_v10 = vmul.f32 1.442695, %v5051_v33  ;;  %v5023_v19 = vsub.f32 %v16658_v57, %v14344_v50  ;;  %v16663_v57 = vld [vmem:[#allocation106_spill] sm:$0xff] }
 0x30e   : > { %16647 = vst [vmem:[#allocation153_spill] sm:$0xff] %v14489_v36  ;;  %v14493_v13 = vpop.eup %10866  ;;  %6885 = vmatmul.mubr.bf16.gmra.mrb[144].mxu1 %v6427_v16  ;;  %10882 = vpow2.f32 %v5427_v35  ;;  %v5827_v27 = vadd.f32 %v16656_v25, %v16655_v44  ;;  %5825 = vadd.xlane.f32.xlu1 %v5824_v4  ;;  %v5493_v35 = vmul.f32 1.442695, %v5052_v12  ;;  %v16659_v52 = vld [vmem:[#allocation216_spill] sm:$0xff]  ;;  %v5495_v22 = vmul.f32 1.442695, %v5053_v43 }
 0x30f   : > { %16649 = vst [vmem:[#allocation150_spill] sm:$0xff] %v14493_v13  ;;  %v14499_v29 = vpop.eup %10868  ;;  %v5024_v9 = vsub.f32 %v16659_v52, %v14344_v50  ;;  %v16661_v44 = vld [vmem:[#allocation253_spill] sm:$0xff]  ;;  %v16662_v25 = vld [vmem:[#allocation104_spill] sm:$0xff]  ;;  %v5497_v28 = vmul.f32 1.442695, %v5054_v14 }
 0x310   : > { %16653 = vst [vmem:[#allocation152_spill] sm:$0xff] %v14499_v29  ;;  %v5718_v58 = vpop.xlane.xlu1 %5717  ;;  %v14505_v24 = vpop.eup %10870  ;;  %5828 = vadd.xlane.f32.xlu0 %v5827_v27  ;;  %v5830_v33 = vadd.f32 %v16662_v25, %v16661_v44  ;;  %v16664_v4 = vld [vmem:[#allocation108_spill] sm:$0xff]  ;;  %v5435_v12 = vmul.f32 1.442695, %v5023_v19  ;;  %v16666_v50 = vld [vmem:[#allocation217_spill] sm:$0xff]  ;;  %v16670_v19 = vld [vmem:[#allocation218_spill] sm:$0xff] }
 0x311   : > { %16657 = vst [vmem:[#allocation135_spill] sm:$0xff] %v14505_v24  ;;  %10884 = vrcp.f32 %v5718_v58  ;;  %v14513_v15 = vpop.eup %10872  ;;  %v5875_v58 = vadd.f32 %v16664_v4, %v16663_v57  ;;  %v5025_v27 = vsub.f32 %v16666_v50, %v14361_v6  ;;  %v5437_v43 = vmul.f32 1.442695, %v5024_v9  ;;  %v16668_v4 = vld [vmem:[#allocation222_spill] sm:$0xff]  ;;  %v16669_v57 = vld [vmem:[#allocation41_spill] sm:$0xff] }
 0x312   : > { %v14509_v16 = vpop.xlane.xlu0 %4778  ;;  %10886 = vpow2.f32 %v5429_v20  ;;  %16660 = vst [vmem:[#allocation155_spill] sm:$0xff] %v14513_v15  ;;  %v14521_v20 = vpop.eup %10874  ;;  %5831 = vadd.xlane.f32.xlu1 %v5830_v33  ;;  %v5878_v25 = vadd.f32 %v16669_v57, %v16668_v4  ;;  %v16671_v33 = vld [vmem:[#allocation219_spill] sm:$0xff] }
 0x313   : > { %10888 = vpow2.f32 %v5431_v18  ;;  %16665 = vst [vmem:[#allocation157_spill] sm:$0xff] %v14521_v20  ;;  %v5056_v50 = vsub.f32 %v16671_v33, %v14368_v3  ;;  %v16675_v4 = vld [vmem:[#allocation195_spill] sm:$0xff]  ;;  %v16680_v20 = vld [vmem:[#allocation44_spill] sm:$0xff] }
 0x314   : > { %10890 = vpow2.f32 %v5433_v48  ;;  %v14519_v42 = vpop.xlane.xlu1 %4781  ;;  %v16667_v48 = vld [vmem:[#allocation221_spill] sm:$0xff]  ;;  %5876 = vadd.xlane.f32.xlu0 %v5875_v58  ;;  %v10877_v52 = vpop.eup %10876  ;;  %v5439_v58 = vmul.f32 1.442695, %v5025_v27  ;;  %v16681_v27 = vld [vmem:[#allocation130_spill] sm:$0xff] }
 0x315   : > { %10892 = vpow2.f32 %v5491_v10  ;;  %v5026_v14 = vsub.f32 %v16667_v48, %v14361_v6  ;;  %v10879_v44 = vpop.eup %10878  ;;  %v5055_v10 = vsub.f32 %v16670_v19, %v14368_v3  ;;  %v16674_v48 = vld [vmem:[#allocation189_spill] sm:$0xff]  ;;  %v16677_v3 = vld [vmem:[#allocation188_spill] sm:$0xff] }
 0x316   : > { %v14525_v18 = vpop.xlane.xlu0 %4826  ;;  %10894 = vpow2.f32 %v5493_v35  ;;  %v16673_v35 = vld [vmem:[#allocation42_spill] sm:$0xff]  ;;  %5879 = vadd.xlane.f32.xlu1 %v5878_v25  ;;  %v6168_v57 = vmul.f32 %v10877_v52, %v16674_v48  ;;  %v6167_v33 = vmul.f32 %v10877_v52, %v16677_v3  ;;  %v16683_v48 = vld [vmem:[#allocation23_spill] sm:$0xff]  ;;  %v16687_v52 = vld [vmem:[#allocation25_spill] sm:$0xff] }
 0x317   : > { %10896 = vpow2.f32 %v5495_v22  ;;  %v5833_v9 = vadd.f32 %v16673_v35, %v16672_v39  ;;  %v10881_v6 = vpop.eup %10880  ;;  %v5441_v19 = vmul.f32 1.442695, %v5026_v14  ;;  %v6169_v39 = vmul.f32 %v10879_v44, %v16678_v0  ;;  %v16682_v25 = vld [vmem:[#allocation134_spill] sm:$0xff] }
 0x318   : > { %10898 = vpow2.f32 %v5497_v28  ;;  %v14537_v1 = vpop.xlane.xlu1 %4829  ;;  %v6170_v28 = vmul.f32 %v10879_v44, %v16675_v4  ;;  %v14541_v2 = vpop.eup %10882  ;;  %v5881_v15 = vadd.f32 %v16682_v25, %v16681_v27  ;;  %v6200_v29 = vmul.f32 %v10881_v6, %v16683_v48 }
 0x319   : > { %10900 = vpow2.f32 %v5435_v12  ;;  %16676 = vst [vmem:[#allocation136_spill] sm:$0xff] %v14541_v2  ;;  %5834 = vadd.xlane.f32.xlu0 %v5833_v9  ;;  %v5836_v12 = vadd.f32 %v16680_v20, %v16679_v51  ;;  %v6413_v2 = vpack.c.bf16 %v6169_v39, %v6167_v33  ;;  %v16686_v9 = vld [vmem:[#allocation197_spill] sm:$0xff]  ;;  %v5499_v44 = vmul.f32 1.442695, %v5055_v10  ;;  %v16688_v51 = vld [vmem:[#allocation226_spill] sm:$0xff]  ;;  %v16689_v39 = vld [vmem:[#allocation228_spill] sm:$0xff] }
 0x31a   : > { %v5673_v22 = vpop.xlane.xlu0 %5672  ;;  %10902 = vpow2.f32 %v5437_v43  ;;  %v6414_v24 = vpack.c.bf16 %v6170_v28, %v6168_v57  ;;  %v16685_v43 = vld [vmem:[#allocation201_spill] sm:$0xff]  ;;  %v6199_v13 = vmul.f32 %v10881_v6, %v16686_v9  ;;  %v5057_v20 = vsub.f32 %v16688_v51, %v14381_v41  ;;  %v16690_v10 = vld [vmem:[#allocation170_spill] sm:$0xff]  ;;  %v16691_v51 = vld [vmem:[#allocation112_spill] sm:$0xff] }
 0x31b   : > { %v10885_v35 = vpop.eup %10884  ;;  %10904 = vpow2.f32 %v5439_v58  ;;  %5837 = vadd.xlane.f32.xlu1 %v5836_v12  ;;  %v5058_v28 = vsub.f32 %v16689_v39, %v14381_v41  ;;  %v5059_v58 = vsub.f32 %v16690_v10, %v14429_v63  ;;  %v16692_v12 = vld [vmem:[#allocation45_spill] sm:$0xff]  ;;  %v16693_v41 = vld [vmem:[#allocation167_spill] sm:$0xff] }
 0x31c   : > { %v14550_v4 = vpop.eup %10886  ;;  %v6202_v14 = vmul.f32 %v10885_v35, %v16685_v43  ;;  %v6201_v3 = vmul.f32 %v10885_v35, %v16687_v52  ;;  %6699 = vmatprep.mubr.bf16.mxu0 %v6414_v24  ;;  %10906 = vpow2.f32 %v5441_v19  ;;  %v5676_v33 = vpop.xlane.xlu1 %5675  ;;  %v5884_v24 = vadd.f32 %v16692_v12, %v16691_v51 }
 0x31d   : > { %16684 = vst [vmem:[#allocation154_spill] sm:$0xff] %v14550_v4  ;;  %v14555_v0 = vpop.eup %10888  ;;  %5882 = vadd.xlane.f32.xlu0 %v5881_v15  ;;  %6700 = vmatmul.mubr.bf16.gmra.mrb[148].mxu0 %v6413_v2  ;;  %10908 = vrcp.f32 %v5673_v22  ;;  %v5501_v19 = vmul.f32 1.442695, %v5056_v50  ;;  %v5060_v15 = vsub.f32 %v16693_v41, %v14429_v63  ;;  %v16694_v2 = vld [vmem:[#allocation131_spill] sm:$0xff]  ;;  %v16695_v22 = vld [vmem:[#allocation238_spill] sm:$0xff] }
 0x31e   : > { %v14559_v57 = vpop.eup %10890  ;;  %v6430_v6 = vpack.c.bf16 %v6202_v14, %v6200_v29  ;;  %v6429_v35 = vpack.c.bf16 %v6201_v3, %v6199_v13  ;;  %v5721_v43 = vpop.xlane.xlu0 %5720  ;;  %10910 = vrcp.f32 %v5676_v33  ;;  %v5839_v13 = vadd.f32 %v14234_v17, %v16694_v2  ;;  %v16696_v63 = vld [vmem:[#allocation242_spill] sm:$0xff] }
 0x31f   : > { %v14563_v48 = vpop.eup %10892  ;;  %v5503_v14 = vmul.f32 1.442695, %v5057_v20  ;;  %v5061_v52 = vsub.f32 %v16695_v22, %v14443_v49  ;;  %5885 = vadd.xlane.f32.xlu1 %v5884_v24  ;;  %10912 = vrcp.f32 %v5721_v43  ;;  %v5505_v50 = vmul.f32 1.442695, %v5058_v28  ;;  %v16697_v20 = vld [vmem:[#allocation50_spill] sm:$0xff] }
 0x320   : > { %v14569_v9 = vpop.eup %10894  ;;  %6892 = vmatprep.mubr.bf16.mxu1 %v6430_v6  ;;  %10914 = vpow2.f32 %v5499_v44  ;;  %v5062_v39 = vsub.f32 %v16696_v63, %v14443_v49  ;;  %v5724_v33 = vpop.xlane.xlu1 %5723  ;;  %v5507_v6 = vmul.f32 1.442695, %v5059_v58  ;;  %v5091_v41 = vsub.f32 %v16697_v20, %v14449_v53  ;;  %v16698_v49 = vld [vmem:[#allocation239_spill] sm:$0xff]  ;;  %v16699_v22 = vld [vmem:[#allocation246_spill] sm:$0xff] }
 0x321   : > { %v14575_v29 = vpop.eup %10896  ;;  %6893 = vmatmul.mubr.bf16.gmra.mrb[148].mxu1 %v6429_v35  ;;  %5840 = vadd.xlane.f32.xlu0 %v5839_v13  ;;  %v5842_v24 = vadd.f32 %v14262_v34, %v14244_v32  ;;  %10916 = vrcp.f32 %v5724_v33  ;;  %v5509_v44 = vmul.f32 1.442695, %v5060_v15  ;;  %v5092_v28 = vsub.f32 %v16698_v49, %v14449_v53  ;;  %v16700_v53 = vld [vmem:[#allocation247_spill] sm:$0xff]  ;;  %v16701_v49 = vld [vmem:[#allocation138_spill] sm:$0xff] }
 0x322   : > { %v14579_v3 = vpop.eup %10898  ;;  %v14589_v35 = vpop.xlane.xlu0 %4784  ;;  %10918 = vpow2.f32 %v5501_v19  ;;  %v5887_v13 = vadd.f32 %v14288_v46, %v14269_v26  ;;  %v5511_v58 = vmul.f32 1.442695, %v5061_v52  ;;  %v5093_v63 = vsub.f32 %v16699_v22, %v14453_v31  ;;  %v16711_v32 = vld [vmem:[#allocation215_spill] sm:$0xff] }
 0x323   : > { %v14583_v10 = vpop.eup %10900  ;;  %10920 = vpow2.f32 %v5503_v14  ;;  %5843 = vadd.xlane.f32.xlu1 %v5842_v24  ;;  %v5513_v33 = vmul.f32 1.442695, %v5062_v39  ;;  %v5571_v19 = vmul.f32 1.442695, %v5091_v41  ;;  %v5094_v15 = vsub.f32 %v16700_v53, %v14453_v31 }
 0x324   : > { %v14591_v43 = vpop.eup %10902  ;;  %10922 = vpow2.f32 %v5505_v50  ;;  %v14599_v20 = vpop.xlane.xlu1 %4787  ;;  %v5890_v14 = vadd.f32 %v16701_v49, %v14298_v11  ;;  %v5573_v50 = vmul.f32 1.442695, %v5092_v28  ;;  %v5845_v39 = vadd.f32 %v14364_v62, %v14341_v47  ;;  %v16702_v47 = vld [vmem:[#allocation28_spill] sm:$0xff]  ;;  %v16707_v11 = vld [vmem:[#allocation30_spill] sm:$0xff] }
 0x325   : > { %5888 = vadd.xlane.f32.xlu0 %v5887_v13  ;;  %v14601_v2 = vpop.eup %10904  ;;  %10924 = vpow2.f32 %v5507_v6  ;;  %v5575_v13 = vmul.f32 1.442695, %v5093_v63  ;;  %v5848_v31 = vadd.f32 %v14372_v56, %v14370_v55  ;;  %v5893_v22 = vadd.f32 %v14388_v23, %v14377_v40  ;;  %v16706_v55 = vld [vmem:[#allocation202_spill] sm:$0xff] }
 0x326   : > { %v14607_v52 = vpop.xlane.xlu0 %4832  ;;  %v14609_v26 = vpop.eup %10906  ;;  %10926 = vpow2.f32 %v5509_v44  ;;  %v5577_v28 = vmul.f32 1.442695, %v5094_v15 }
 0x327   : > { %v10909_v24 = vpop.eup %10908  ;;  %10928 = vpow2.f32 %v5511_v58  ;;  %5891 = vadd.xlane.f32.xlu1 %v5890_v14  ;;  %v16703_v58 = vld [vmem:[#allocation204_spill] sm:$0xff] }
 0x328   : > { %v10911_v6 = vpop.eup %10910  ;;  %10930 = vpow2.f32 %v5513_v33  ;;  %v14615_v41 = vpop.xlane.xlu1 %4835  ;;  %v6172_v62 = vmul.f32 %v10909_v24, %v16702_v47  ;;  %v16705_v33 = vld [vmem:[#allocation12_spill] sm:$0xff]  ;;  %v6171_v56 = vmul.f32 %v10909_v24, %v16706_v55  ;;  %v16709_v47 = vld [vmem:[#allocation209_spill] sm:$0xff]  ;;  %v16713_v55 = vld [vmem:[#allocation211_spill] sm:$0xff] }
 0x329   : > { %5846 = vadd.xlane.f32.xlu0 %v5845_v39  ;;  %v10913_v44 = vpop.eup %10912  ;;  %10932 = vpow2.f32 %v5571_v19  ;;  %v6174_v63 = vmul.f32 %v10911_v6, %v16703_v58  ;;  %v5063_v39 = vsub.f32 %v16705_v33, %v14509_v16  ;;  %v6173_v49 = vmul.f32 %v10911_v6, %v16707_v11  ;;  %v16708_v19 = vld [vmem:[#allocation14_spill] sm:$0xff] }
 0x32a   : > { %v5679_v53 = vpop.xlane.xlu0 %5678  ;;  %v14621_v14 = vpop.eup %10914  ;;  %10934 = vpow2.f32 %v5573_v50  ;;  %v5064_v15 = vsub.f32 %v16708_v19, %v14509_v16  ;;  %v6204_v23 = vmul.f32 %v10913_v44, %v16709_v47  ;;  %v16712_v33 = vld [vmem:[#allocation206_spill] sm:$0xff]  ;;  %v5851_v6 = vadd.f32 %v14423_v38, %v14417_v54  ;;  %v16745_v54 = vld [vmem:[#allocation225_spill] sm:$0xff] }
 0x32b   : > { %16704 = vst [vmem:[#allocation156_spill] sm:$0xff] %v14621_v14  ;;  %v10917_v46 = vpop.eup %10916  ;;  %10936 = vpow2.f32 %v5575_v13  ;;  %5849 = vadd.xlane.f32.xlu1 %v5848_v31  ;;  %v6416_v40 = vpack.c.bf16 %v6174_v63, %v6172_v62  ;;  %v6415_v50 = vpack.c.bf16 %v6173_v49, %v6171_v56  ;;  %v6203_v17 = vmul.f32 %v10913_v44, %v16712_v33  ;;  %v16715_v13 = vld [vmem:[#allocation179_spill] sm:$0xff]  ;;  %v16719_v63 = vld [vmem:[#allocation180_spill] sm:$0xff] }
 0x32c   : > { %v14630_v58 = vpop.eup %10918  ;;  %v6206_v34 = vmul.f32 %v10917_v46, %v16711_v32  ;;  %v6205_v24 = vmul.f32 %v10917_v46, %v16713_v55  ;;  %10938 = vpow2.f32 %v5577_v28  ;;  %v5065_v16 = vsub.f32 %v16715_v13, %v14519_v42  ;;  %v16717_v49 = vld [vmem:[#allocation63_spill] sm:$0xff]  ;;  %v5682_v46 = vpop.xlane.xlu1 %5681 }
 0x32d   : > { %16710 = vst [vmem:[#allocation137_spill] sm:$0xff] %v14630_v58  ;;  %5894 = vadd.xlane.f32.xlu0 %v5893_v22  ;;  %v14635_v11 = vpop.eup %10920  ;;  %v5896_v62 = vadd.f32 %v14414_v5, %v14390_v8  ;;  %6707 = vmatprep.mubr.bf16.mxu0 %v6416_v40  ;;  %v5515_v32 = vmul.f32 1.442695, %v5063_v39  ;;  %v5066_v31 = vsub.f32 %v16717_v49, %v14519_v42  ;;  %10940 = vrcp.f32 %v5679_v53  ;;  %v16721_v39 = vld [vmem:[#allocation17_spill] sm:$0xff] }
 0x32e   : > { %16714 = vst [vmem:[#allocation139_spill] sm:$0xff] %v14635_v11  ;;  %v14643_v56 = vpop.eup %10922  ;;  %6708 = vmatmul.mubr.bf16.gmra.mrb[152].mxu0 %v6415_v50  ;;  %v6432_v22 = vpack.c.bf16 %v6206_v34, %v6204_v23  ;;  %v6431_v44 = vpack.c.bf16 %v6205_v24, %v6203_v17  ;;  %v5095_v19 = vsub.f32 %v16719_v63, %v14525_v18  ;;  %v5727_v40 = vpop.xlane.xlu0 %5726  ;;  %v5517_v33 = vmul.f32 1.442695, %v5064_v15  ;;  %v16723_v34 = vld [vmem:[#allocation64_spill] sm:$0xff]  ;;  %v16729_v63 = vld [vmem:[#allocation75_spill] sm:$0xff] }
 0x32f   : > { %16716 = vst [vmem:[#allocation140_spill] sm:$0xff] %v14643_v56  ;;  %v14647_v28 = vpop.eup %10924  ;;  %5897 = vadd.xlane.f32.xlu1 %v5896_v62  ;;  %v5096_v55 = vsub.f32 %v16721_v39, %v14525_v18  ;;  %10942 = vrcp.f32 %v5682_v46  ;;  %v5519_v17 = vmul.f32 1.442695, %v5065_v16  ;;  %v5097_v23 = vsub.f32 %v16723_v34, %v14537_v1  ;;  %v16725_v18 = vld [vmem:[#allocation66_spill] sm:$0xff] }
 0x330   : > { %16718 = vst [vmem:[#allocation144_spill] sm:$0xff] %v14647_v28  ;;  %v14651_v47 = vpop.eup %10926  ;;  %6900 = vmatprep.mubr.bf16.mxu1 %v6432_v22  ;;  %10944 = vrcp.f32 %v5727_v40  ;;  %v5854_v53 = vadd.f32 %v14435_v37, %v14431_v21  ;;  %v5521_v15 = vmul.f32 1.442695, %v5066_v31  ;;  %v5098_v24 = vsub.f32 %v16725_v18, %v14537_v1  ;;  %v5730_v13 = vpop.xlane.xlu1 %5729  ;;  %v16731_v18 = vld [vmem:[#allocation76_spill] sm:$0xff] }
 0x331   : > { %16720 = vst [vmem:[#allocation146_spill] sm:$0xff] %v14651_v47  ;;  %5852 = vadd.xlane.f32.xlu0 %v5851_v6  ;;  %v14655_v42 = vpop.eup %10928  ;;  %6901 = vmatmul.mubr.bf16.gmra.mrb[152].mxu1 %v6431_v44  ;;  %10946 = vpow2.f32 %v5515_v32  ;;  %v5899_v62 = vadd.f32 %v14445_v59, %v14439_v45  ;;  %v5579_v6 = vmul.f32 1.442695, %v5095_v19  ;;  %v5581_v22 = vmul.f32 1.442695, %v5096_v55  ;;  %v16728_v32 = vld [vmem:[#allocation186_spill] sm:$0xff] }
 0x332   : > { %16722 = vst [vmem:[#allocation158_spill] sm:$0xff] %v14655_v42  ;;  %v14661_v50 = vpop.eup %10930  ;;  %10948 = vrcp.f32 %v5730_v13  ;;  %v5067_v31 = vsub.f32 %v16728_v32, %v14589_v35  ;;  %v5583_v44 = vmul.f32 1.442695, %v5097_v23  ;;  %v5068_v40 = vsub.f32 %v16729_v63, %v14589_v35  ;;  %v16746_v37 = vld [vmem:[#allocation40_spill] sm:$0xff] }
 0x333   : > { %16724 = vst [vmem:[#allocation160_spill] sm:$0xff] %v14661_v50  ;;  %v14667_v16 = vpop.eup %10932  ;;  %5855 = vadd.xlane.f32.xlu1 %v5854_v53  ;;  %v14669_v49 = vpop.xlane.xlu0 %4790  ;;  %10950 = vpow2.f32 %v5517_v33  ;;  %v5902_v19 = vadd.f32 %v14473_v30, %v14468_v60  ;;  %v5585_v39 = vmul.f32 1.442695, %v5098_v24  ;;  %v5857_v33 = vadd.f32 %v14485_v61, %v14481_v7  ;;  %v16730_v53 = vld [vmem:[#allocation193_spill] sm:$0xff]  ;;  %v16735_v61 = vld [vmem:[#allocation155_spill] sm:$0xff]  ;;  %v16737_v60 = vld [vmem:[#allocation136_spill] sm:$0xff] }
 0x334   : > { %16726 = vst [vmem:[#allocation162_spill] sm:$0xff] %v14667_v16  ;;  %v14671_v46 = vpop.eup %10934  ;;  %10952 = vpow2.f32 %v5519_v17  ;;  %v5069_v17 = vsub.f32 %v16730_v53, %v14599_v20  ;;  %v5523_v35 = vmul.f32 1.442695, %v5067_v31  ;;  %v5525_v13 = vmul.f32 1.442695, %v5068_v40  ;;  %v16733_v53 = vld [vmem:[#allocation152_spill] sm:$0xff] }
 0x335   : > { %16727 = vst [vmem:[#allocation165_spill] sm:$0xff] %v14671_v46  ;;  %5900 = vadd.xlane.f32.xlu0 %v5899_v62  ;;  %v14675_v1 = vpop.eup %10936  ;;  %10954 = vpow2.f32 %v5521_v15  ;;  %v14681_v34 = vpop.xlane.xlu1 %4793  ;;  %v5070_v15 = vsub.f32 %v16731_v18, %v14599_v20  ;;  %v16732_v62 = vld [vmem:[#allocation150_spill] sm:$0xff]  ;;  %v5863_v20 = vadd.f32 %v14550_v4, %v16737_v60  ;;  %v16740_v30 = vld [vmem:[#allocation223_spill] sm:$0xff] }
 0x336   : > { %v14685_v55 = vpop.eup %10938  ;;  %10956 = vpow2.f32 %v5579_v6  ;;  %v5860_v32 = vadd.f32 %v16732_v62, %v14489_v36  ;;  %v5527_v18 = vmul.f32 1.442695, %v5069_v17  ;;  %v16739_v62 = vld [vmem:[#allocation36_spill] sm:$0xff] }
 0x337   : > { %5903 = vadd.xlane.f32.xlu1 %v5902_v19  ;;  %v14689_v23 = vpop.xlane.xlu0 %4838  ;;  %10958 = vpow2.f32 %v5581_v22  ;;  %v10941_v24 = vpop.eup %10940  ;;  %v16734_v19 = vld [vmem:[#allocation135_spill] sm:$0xff]  ;;  %v16736_v22 = vld [vmem:[#allocation157_spill] sm:$0xff]  ;;  %v16744_v17 = vld [vmem:[#allocation72_spill] sm:$0xff] }
 0x338   : > { %10960 = vpow2.f32 %v5583_v44  ;;  %v5905_v7 = vadd.f32 %v16734_v19, %v16733_v53  ;;  %v5908_v31 = vadd.f32 %v16736_v22, %v16735_v61  ;;  %v16738_v44 = vld [vmem:[#allocation192_spill] sm:$0xff]  ;;  %v5529_v53 = vmul.f32 1.442695, %v5070_v15  ;;  %v16742_v61 = vld [vmem:[#allocation34_spill] sm:$0xff] }
 0x339   : > { %5858 = vadd.xlane.f32.xlu0 %v5857_v33  ;;  %v10943_v63 = vpop.eup %10942  ;;  %10962 = vpow2.f32 %v5585_v39  ;;  %v14695_v6 = vpop.xlane.xlu1 %4841  ;;  %v5099_v40 = vsub.f32 %v16738_v44, %v14607_v52  ;;  %v6176_v39 = vmul.f32 %v10941_v24, %v16739_v62  ;;  %v6175_v22 = vmul.f32 %v10941_v24, %v16742_v61  ;;  %v16743_v19 = vld [vmem:[#allocation220_spill] sm:$0xff] }
 0x33a   : > { %v10945_v33 = vpop.eup %10944  ;;  %v6178_v45 = vmul.f32 %v10943_v63, %v16740_v30  ;;  %10964 = vpow2.f32 %v5523_v35  ;;  %v6177_v60 = vmul.f32 %v10943_v63, %v16743_v19  ;;  %v5100_v44 = vsub.f32 %v16744_v17, %v14607_v52  ;;  %v16747_v35 = vld [vmem:[#allocation39_spill] sm:$0xff] }
 0x33b   : > { %5861 = vadd.xlane.f32.xlu1 %v5860_v32  ;;  %v5733_v36 = vpop.xlane.xlu0 %5732  ;;  %v14707_v59 = vpop.eup %10946  ;;  %10966 = vpow2.f32 %v5525_v13  ;;  %v6208_v21 = vmul.f32 %v10945_v33, %v16745_v54  ;;  %v6207_v15 = vmul.f32 %v10945_v33, %v16747_v35  ;;  %v5587_v24 = vmul.f32 1.442695, %v5099_v40  ;;  %v16750_v13 = vld [vmem:[#allocation79_spill] sm:$0xff]  ;;  %v16751_v54 = vld [vmem:[#allocation81_spill] sm:$0xff] }
 0x33c   : > { %16741 = vst [vmem:[#allocation161_spill] sm:$0xff] %v14707_v59  ;;  %v10949_v4 = vpop.eup %10948  ;;  %v6418_v32 = vpack.c.bf16 %v6178_v45, %v6176_v39  ;;  %v6417_v30 = vpack.c.bf16 %v6177_v60, %v6175_v22  ;;  %10968 = vpow2.f32 %v5527_v18  ;;  %v5101_v63 = vsub.f32 %v16750_v13, %v14615_v41  ;;  %v16753_v22 = vld [vmem:[#allocation85_spill] sm:$0xff] }
 0x33d   : > { %5906 = vadd.xlane.f32.xlu0 %v5905_v7  ;;  %v14714_v62 = vpop.eup %10950  ;;  %v6210_v38 = vmul.f32 %v10949_v4, %v16746_v37  ;;  %v16748_v7 = vld [vmem:[#allocation227_spill] sm:$0xff]  ;;  %10970 = vpow2.f32 %v5529_v53  ;;  %v5102_v60 = vsub.f32 %v16751_v54, %v14615_v41  ;;  %v5736_v37 = vpop.xlane.xlu1 %5735  ;;  %v5071_v33 = vsub.f32 %v16753_v22, %v14669_v49  ;;  %v16755_v41 = vld [vmem:[#allocation86_spill] sm:$0xff] }
 0x33e   : > { %v6209_v8 = vmul.f32 %v10949_v4, %v16748_v7  ;;  %v14719_v61 = vpop.eup %10952  ;;  %6715 = vmatprep.mubr.bf16.mxu0 %v6418_v32  ;;  %10972 = vrcp.f32 %v5733_v36  ;;  %v5589_v53 = vmul.f32 1.442695, %v5100_v44  ;;  %v5072_v39 = vsub.f32 %v16755_v41, %v14669_v49  ;;  %v16757_v36 = vld [vmem:[#allocation87_spill] sm:$0xff]  ;;  %v16759_v49 = vld [vmem:[#allocation249_spill] sm:$0xff] }
 0x33f   : > { %16749 = vst [vmem:[#allocation168_spill] sm:$0xff] %v14719_v61  ;;  %5909 = vadd.xlane.f32.xlu1 %v5908_v31  ;;  %v14723_v45 = vpop.eup %10954  ;;  %6716 = vmatmul.mubr.bf16.gmra.mrb[156].mxu0 %v6417_v30  ;;  %v6434_v52 = vpack.c.bf16 %v6210_v38, %v6208_v21  ;;  %v5781_v18 = vpop.xlane.xlu0 %5780  ;;  %v5866_v31 = vadd.f32 %v14559_v57, %v14555_v0  ;;  %10974 = vrcp.f32 %v5736_v37  ;;  %v5591_v21 = vmul.f32 1.442695, %v5101_v63 }
 0x340   : > { %v6433_v4 = vpack.c.bf16 %v6209_v8, %v6207_v15  ;;  %v14727_v19 = vpop.eup %10956  ;;  %v5911_v38 = vadd.f32 %v14569_v9, %v14563_v48  ;;  %10976 = vrcp.f32 %v5781_v18  ;;  %v5593_v44 = vmul.f32 1.442695, %v5102_v60  ;;  %v16760_v15 = vld [vmem:[#allocation89_spill] sm:$0xff]  ;;  %v16762_v60 = vld [vmem:[#allocation91_spill] sm:$0xff] }
 0x341   : > { %5864 = vadd.xlane.f32.xlu0 %v5863_v20  ;;  %16752 = vst [vmem:[#allocation159_spill] sm:$0xff] %v14727_v19  ;;  %v14733_v40 = vpop.eup %10958  ;;  %6908 = vmatprep.mubr.bf16.mxu1 %v6434_v52  ;;  %v5073_v20 = vsub.f32 %v16757_v36, %v14681_v34  ;;  %10978 = vpow2.f32 %v5587_v24  ;;  %v5074_v32 = vsub.f32 %v16759_v49, %v14681_v34  ;;  %v5784_v30 = vpop.xlane.xlu1 %5783  ;;  %v5531_v35 = vmul.f32 1.442695, %v5071_v33  ;;  %v16767_v36 = vld [vmem:[#allocation94_spill] sm:$0xff] }
 0x342   : > { %16754 = vst [vmem:[#allocation164_spill] sm:$0xff] %v14733_v40  ;;  %v14739_v8 = vpop.eup %10960  ;;  %6909 = vmatmul.mubr.bf16.gmra.mrb[156].mxu1 %v6433_v4  ;;  %v5103_v7 = vsub.f32 %v16760_v15, %v14689_v23  ;;  %10980 = vrcp.f32 %v5784_v30  ;;  %v5914_v63 = vadd.f32 %v14579_v3, %v14575_v29  ;;  %v5533_v24 = vmul.f32 1.442695, %v5072_v39 }
 0x343   : > { %16756 = vst [vmem:[#allocation174_spill] sm:$0xff] %v14739_v8  ;;  %5867 = vadd.xlane.f32.xlu1 %v5866_v31  ;;  %v14743_v17 = vpop.eup %10962  ;;  %v14749_v13 = vpop.xlane.xlu0 %4796  ;;  %10982 = vpow2.f32 %v5589_v53  ;;  %v5104_v37 = vsub.f32 %v16762_v60, %v14689_v23  ;;  %v5869_v34 = vadd.f32 %v14591_v43, %v14583_v10  ;;  %v5535_v4 = vmul.f32 1.442695, %v5073_v20  ;;  %v16765_v53 = vld [vmem:[#allocation93_spill] sm:$0xff]  ;;  %v16769_v60 = vld [vmem:[#allocation232_spill] sm:$0xff] }
 0x344   : > { %16758 = vst [vmem:[#allocation176_spill] sm:$0xff] %v14743_v17  ;;  %v14753_v54 = vpop.eup %10964  ;;  %10984 = vpow2.f32 %v5591_v21  ;;  %v5537_v22 = vmul.f32 1.442695, %v5074_v32  ;;  %v5595_v31 = vmul.f32 1.442695, %v5103_v7  ;;  %v5105_v23 = vsub.f32 %v16765_v53, %v14695_v6  ;;  %v16771_v53 = vld [vmem:[#allocation231_spill] sm:$0xff] }
 0x345   : > { %5912 = vadd.xlane.f32.xlu0 %v5911_v38  ;;  %16761 = vst [vmem:[#allocation169_spill] sm:$0xff] %v14753_v54  ;;  %v14759_v52 = vpop.eup %10966  ;;  %10986 = vpow2.f32 %v5593_v44  ;;  %v14761_v33 = vpop.xlane.xlu1 %4799  ;;  %v5872_v39 = vadd.f32 %v14609_v26, %v14601_v2  ;;  %v5597_v21 = vmul.f32 1.442695, %v5104_v37  ;;  %v5106_v20 = vsub.f32 %v16767_v36, %v14695_v6  ;;  %v16772_v36 = vld [vmem:[#allocation236_spill] sm:$0xff] }
 0x346   : > { %16763 = vst [vmem:[#allocation171_spill] sm:$0xff] %v14759_v52  ;;  %v14763_v18 = vpop.eup %10968  ;;  %10988 = vpow2.f32 %v5531_v35  ;;  %v5917_v44 = vadd.f32 %v14630_v58, %v14621_v14  ;;  %v5920_v35 = vadd.f32 %v14643_v56, %v14635_v11  ;;  %v5923_v15 = vadd.f32 %v14651_v47, %v14647_v28  ;;  %v16773_v14 = vld [vmem:[#allocation166_spill] sm:$0xff]  ;;  %v16774_v28 = vld [vmem:[#allocation96_spill] sm:$0xff] }
 0x347   : > { %5915 = vadd.xlane.f32.xlu1 %v5914_v63  ;;  %16764 = vst [vmem:[#allocation9_spill] sm:$0xff] %v14763_v18  ;;  %v14767_v41 = vpop.xlane.xlu0 %4844  ;;  %v14771_v38 = vpop.eup %10970  ;;  %10990 = vpow2.f32 %v5533_v24  ;;  %v5599_v6 = vmul.f32 1.442695, %v5105_v23  ;;  %v16768_v63 = vld [vmem:[#allocation230_spill] sm:$0xff] }
 0x348   : > { %16766 = vst [vmem:[#allocation175_spill] sm:$0xff] %v14771_v38  ;;  %v10973_v49 = vpop.eup %10972  ;;  %10992 = vpow2.f32 %v5535_v4  ;;  %v16775_v23 = vld [vmem:[#allocation98_spill] sm:$0xff] }
 0x349   : > { %5870 = vadd.xlane.f32.xlu0 %v5869_v34  ;;  %v10975_v32 = vpop.eup %10974  ;;  %10994 = vpow2.f32 %v5537_v22  ;;  %v14777_v30 = vpop.xlane.xlu1 %4847  ;;  %v6211_v24 = vmul.f32 %v10973_v49, %v16768_v63  ;;  %v5601_v22 = vmul.f32 1.442695, %v5106_v20  ;;  %v5076_v63 = vsub.f32 %v16775_v23, %v14749_v13 }
 0x34a   : > { %v10977_v7 = vpop.eup %10976  ;;  %10996 = vpow2.f32 %v5595_v31  ;;  %v6213_v37 = vmul.f32 %v10975_v32, %v16769_v60  ;;  %v5075_v31 = vsub.f32 %v16774_v28, %v14749_v13  ;;  %v16780_v13 = vld [vmem:[#allocation210_spill] sm:$0xff] }
 0x34b   : > { %5873 = vadd.xlane.f32.xlu1 %v5872_v39  ;;  %v5739_v34 = vpop.xlane.xlu0 %5738  ;;  %v14785_v4 = vpop.eup %10978  ;;  %10998 = vpow2.f32 %v5597_v21  ;;  %v6212_v39 = vmul.f32 %v10973_v49, %v16771_v53  ;;  %v6243_v56 = vmul.f32 %v10977_v7, %v16773_v14  ;;  %v16777_v21 = vld [vmem:[#allocation172_spill] sm:$0xff]  ;;  %v16779_v14 = vld [vmem:[#allocation237_spill] sm:$0xff] }
 0x34c   : > { %16770 = vst [vmem:[#allocation10_spill] sm:$0xff] %v14785_v4  ;;  %v10981_v11 = vpop.eup %10980  ;;  %v6435_v60 = vpack.c.bf16 %v6213_v37, %v6211_v24  ;;  %11000 = vpow2.f32 %v5599_v6  ;;  %v5926_v37 = vadd.f32 %v14661_v50, %v14655_v42  ;;  %v16782_v50 = vld [vmem:[#allocation32_spill] sm:$0xff] }
 0x34d   : > { %5918 = vadd.xlane.f32.xlu0 %v5917_v44  ;;  %v6214_v44 = vmul.f32 %v10975_v32, %v16772_v36  ;;  %v14794_v47 = vpop.eup %10982  ;;  %v6245_v20 = vmul.f32 %v10981_v11, %v16777_v21  ;;  %v5742_v49 = vpop.xlane.xlu1 %5741  ;;  %v16778_v32 = vld [vmem:[#allocation49_spill] sm:$0xff]  ;;  %v6246_v36 = vmul.f32 %v10981_v11, %v16779_v14  ;;  %11002 = vpow2.f32 %v5601_v22  ;;  %v16781_v11 = vld [vmem:[#allocation102_spill] sm:$0xff]  ;;  %v10415_v21 = vld [vmem:[%s11938_s10 + $0x280] sm:$0xff]  }
 0x34e   : > { %16776 = vst [vmem:[#allocation177_spill] sm:$0xff] %v14794_v47  ;;  %v6244_v53 = vmul.f32 %v10977_v7, %v16778_v32  ;;  %v14799_v28 = vpop.eup %10984  ;;  %v5078_v7 = vsub.f32 %v16781_v11, %v14761_v33  ;;  %v10416_v32 = vld [vmem:[%s11938_s10 + $0x248] sm:$0xff]   ;;  %v5107_v42 = vsub.f32 %v16782_v50, %v14767_v41  ;;  %11004 = vrcp.f32 %v5739_v34  ;;  %v16784_v50 = vld [vmem:[#allocation107_spill] sm:$0xff] }
 0x34f   : > { %5921 = vadd.xlane.f32.xlu1 %v5920_v35  ;;  %v6436_v58 = vpack.c.bf16 %v6214_v44, %v6212_v39  ;;  %v5077_v35 = vsub.f32 %v16780_v13, %v14761_v33  ;;  %v5787_v24 = vpop.xlane.xlu0 %5786  ;;  %v5971_v39 = vadd.f32 %v14671_v46, %v14667_v16  ;;  %v14808_v44 = vpop.eup %10986  ;;  %v6451_v23 = vpack.c.bf16 %v6245_v20, %v6243_v56  ;;  %v10418_v46 = vld [vmem:[%s11938_s10 + $0x2c8] sm:$0xff]  }
 0x350   : > { %v6452_v6 = vpack.c.bf16 %v6246_v36, %v6244_v53  ;;  %v14814_v14 = vpop.eup %10988  ;;  %v5539_v13 = vmul.f32 1.442695, %v5075_v31  ;;  %v5541_v16 = vmul.f32 1.442695, %v5076_v63  ;;  %11006 = vrcp.f32 %v5742_v49  ;;  %v16785_v36 = vld [vmem:[#allocation251_spill] sm:$0xff] }
 0x351   : > { %5924 = vadd.xlane.f32.xlu0 %v5923_v15  ;;  %v10413_v15 = vld [vmem:[%s11938_s10 + $0x200] sm:$0xff]   ;;  %7045 = vmatprep.mubr.bf16.mxu0 %v6436_v58  ;;  %v14819_v22 = vpop.eup %10990  ;;  %v16783_v58 = vld [vmem:[#allocation100_spill] sm:$0xff]  ;;  %v5790_v56 = vpop.xlane.xlu1 %5789  ;;  %v5543_v31 = vmul.f32 1.442695, %v5077_v35  ;;  %v5109_v34 = vsub.f32 %v16784_v50, %v14777_v30  ;;  %11008 = vrcp.f32 %v5787_v24  ;;  %v5974_v63 = vadd.f32 %v14685_v55, %v14675_v1 }
 0x352   : > { %7046 = vmatmul.mubr.bf16.vlgmr.msra.gmra.mrb[160].mxu0 %v6435_v60  ;;  %v5108_v33 = vsub.f32 %v16783_v58, %v14767_v41  ;;  %7238 = vmatprep.mubr.bf16.mxu1 %v6452_v6  ;;  %v14823_v20 = vpop.eup %10992  ;;  %v10417_v41 = vld [vmem:[%s11938_s10 + $0x208] sm:$0xff]   ;;  %v5545_v53 = vmul.f32 1.442695, %v5078_v7  ;;  %11010 = vrcp.f32 %v5790_v56  ;;  %v5929_v35 = vadd.f32 %v14714_v62, %v14707_v59  ;;  %v16787_v6 = vld [vmem:[#allocation37_spill] sm:$0xff]  ;;  %v16789_v56 = vld [vmem:[#allocation38_spill] sm:$0xff] }
 0x353   : > { %5927 = vadd.xlane.f32.xlu1 %v5926_v37  ;;  %7239 = vmatmul.mubr.bf16.vlgmr.msra.gmra.mrb[160].mxu1 %v6451_v23  ;;  %v4803_v60 = vpop.xlane.xlu0 %4802  ;;  %v14830_v49 = vpop.eup %10994  ;;  %v5110_v37 = vsub.f32 %v16785_v36, %v14777_v30  ;;  %v10419_v24 = vld [vmem:[%s11938_s10 + $0x288] sm:$0xff]   ;;  %11012 = vpow2.f32 %v5539_v13  ;;  %v10422_v7 = vld [vmem:[%s11938_s10 + $0x2d0] sm:$0xff]   ;;  %v5607_v13 = vmul.f32 1.442695, %v5109_v34  ;;  %v5932_v50 = vadd.f32 %v14723_v45, %v14719_v61  ;;  %v10424_v34 = vld [vmem:[%s11938_s10 + $0x258] sm:$0xff]  }
 0x354   : > { %9693 = vmatpush3.bf16.msra.mxu0 %v10413_v15  ;;  %9757 = vmatpush3.bf16.msra.mxu1 %v10415_v21  ;;  %v14838_v11 = vpop.eup %10996  ;;  %v5603_v15 = vmul.f32 1.442695, %v5107_v42  ;;  %v5079_v23 = vsub.f32 %v16787_v6, %v4803_v60  ;;  %11014 = vpow2.f32 %v5541_v16  ;;  %v5605_v30 = vmul.f32 1.442695, %v5108_v33  ;;  %v16790_v33 = vld [vmem:[#allocation43_spill] sm:$0xff] }
 0x355   : > { %5972 = vadd.xlane.f32.xlu0 %v5971_v39  ;;  %9694 = vmatprep.subr.bf16.mxu0 %v10416_v32  ;;  %v10420_v39 = vld [vmem:[%s11938_s10 + $0x250] sm:$0xff]   ;;  %16786 = vst [vmem:[#allocation13_spill] sm:$0xff] %v14838_v11  ;;  %v14842_v58 = vpop.eup %10998  ;;  %v5080_v21 = vsub.f32 %v16789_v56, %v4803_v60  ;;  %v14845_v32 = vpop.xlane.xlu1 %4805  ;;  %11016 = vpow2.f32 %v5543_v31  ;;  %v5609_v16 = vmul.f32 1.442695, %v5110_v37  ;;  %v5977_v60 = vadd.f32 %v14733_v40, %v14727_v19  ;;  %v10425_v56 = vld [vmem:[%s11938_s10 + $0x218] sm:$0xff]   ;;  %v16800_v19 = vld [vmem:[#allocation55_spill] sm:$0xff] }
 0x356   : > { %9758 = vmatprep.subr.bf16.mxu1 %v10418_v46  ;;  %16788 = vst [vmem:[#allocation15_spill] sm:$0xff] %v14842_v58  ;;  %v10421_v46 = vld [vmem:[%s11938_s10 + $0x210] sm:$0xff]   ;;  %11018 = vpow2.f32 %v5545_v53  ;;  %v14858_v36 = vpop.eup %11000 }
 0x357   : > { %5975 = vadd.xlane.f32.xlu1 %v5974_v63  ;;  %v14847_v42 = vpop.xlane.xlu0 %4850  ;;  %v5081_v63 = vsub.f32 %v16790_v33, %v14845_v32  ;;  %v10423_v31 = vld [vmem:[%s11938_s10 + $0x290] sm:$0xff]   ;;  %16791 = vst [vmem:[#allocation185_spill] sm:$0xff] %v14858_v36  ;;  %11020 = vpow2.f32 %v5603_v15  ;;  %v14861_v53 = vpop.eup %11002  ;;  %v5549_v37 = vmul.f32 1.442695, %v5080_v21 }
 0x358   : > { %9695 = vmatpush3.bf16.msra.mxu0 %v10417_v41  ;;  %9759 = vmatpush3.bf16.msra.mxu1 %v10419_v24  ;;  %v10426_v41 = vld [vmem:[%s11938_s10 + $0x2d8] sm:$0xff]   ;;  %16792 = vst [vmem:[#allocation8_spill] sm:$0xff] %v14861_v53  ;;  %11022 = vpow2.f32 %v5605_v30  ;;  %v5980_v24 = vadd.f32 %v14743_v17, %v14739_v8  ;;  %v5983_v30 = vadd.f32 %v14794_v47, %v14785_v4 }
 0x359   : > { %5930 = vadd.xlane.f32.xlu0 %v5929_v35  ;;  %9696 = vmatprep.subr.bf16.mxu0 %v10420_v39  ;;  %v5547_v35 = vmul.f32 1.442695, %v5079_v23  ;;  %v14863_v6 = vpop.xlane.xlu1 %4853  ;;  %v11005_v39 = vpop.eup %11004  ;;  %11024 = vpow2.f32 %v5607_v13  ;;  %v5935_v23 = vadd.f32 %v14759_v52, %v14753_v54  ;;  %v16794_v13 = vld [vmem:[#allocation109_spill] sm:$0xff]  ;;  %v10427_v54 = vld [vmem:[%s11938_s10 + $0x298] sm:$0xff]   ;;  %v10428_v52 = vld [vmem:[%s11938_s10 + $0x260] sm:$0xff]  }
 0x35a   : > { %9760 = vmatprep.subr.bf16.mxu1 %v10422_v7  ;;  %v5938_v7 = vadd.f32 %v14771_v38, %v14763_v18  ;;  %v11007_v21 = vpop.eup %11006  ;;  %11026 = vpow2.f32 %v5609_v16  ;;  %v5111_v8 = vsub.f32 %v16794_v13, %v14847_v42  ;;  %v16795_v18 = vld [vmem:[#allocation224_spill] sm:$0xff] }
 0x35b   : > { %5933 = vadd.xlane.f32.xlu1 %v5932_v50  ;;  %v5745_v15 = vpop.xlane.xlu0 %5744  ;;  %v16793_v50 = vld [vmem:[#allocation110_spill] sm:$0xff]  ;;  %v11009_v17 = vpop.eup %11008  ;;  %11028 = vpow2.f32 %v5547_v35  ;;  %v5112_v4 = vsub.f32 %v16795_v18, %v14847_v42  ;;  %v16797_v16 = vld [vmem:[#allocation244_spill] sm:$0xff] }
 0x35c   : > { %9697 = vmatpush3.bf16.msra.mxu0 %v10421_v46  ;;  %v5082_v33 = vsub.f32 %v16793_v50, %v14845_v32  ;;  %9761 = vmatpush3.bf16.msra.mxu1 %v10423_v31  ;;  %v16796_v46 = vld [vmem:[#allocation243_spill] sm:$0xff]  ;;  %v6218_v38 = vmul.f32 %v11007_v21, %v16797_v16  ;;  %v11011_v32 = vpop.eup %11010  ;;  %11030 = vpow2.f32 %v5549_v37  ;;  %v16798_v31 = vld [vmem:[#allocation241_spill] sm:$0xff]  ;;  %v16799_v50 = vld [vmem:[#allocation52_spill] sm:$0xff]  ;;  %v6248_v35 = vmul.f32 %v11009_v17, %v16800_v19 }
 0x35d   : > { %5978 = vadd.xlane.f32.xlu0 %v5977_v60  ;;  %v5551_v60 = vmul.f32 1.442695, %v5081_v63  ;;  %9698 = vmatprep.subr.bf16.mxu0 %v10424_v34  ;;  %v6216_v47 = vmul.f32 %v11005_v39, %v16796_v46  ;;  %v5748_v63 = vpop.xlane.xlu1 %5747  ;;  %v6215_v34 = vmul.f32 %v11005_v39, %v16798_v31  ;;  %v6217_v13 = vmul.f32 %v11007_v21, %v16799_v50  ;;  %v14887_v40 = vpop.eup %11012  ;;  %v16803_v16 = vld [vmem:[#allocation245_spill] sm:$0xff]  ;;  %v10429_v37 = vld [vmem:[%s11938_s10 + $0x220] sm:$0xff]  }
 0x35e   : > { %9762 = vmatprep.subr.bf16.mxu1 %v10426_v41  ;;  %16801 = vst [vmem:[#allocation178_spill] sm:$0xff] %v14887_v40  ;;  %v6247_v59 = vmul.f32 %v11009_v17, %v16803_v16  ;;  %v16804_v41 = vld [vmem:[#allocation57_spill] sm:$0xff]  ;;  %v5553_v39 = vmul.f32 1.442695, %v5082_v33  ;;  %v16808_v17 = vld [vmem:[#allocation115_spill] sm:$0xff] }
 0x35f   : > { %5981 = vadd.xlane.f32.xlu1 %v5980_v24  ;;  %v6438_v18 = vpack.c.bf16 %v6218_v38, %v6216_v47  ;;  %v5793_v42 = vpop.xlane.xlu0 %5792  ;;  %v16802_v24 = vld [vmem:[#allocation248_spill] sm:$0xff]  ;;  %v6249_v61 = vmul.f32 %v11011_v32, %v16804_v41  ;;  %11032 = vpow2.f32 %v5551_v60  ;;  %v16806_v19 = vld [vmem:[#allocation113_spill] sm:$0xff]  ;;  %v6437_v31 = vpack.c.bf16 %v6217_v13, %v6215_v34  ;;  %v10430_v47 = vld [vmem:[%s11938_s10 + $0x2e0] sm:$0xff]  }
 0x360   : > { %v6250_v46 = vmul.f32 %v11011_v32, %v16802_v24  ;;  %9699 = vmatpush3.bf16.msra.mxu0 %v10425_v56  ;;  %v5113_v21 = vsub.f32 %v16806_v19, %v14863_v6  ;;  %9763 = vmatpush3.bf16.msra.mxu1 %v10427_v54  ;;  %v5114_v32 = vsub.f32 %v16808_v17, %v14863_v6  ;;  %11034 = vrcp.f32 %v5745_v15  ;;  %v10431_v60 = vld [vmem:[%s11938_s10 + $0x2a0] sm:$0xff]   ;;  %v10434_v15 = vld [vmem:[%s11938_s10 + $0x2e8] sm:$0xff]  }
 0x361   : > { %5936 = vadd.xlane.f32.xlu0 %v5935_v23  ;;  %v14893_v23 = vpop.eup %11014  ;;  %9700 = vmatprep.subr.bf16.mxu0 %v10428_v52  ;;  %v6453_v50 = vpack.c.bf16 %v6249_v61, %v6247_v59  ;;  %v5611_v34 = vmul.f32 1.442695, %v5111_v8  ;;  %11036 = vrcp.f32 %v5748_v63  ;;  %v5796_v54 = vpop.xlane.xlu1 %5795  ;;  %v10432_v52 = vld [vmem:[%s11938_s10 + $0x268] sm:$0xff]   ;;  %v5613_v24 = vmul.f32 1.442695, %v5112_v4  ;;  %v16810_v4 = vld [vmem:[#allocation126_spill] sm:$0xff] }
 0x362   : > { %16805 = vst [vmem:[#allocation190_spill] sm:$0xff] %v14893_v23  ;;  %v14898_v38 = vpop.eup %11016  ;;  %7053 = vmatprep.mubr.bf16.mxu0 %v6438_v18  ;;  %v6454_v56 = vpack.c.bf16 %v6250_v46, %v6248_v35  ;;  %11038 = vrcp.f32 %v5793_v42  ;;  %v5986_v59 = vadd.f32 %v14808_v44, %v14799_v28  ;;  %v5941_v61 = vadd.f32 %v14819_v22, %v14814_v14  ;;  %v10433_v8 = vld [vmem:[%s11938_s10 + $0x228] sm:$0xff]   ;;  %v16811_v35 = vld [vmem:[#allocation129_spill] sm:$0xff] }
 0x363   : > { %16807 = vst [vmem:[#allocation182_spill] sm:$0xff] %v14898_v38  ;;  %5939 = vadd.xlane.f32.xlu1 %v5938_v7  ;;  %v14903_v33 = vpop.eup %11018  ;;  %7054 = vmatmul.mubr.bf16.gmra.mrb[164].mxu0 %v6437_v31  ;;  %v4809_v6 = vpop.xlane.xlu0 %4808  ;;  %11040 = vrcp.f32 %v5796_v54  ;;  %v10436_v42 = vld [vmem:[%s11938_s10 + $0x270] sm:$0xff]   ;;  %v5617_v16 = vmul.f32 1.442695, %v5114_v32  ;;  %v10435_v41 = vld [vmem:[%s11938_s10 + $0x2a8] sm:$0xff]   ;;  %v5944_v31 = vadd.f32 %v14830_v49, %v14823_v20  ;;  %v16812_v32 = vld [vmem:[#allocation234_spill] sm:$0xff] }
 0x364   : > { %16809 = vst [vmem:[#allocation184_spill] sm:$0xff] %v14903_v33  ;;  %v14906_v13 = vpop.eup %11020  ;;  %7246 = vmatprep.mubr.bf16.mxu1 %v6454_v56  ;;  %9701 = vmatpush3.bf16.msra.mxu0 %v10429_v37  ;;  %v5083_v63 = vsub.f32 %v16810_v4, %v4809_v6  ;;  %v5084_v18 = vsub.f32 %v16811_v35, %v4809_v6  ;;  %11042 = vpow2.f32 %v5553_v39 }
 0x365   : > { %5984 = vadd.xlane.f32.xlu0 %v5983_v30  ;;  %v14914_v7 = vpop.eup %11022  ;;  %v5615_v30 = vmul.f32 1.442695, %v5113_v21  ;;  %7247 = vmatmul.mubr.bf16.gmra.mrb[164].mxu1 %v6453_v50  ;;  %11044 = vpow2.f32 %v5611_v34  ;;  %v4812_v21 = vpop.xlane.xlu1 %4811  ;;  %v16813_v50 = vld [vmem:[#allocation233_spill] sm:$0xff] }
 0x366   : > { %9764 = vmatprep.subr.bf16.mxu1 %v10430_v47  ;;  %v14919_v46 = vpop.eup %11024  ;;  %v5555_v19 = vmul.f32 1.442695, %v5083_v63  ;;  %9702 = vmatprep.subr.bf16.mxu0 %v10432_v52  ;;  %v10438_v47 = vld [vmem:[%s11938_s10 + $0x2f0] sm:$0xff]   ;;  %11046 = vpow2.f32 %v5613_v24  ;;  %v5557_v39 = vmul.f32 1.442695, %v5084_v18  ;;  %v5085_v56 = vsub.f32 %v16812_v32, %v4812_v21  ;;  %v10440_v63 = vld [vmem:[%s11938_s10 + $0x278] sm:$0xff]  }
 0x367   : > { %5987 = vadd.xlane.f32.xlu1 %v5986_v59  ;;  %9765 = vmatpush3.bf16.msra.mxu1 %v10431_v60  ;;  %v14922_v37 = vpop.eup %11026  ;;  %v5086_v60 = vsub.f32 %v16813_v50, %v4812_v21  ;;  %v4857_v54 = vpop.xlane.xlu0 %4856  ;;  %v10437_v34 = vld [vmem:[%s11938_s10 + $0x230] sm:$0xff]   ;;  %11048 = vpow2.f32 %v5615_v30  ;;  %v16814_v59 = vld [vmem:[#allocation114_spill] sm:$0xff]  ;;  %v5989_v24 = vadd.f32 %v14842_v58, %v14838_v11 }
 0x368   : > { %v14927_v17 = vpop.eup %11028  ;;  %9703 = vmatpush3.bf16.msra.mxu0 %v10433_v8  ;;  %9766 = vmatprep.subr.bf16.mxu1 %v10434_v15  ;;  %v5115_v52 = vsub.f32 %v16814_v59, %v4857_v54  ;;  %11050 = vpow2.f32 %v5617_v16  ;;  %v5559_v35 = vmul.f32 1.442695, %v5085_v56  ;;  %v10439_v8 = vld [vmem:[%s11938_s10 + $0x2b0] sm:$0xff]   ;;  %v10442_v32 = vld [vmem:[%s11938_s10 + $0x2f8] sm:$0xff]   ;;  %v5992_v16 = vadd.f32 %v14861_v53, %v14858_v36  ;;  %v10444_v59 = vld [vmem:[%s11938_s10 + $0x340] sm:$0xff]  }
 0x369   : > { %5942 = vadd.xlane.f32.xlu0 %v5941_v61  ;;  %v14932_v6 = vpop.eup %11030  ;;  %v16815_v61 = vld [vmem:[#allocation127_spill] sm:$0xff]  ;;  %9704 = vmatprep.subr.bf16.mxu0 %v10436_v42  ;;  %v5561_v18 = vmul.f32 1.442695, %v5086_v60  ;;  %11052 = vpow2.f32 %v5555_v19  ;;  %v4860_v21 = vpop.xlane.xlu1 %4859  ;;  %v16816_v60 = vld [vmem:[#allocation128_spill] sm:$0xff]  ;;  %v16825_v53 = vld [vmem:[#allocation65_spill] sm:$0xff] }
 0x36a   : > { %v5116_v4 = vsub.f32 %v16815_v61, %v4857_v54  ;;  %v14940_v15 = vpop.eup %11032  ;;  %v5619_v30 = vmul.f32 1.442695, %v5115_v52  ;;  %11054 = vpow2.f32 %v5557_v39  ;;  %v5117_v54 = vsub.f32 %v16816_v60, %v4860_v21  ;;  %v16817_v52 = vld [vmem:[#allocation132_spill] sm:$0xff]  ;;  %v16820_v60 = vld [vmem:[#allocation59_spill] sm:$0xff] }
 0x36b   : > { %5945 = vadd.xlane.f32.xlu1 %v5944_v31  ;;  %9767 = vmatpush3.bf16.msra.mxu1 %v10435_v41  ;;  %v11035_v50 = vpop.eup %11034  ;;  %v5751_v42 = vpop.xlane.xlu0 %5750  ;;  %v5947_v31 = vadd.f32 %v14893_v23, %v14887_v40  ;;  %v10441_v41 = vld [vmem:[%s11938_s10 + $0x238] sm:$0xff]   ;;  %11056 = vpow2.f32 %v5559_v35  ;;  %v5118_v61 = vsub.f32 %v16817_v52, %v4860_v21  ;;  %v16819_v40 = vld [vmem:[#allocation60_spill] sm:$0xff] }
 0x36c   : > { %9768 = vmatprep.subr.bf16.mxu1 %v10438_v47  ;;  %9705 = vmatpush3.bf16.msra.mxu0 %v10437_v34  ;;  %v11037_v56 = vpop.eup %11036  ;;  %v5621_v19 = vmul.f32 1.442695, %v5116_v4  ;;  %v5950_v47 = vadd.f32 %v14903_v33, %v14898_v38  ;;  %11058 = vpow2.f32 %v5561_v18  ;;  %v6219_v23 = vmul.f32 %v11035_v50, %v16820_v60  ;;  %v16821_v38 = vld [vmem:[#allocation58_spill] sm:$0xff] }
 0x36d   : > { %5990 = vadd.xlane.f32.xlu0 %v5989_v24  ;;  %9706 = vmatprep.subr.bf16.mxu0 %v10440_v63  ;;  %v11039_v39 = vpop.eup %11038  ;;  %v16818_v24 = vld [vmem:[#allocation56_spill] sm:$0xff]  ;;  %v6222_v34 = vmul.f32 %v11037_v56, %v16819_v40  ;;  %11060 = vpow2.f32 %v5619_v30  ;;  %v5754_v4 = vpop.xlane.xlu1 %5753  ;;  %v6221_v63 = vmul.f32 %v11037_v56, %v16821_v38  ;;  %v16822_v33 = vld [vmem:[#allocation62_spill] sm:$0xff] }
 0x36e   : > { %v6220_v36 = vmul.f32 %v11035_v50, %v16818_v24  ;;  %v11041_v35 = vpop.eup %11040  ;;  %v6252_v18 = vmul.f32 %v11039_v39, %v16822_v33  ;;  %v16823_v24 = vld [vmem:[#allocation19_spill] sm:$0xff]  ;;  %11062 = vpow2.f32 %v5621_v19  ;;  %v5995_v33 = vadd.f32 %v14914_v7, %v14906_v13 }
 0x36f   : > { %5993 = vadd.xlane.f32.xlu1 %v5992_v16  ;;  %9769 = vmatpush3.bf16.msra.mxu1 %v10439_v8  ;;  %v14958_v21 = vpop.eup %11042  ;;  %v5799_v52 = vpop.xlane.xlu0 %5798  ;;  %v6254_v40 = vmul.f32 %v11041_v35, %v16823_v24  ;;  %v16824_v8 = vld [vmem:[#allocation61_spill] sm:$0xff]  ;;  %v6253_v30 = vmul.f32 %v11041_v35, %v16825_v53  ;;  %v6439_v38 = vpack.c.bf16 %v6221_v63, %v6219_v23  ;;  %11064 = vrcp.f32 %v5751_v42  ;;  %v16834_v24 = vld [vmem:[#allocation119_spill] sm:$0xff] }
 0x370   : > { %9770 = vmatprep.subr.bf16.mxu1 %v10442_v32  ;;  %v6440_v16 = vpack.c.bf16 %v6222_v34, %v6220_v36  ;;  %v6251_v11 = vmul.f32 %v11039_v39, %v16824_v8  ;;  %9707 = vmatpush3.bf16.msra.mxu0 %v10441_v41  ;;  %v14964_v58 = vpop.eup %11044  ;;  %v10446_v32 = vld [vmem:[%s11938_s10 + $0x3c0] sm:$0xff]   ;;  %v5623_v36 = vmul.f32 1.442695, %v5117_v54  ;;  %v5625_v41 = vmul.f32 1.442695, %v5118_v61  ;;  %v16830_v61 = vld [vmem:[#allocation117_spill] sm:$0xff] }
 0x371   : > { %5948 = vadd.xlane.f32.xlu0 %v5947_v31  ;;  %v10443_v31 = vld [vmem:[%s11938_s10 + $0x2b8] sm:$0xff]   ;;  %9820 = vmatprep.subr.bf16.mxu0 %v10444_v59  ;;  %v14969_v50 = vpop.eup %11046  ;;  %v6456_v56 = vpack.c.bf16 %v6254_v40, %v6252_v18  ;;  %11066 = vrcp.f32 %v5754_v4  ;;  %v5802_v19 = vpop.xlane.xlu1 %5801  ;;  %v5998_v54 = vadd.f32 %v14922_v37, %v14919_v46  ;;  %v5953_v35 = vadd.f32 %v14932_v6, %v14927_v17  ;;  %v16835_v8 = vld [vmem:[#allocation141_spill] sm:$0xff] }
 0x372   : > { %7061 = vmatprep.mubr.bf16.mxu0 %v6440_v16  ;;  %v6455_v39 = vpack.c.bf16 %v6253_v30, %v6251_v11  ;;  %v14971_v53 = vpop.eup %11048  ;;  %11068 = vrcp.f32 %v5799_v52  ;;  %v16829_v11 = vld [vmem:[#allocation116_spill] sm:$0xff] }
 0x373   : > { %5951 = vadd.xlane.f32.xlu1 %v5950_v47  ;;  %16826 = vst [vmem:[#allocation181_spill] sm:$0xff] %v14971_v53  ;;  %7062 = vmatmul.mubr.bf16.gmra.mrb[168].mxu0 %v6439_v38  ;;  %v14973_v23 = vpop.eup %11050  ;;  %v4815_v59 = vpop.xlane.xlu0 %4814  ;;  %11070 = vrcp.f32 %v5802_v19  ;;  %v5956_v38 = vadd.f32 %v14958_v21, %v14940_v15 }
 0x374   : > { %16827 = vst [vmem:[#allocation183_spill] sm:$0xff] %v14973_v23  ;;  %7254 = vmatprep.mubr.bf16.mxu1 %v6456_v56  ;;  %9771 = vmatpush3.bf16.msra.mxu1 %v10443_v31  ;;  %v14977_v42 = vpop.eup %11052  ;;  %v5087_v47 = vsub.f32 %v16829_v11, %v4815_v59  ;;  %v5088_v34 = vsub.f32 %v16830_v61, %v4815_v59  ;;  %11072 = vpow2.f32 %v5623_v36  ;;  %v16838_v56 = vld [vmem:[#allocation51_spill] sm:$0xff] }
 0x375   : > { %5996 = vadd.xlane.f32.xlu0 %v5995_v33  ;;  %16828 = vst [vmem:[#allocation191_spill] sm:$0xff] %v14977_v42  ;;  %7255 = vmatmul.mubr.bf16.gmra.mrb[168].mxu1 %v6455_v39  ;;  %v14983_v4 = vpop.eup %11054  ;;  %11074 = vpow2.f32 %v5625_v41  ;;  %v4818_v16 = vpop.xlane.xlu1 %4817  ;;  %v6001_v41 = vadd.f32 %v14969_v50, %v14964_v58 }
 0x376   : > { %9884 = vmatprep.subr.bf16.mxu1 %v10446_v32  ;;  %16831 = vst [vmem:[#allocation196_spill] sm:$0xff] %v14983_v4  ;;  %v14985_v60 = vpop.eup %11056  ;;  %v5563_v63 = vmul.f32 1.442695, %v5087_v47  ;;  %v5565_v18 = vmul.f32 1.442695, %v5088_v34  ;;  %v5089_v40 = vsub.f32 %v16834_v24, %v4818_v16  ;;  %v5090_v30 = vsub.f32 %v16835_v8, %v4818_v16  ;;  %v16837_v32 = vld [vmem:[#allocation173_spill] sm:$0xff] }
 0x377   : > { %5999 = vadd.xlane.f32.xlu1 %v5998_v54  ;;  %16832 = vst [vmem:[#allocation198_spill] sm:$0xff] %v14985_v60  ;;  %v14987_v52 = vpop.eup %11058  ;;  %v4863_v31 = vpop.xlane.xlu0 %4862  ;;  %v6004_v34 = vadd.f32 %v14973_v23, %v14971_v53  ;;  %v16840_v24 = vld [vmem:[#allocation121_spill] sm:$0xff]  ;;  %v16845_v53 = vld [vmem:[#allocation71_spill] sm:$0xff]  ;;  %v16846_v23 = vld [vmem:[#allocation70_spill] sm:$0xff] }
 0x378   : > { %16833 = vst [vmem:[#allocation199_spill] sm:$0xff] %v14987_v52  ;;  %v14993_v33 = vpop.eup %11060  ;;  %11076 = vpow2.f32 %v5563_v63  ;;  %v5119_v36 = vsub.f32 %v16837_v32, %v4863_v31  ;;  %v5120_v39 = vsub.f32 %v16838_v56, %v4863_v31  ;;  %v5567_v19 = vmul.f32 1.442695, %v5089_v40  ;;  %v16839_v63 = vld [vmem:[#allocation142_spill] sm:$0xff]  ;;  %v16842_v32 = vld [vmem:[#allocation16_spill] sm:$0xff] }
 0x379   : > { %5954 = vadd.xlane.f32.xlu0 %v5953_v35  ;;  %16836 = vst [vmem:[#allocation27_spill] sm:$0xff] %v14993_v33  ;;  %11078 = vpow2.f32 %v5565_v18  ;;  %v5569_v59 = vmul.f32 1.442695, %v5090_v30  ;;  %v14999_v54 = vpop.eup %11062  ;;  %v4866_v61 = vpop.xlane.xlu1 %4865  ;;  %v5959_v18 = vadd.f32 %v14983_v4, %v14977_v42  ;;  %v16841_v30 = vld [vmem:[#allocation67_spill] sm:$0xff]  ;;  %v5962_v56 = vadd.f32 %v14987_v52, %v14985_v60  ;;  %v16844_v4 = vld [vmem:[#allocation68_spill] sm:$0xff] }
 0x37a   : > { %v5627_v11 = vmul.f32 1.442695, %v5119_v36  ;;  %v5629_v47 = vmul.f32 1.442695, %v5120_v39  ;;  %v11065_v35 = vpop.eup %11064  ;;  %11080 = vpow2.f32 %v5567_v19  ;;  %v5121_v16 = vsub.f32 %v16839_v63, %v4866_v61  ;;  %v16843_v63 = vld [vmem:[#allocation69_spill] sm:$0xff] }
 0x37b   : > { %5957 = vadd.xlane.f32.xlu1 %v5956_v38  ;;  %v5122_v8 = vsub.f32 %v16840_v24, %v4866_v61  ;;  %v5757_v31 = vpop.xlane.xlu0 %5756  ;;  %v11067_v40 = vpop.eup %11066  ;;  %11082 = vpow2.f32 %v5569_v59  ;;  %v6224_v38 = vmul.f32 %v11065_v35, %v16841_v30  ;;  %v6223_v36 = vmul.f32 %v11065_v35, %v16842_v32 }
 0x37c   : > { %v11069_v39 = vpop.eup %11068  ;;  %11084 = vpow2.f32 %v5627_v11  ;;  %v6226_v61 = vmul.f32 %v11067_v40, %v16843_v63  ;;  %v6225_v59 = vmul.f32 %v11067_v40, %v16844_v4  ;;  %v6007_v4 = vadd.f32 %v14999_v54, %v14993_v33 }
 0x37d   : > { %6002 = vadd.xlane.f32.xlu0 %v6001_v41  ;;  %v5631_v41 = vmul.f32 1.442695, %v5121_v16  ;;  %v5633_v19 = vmul.f32 1.442695, %v5122_v8  ;;  %v11071_v24 = vpop.eup %11070  ;;  %11086 = vpow2.f32 %v5629_v47  ;;  %v5760_v42 = vpop.xlane.xlu1 %5759  ;;  %v6256_v30 = vmul.f32 %v11069_v39, %v16845_v53  ;;  %v16848_v16 = vld [vmem:[#allocation18_spill] sm:$0xff] }
 0x37e   : > { %v6255_v35 = vmul.f32 %v11069_v39, %v16846_v23  ;;  %v15015_v32 = vpop.eup %11072  ;;  %v6442_v60 = vpack.c.bf16 %v6226_v61, %v6224_v38  ;;  %v6258_v8 = vmul.f32 %v11071_v24, %v16848_v16  ;;  %v6441_v47 = vpack.c.bf16 %v6225_v59, %v6223_v36 }
 0x37f   : > { %6005 = vadd.xlane.f32.xlu1 %v6004_v34  ;;  %16847 = vst [vmem:[#allocation203_spill] sm:$0xff] %v15015_v32  ;;  %11088 = vpow2.f32 %v5631_v41  ;;  %v5805_v11 = vpop.xlane.xlu0 %5804  ;;  %v16849_v34 = vld [vmem:[#allocation73_spill] sm:$0xff]  ;;  %v15019_v63 = vpop.eup %11074 }
 0x380   : > { %v6257_v52 = vmul.f32 %v11071_v24, %v16849_v34  ;;  %11090 = vpow2.f32 %v5633_v19  ;;  %7069 = vmatprep.mubr.bf16.mxu0 %v6442_v60  ;;  %v6458_v53 = vpack.c.bf16 %v6258_v8, %v6256_v30  ;;  %v6010_v36 = vadd.f32 %v15019_v63, %v15015_v32 }
 0x381   : > { %5960 = vadd.xlane.f32.xlu0 %v5959_v18  ;;  %11092 = vrcp.f32 %v5757_v31  ;;  %7070 = vmatmul.mubr.bf16.gmra.mrb[172].mxu0 %v6441_v47  ;;  %v5808_v40 = vpop.xlane.xlu1 %5807 }
 0x382   : > { %v6457_v23 = vpack.c.bf16 %v6257_v52, %v6255_v35  ;;  %v15023_v18 = vpop.eup %11076  ;;  %11094 = vrcp.f32 %v5760_v42  ;;  %7262 = vmatprep.mubr.bf16.mxu1 %v6458_v53 }
 0x383   : > { %5963 = vadd.xlane.f32.xlu1 %v5962_v56  ;;  %16850 = vst [vmem:[#allocation212_spill] sm:$0xff] %v15023_v18  ;;  %v15025_v38 = vpop.eup %11078  ;;  %11096 = vrcp.f32 %v5805_v11  ;;  %v5763_v39 = vpop.xlane.xlu0 %5762 }
 0x384   : > { %16851 = vst [vmem:[#allocation216_spill] sm:$0xff] %v15025_v38  ;;  %11098 = vrcp.f32 %v5808_v40  ;;  %7263 = vmatmul.mubr.bf16.gmra.mrb[172].mxu1 %v6457_v23  ;;  %v5965_v60 = vadd.f32 %v15025_v38, %v15023_v18  ;;  %v15031_v52 = vpop.eup %11080  ;;  %v16859_v23 = vld [vmem:[#allocation77_spill] sm:$0xff] }
 0x385   : > { %6008 = vadd.xlane.f32.xlu0 %v6007_v4  ;;  %16852 = vst [vmem:[#allocation217_spill] sm:$0xff] %v15031_v52  ;;  %11100 = vrcp.f32 %v5763_v39  ;;  %v15033_v42 = vpop.eup %11082  ;;  %v5766_v31 = vpop.xlane.xlu1 %5765  ;;  %v16858_v4 = vld [vmem:[#allocation187_spill] sm:$0xff]  ;;  %v16860_v39 = vld [vmem:[#allocation20_spill] sm:$0xff] }
 0x386   : > { %16853 = vst [vmem:[#allocation221_spill] sm:$0xff] %v15033_v42  ;;  %v15035_v56 = vpop.eup %11084  ;;  %11102 = vrcp.f32 %v5766_v31  ;;  %v5968_v19 = vadd.f32 %v15033_v42, %v15031_v52  ;;  %v16865_v52 = vld [vmem:[#allocation78_spill] sm:$0xff] }
 0x387   : > { %6011 = vadd.xlane.f32.xlu1 %v6010_v36  ;;  %16854 = vst [vmem:[#allocation218_spill] sm:$0xff] %v15035_v56  ;;  %v5811_v41 = vpop.xlane.xlu0 %5810  ;;  %v15039_v61 = vpop.eup %11086 }
 0x388   : > { %16855 = vst [vmem:[#allocation219_spill] sm:$0xff] %v15039_v61  ;;  %11104 = vrcp.f32 %v5811_v41  ;;  %v6013_v59 = vadd.f32 %v15039_v61, %v15035_v56 }
 0x389   : > { %5966 = vadd.xlane.f32.xlu0 %v5965_v60  ;;  %v15041_v24 = vpop.eup %11088  ;;  %v5814_v35 = vpop.xlane.xlu1 %5813  ;;  %v16861_v60 = vld [vmem:[#allocation74_spill] sm:$0xff] }
 0x38a   : > { %16856 = vst [vmem:[#allocation189_spill] sm:$0xff] %v15041_v24  ;;  %v15045_v30 = vpop.eup %11090  ;;  %11106 = vrcp.f32 %v5814_v35 }
 0x38b   : > { %5969 = vadd.xlane.f32.xlu1 %v5968_v19  ;;  %16857 = vst [vmem:[#allocation195_spill] sm:$0xff] %v15045_v30  ;;  %v11093_v11 = vpop.eup %11092  ;;  %v5769_v16 = vpop.xlane.xlu0 %5768  ;;  %v6016_v8 = vadd.f32 %v15045_v30, %v15041_v24 }
 0x38c   : > { %v11095_v34 = vpop.eup %11094  ;;  %11108 = vrcp.f32 %v5769_v16  ;;  %v6228_v53 = vmul.f32 %v11093_v11, %v16858_v4  ;;  %v6227_v36 = vmul.f32 %v11093_v11, %v16860_v39  ;;  %v16863_v16 = vld [vmem:[#allocation83_spill] sm:$0xff] }
 0x38d   : > { %6014 = vadd.xlane.f32.xlu0 %v6013_v59  ;;  %v11097_v47 = vpop.eup %11096  ;;  %v6230_v40 = vmul.f32 %v11095_v34, %v16859_v23  ;;  %v6229_v31 = vmul.f32 %v11095_v34, %v16861_v60  ;;  %v16862_v59 = vld [vmem:[#allocation22_spill] sm:$0xff] }
 0x38e   : > { %v11099_v41 = vpop.eup %11098  ;;  %v5772_v19 = vpop.xlane.xlu1 %5771  ;;  %v6260_v35 = vmul.f32 %v11097_v47, %v16862_v59  ;;  %v16866_v59 = vld [vmem:[#allocation82_spill] sm:$0xff] }
 0x38f   : > { %6017 = vadd.xlane.f32.xlu1 %v6016_v8  ;;  %v11101_v56 = vpop.eup %11100  ;;  %v6444_v61 = vpack.c.bf16 %v6230_v40, %v6228_v53  ;;  %11110 = vrcp.f32 %v5772_v19  ;;  %v6443_v30 = vpack.c.bf16 %v6229_v31, %v6227_v36  ;;  %v6262_v18 = vmul.f32 %v11099_v41, %v16863_v16  ;;  %v16864_v8 = vld [vmem:[#allocation21_spill] sm:$0xff]  ;;  %v16867_v53 = vld [vmem:[#allocation24_spill] sm:$0xff] }
 0x390   : > { %v6259_v4 = vmul.f32 %v11097_v47, %v16864_v8  ;;  %v6261_v23 = vmul.f32 %v11099_v41, %v16865_v52  ;;  %v11103_v42 = vpop.eup %11102  ;;  %v6232_v38 = vmul.f32 %v11101_v56, %v16866_v59  ;;  %v16868_v19 = vld [vmem:[#allocation84_spill] sm:$0xff] }
 0x391   : > { %v5817_v24 = vpop.xlane.xlu0 %5816  ;;  %7077 = vmatprep.mubr.bf16.mxu0 %v6444_v61  ;;  %v6460_v11 = vpack.c.bf16 %v6262_v18, %v6260_v35  ;;  %v6234_v40 = vmul.f32 %v11103_v42, %v16867_v53  ;;  %v6233_v36 = vmul.f32 %v11103_v42, %v16868_v19  ;;  %v16869_v31 = vld [vmem:[#allocation80_spill] sm:$0xff]  ;;  %v16873_v42 = vld [vmem:[#allocation29_spill] sm:$0xff] }
 0x392   : > { %11112 = vrcp.f32 %v5817_v24  ;;  %v11105_v34 = vpop.eup %11104  ;;  %7078 = vmatmul.mubr.bf16.gmra.mrb[176].mxu0 %v6443_v30  ;;  %v5820_v39 = vpop.xlane.xlu1 %5819  ;;  %v6459_v60 = vpack.c.bf16 %v6261_v23, %v6259_v4  ;;  %v6231_v52 = vmul.f32 %v11101_v56, %v16869_v31  ;;  %v16870_v18 = vld [vmem:[#allocation200_spill] sm:$0xff]  ;;  %v16872_v23 = vld [vmem:[#allocation26_spill] sm:$0xff]  ;;  %v16874_v19 = vld [vmem:[#allocation33_spill] sm:$0xff] }
 0x393   : > { %7270 = vmatprep.mubr.bf16.mxu1 %v6460_v11  ;;  %11114 = vrcp.f32 %v5820_v39  ;;  %v6446_v47 = vpack.c.bf16 %v6234_v40, %v6232_v38  ;;  %v6264_v61 = vmul.f32 %v11105_v34, %v16870_v18  ;;  %v16871_v8 = vld [vmem:[#allocation88_spill] sm:$0xff]  ;;  %v6263_v59 = vmul.f32 %v11105_v34, %v16872_v23  ;;  %v16876_v31 = vld [vmem:[#allocation90_spill] sm:$0xff]  ;;  %v16877_v18 = vld [vmem:[#allocation31_spill] sm:$0xff] }
 0x394   : > { %7271 = vmatmul.mubr.bf16.gmra.mrb[176].mxu1 %v6459_v60  ;;  %v11107_v41 = vpop.eup %11106  ;;  %v6445_v16 = vpack.c.bf16 %v6233_v36, %v6231_v52 }
 0x395   : > { %v5775_v24 = vpop.xlane.xlu0 %5774  ;;  %7085 = vmatprep.mubr.bf16.mxu0 %v6446_v47  ;;  %v6266_v4 = vmul.f32 %v11107_v41, %v16871_v8  ;;  %v6265_v11 = vmul.f32 %v11107_v41, %v16873_v42  ;;  %v16875_v47 = vld [vmem:[#allocation92_spill] sm:$0xff] }
 0x396   : > { %11116 = vrcp.f32 %v5775_v24  ;;  %v11109_v30 = vpop.eup %11108  ;;  %v5778_v35 = vpop.xlane.xlu1 %5777 }
 0x397   : > { %11118 = vrcp.f32 %v5778_v35  ;;  %v6462_v38 = vpack.c.bf16 %v6266_v4, %v6264_v61  ;;  %v6461_v60 = vpack.c.bf16 %v6265_v11, %v6263_v59  ;;  %v6236_v24 = vmul.f32 %v11109_v30, %v16874_v19  ;;  %v16878_v61 = vld [vmem:[#allocation95_spill] sm:$0xff]  ;;  %v16880_v11 = vld [vmem:[#allocation250_spill] sm:$0xff] }
 0x398   : > { %v6235_v35 = vmul.f32 %v11109_v30, %v16877_v18  ;;  %v16879_v59 = vld [vmem:[#allocation99_spill] sm:$0xff] }
 0x399   : > { %v5823_v39 = vpop.xlane.xlu0 %5822  ;;  %v11111_v56 = vpop.eup %11110  ;;  %7278 = vmatprep.mubr.bf16.mxu1 %v6462_v38  ;;  %v16881_v38 = vld [vmem:[#allocation97_spill] sm:$0xff]  ;;  %v16883_v18 = vld [vmem:[#allocation207_spill] sm:$0xff] }
 0x39a   : > { %11120 = vrcp.f32 %v5823_v39  ;;  %7086 = vmatmul.mubr.bf16.gmra.mrb[180].mxu0 %v6445_v16  ;;  %v6238_v36 = vmul.f32 %v11111_v56, %v16875_v47  ;;  %v6237_v52 = vmul.f32 %v11111_v56, %v16876_v31 }
 0x39b   : > { %v5826_v40 = vpop.xlane.xlu1 %5825 }
 0x39c   : > { %v11113_v53 = vpop.eup %11112  ;;  %11122 = vrcp.f32 %v5826_v40  ;;  %7279 = vmatmul.mubr.bf16.gmra.mrb[180].mxu1 %v6461_v60  ;;  %v6448_v41 = vpack.c.bf16 %v6238_v36, %v6236_v24  ;;  %v6447_v23 = vpack.c.bf16 %v6237_v52, %v6235_v35  ;;  %v16882_v52 = vld [vmem:[#allocation35_spill] sm:$0xff] }
 0x39d   : > { %v5829_v34 = vpop.xlane.xlu0 %5828  ;;  %v11115_v8 = vpop.eup %11114  ;;  %v6268_v4 = vmul.f32 %v11113_v53, %v16878_v61  ;;  %v6267_v39 = vmul.f32 %v11113_v53, %v16880_v11  ;;  %v16884_v53 = vld [vmem:[#allocation208_spill] sm:$0xff]  ;;  %v16885_v11 = vld [vmem:[#allocation205_spill] sm:$0xff] }
 0x39e   : > { %11124 = vrcp.f32 %v5829_v34  ;;  %7093 = vmatprep.mubr.bf16.mxu0 %v6448_v41  ;;  %v6270_v42 = vmul.f32 %v11115_v8, %v16879_v59  ;;  %v6269_v19 = vmul.f32 %v11115_v8, %v16881_v38 }
 0x39f   : > { %v5832_v16 = vpop.xlane.xlu1 %5831  ;;  %v9452_v47 = vpop.f32.mrb[128].mxu0 }
 0x3a0   : > { %v11117_v56 = vpop.eup %11116  ;;  %11126 = vrcp.f32 %v5832_v16  ;;  %v6464_v60 = vpack.c.bf16 %v6270_v42, %v6268_v4  ;;  %v6463_v24 = vpack.c.bf16 %v6269_v19, %v6267_v39  ;;  %v9453_v34 = vpop.f32.mrb[129].mxu0 }
 0x3a1   : > { %v5877_v40 = vpop.xlane.xlu0 %5876  ;;  %v11119_v30 = vpop.eup %11118  ;;  %v6240_v41 = vmul.f32 %v11117_v56, %v16882_v52  ;;  %v9454_v16 = vadd.f32 %v9453_v34, %v9452_v47  ;;  %v6239_v39 = vmul.f32 %v11117_v56, %v16885_v11  ;;  %v16889_v34 = vld [vmem:[#allocation213_spill] sm:$0xff] }
 0x3a2   : > { %11128 = vrcp.f32 %v5877_v40  ;;  %7094 = vmatmul.mubr.bf16.gmra.mrb[184].mxu0 %v6447_v23  ;;  %7286 = vmatprep.mubr.bf16.mxu1 %v6464_v60  ;;  %v6242_v35 = vmul.f32 %v11119_v30, %v16883_v18  ;;  %v6241_v61 = vmul.f32 %v11119_v30, %v16884_v53  ;;  %v9455_v59 = vpop.f32.mrb[130].mxu0  ;;  %v16886_v40 = vld [vmem:[#allocation103_spill] sm:$0xff]  ;;  %v16887_v30 = vld [vmem:[#allocation214_spill] sm:$0xff]  ;;  %v16888_v53 = vld [vmem:[#allocation101_spill] sm:$0xff] }
 0x3a3   : > { %v5880_v31 = vpop.xlane.xlu1 %5879  ;;  %v9456_v4 = vpop.f32.mrb[131].mxu0 }
 0x3a4   : > { %v11121_v36 = vpop.eup %11120  ;;  %11130 = vrcp.f32 %v5880_v31  ;;  %7287 = vmatmul.mubr.bf16.gmra.mrb[184].mxu1 %v6463_v24  ;;  %v6450_v42 = vpack.c.bf16 %v6242_v35, %v6240_v41  ;;  %v9457_v23 = vadd.f32 %v9456_v4, %v9455_v59  ;;  %v9516_v19 = vpop.f32.mrb[128].mxu1  ;;  %v6449_v32 = vpack.c.bf16 %v6241_v61, %v6239_v39 }
 0x3a5   : > { %v6272_v60 = vmul.f32 %v11121_v36, %v16886_v40  ;;  %v9517_v18 = vpop.f32.mrb[129].mxu1  ;;  %v6271_v47 = vmul.f32 %v11121_v36, %v16888_v53  ;;  %v16890_v40 = vld [vmem:[#allocation253_spill] sm:$0xff] }
 0x3a6   : > { %v5835_v8 = vpop.xlane.xlu0 %5834  ;;  %v11123_v38 = vpop.eup %11122  ;;  %7101 = vmatprep.mubr.bf16.mxu0 %v6450_v42  ;;  %v8075_v41 = vpack.c.bf16 %v9457_v23, %v9454_v16  ;;  %v9518_v56 = vadd.f32 %v9517_v18, %v9516_v19  ;;  %v16892_v23 = vld [vmem:[#allocation104_spill] sm:$0xff]  ;;  %v16893_v53 = vld [vmem:[#allocation105_spill] sm:$0xff] }
 0x3a7   : > { %11132 = vrcp.f32 %v5835_v8  ;;  %v6274_v31 = vmul.f32 %v11123_v38, %v16887_v30  ;;  %v6273_v24 = vmul.f32 %v11123_v38, %v16889_v34  ;;  %v9519_v8 = vpop.f32.mrb[130].mxu1  ;;  %v16891_v38 = vld [vmem:[#allocation252_spill] sm:$0xff]  ;;  %v16894_v34 = vld [vmem:[#allocation106_spill] sm:$0xff] }
 0x3a8   : > { %v5838_v52 = vpop.xlane.xlu1 %5837  ;;  %v11125_v33 = vpop.eup %11124  ;;  %8083 = vst.msk [vmem:[#allocation2] sm:$0xff] %vm1639_vm0, %v8075_v41 }
 0x3a9   : > { %11134 = vrcp.f32 %v5838_v52  ;;  %v9520_v59 = vpop.f32.mrb[131].mxu1  ;;  %v6466_v4 = vpack.c.bf16 %v6274_v31, %v6272_v60  ;;  %v6465_v11 = vpack.c.bf16 %v6273_v24, %v6271_v47  ;;  %v6276_v16 = vmul.f32 %v11125_v33, %v16891_v38 }
 0x3aa   : > { %v5883_v35 = vpop.xlane.xlu0 %5882  ;;  %v11127_v42 = vpop.eup %11126  ;;  %v9521_v61 = vadd.f32 %v9520_v59, %v9519_v8  ;;  %7102 = vmatmul.mubr.bf16.gmra.mrb[188].mxu0 %v6449_v32  ;;  %v6275_v60 = vmul.f32 %v11125_v33, %v16893_v53  ;;  %v16895_v32 = vld [vmem:[#allocation222_spill] sm:$0xff]  ;;  %v16896_v8 = vld [vmem:[#allocation108_spill] sm:$0xff]  ;;  %v16897_v33 = vld [vmem:[#allocation41_spill] sm:$0xff] }
 0x3ab   : > { %11136 = vrcp.f32 %v5883_v35  ;;  %v6277_v30 = vmul.f32 %v11127_v42, %v16890_v40  ;;  %7294 = vmatprep.mubr.bf16.mxu1 %v6466_v4  ;;  %v6278_v19 = vmul.f32 %v11127_v42, %v16892_v23  ;;  %v10448_v23 = vld [vmem:[%s11938_s10 + $0x348] sm:$0xff]  }
 0x3ac   : > { %v11129_v39 = vpop.eup %11128  ;;  %v5886_v36 = vpop.xlane.xlu1 %5885  ;;  %v8091_v52 = vpack.c.bf16 %v9521_v61, %v9518_v56  ;;  %7295 = vmatmul.mubr.bf16.gmra.mrb[188].mxu1 %v6465_v11  ;;  %v10445_v61 = vld [vmem:[%s11938_s10 + $0x300] sm:$0xff]  }
 0x3ad   : > { %11138 = vrcp.f32 %v5886_v36  ;;  %v6468_v31 = vpack.c.bf16 %v6278_v19, %v6276_v16  ;;  %v6307_v24 = vmul.f32 %v11129_v39, %v16894_v34  ;;  %v6467_v56 = vpack.c.bf16 %v6277_v30, %v6275_v60  ;;  %v9458_v40 = vpop.f32.mrb[132].mxu0  ;;  %v16899_v34 = vld [vmem:[#allocation44_spill] sm:$0xff] }
 0x3ae   : > { %v5841_v18 = vpop.xlane.xlu0 %5840  ;;  %v11131_v47 = vpop.eup %11130  ;;  %8107 = vrot.lane.b32.xlu0 %v8091_v52, %s11348_s18  ;;  %v6308_v59 = vmul.f32 %v11129_v39, %v16896_v8 }
 0x3af   : > { %11140 = vrcp.f32 %v5841_v18  ;;  %v6309_v41 = vmul.f32 %v11131_v47, %v16895_v32  ;;  %7431 = vmatprep.mubr.bf16.mxu0 %v6468_v31  ;;  %v6310_v4 = vmul.f32 %v11131_v47, %v16897_v33  ;;  %v9459_v38 = vpop.f32.mrb[133].mxu0  ;;  %v10447_v18 = vld [vmem:[%s11938_s10 + $0x380] sm:$0xff]   ;;  %v16898_v31 = vld [vmem:[#allocation42_spill] sm:$0xff]  ;;  %v10449_v33 = vld [vmem:[%s11938_s10 + $0x308] sm:$0xff]  }
 0x3b0   : > { %v5844_v35 = vpop.xlane.xlu1 %5843  ;;  %v9460_v52 = vadd.f32 %v9459_v38, %v9458_v40  ;;  %v9461_v30 = vpop.f32.mrb[134].mxu0  ;;  %v10452_v40 = vld [vmem:[%s11938_s10 + $0x350] sm:$0xff]  }
 0x3b1   : > { %v11133_v11 = vpop.eup %11132  ;;  %11142 = vrcp.f32 %v5844_v35  ;;  %v6484_v36 = vpack.c.bf16 %v6310_v4, %v6308_v59  ;;  %v6483_v16 = vpack.c.bf16 %v6309_v41, %v6307_v24  ;;  %v9462_v60 = vpop.f32.mrb[135].mxu0  ;;  %v16900_v35 = vld [vmem:[#allocation111_spill] sm:$0xff]  ;;  %v10450_v59 = vld [vmem:[%s11938_s10 + $0x3c8] sm:$0xff]  }
 0x3b2   : > { %v5889_v42 = vpop.xlane.xlu0 %5888  ;;  %7432 = vmatmul.mubr.bf16.vlgmr.msra.gmra.mrb[192].mxu0 %v6467_v56  ;;  %v6280_v47 = vmul.f32 %v11133_v11, %v16898_v31  ;;  %v9463_v41 = vadd.f32 %v9462_v60, %v9461_v30  ;;  %v16901_v56 = vld [vmem:[#allocation229_spill] sm:$0xff] }
 0x3b3   : > { %11144 = vrcp.f32 %v5889_v42  ;;  %v11135_v19 = vpop.eup %11134  ;;  %7624 = vmatprep.mubr.bf16.mxu1 %v6484_v36  ;;  %9821 = vmatpush3.bf16.msra.mxu0 %v10445_v61  ;;  %v6279_v42 = vmul.f32 %v11133_v11, %v16901_v56  ;;  %v16903_v56 = vld [vmem:[#allocation163_spill] sm:$0xff] }
 0x3b4   : > { %v5892_v39 = vpop.xlane.xlu1 %5891  ;;  %v6282_v32 = vmul.f32 %v11135_v19, %v16899_v34  ;;  %v6281_v8 = vmul.f32 %v11135_v19, %v16900_v35  ;;  %7625 = vmatmul.mubr.bf16.vlgmr.msra.gmra.mrb[192].mxu1 %v6483_v16  ;;  %9822 = vmatprep.subr.bf16.mxu0 %v10448_v23  ;;  %v8076_v38 = vpack.c.bf16 %v9463_v41, %v9460_v52  ;;  %v9522_v31 = vpop.f32.mrb[132].mxu1  ;;  %v10456_v35 = vld [vmem:[%s11938_s10 + $0x358] sm:$0xff]  }
 0x3b5   : > { %v11137_v53 = vpop.eup %11136  ;;  %11146 = vrcp.f32 %v5892_v39  ;;  %9885 = vmatpush3.bf16.msra.mxu1 %v10447_v18  ;;  %v10451_v39 = vld [vmem:[%s11938_s10 + $0x388] sm:$0xff]   ;;  %v9523_v16 = vpop.f32.mrb[133].mxu1 }
 0x3b6   : > { %v5847_v24 = vpop.xlane.xlu0 %5846  ;;  %v6470_v4 = vpack.c.bf16 %v6282_v32, %v6280_v47  ;;  %v6312_v19 = vmul.f32 %v11137_v53, %v16682_v25  ;;  %v6311_v61 = vmul.f32 %v11137_v53, %v16681_v27  ;;  %v6469_v60 = vpack.c.bf16 %v6281_v8, %v6279_v42  ;;  %9886 = vmatprep.subr.bf16.mxu1 %v10450_v59  ;;  %v9525_v52 = vpop.f32.mrb[134].mxu1  ;;  %v10453_v53 = vld [vmem:[%s11938_s10 + $0x310] sm:$0xff]  }
 0x3b7   : > { %v11139_v36 = vpop.eup %11138  ;;  %11148 = vrcp.f32 %v5847_v24  ;;  %8084 = vst.msk [vmem:[#allocation2 + $0x8] sm:$0xff] %vm1639_vm0, %v8076_v38  ;;  %v9524_v25 = vadd.f32 %v9523_v16, %v9522_v31  ;;  %9823 = vmatpush3.bf16.msra.mxu0 %v10449_v33  ;;  %v10454_v47 = vld [vmem:[%s11938_s10 + $0x3d0] sm:$0xff]   ;;  %v9526_v34 = vpop.f32.mrb[135].mxu1  ;;  %v16902_v33 = vld [vmem:[#allocation235_spill] sm:$0xff]  ;;  %v10458_v31 = vld [vmem:[%s11938_s10 + $0x3d8] sm:$0xff]  }
 0x3b8   : > { %7439 = vmatprep.mubr.bf16.mxu0 %v6470_v4  ;;  %v5850_v30 = vpop.xlane.xlu1 %5849  ;;  %v6314_v23 = vmul.f32 %v11139_v36, %v16692_v12  ;;  %v6313_v11 = vmul.f32 %v11139_v36, %v16691_v51  ;;  %9824 = vmatprep.subr.bf16.mxu0 %v10452_v40  ;;  %v9527_v51 = vadd.f32 %v9526_v34, %v9525_v52  ;;  %v10455_v59 = vld [vmem:[%s11938_s10 + $0x390] sm:$0xff]   ;;  %v16904_v36 = vld [vmem:[#allocation46_spill] sm:$0xff] }
 0x3b9   : > { %v11141_v18 = vpop.eup %11140  ;;  %11150 = vrcp.f32 %v5850_v30  ;;  %9887 = vmatpush3.bf16.msra.mxu1 %v10451_v39  ;;  %v16905_v30 = vld [vmem:[#allocation131_spill] sm:$0xff] }
 0x3ba   : > { %v5895_v27 = vpop.xlane.xlu0 %5894  ;;  %v6486_v32 = vpack.c.bf16 %v6314_v23, %v6312_v19  ;;  %v6485_v12 = vpack.c.bf16 %v6313_v11, %v6311_v61  ;;  %7440 = vmatmul.mubr.bf16.gmra.mrb[196].mxu0 %v6469_v60  ;;  %v6284_v4 = vmul.f32 %v11141_v18, %v16902_v33  ;;  %v8092_v19 = vpack.c.bf16 %v9527_v51, %v9524_v25  ;;  %v10457_v61 = vld [vmem:[%s11938_s10 + $0x318] sm:$0xff]   ;;  %v10460_v60 = vld [vmem:[%s11938_s10 + $0x360] sm:$0xff]  }
 0x3bb   : > { %11152 = vrcp.f32 %v5895_v27  ;;  %v11143_v8 = vpop.eup %11142  ;;  %9825 = vmatpush3.bf16.msra.mxu0 %v10453_v53  ;;  %9888 = vmatprep.subr.bf16.mxu1 %v10454_v47  ;;  %v6283_v16 = vmul.f32 %v11141_v18, %v16905_v30  ;;  %v16906_v11 = vld [vmem:[#allocation118_spill] sm:$0xff]  ;;  %v16907_v25 = vld [vmem:[#allocation47_spill] sm:$0xff] }
 0x3bc   : > { %7632 = vmatprep.mubr.bf16.mxu1 %v6486_v32  ;;  %v5898_v41 = vpop.xlane.xlu1 %5897  ;;  %v6286_v42 = vmul.f32 %v11143_v8, %v16903_v56  ;;  %v6285_v38 = vmul.f32 %v11143_v8, %v16904_v36  ;;  %9826 = vmatprep.subr.bf16.mxu0 %v10456_v35  ;;  %v10459_v53 = vld [vmem:[%s11938_s10 + $0x398] sm:$0xff]   ;;  %v10461_v33 = vld [vmem:[%s11938_s10 + $0x320] sm:$0xff]  }
 0x3bd   : > { %v11145_v24 = vpop.eup %11144  ;;  %11154 = vrcp.f32 %v5898_v41  ;;  %7633 = vmatmul.mubr.bf16.gmra.mrb[196].mxu1 %v6485_v12  ;;  %8109 = vrot.lane.b32.xlu1 %v8092_v19, %s11348_s18  ;;  %v16908_v32 = vld [vmem:[#allocation138_spill] sm:$0xff]  ;;  %v16909_v12 = vld [vmem:[#allocation143_spill] sm:$0xff]  ;;  %v9464_v41 = vpop.f32.mrb[136].mxu0 }
 0x3be   : > { %v5853_v40 = vpop.xlane.xlu0 %5852  ;;  %v6472_v39 = vpack.c.bf16 %v6286_v42, %v6284_v4  ;;  %v6316_v27 = vmul.f32 %v11145_v24, %v16906_v11  ;;  %v6315_v52 = vmul.f32 %v11145_v24, %v16907_v25  ;;  %9889 = vmatpush3.bf16.msra.mxu1 %v10455_v59  ;;  %v6471_v34 = vpack.c.bf16 %v6285_v38, %v6283_v16  ;;  %v10462_v4 = vld [vmem:[%s11938_s10 + $0x3e0] sm:$0xff]   ;;  %v9465_v24 = vpop.f32.mrb[137].mxu0  ;;  %v10464_v42 = vld [vmem:[%s11938_s10 + $0x368] sm:$0xff]  }
 0x3bf   : > { %v11147_v23 = vpop.eup %11146  ;;  %11156 = vrcp.f32 %v5853_v40  ;;  %9890 = vmatprep.subr.bf16.mxu1 %v10458_v31  ;;  %9827 = vmatpush3.bf16.msra.mxu0 %v10457_v61  ;;  %v9466_v38 = vadd.f32 %v9465_v24, %v9464_v41  ;;  %v9467_v19 = vpop.f32.mrb[138].mxu0  ;;  %v10463_v31 = vld [vmem:[%s11938_s10 + $0x3a0] sm:$0xff]   ;;  %v16910_v16 = vld [vmem:[#allocation120_spill] sm:$0xff] }
 0x3c0   : > { %7447 = vmatprep.mubr.bf16.mxu0 %v6472_v39  ;;  %v5856_v47 = vpop.xlane.xlu1 %5855  ;;  %v6318_v18 = vmul.f32 %v11147_v23, %v16908_v32  ;;  %v6317_v35 = vmul.f32 %v11147_v23, %v16909_v12  ;;  %9828 = vmatprep.subr.bf16.mxu0 %v10460_v60  ;;  %v9528_v40 = vpop.f32.mrb[136].mxu1  ;;  %v16911_v11 = vld [vmem:[#allocation147_spill] sm:$0xff]  ;;  %v16912_v25 = vld [vmem:[#allocation240_spill] sm:$0xff] }
 0x3c1   : > { %v11149_v8 = vpop.eup %11148  ;;  %11158 = vrcp.f32 %v5856_v47  ;;  %v9468_v30 = vpop.f32.mrb[139].mxu0 }
 0x3c2   : > { %v5901_v51 = vpop.xlane.xlu0 %5900  ;;  %v6488_v59 = vpack.c.bf16 %v6318_v18, %v6316_v27  ;;  %v6487_v56 = vpack.c.bf16 %v6317_v35, %v6315_v52  ;;  %9891 = vmatpush3.bf16.msra.mxu1 %v10459_v53  ;;  %7448 = vmatmul.mubr.bf16.gmra.mrb[200].mxu0 %v6471_v34  ;;  %v6288_v23 = vmul.f32 %v11149_v8, %v16910_v16  ;;  %v10466_v52 = vld [vmem:[%s11938_s10 + $0x3e8] sm:$0xff]   ;;  %v9529_v18 = vpop.f32.mrb[137].mxu1  ;;  %v16913_v53 = vld [vmem:[#allocation122_spill] sm:$0xff] }
 0x3c3   : > { %11160 = vrcp.f32 %v5901_v51  ;;  %v11151_v36 = vpop.eup %11150  ;;  %v9469_v32 = vadd.f32 %v9468_v30, %v9467_v19  ;;  %v6287_v12 = vmul.f32 %v11149_v8, %v16913_v53  ;;  %9829 = vmatpush3.bf16.msra.mxu0 %v10461_v33  ;;  %9892 = vmatprep.subr.bf16.mxu1 %v10462_v4  ;;  %v10465_v34 = vld [vmem:[%s11938_s10 + $0x328] sm:$0xff]   ;;  %v9530_v51 = vadd.f32 %v9529_v18, %v9528_v40  ;;  %v9531_v41 = vpop.f32.mrb[138].mxu1  ;;  %v16915_v30 = vld [vmem:[#allocation149_spill] sm:$0xff] }
 0x3c4   : > { %7640 = vmatprep.mubr.bf16.mxu1 %v6488_v59  ;;  %v5904_v61 = vpop.xlane.xlu1 %5903  ;;  %v6290_v27 = vmul.f32 %v11151_v36, %v16911_v11  ;;  %v6289_v60 = vmul.f32 %v11151_v36, %v16912_v25  ;;  %v16914_v59 = vld [vmem:[#allocation7_spill] sm:$0xff]  ;;  %9830 = vmatprep.subr.bf16.mxu0 %v10464_v42  ;;  %v10468_v36 = vld [vmem:[%s11938_s10 + $0x370] sm:$0xff]   ;;  %v9532_v19 = vpop.f32.mrb[139].mxu1  ;;  %v10467_v33 = vld [vmem:[%s11938_s10 + $0x3a8] sm:$0xff]  }
 0x3c5   : > { %v11153_v39 = vpop.eup %11152  ;;  %11162 = vrcp.f32 %v5904_v61  ;;  %7641 = vmatmul.mubr.bf16.gmra.mrb[200].mxu1 %v6487_v56  ;;  %v8077_v61 = vpack.c.bf16 %v9469_v32, %v9466_v38  ;;  %v9533_v56 = vadd.f32 %v9532_v19, %v9531_v41  ;;  %v10471_v32 = vld [vmem:[%s11938_s10 + $0x3b0] sm:$0xff]   ;;  %v16920_v19 = vld [vmem:[#allocation11_spill] sm:$0xff] }
 0x3c6   : > { %v5859_v47 = vpop.xlane.xlu0 %5858  ;;  %v6474_v35 = vpack.c.bf16 %v6290_v27, %v6288_v23  ;;  %v6320_v24 = vmul.f32 %v11153_v39, %v16914_v59  ;;  %v6473_v11 = vpack.c.bf16 %v6289_v60, %v6287_v12  ;;  %v6319_v8 = vmul.f32 %v11153_v39, %v16915_v30  ;;  %9893 = vmatpush3.bf16.msra.mxu1 %v10463_v31  ;;  %v16916_v23 = vld [vmem:[#allocation48_spill] sm:$0xff]  ;;  %v10469_v39 = vld [vmem:[%s11938_s10 + $0x330] sm:$0xff]  }
 0x3c7   : > { %v11155_v16 = vpop.eup %11154  ;;  %11164 = vrcp.f32 %v5859_v47  ;;  %9894 = vmatprep.subr.bf16.mxu1 %v10466_v52  ;;  %8085 = vst.msk [vmem:[#allocation2 + $0x10] sm:$0xff] %vm1639_vm0, %v8077_v61  ;;  %9831 = vmatpush3.bf16.msra.mxu0 %v10465_v34  ;;  %v8093_v31 = vpack.c.bf16 %v9533_v56, %v9530_v51  ;;  %v10470_v47 = vld [vmem:[%s11938_s10 + $0x3f0] sm:$0xff]   ;;  %v10472_v52 = vld [vmem:[%s11938_s10 + $0x378] sm:$0xff]   ;;  %v16918_v34 = vld [vmem:[#allocation123_spill] sm:$0xff] }
 0x3c8   : > { %7455 = vmatprep.mubr.bf16.mxu0 %v6474_v35  ;;  %v5862_v4 = vpop.xlane.xlu1 %5861  ;;  %v6322_v40 = vmul.f32 %v11155_v16, %v14414_v5  ;;  %v6321_v27 = vmul.f32 %v11155_v16, %v16916_v23  ;;  %9832 = vmatprep.subr.bf16.mxu0 %v10468_v36  ;;  %v16917_v12 = vld [vmem:[#allocation145_spill] sm:$0xff]  ;;  %v16919_v59 = vld [vmem:[#allocation148_spill] sm:$0xff]  ;;  %v10474_v16 = vld [vmem:[%s11938_s10 + $0x3f8] sm:$0xff]  }
 0x3c9   : > { %v11157_v42 = vpop.eup %11156  ;;  %11166 = vrcp.f32 %v5862_v4  ;;  %8111 = vrot.lane.b32.xlu0 %v8093_v31, %s11348_s18  ;;  %v10473_v36 = vld [vmem:[%s11938_s10 + $0x338] sm:$0xff]   ;;  %v16922_v4 = vld [vmem:[#allocation124_spill] sm:$0xff] }
 0x3ca   : > { %v5907_v38 = vpop.xlane.xlu0 %5906  ;;  %v6490_v25 = vpack.c.bf16 %v6322_v40, %v6320_v24  ;;  %v6489_v60 = vpack.c.bf16 %v6321_v27, %v6319_v8  ;;  %9895 = vmatpush3.bf16.msra.mxu1 %v10467_v33  ;;  %7456 = vmatmul.mubr.bf16.gmra.mrb[204].mxu0 %v6473_v11  ;;  %v6292_v35 = vmul.f32 %v11157_v42, %v16917_v12  ;;  %v16921_v8 = vld [vmem:[#allocation53_spill] sm:$0xff]  ;;  %v10475_v40 = vld [vmem:[%s11938_s10 + $0x3b8] sm:$0xff]   ;;  %s8773_s10 = sshll.u32 %s11612_s15, 7 }
 0x3cb   : > { %11168 = vrcp.f32 %v5907_v38  ;;  %v11159_v5 = vpop.eup %11158  ;;  %9833 = vmatpush3.bf16.msra.mxu0 %v10469_v39  ;;  %v6291_v11 = vmul.f32 %v11157_v42, %v16920_v19  ;;  %9896 = vmatprep.subr.bf16.mxu1 %v10470_v47  ;;  %v16923_v38 = vld [vmem:[#allocation125_spill] sm:$0xff]  ;;  %v16924_v31 = vld [vmem:[#allocation54_spill] sm:$0xff]  ;;  %v9470_v47 = vpop.f32.mrb[140].mxu0  ;;  %s15387_s29 = scalar_lea.vmem [#allocation4], %s8773_s10  ;;  %s8627_s10 = scalar_lea.sflag [#allocation5], %s11612_s15 }
 0x3cc   : > { %7648 = vmatprep.mubr.bf16.mxu1 %v6490_v25  ;;  %v5910_v53 = vpop.xlane.xlu1 %5909  ;;  %v6294_v41 = vmul.f32 %v11159_v5, %v16918_v34  ;;  %v6293_v51 = vmul.f32 %v11159_v5, %v16919_v59  ;;  %9834 = vmatprep.subr.bf16.mxu0 %v10472_v52  ;;  %v16927_v19 = vld [vmem:[#allocation153_spill] sm:$0xff] }
 0x3cd   : > { %v11161_v18 = vpop.eup %11160  ;;  %11170 = vrcp.f32 %v5910_v53  ;;  %7649 = vmatmul.mubr.bf16.gmra.mrb[204].mxu1 %v6489_v60  ;;  %v9471_v53 = vpop.f32.mrb[141].mxu0 }
 0x3ce   : > { %v5865_v24 = vpop.xlane.xlu0 %5864  ;;  %v6476_v61 = vpack.c.bf16 %v6294_v41, %v6292_v35  ;;  %v6324_v33 = vmul.f32 %v11161_v18, %v16921_v8  ;;  %v6323_v56 = vmul.f32 %v11161_v18, %v16922_v4  ;;  %9897 = vmatpush3.bf16.msra.mxu1 %v10471_v32  ;;  %v6475_v27 = vpack.c.bf16 %v6293_v51, %v6291_v11  ;;  %v9473_v12 = vpop.f32.mrb[142].mxu0  ;;  %v16925_v51 = vld [vmem:[#allocation151_spill] sm:$0xff] }
 0x3cf   : > { %v11163_v30 = vpop.eup %11162  ;;  %11172 = vrcp.f32 %v5865_v24  ;;  %9898 = vmatprep.subr.bf16.mxu1 %v10474_v16  ;;  %9835 = vmatpush3.bf16.msra.mxu0 %v10473_v36  ;;  %v9472_v52 = vadd.f32 %v9471_v53, %v9470_v47  ;;  %v9474_v59 = vpop.f32.mrb[143].mxu0  ;;  %v16926_v24 = vld [vmem:[#allocation150_spill] sm:$0xff] }
 0x3d0   : > { %7463 = vmatprep.mubr.bf16.mxu0 %v6476_v61  ;;  %v5868_v23 = vpop.xlane.xlu1 %5867  ;;  %v6326_v39 = vmul.f32 %v11163_v30, %v16923_v38  ;;  %v6325_v25 = vmul.f32 %v11163_v30, %v16924_v31  ;;  %v9475_v30 = vadd.f32 %v9474_v59, %v9473_v12  ;;  %v16929_v31 = vld [vmem:[#allocation135_spill] sm:$0xff]  ;;  %v16931_v12 = vld [vmem:[#allocation157_spill] sm:$0xff] }
 0x3d1   : > { %v11165_v60 = vpop.eup %11164  ;;  %11174 = vrcp.f32 %v5868_v23  ;;  %v9534_v35 = vpop.f32.mrb[140].mxu1 }
 0x3d2   : > { %v5913_v42 = vpop.xlane.xlu0 %5912  ;;  %v6492_v5 = vpack.c.bf16 %v6326_v39, %v6324_v33  ;;  %v6491_v18 = vpack.c.bf16 %v6325_v25, %v6323_v56  ;;  %9899 = vmatpush3.bf16.msra.mxu1 %v10475_v40  ;;  %7464 = vmatmul.mubr.bf16.gmra.mrb[208].mxu0 %v6475_v27  ;;  %v6296_v16 = vmul.f32 %v11165_v60, %v16925_v51  ;;  %v9535_v8 = vpop.f32.mrb[141].mxu1  ;;  %v16928_v56 = vld [vmem:[#allocation133_spill] sm:$0xff] }
 0x3d3   : > { %11176 = vrcp.f32 %v5913_v42  ;;  %v11167_v32 = vpop.eup %11166  ;;  %v9536_v4 = vadd.f32 %v9535_v8, %v9534_v35  ;;  %v6295_v40 = vmul.f32 %v11165_v60, %v16928_v56  ;;  %v9537_v23 = vpop.f32.mrb[142].mxu1  ;;  %v8078_v38 = vpack.c.bf16 %v9475_v30, %v9472_v52  ;;  %v16930_v42 = vld [vmem:[#allocation152_spill] sm:$0xff] }
 0x3d4   : > { %7656 = vmatprep.mubr.bf16.mxu1 %v6492_v5  ;;  %v5916_v41 = vpop.xlane.xlu1 %5915  ;;  %v6298_v61 = vmul.f32 %v11167_v32, %v16926_v24  ;;  %v6297_v36 = vmul.f32 %v11167_v32, %v16927_v19  ;;  %v9538_v39 = vpop.f32.mrb[143].mxu1  ;;  %v16933_v19 = vld [vmem:[#allocation154_spill] sm:$0xff]  ;;  %v16934_v56 = vld [vmem:[#allocation136_spill] sm:$0xff] }
 0x3d5   : > { %v11169_v34 = vpop.eup %11168  ;;  %11178 = vrcp.f32 %v5916_v41  ;;  %7657 = vmatmul.mubr.bf16.gmra.mrb[208].mxu1 %v6491_v18  ;;  %v9539_v32 = vadd.f32 %v9538_v39, %v9537_v23  ;;  %v16932_v18 = vld [vmem:[#allocation155_spill] sm:$0xff]  ;;  %8086 = vst.msk [vmem:[#allocation2 + $0x18] sm:$0xff] %vm1639_vm0, %v8078_v38 }
 0x3d6   : > { %v5871_v11 = vpop.xlane.xlu0 %5870  ;;  %v6478_v33 = vpack.c.bf16 %v6298_v61, %v6296_v16  ;;  %v6328_v25 = vmul.f32 %v11169_v34, %v16929_v31  ;;  %v6327_v47 = vmul.f32 %v11169_v34, %v16930_v42  ;;  %v6477_v53 = vpack.c.bf16 %v6297_v36, %v6295_v40 }
 0x3d7   : > { %v11171_v27 = vpop.eup %11170  ;;  %11180 = vrcp.f32 %v5871_v11  ;;  %v8094_v52 = vpack.c.bf16 %v9539_v32, %v9536_v4 }
 0x3d8   : > { %7471 = vmatprep.mubr.bf16.mxu0 %v6478_v33  ;;  %v5874_v5 = vpop.xlane.xlu1 %5873  ;;  %v6330_v41 = vmul.f32 %v11171_v27, %v16931_v12  ;;  %v6329_v59 = vmul.f32 %v11171_v27, %v16932_v18 }
 0x3d9   : > { %v11173_v35 = vpop.eup %11172  ;;  %11182 = vrcp.f32 %v5874_v5  ;;  %8113 = vrot.lane.b32.xlu0 %v8094_v52, %s11348_s18 }
 0x3da   : > { %v5919_v60 = vpop.xlane.xlu0 %5918  ;;  %v6494_v51 = vpack.c.bf16 %v6330_v41, %v6328_v25  ;;  %v6493_v16 = vpack.c.bf16 %v6329_v59, %v6327_v47  ;;  %7472 = vmatmul.mubr.bf16.gmra.mrb[212].mxu0 %v6477_v53  ;;  %v6300_v36 = vmul.f32 %v11173_v35, %v16933_v19  ;;  %v6299_v40 = vmul.f32 %v11173_v35, %v16934_v56  ;;  %v16936_v56 = vld [vmem:[#allocation140_spill] sm:$0xff] }
 0x3db   : > { %11184 = vrcp.f32 %v5919_v60  ;;  %v11175_v24 = vpop.eup %11174 }
 0x3dc   : > { %7664 = vmatprep.mubr.bf16.mxu1 %v6494_v51  ;;  %v5922_v34 = vpop.xlane.xlu1 %5921  ;;  %v6302_v11 = vmul.f32 %v11175_v24, %v14559_v57  ;;  %v6301_v30 = vmul.f32 %v11175_v24, %v14555_v0 }
 0x3dd   : > { %v11177_v61 = vpop.eup %11176  ;;  %11186 = vrcp.f32 %v5922_v34  ;;  %v9476_v33 = vpop.f32.mrb[144].mxu0  ;;  %7665 = vmatmul.mubr.bf16.gmra.mrb[212].mxu1 %v6493_v16 }
 0x3de   : > { %v5925_v8 = vpop.xlane.xlu0 %5924  ;;  %v6480_v4 = vpack.c.bf16 %v6302_v11, %v6300_v36  ;;  %v9477_v23 = vpop.f32.mrb[145].mxu0  ;;  %v6332_v38 = vmul.f32 %v11177_v61, %v14569_v9  ;;  %v6479_v25 = vpack.c.bf16 %v6301_v30, %v6299_v40  ;;  %v6331_v42 = vmul.f32 %v11177_v61, %v14563_v48  ;;  %v16937_v40 = vld [vmem:[#allocation156_spill] sm:$0xff] }
 0x3df   : > { %v11179_v27 = vpop.eup %11178  ;;  %11188 = vrcp.f32 %v5925_v8  ;;  %v9478_v39 = vadd.f32 %v9477_v23, %v9476_v33  ;;  %v9479_v31 = vpop.f32.mrb[146].mxu0  ;;  %v16935_v33 = vld [vmem:[#allocation137_spill] sm:$0xff] }
 0x3e0   : > { %7479 = vmatprep.mubr.bf16.mxu0 %v6480_v4  ;;  %v5928_v57 = vpop.xlane.xlu1 %5927  ;;  %v6334_v0 = vmul.f32 %v11179_v27, %v14579_v3  ;;  %v6333_v47 = vmul.f32 %v11179_v27, %v14575_v29  ;;  %v9480_v5 = vpop.f32.mrb[147].mxu0  ;;  %v16938_v27 = vld [vmem:[#allocation139_spill] sm:$0xff] }
 0x3e1   : > { %v11181_v53 = vpop.eup %11180  ;;  %11190 = vrcp.f32 %v5928_v57  ;;  %v9481_v12 = vadd.f32 %v9480_v5, %v9479_v31  ;;  %v9540_v41 = vpop.f32.mrb[144].mxu1 }
 0x3e2   : > { %v5973_v32 = vpop.xlane.xlu0 %5972  ;;  %v6496_v18 = vpack.c.bf16 %v6334_v0, %v6332_v38  ;;  %v6495_v9 = vpack.c.bf16 %v6333_v47, %v6331_v42  ;;  %v9541_v59 = vpop.f32.mrb[145].mxu1  ;;  %7480 = vmatmul.mubr.bf16.gmra.mrb[216].mxu0 %v6479_v25  ;;  %v6304_v29 = vmul.f32 %v11181_v53, %v14591_v43  ;;  %v6303_v11 = vmul.f32 %v11181_v53, %v14583_v10  ;;  %v16939_v42 = vld [vmem:[#allocation158_spill] sm:$0xff] }
 0x3e3   : > { %11192 = vrcp.f32 %v5973_v32  ;;  %v11183_v35 = vpop.eup %11182  ;;  %v8079_v60 = vpack.c.bf16 %v9481_v12, %v9478_v39  ;;  %v9542_v52 = vadd.f32 %v9541_v59, %v9540_v41  ;;  %v9543_v51 = vpop.f32.mrb[146].mxu1  ;;  %v16940_v53 = vld [vmem:[#allocation146_spill] sm:$0xff]  ;;  %v16941_v12 = vld [vmem:[#allocation160_spill] sm:$0xff] }
 0x3e4   : > { %7672 = vmatprep.mubr.bf16.mxu1 %v6496_v18  ;;  %v5976_v48 = vpop.xlane.xlu1 %5975  ;;  %v6306_v3 = vmul.f32 %v11183_v35, %v14609_v26  ;;  %v6305_v24 = vmul.f32 %v11183_v35, %v14601_v2  ;;  %v9544_v61 = vpop.f32.mrb[147].mxu1 }
 0x3e5   : > { %v11185_v16 = vpop.eup %11184  ;;  %11194 = vrcp.f32 %v5976_v48  ;;  %8087 = vst.msk [vmem:[#allocation2 + $0x20] sm:$0xff] %vm1639_vm0, %v8079_v60  ;;  %v9545_v19 = vadd.f32 %v9544_v61, %v9543_v51  ;;  %7673 = vmatmul.mubr.bf16.gmra.mrb[216].mxu1 %v6495_v9  ;;  %v16942_v9 = vld [vmem:[#allocation144_spill] sm:$0xff]  ;;  %v16944_v61 = vld [vmem:[#allocation165_spill] sm:$0xff] }
 0x3e6   : > { %v5931_v34 = vpop.xlane.xlu0 %5930  ;;  %v6482_v36 = vpack.c.bf16 %v6306_v3, %v6304_v29  ;;  %v6336_v4 = vmul.f32 %v11185_v16, %v16935_v33  ;;  %v6481_v26 = vpack.c.bf16 %v6305_v24, %v6303_v11  ;;  %v6335_v23 = vmul.f32 %v11185_v16, %v16937_v40 }
 0x3e7   : > { %11196 = vrcp.f32 %v5931_v34  ;;  %v11187_v30 = vpop.eup %11186  ;;  %v8095_v8 = vpack.c.bf16 %v9545_v19, %v9542_v52  ;;  %v16943_v52 = vld [vmem:[#allocation162_spill] sm:$0xff] }
 0x3e8   : > { %7487 = vmatprep.mubr.bf16.mxu0 %v6482_v36  ;;  %v5934_v43 = vpop.xlane.xlu1 %5933  ;;  %v6338_v2 = vmul.f32 %v11187_v30, %v16936_v56  ;;  %v6337_v38 = vmul.f32 %v11187_v30, %v16938_v27 }
 0x3e9   : > { %v11189_v39 = vpop.eup %11188  ;;  %11198 = vrcp.f32 %v5934_v43  ;;  %8115 = vrot.lane.b32.xlu1 %v8095_v8, %s11348_s18 }
 0x3ea   : > { %v5979_v31 = vpop.xlane.xlu0 %5978  ;;  %v6498_v10 = vpack.c.bf16 %v6338_v2, %v6336_v4  ;;  %v6497_v57 = vpack.c.bf16 %v6337_v38, %v6335_v23  ;;  %7488 = vmatmul.mubr.bf16.gmra.mrb[220].mxu0 %v6481_v26  ;;  %v6340_v32 = vmul.f32 %v11189_v39, %v16940_v53  ;;  %v6339_v59 = vmul.f32 %v11189_v39, %v16942_v9  ;;  %v16945_v39 = vld [vmem:[#allocation168_spill] sm:$0xff] }
 0x3eb   : > { %11200 = vrcp.f32 %v5979_v31  ;;  %v11191_v25 = vpop.eup %11190 }
 0x3ec   : > { %v6341_v47 = vmul.f32 %v11191_v25, %v16939_v42  ;;  %7680 = vmatprep.mubr.bf16.mxu1 %v6498_v10  ;;  %v5982_v5 = vpop.xlane.xlu1 %5981  ;;  %v6342_v41 = vmul.f32 %v11191_v25, %v16941_v12 }
 0x3ed   : > { %v11193_v0 = vpop.eup %11192  ;;  %11202 = vrcp.f32 %v5982_v5  ;;  %7681 = vmatmul.mubr.bf16.gmra.mrb[220].mxu1 %v6497_v57 }
 0x3ee   : > { %v5937_v18 = vpop.xlane.xlu0 %5936  ;;  %v6500_v35 = vpack.c.bf16 %v6342_v41, %v6340_v32  ;;  %v6371_v51 = vmul.f32 %v11193_v0, %v16943_v52  ;;  %v6499_v24 = vpack.c.bf16 %v6341_v47, %v6339_v59  ;;  %v6372_v34 = vmul.f32 %v11193_v0, %v16944_v61  ;;  %v16946_v47 = vld [vmem:[#allocation161_spill] sm:$0xff]  ;;  %v16947_v32 = vld [vmem:[#allocation164_spill] sm:$0xff]  ;;  %v16950_v52 = vld [vmem:[#allocation174_spill] sm:$0xff] }
 0x3ef   : > { %v11195_v60 = vpop.eup %11194  ;;  %11204 = vrcp.f32 %v5937_v18 }
 0x3f0   : > { %v9482_v16 = vpop.f32.mrb[148].mxu0  ;;  %v6373_v29 = vmul.f32 %v11195_v60, %v14675_v1  ;;  %7817 = vmatprep.mubr.bf16.mxu0 %v6500_v35  ;;  %v5940_v3 = vpop.xlane.xlu1 %5939  ;;  %v6374_v19 = vmul.f32 %v11195_v60, %v14685_v55  ;;  %v16949_v35 = vld [vmem:[#allocation176_spill] sm:$0xff] }
 0x3f1   : > { %v11197_v48 = vpop.eup %11196  ;;  %v9483_v36 = vpop.f32.mrb[149].mxu0  ;;  %11206 = vrcp.f32 %v5940_v3 }
 0x3f2   : > { %v5985_v11 = vpop.xlane.xlu0 %5984  ;;  %v9484_v30 = vadd.f32 %v9483_v36, %v9482_v16  ;;  %v9485_v8 = vpop.f32.mrb[150].mxu0  ;;  %v6516_v33 = vpack.c.bf16 %v6374_v19, %v6372_v34  ;;  %v6515_v4 = vpack.c.bf16 %v6373_v29, %v6371_v51  ;;  %v6344_v1 = vmul.f32 %v11197_v48, %v14714_v62  ;;  %7818 = vmatmul.mubr.bf16.vlgmr.msra.gmra.mrb[224].mxu0 %v6499_v24  ;;  %v16951_v19 = vld [vmem:[#allocation171_spill] sm:$0xff] }
 0x3f3   : > { %11208 = vrcp.f32 %v5985_v11  ;;  %v9486_v43 = vpop.f32.mrb[151].mxu0  ;;  %v11199_v56 = vpop.eup %11198  ;;  %v6343_v5 = vmul.f32 %v11197_v48, %v16946_v47  ;;  %v16952_v11 = vld [vmem:[#allocation175_spill] sm:$0xff] }
 0x3f4   : > { %v9546_v26 = vpop.f32.mrb[148].mxu1  ;;  %v9487_v2 = vadd.f32 %v9486_v43, %v9485_v8  ;;  %8010 = vmatprep.mubr.bf16.mxu1 %v6516_v33  ;;  %v5988_v27 = vpop.xlane.xlu1 %5987  ;;  %v6346_v55 = vmul.f32 %v11199_v56, %v14723_v45  ;;  %v6345_v31 = vmul.f32 %v11199_v56, %v16945_v39  ;;  %v16948_v45 = vld [vmem:[#allocation159_spill] sm:$0xff]  ;;  %v16953_v8 = vld [vmem:[#allocation9_spill] sm:$0xff] }
 0x3f5   : > { %v9547_v40 = vpop.f32.mrb[149].mxu1  ;;  %v11201_v23 = vpop.eup %11200  ;;  %11210 = vrcp.f32 %v5988_v27  ;;  %8011 = vmatmul.mubr.bf16.vlgmr.msra.gmra.mrb[224].mxu1 %v6515_v4 }
 0x3f6   : > { %v9548_v38 = vadd.f32 %v9547_v40, %v9546_v26  ;;  %v9549_v10 = vpop.f32.mrb[150].mxu1  ;;  %v5943_v57 = vpop.xlane.xlu0 %5942  ;;  %v8080_v25 = vpack.c.bf16 %v9487_v2, %v9484_v30  ;;  %v6502_v42 = vpack.c.bf16 %v6346_v55, %v6344_v1  ;;  %v6376_v12 = vmul.f32 %v11201_v23, %v16947_v32  ;;  %v16954_v26 = vld [vmem:[#allocation169_spill] sm:$0xff] }
 0x3f7   : > { %v9550_v0 = vpop.f32.mrb[151].mxu1  ;;  %v11203_v53 = vpop.eup %11202  ;;  %11212 = vrcp.f32 %v5943_v57  ;;  %v6375_v41 = vmul.f32 %v11201_v23, %v16948_v45  ;;  %v6501_v9 = vpack.c.bf16 %v6345_v31, %v6343_v5  ;;  %v16955_v1 = vld [vmem:[#allocation177_spill] sm:$0xff] }
 0x3f8   : > { %v9551_v62 = vadd.f32 %v9550_v0, %v9549_v10  ;;  %8088 = vst.msk [vmem:[#allocation2 + $0x28] sm:$0xff] %vm1639_vm0, %v8080_v25  ;;  %7825 = vmatprep.mubr.bf16.mxu0 %v6502_v42  ;;  %v5946_v18 = vpop.xlane.xlu1 %5945  ;;  %v6378_v60 = vmul.f32 %v11203_v53, %v16949_v35  ;;  %v6377_v51 = vmul.f32 %v11203_v53, %v16950_v52 }
 0x3f9   : > { %v11205_v16 = vpop.eup %11204  ;;  %11214 = vrcp.f32 %v5946_v18 }
 0x3fa   : > { %v8096_v59 = vpack.c.bf16 %v9551_v62, %v9548_v38  ;;  %v5991_v48 = vpop.xlane.xlu0 %5990  ;;  %v6518_v29 = vpack.c.bf16 %v6378_v60, %v6376_v12  ;;  %v6517_v3 = vpack.c.bf16 %v6377_v51, %v6375_v41  ;;  %7826 = vmatmul.mubr.bf16.gmra.mrb[228].mxu0 %v6501_v9  ;;  %v6348_v36 = vmul.f32 %v11205_v16, %v16951_v19  ;;  %v16956_v38 = vld [vmem:[#allocation10_spill] sm:$0xff]  ;;  %v16959_v19 = vld [vmem:[#allocation13_spill] sm:$0xff] }
 0x3fb   : > { %11216 = vrcp.f32 %v5991_v48  ;;  %v11207_v24 = vpop.eup %11206  ;;  %v6347_v56 = vmul.f32 %v11205_v16, %v16954_v26 }
 0x3fc   : > { %8117 = vrot.lane.b32.xlu1 %v8096_v59, %s11348_s18  ;;  %8018 = vmatprep.mubr.bf16.mxu1 %v6518_v29  ;;  %v5994_v34 = vpop.xlane.xlu1 %5993  ;;  %v6350_v30 = vmul.f32 %v11207_v24, %v16952_v11  ;;  %v6349_v33 = vmul.f32 %v11207_v24, %v16953_v8  ;;  %v16960_v11 = vld [vmem:[#allocation185_spill] sm:$0xff] }
 0x3fd   : > { %v11209_v61 = vpop.eup %11208  ;;  %11218 = vrcp.f32 %v5994_v34  ;;  %8019 = vmatmul.mubr.bf16.gmra.mrb[228].mxu1 %v6517_v3  ;;  %v16957_v3 = vld [vmem:[#allocation15_spill] sm:$0xff] }
 0x3fe   : > { %v5949_v4 = vpop.xlane.xlu0 %5948  ;;  %v6504_v43 = vpack.c.bf16 %v6350_v30, %v6348_v36  ;;  %v6380_v40 = vmul.f32 %v11209_v61, %v16955_v1  ;;  %v6503_v27 = vpack.c.bf16 %v6349_v33, %v6347_v56  ;;  %v6379_v39 = vmul.f32 %v11209_v61, %v16956_v38  ;;  %v16958_v61 = vld [vmem:[#allocation8_spill] sm:$0xff]  ;;  %v16963_v38 = vld [vmem:[#allocation182_spill] sm:$0xff] }
 0x3ff   : > { %v11211_v2 = vpop.eup %11210  ;;  %11220 = vrcp.f32 %v5949_v4 }
 0x400   : > { %7833 = vmatprep.mubr.bf16.mxu0 %v6504_v43  ;;  %v5952_v23 = vpop.xlane.xlu1 %5951  ;;  %v6382_v55 = vmul.f32 %v11211_v2, %v14808_v44  ;;  %v6381_v31 = vmul.f32 %v11211_v2, %v14799_v28 }
 0x401   : > { %v11213_v10 = vpop.eup %11212  ;;  %11222 = vrcp.f32 %v5952_v23  ;;  %v9488_v25 = vpop.f32.mrb[152].mxu0 }
 0x402   : > { %v5997_v57 = vpop.xlane.xlu0 %5996  ;;  %v6520_v0 = vpack.c.bf16 %v6382_v55, %v6380_v40  ;;  %v9489_v42 = vpop.f32.mrb[153].mxu0  ;;  %v6519_v47 = vpack.c.bf16 %v6381_v31, %v6379_v39  ;;  %7834 = vmatmul.mubr.bf16.gmra.mrb[232].mxu0 %v6503_v27  ;;  %v6352_v45 = vmul.f32 %v11213_v10, %v14819_v22  ;;  %v6351_v52 = vmul.f32 %v11213_v10, %v14814_v14  ;;  %v16961_v40 = vld [vmem:[#allocation190_spill] sm:$0xff]  ;;  %v16962_v27 = vld [vmem:[#allocation184_spill] sm:$0xff] }
 0x403   : > { %11224 = vrcp.f32 %v5997_v57  ;;  %v11215_v5 = vpop.eup %11214  ;;  %v9490_v62 = vadd.f32 %v9489_v42, %v9488_v25  ;;  %v9491_v53 = vpop.f32.mrb[154].mxu0  ;;  %v16964_v57 = vld [vmem:[#allocation178_spill] sm:$0xff] }
 0x404   : > { %8026 = vmatprep.mubr.bf16.mxu1 %v6520_v0  ;;  %v6000_v12 = vpop.xlane.xlu1 %5999  ;;  %v9492_v44 = vpop.f32.mrb[155].mxu0  ;;  %v6354_v28 = vmul.f32 %v11215_v5, %v14830_v49  ;;  %v6353_v41 = vmul.f32 %v11215_v5, %v14823_v20 }
 0x405   : > { %v11217_v32 = vpop.eup %11216  ;;  %11226 = vrcp.f32 %v6000_v12  ;;  %v9493_v9 = vadd.f32 %v9492_v44, %v9491_v53  ;;  %v9552_v59 = vpop.f32.mrb[152].mxu1  ;;  %8027 = vmatmul.mubr.bf16.gmra.mrb[232].mxu1 %v6519_v47 }
 0x406   : > { %v5955_v18 = vpop.xlane.xlu0 %5954  ;;  %v6506_v35 = vpack.c.bf16 %v6354_v28, %v6352_v45  ;;  %v9553_v60 = vpop.f32.mrb[153].mxu1  ;;  %v6384_v22 = vmul.f32 %v11217_v32, %v16957_v3  ;;  %v6505_v24 = vpack.c.bf16 %v6353_v41, %v6351_v52  ;;  %v6383_v36 = vmul.f32 %v11217_v32, %v16959_v19  ;;  %v16965_v19 = vld [vmem:[#allocation183_spill] sm:$0xff] }
 0x407   : > { %v11219_v51 = vpop.eup %11218  ;;  %11228 = vrcp.f32 %v5955_v18  ;;  %v8081_v16 = vpack.c.bf16 %v9493_v9, %v9490_v62  ;;  %v9554_v48 = vadd.f32 %v9553_v60, %v9552_v59  ;;  %v9555_v29 = vpop.f32.mrb[154].mxu1 }
 0x408   : > { %7841 = vmatprep.mubr.bf16.mxu0 %v6506_v35  ;;  %v5958_v49 = vpop.xlane.xlu1 %5957  ;;  %v9556_v20 = vpop.f32.mrb[155].mxu1  ;;  %v6386_v34 = vmul.f32 %v11219_v51, %v16958_v61  ;;  %v6385_v30 = vmul.f32 %v11219_v51, %v16960_v11  ;;  %v16966_v11 = vld [vmem:[#allocation181_spill] sm:$0xff] }
 0x409   : > { %v11221_v8 = vpop.eup %11220  ;;  %8089 = vst.msk [vmem:[#allocation2 + $0x30] sm:$0xff] %vm1639_vm0, %v8081_v16  ;;  %11230 = vrcp.f32 %v5958_v49  ;;  %v9557_v33 = vadd.f32 %v9556_v20, %v9555_v29 }
 0x40a   : > { %v6003_v14 = vpop.xlane.xlu0 %6002  ;;  %v6522_v4 = vpack.c.bf16 %v6386_v34, %v6384_v22  ;;  %v6521_v43 = vpack.c.bf16 %v6385_v30, %v6383_v36  ;;  %7842 = vmatmul.mubr.bf16.gmra.mrb[236].mxu0 %v6505_v24  ;;  %v6356_v23 = vmul.f32 %v11221_v8, %v16961_v40  ;;  %v6355_v25 = vmul.f32 %v11221_v8, %v16964_v57  ;;  %v16968_v40 = vld [vmem:[#allocation199_spill] sm:$0xff] }
 0x40b   : > { %11232 = vrcp.f32 %v6003_v14  ;;  %v11223_v26 = vpop.eup %11222  ;;  %v8097_v56 = vpack.c.bf16 %v9557_v33, %v9554_v48 }
 0x40c   : > { %8034 = vmatprep.mubr.bf16.mxu1 %v6522_v4  ;;  %v6006_v1 = vpop.xlane.xlu1 %6005  ;;  %v6358_v55 = vmul.f32 %v11223_v26, %v16962_v27  ;;  %v6357_v39 = vmul.f32 %v11223_v26, %v16963_v38  ;;  %v16969_v27 = vld [vmem:[#allocation198_spill] sm:$0xff] }
 0x40d   : > { %v11225_v2 = vpop.eup %11224  ;;  %11234 = vrcp.f32 %v6006_v1  ;;  %8119 = vrot.lane.b32.xlu1 %v8097_v56, %s11348_s18  ;;  %8035 = vmatmul.mubr.bf16.gmra.mrb[236].mxu1 %v6521_v43 }
 0x40e   : > { %v5961_v31 = vpop.xlane.xlu0 %5960  ;;  %v6508_v10 = vpack.c.bf16 %v6358_v55, %v6356_v23  ;;  %v6388_v42 = vmul.f32 %v11225_v2, %v14914_v7  ;;  %v6507_v5 = vpack.c.bf16 %v6357_v39, %v6355_v25  ;;  %v6387_v53 = vmul.f32 %v11225_v2, %v14906_v13  ;;  %v16970_v39 = vld [vmem:[#allocation191_spill] sm:$0xff] }
 0x40f   : > { %11236 = vrcp.f32 %v5961_v31  ;;  %v11227_v0 = vpop.eup %11226 }
 0x410   : > { %7849 = vmatprep.mubr.bf16.mxu0 %v6508_v10  ;;  %v5964_v47 = vpop.xlane.xlu1 %5963  ;;  %v6390_v62 = vmul.f32 %v11227_v0, %v14922_v37  ;;  %v6389_v32 = vmul.f32 %v11227_v0, %v14919_v46 }
 0x411   : > { %v11229_v12 = vpop.eup %11228  ;;  %11238 = vrcp.f32 %v5964_v47 }
 0x412   : > { %v6009_v44 = vpop.xlane.xlu0 %6008  ;;  %v6524_v45 = vpack.c.bf16 %v6390_v62, %v6388_v42  ;;  %v6523_v28 = vpack.c.bf16 %v6389_v32, %v6387_v53  ;;  %v9494_v18 = vpop.f32.mrb[156].mxu0  ;;  %7850 = vmatmul.mubr.bf16.gmra.mrb[240].mxu0 %v6507_v5  ;;  %v6360_v35 = vmul.f32 %v11229_v12, %v14932_v6  ;;  %v6359_v29 = vmul.f32 %v11229_v12, %v14927_v17  ;;  %v16971_v42 = vld [vmem:[#allocation27_spill] sm:$0xff] }
 0x413   : > { %11240 = vrcp.f32 %v6009_v44  ;;  %v11231_v41 = vpop.eup %11230  ;;  %v9495_v59 = vpop.f32.mrb[157].mxu0  ;;  %v16972_v5 = vld [vmem:[#allocation203_spill] sm:$0xff] }
 0x414   : > { %8042 = vmatprep.mubr.bf16.mxu1 %v6524_v45  ;;  %v6012_v7 = vpop.xlane.xlu1 %6011  ;;  %v6362_v37 = vmul.f32 %v11231_v41, %v14958_v21  ;;  %v6361_v13 = vmul.f32 %v11231_v41, %v14940_v15  ;;  %v9496_v60 = vadd.f32 %v9495_v59, %v9494_v18  ;;  %v9497_v52 = vpop.f32.mrb[158].mxu0  ;;  %v16976_v59 = vld [vmem:[#allocation212_spill] sm:$0xff] }
 0x415   : > { %v11233_v9 = vpop.eup %11232  ;;  %11242 = vrcp.f32 %v6012_v7  ;;  %8043 = vmatmul.mubr.bf16.gmra.mrb[240].mxu1 %v6523_v28  ;;  %v9498_v51 = vpop.f32.mrb[159].mxu0  ;;  %v16973_v28 = vld [vmem:[#allocation216_spill] sm:$0xff] }
 0x416   : > { %v5967_v46 = vpop.xlane.xlu0 %5966  ;;  %v9558_v16 = vpop.f32.mrb[156].mxu1  ;;  %v6510_v48 = vpack.c.bf16 %v6362_v37, %v6360_v35  ;;  %v9499_v22 = vadd.f32 %v9498_v51, %v9497_v52  ;;  %v6392_v6 = vmul.f32 %v11233_v9, %v14969_v50  ;;  %v6391_v21 = vmul.f32 %v11233_v9, %v14964_v58  ;;  %v16967_v58 = vld [vmem:[#allocation196_spill] sm:$0xff]  ;;  %v16975_v9 = vld [vmem:[#allocation217_spill] sm:$0xff]  ;;  %v16977_v51 = vld [vmem:[#allocation219_spill] sm:$0xff] }
 0x417   : > { %v11235_v3 = vpop.eup %11234  ;;  %11244 = vrcp.f32 %v5967_v46  ;;  %v9559_v49 = vpop.f32.mrb[157].mxu1  ;;  %v6509_v61 = vpack.c.bf16 %v6361_v13, %v6359_v29 }
 0x418   : > { %7857 = vmatprep.mubr.bf16.mxu0 %v6510_v48  ;;  %v5970_v15 = vpop.xlane.xlu1 %5969  ;;  %v9560_v20 = vadd.f32 %v9559_v49, %v9558_v16  ;;  %v9561_v34 = vpop.f32.mrb[158].mxu1  ;;  %v6394_v36 = vmul.f32 %v11235_v3, %v16965_v19  ;;  %v6393_v30 = vmul.f32 %v11235_v3, %v16966_v11  ;;  %v8082_v8 = vpack.c.bf16 %v9499_v22, %v9496_v60  ;;  %v16978_v22 = vld [vmem:[#allocation195_spill] sm:$0xff] }
 0x419   : > { %v11237_v24 = vpop.eup %11236  ;;  %11246 = vrcp.f32 %v5970_v15  ;;  %v9562_v17 = vpop.f32.mrb[159].mxu1 }
 0x41a   : > { %v6015_v14 = vpop.xlane.xlu0 %6014  ;;  %v9563_v33 = vadd.f32 %v9562_v17, %v9561_v34  ;;  %v6526_v4 = vpack.c.bf16 %v6394_v36, %v6392_v6  ;;  %v6525_v43 = vpack.c.bf16 %v6393_v30, %v6391_v21  ;;  %8090 = vst.msk [vmem:[#allocation2 + $0x38] sm:$0xff] %vm1639_vm0, %v8082_v8  ;;  %v6364_v26 = vmul.f32 %v11237_v24, %v16967_v58  ;;  %v16979_v6 = vld [vmem:[#allocation218_spill] sm:$0xff] }
 0x41b   : > { %v11239_v50 = vpop.eup %11238  ;;  %11248 = vrcp.f32 %v6015_v14  ;;  %7858 = vmatmul.mubr.bf16.gmra.mrb[244].mxu0 %v6509_v61  ;;  %v6363_v31 = vmul.f32 %v11237_v24, %v16970_v39  ;;  %v16980_v24 = vld [vmem:[#allocation189_spill] sm:$0xff] }
 0x41c   : > { %v8098_v2 = vpack.c.bf16 %v9563_v33, %v9560_v20  ;;  %8050 = vmatprep.mubr.bf16.mxu1 %v6526_v4  ;;  %v6018_v1 = vpop.xlane.xlu1 %6017  ;;  %v6366_v23 = vmul.f32 %v11239_v50, %v16968_v40  ;;  %v6365_v55 = vmul.f32 %v11239_v50, %v16969_v27 }
 0x41d   : > { %v11241_v56 = vpop.eup %11240  ;;  %11250 = vrcp.f32 %v6018_v1  ;;  %8051 = vmatmul.mubr.bf16.gmra.mrb[244].mxu1 %v6525_v43 }
 0x41e   : > { %8121 = vrot.lane.b32.xlu1 %v8098_v2, %s11348_s18  ;;  %v6512_v38 = vpack.c.bf16 %v6366_v23, %v6364_v26  ;;  %v6396_v57 = vmul.f32 %v11241_v56, %v14999_v54  ;;  %v6511_v25 = vpack.c.bf16 %v6365_v55, %v6363_v31  ;;  %v6395_v47 = vmul.f32 %v11241_v56, %v16971_v42  ;;  %v16974_v54 = vld [vmem:[#allocation221_spill] sm:$0xff]  ;;  %s11353_s18 = smov 96  }
 0x41f   : > { %v11243_v10 = vpop.eup %11242 }
 0x420   : > { %7865 = vmatprep.mubr.bf16.mxu0 %v6512_v38  ;;  %v6398_v0 = vmul.f32 %v11243_v10, %v15019_v63  ;;  %v6397_v62 = vmul.f32 %v11243_v10, %v16972_v5  ;;  %v8108_v32 = vpop.permute.xlu0 %8107 }
 0x421   : > { %v11245_v53 = vpop.eup %11244  ;;  %8132 = vst.msk [vmem:[#allocation2] sm:$0xff] %vm8131_vm1, %v8108_v32 }
 0x422   : > { %v6528_v12 = vpack.c.bf16 %v6398_v0, %v6396_v57  ;;  %v6527_v44 = vpack.c.bf16 %v6397_v62, %v6395_v47  ;;  %v6368_v41 = vmul.f32 %v11245_v53, %v16973_v28  ;;  %v6367_v35 = vmul.f32 %v11245_v53, %v16976_v59 }
 0x423   : > { %v11247_v45 = vpop.eup %11246  ;;  %7866 = vmatmul.mubr.bf16.gmra.mrb[248].mxu0 %v6511_v25 }
 0x424   : > { %8058 = vmatprep.mubr.bf16.mxu1 %v6528_v12  ;;  %v6370_v18 = vmul.f32 %v11247_v45, %v16974_v54  ;;  %v6369_v7 = vmul.f32 %v11247_v45, %v16975_v9 }
 0x425   : > { %v11249_v63 = vpop.eup %11248  ;;  %v9580_v37 = vpop.f32.mrb[160].mxu0  ;;  %8059 = vmatmul.mubr.bf16.gmra.mrb[248].mxu1 %v6527_v44 }
 0x426   : > { %v6514_v13 = vpack.c.bf16 %v6370_v18, %v6368_v41  ;;  %v9581_v60 = vpop.f32.mrb[161].mxu0  ;;  %v6513_v52 = vpack.c.bf16 %v6369_v7, %v6367_v35  ;;  %v6400_v16 = vmul.f32 %v11249_v63, %v16977_v51  ;;  %v9644_v3 = vpop.f32.mrb[160].mxu1  ;;  %v6399_v21 = vmul.f32 %v11249_v63, %v16979_v6 }
 0x427   : > { %v11251_v46 = vpop.eup %11250  ;;  %v9582_v48 = vadd.f32 %v9581_v60, %v9580_v37  ;;  %v9583_v29 = vpop.f32.mrb[162].mxu0 }
 0x428   : > { %7873 = vmatprep.mubr.bf16.mxu0 %v6514_v13  ;;  %v6402_v49 = vmul.f32 %v11251_v46, %v16978_v22  ;;  %v6401_v15 = vmul.f32 %v11251_v46, %v16980_v24  ;;  %v9584_v20 = vpop.f32.mrb[163].mxu0  ;;  %v9645_v61 = vpop.f32.mrb[161].mxu1 }
 0x429   : > { %v9585_v34 = vadd.f32 %v9584_v20, %v9583_v29  ;;  %v9646_v19 = vadd.f32 %v9645_v61, %v9644_v3  ;;  %v9647_v36 = vpop.f32.mrb[162].mxu1 }
 0x42a   : > { %v6530_v11 = vpack.c.bf16 %v6402_v49, %v6400_v16  ;;  %v6529_v30 = vpack.c.bf16 %v6401_v15, %v6399_v21  ;;  %v9648_v8 = vpop.f32.mrb[163].mxu1 }
 0x42b   : > { %v8140_v17 = vpack.c.bf16 %v9585_v34, %v9582_v48  ;;  %7874 = vmatmul.mubr.bf16.gmra.mrb[252].mxu0 %v6513_v52  ;;  %v9649_v14 = vadd.f32 %v9648_v8, %v9647_v36 }
 0x42c   : > { %8066 = vmatprep.mubr.bf16.mxu1 %v6530_v11 }
 0x42d   : > { %v8189_v33 = vpack.c.bf16 %v9649_v14, %v9646_v19  ;;  %8156 = vrot.lane.b32.xlu0 %v8140_v17, %s11349_s20  ;;  %8067 = vmatmul.mubr.bf16.gmra.mrb[252].mxu1 %v6529_v30 }
 0x42f   : > { %v8110_v4 = vpop.permute.xlu1 %8109 }
 0x430   : > { %8133 = vst.msk [vmem:[#allocation2 + $0x8] sm:$0xff] %vm8131_vm1, %v8110_v4 }
 0x431   : > { %8205 = vrot.lane.b32.xlu0 %v8189_v33, %s11350_s9 }
 0x436   : > { %v9586_v43 = vpop.f32.mrb[164].mxu0 }
 0x437   : > { %v9587_v50 = vpop.f32.mrb[165].mxu0 }
 0x438   : > { %v9588_v58 = vadd.f32 %v9587_v50, %v9586_v43  ;;  %v9589_v26 = vpop.f32.mrb[166].mxu0  ;;  %v9650_v56 = vpop.f32.mrb[164].mxu1 }
 0x439   : > { %v9590_v2 = vpop.f32.mrb[167].mxu0  ;;  %v9651_v1 = vpop.f32.mrb[165].mxu1 }
 0x43a   : > { %v9591_v40 = vadd.f32 %v9590_v2, %v9589_v26  ;;  %v9652_v23 = vadd.f32 %v9651_v1, %v9650_v56  ;;  %v9653_v27 = vpop.f32.mrb[166].mxu1 }
 0x43b   : > { %v9654_v55 = vpop.f32.mrb[167].mxu1  ;;  %v8112_v10 = vpop.permute.xlu0 %8111 }
 0x43c   : > { %v8141_v38 = vpack.c.bf16 %v9591_v40, %v9588_v58  ;;  %v9655_v39 = vadd.f32 %v9654_v55, %v9653_v27  ;;  %8134 = vst.msk [vmem:[#allocation2 + $0x10] sm:$0xff] %vm8131_vm1, %v8112_v10 }
 0x43e   : > { %v8190_v31 = vpack.c.bf16 %v9655_v39, %v9652_v23  ;;  %8158 = vrot.lane.b32.xlu0 %v8141_v38, %s11349_s20 }
 0x442   : > { %8207 = vrot.lane.b32.xlu0 %v8190_v31, %s11350_s9 }
 0x446   : > { %v9592_v57 = vpop.f32.mrb[168].mxu0 }
 0x447   : > { %v9593_v25 = vpop.f32.mrb[169].mxu0 }
 0x448   : > { %v9594_v0 = vadd.f32 %v9593_v25, %v9592_v57  ;;  %v9595_v42 = vpop.f32.mrb[170].mxu0  ;;  %v9656_v47 = vpop.f32.mrb[168].mxu1 }
 0x449   : > { %v9596_v5 = vpop.f32.mrb[171].mxu0  ;;  %v9657_v62 = vpop.f32.mrb[169].mxu1 }
 0x44a   : > { %v9597_v53 = vadd.f32 %v9596_v5, %v9595_v42  ;;  %v9658_v32 = vadd.f32 %v9657_v62, %v9656_v47  ;;  %v9659_v12 = vpop.f32.mrb[170].mxu1 }
 0x44b   : > { %v9660_v44 = vpop.f32.mrb[171].mxu1  ;;  %v8114_v54 = vpop.permute.xlu0 %8113 }
 0x44c   : > { %v8142_v45 = vpack.c.bf16 %v9597_v53, %v9594_v0  ;;  %v9661_v28 = vadd.f32 %v9660_v44, %v9659_v12  ;;  %8135 = vst.msk [vmem:[#allocation2 + $0x18] sm:$0xff] %vm8131_vm1, %v8114_v54 }
 0x44e   : > { %v8191_v41 = vpack.c.bf16 %v9661_v28, %v9658_v32  ;;  %8160 = vrot.lane.b32.xlu0 %v8142_v45, %s11349_s20 }
 0x452   : > { %8209 = vrot.lane.b32.xlu0 %v8191_v41, %s11350_s9 }
 0x454   : > { %v9598_v18 = vpop.f32.mrb[172].mxu0 }
 0x455   : > { %v9599_v9 = vpop.f32.mrb[173].mxu0 }
 0x456   : > { %v9600_v7 = vadd.f32 %v9599_v9, %v9598_v18  ;;  %v9601_v63 = vpop.f32.mrb[174].mxu0 }
 0x457   : > { %v9662_v59 = vpop.f32.mrb[172].mxu1  ;;  %v9602_v35 = vpop.f32.mrb[175].mxu0 }
 0x458   : > { %v9663_v37 = vpop.f32.mrb[173].mxu1  ;;  %v9603_v13 = vadd.f32 %v9602_v35, %v9601_v63 }
 0x459   : > { %v9664_v46 = vadd.f32 %v9663_v37, %v9662_v59  ;;  %v9665_v60 = vpop.f32.mrb[174].mxu1 }
 0x45a   : > { %v9666_v51 = vpop.f32.mrb[175].mxu1  ;;  %v8143_v16 = vpack.c.bf16 %v9603_v13, %v9600_v7 }
 0x45b   : > { %v8116_v52 = vpop.permute.xlu1 %8115  ;;  %v9667_v48 = vadd.f32 %v9666_v51, %v9665_v60 }
 0x45c   : > { %8136 = vst.msk [vmem:[#allocation2 + $0x20] sm:$0xff] %vm8131_vm1, %v8116_v52  ;;  %8162 = vrot.lane.b32.xlu0 %v8143_v16, %s11349_s20 }
 0x45d   : > { %v8192_v29 = vpack.c.bf16 %v9667_v48, %v9664_v46 }
 0x460   : > { %8211 = vrot.lane.b32.xlu0 %v8192_v29, %s11350_s9 }
 0x465   : > { %v9604_v3 = vpop.f32.mrb[176].mxu0 }
 0x466   : > { %v9605_v22 = vpop.f32.mrb[177].mxu0 }
 0x467   : > { %v9606_v49 = vadd.f32 %v9605_v22, %v9604_v3  ;;  %v9607_v6 = vpop.f32.mrb[178].mxu0  ;;  %v9668_v21 = vpop.f32.mrb[176].mxu1 }
 0x468   : > { %v9608_v24 = vpop.f32.mrb[179].mxu0  ;;  %v9669_v15 = vpop.f32.mrb[177].mxu1 }
 0x469   : > { %v9609_v20 = vadd.f32 %v9608_v24, %v9607_v6  ;;  %v9670_v61 = vadd.f32 %v9669_v15, %v9668_v21  ;;  %v9671_v34 = vpop.f32.mrb[178].mxu1 }
 0x46a   : > { %v9672_v19 = vpop.f32.mrb[179].mxu1 }
 0x46b   : > { %v8144_v11 = vpack.c.bf16 %v9609_v20, %v9606_v49  ;;  %v9673_v30 = vadd.f32 %v9672_v19, %v9671_v34 }
 0x46d   : > { %v8193_v8 = vpack.c.bf16 %v9673_v30, %v9670_v61  ;;  %8164 = vrot.lane.b32.xlu1 %v8144_v11, %s11349_s20  ;;  %v9610_v17 = vpop.f32.mrb[180].mxu0 }
 0x46e   : > { %v8118_v36 = vpop.permute.xlu1 %8117  ;;  %v9611_v14 = vpop.f32.mrb[181].mxu0 }
 0x46f   : > { %8137 = vst.msk [vmem:[#allocation2 + $0x28] sm:$0xff] %vm8131_vm1, %v8118_v36  ;;  %v9612_v33 = vadd.f32 %v9611_v14, %v9610_v17  ;;  %v9613_v4 = vpop.f32.mrb[182].mxu0  ;;  %v9674_v43 = vpop.f32.mrb[180].mxu1 }
 0x470   : > { %v9614_v50 = vpop.f32.mrb[183].mxu0  ;;  %v9675_v58 = vpop.f32.mrb[181].mxu1 }
 0x471   : > { %v9615_v26 = vadd.f32 %v9614_v50, %v9613_v4  ;;  %8213 = vrot.lane.b32.xlu1 %v8193_v8, %s11350_s9  ;;  %v9676_v56 = vadd.f32 %v9675_v58, %v9674_v43  ;;  %v9677_v2 = vpop.f32.mrb[182].mxu1 }
 0x472   : > { %v9678_v1 = vpop.f32.mrb[183].mxu1 }
 0x473   : > { %v8145_v40 = vpack.c.bf16 %v9615_v26, %v9612_v33  ;;  %v9679_v23 = vadd.f32 %v9678_v1, %v9677_v2 }
 0x475   : > { %v8194_v27 = vpack.c.bf16 %v9679_v23, %v9676_v56  ;;  %8166 = vrot.lane.b32.xlu1 %v8145_v40, %s11349_s20  ;;  %v9616_v55 = vpop.f32.mrb[184].mxu0 }
 0x476   : > { %v9617_v38 = vpop.f32.mrb[185].mxu0 }
 0x477   : > { %v9618_v39 = vadd.f32 %v9617_v38, %v9616_v55  ;;  %v9619_v31 = vpop.f32.mrb[186].mxu0  ;;  %v9680_v10 = vpop.f32.mrb[184].mxu1 }
 0x478   : > { %v9620_v57 = vpop.f32.mrb[187].mxu0  ;;  %v9681_v25 = vpop.f32.mrb[185].mxu1 }
 0x479   : > { %v9621_v0 = vadd.f32 %v9620_v57, %v9619_v31  ;;  %8215 = vrot.lane.b32.xlu1 %v8194_v27, %s11350_s9  ;;  %v9682_v42 = vadd.f32 %v9681_v25, %v9680_v10  ;;  %v9683_v47 = vpop.f32.mrb[186].mxu1 }
 0x47a   : > { %v9684_v5 = vpop.f32.mrb[187].mxu1 }
 0x47b   : > { %v8146_v62 = vpack.c.bf16 %v9621_v0, %v9618_v39  ;;  %v9685_v53 = vadd.f32 %v9684_v5, %v9683_v47 }
 0x47d   : > { %v8195_v32 = vpack.c.bf16 %v9685_v53, %v9682_v42  ;;  %8168 = vrot.lane.b32.xlu1 %v8146_v62, %s11349_s20  ;;  %v9622_v12 = vpop.f32.mrb[188].mxu0 }
 0x47e   : > { %v9623_v45 = vpop.f32.mrb[189].mxu0 }
 0x47f   : > { %v8120_v44 = vpop.permute.xlu1 %8119  ;;  %v9624_v28 = vadd.f32 %v9623_v45, %v9622_v12  ;;  %v9625_v41 = vpop.f32.mrb[190].mxu0 }
 0x480   : > { %8138 = vst.msk [vmem:[#allocation2 + $0x30] sm:$0xff] %vm8131_vm1, %v8120_v44  ;;  %v9686_v54 = vpop.f32.mrb[188].mxu1  ;;  %v9626_v18 = vpop.f32.mrb[191].mxu0 }
 0x481   : > { %v9687_v9 = vpop.f32.mrb[189].mxu1  ;;  %v9627_v7 = vadd.f32 %v9626_v18, %v9625_v41  ;;  %8217 = vrot.lane.b32.xlu1 %v8195_v32, %s11350_s9 }
 0x482   : > { %v9688_v63 = vadd.f32 %v9687_v9, %v9686_v54  ;;  %v9689_v59 = vpop.f32.mrb[190].mxu1 }
 0x483   : > { %v9690_v35 = vpop.f32.mrb[191].mxu1  ;;  %v8147_v37 = vpack.c.bf16 %v9627_v7, %v9624_v28 }
 0x484   : > { %v9691_v13 = vadd.f32 %v9690_v35, %v9689_v59 }
 0x485   : > { %8170 = vrot.lane.b32.xlu1 %v8147_v37, %s11349_s20  ;;  %v9708_v60 = vpop.f32.mrb[192].mxu0 }
 0x486   : > { %v8196_v46 = vpack.c.bf16 %v9691_v13, %v9688_v63  ;;  %v9709_v52 = vpop.f32.mrb[193].mxu0 }
 0x487   : > { %v9710_v51 = vadd.f32 %v9709_v52, %v9708_v60  ;;  %v9711_v16 = vpop.f32.mrb[194].mxu0  ;;  %v9772_v48 = vpop.f32.mrb[192].mxu1 }
 0x488   : > { %v9712_v29 = vpop.f32.mrb[195].mxu0  ;;  %v9773_v3 = vpop.f32.mrb[193].mxu1 }
 0x489   : > { %v9713_v22 = vadd.f32 %v9712_v29, %v9711_v16  ;;  %8219 = vrot.lane.b32.xlu1 %v8196_v46, %s11350_s9  ;;  %v9774_v49 = vadd.f32 %v9773_v3, %v9772_v48  ;;  %v9775_v6 = vpop.f32.mrb[194].mxu1  ;;  %s11354_s9 = smov 112  }
 0x48a   : > { %v9776_v21 = vpop.f32.mrb[195].mxu1 }
 0x48b   : > { %v8238_v24 = vpack.c.bf16 %v9713_v22, %v9710_v51  ;;  %v9777_v15 = vadd.f32 %v9776_v21, %v9775_v6 }
 0x48d   : > { %v8287_v20 = vpack.c.bf16 %v9777_v15, %v9774_v49  ;;  %8254 = vrot.lane.b32.xlu0 %v8238_v24, %s11351_s13  ;;  %v9714_v61 = vpop.f32.mrb[196].mxu0 }
 0x48e   : > { %v9715_v34 = vpop.f32.mrb[197].mxu0 }
 0x48f   : > { %v9716_v36 = vadd.f32 %v9715_v34, %v9714_v61  ;;  %v9717_v11 = vpop.f32.mrb[198].mxu0 }
 0x490   : > { %v8122_v19 = vpop.permute.xlu1 %8121  ;;  %v9778_v30 = vpop.f32.mrb[196].mxu1 }
 0x491   : > { %8139 = vst.msk [vmem:[#allocation2 + $0x38] sm:$0xff] %vm8131_vm1, %v8122_v19  ;;  %v9718_v8 = vpop.f32.mrb[199].mxu0  ;;  %v9779_v17 = vpop.f32.mrb[197].mxu1  ;;  %8303 = vrot.lane.b32.xlu0 %v8287_v20, %s11352_s14 }
 0x492   : > { %v9719_v14 = vadd.f32 %v9718_v8, %v9717_v11  ;;  %v9780_v33 = vadd.f32 %v9779_v17, %v9778_v30  ;;  %v9781_v4 = vpop.f32.mrb[198].mxu1 }
 0x493   : > { %v9782_v43 = vpop.f32.mrb[199].mxu1 }
 0x494   : > { %v8239_v50 = vpack.c.bf16 %v9719_v14, %v9716_v36  ;;  %v9783_v58 = vadd.f32 %v9782_v43, %v9781_v4  ;;  %v10476_v4 = vld [vmem:[%s15471_s4] sm:$0xff]  }
 0x495   : > { %v9720_v56 = vpop.f32.mrb[200].mxu0  ;;  %9964 = vmatprep.subr.bf16.mxu0 %v10476_v4  ;;  %9996 = vmatprep.subr.bf16.mxu1 %v10476_v4 }
 0x496   : > { %v8288_v26 = vpack.c.bf16 %v9783_v58, %v9780_v33  ;;  %8256 = vrot.lane.b32.xlu0 %v8239_v50, %s11351_s13  ;;  %v9721_v2 = vpop.f32.mrb[201].mxu0  ;;  %9965 = vmatpush3.bf16.msra.mxu0 %v10476_v4 }
 0x497   : > { %v9722_v1 = vadd.f32 %v9721_v2, %v9720_v56  ;;  %v9723_v40 = vpop.f32.mrb[202].mxu0  ;;  %10004 = vmatpush3.bf16.msra.mxu1 %v10476_v4 }
 0x498   : > { %v9784_v23 = vpop.f32.mrb[200].mxu1  ;;  %v9724_v27 = vpop.f32.mrb[203].mxu0 }
 0x499   : > { %v9785_v55 = vpop.f32.mrb[201].mxu1  ;;  %v9725_v38 = vadd.f32 %v9724_v27, %v9723_v40 }
 0x49a   : > { %8305 = vrot.lane.b32.xlu0 %v8288_v26, %s11352_s14  ;;  %v9786_v39 = vadd.f32 %v9785_v55, %v9784_v23  ;;  %v9787_v31 = vpop.f32.mrb[202].mxu1  ;;  %v10477_v23 = vld [vmem:[%s15471_s4 + $0x8] sm:$0xff]  }
 0x49b   : > { %v9788_v10 = vpop.f32.mrb[203].mxu1  ;;  %v8240_v57 = vpack.c.bf16 %v9725_v38, %v9722_v1  ;;  %9966 = vmatprep.subr.bf16.mxu0 %v10477_v23  ;;  %9997 = vmatprep.subr.bf16.mxu1 %v10477_v23 }
 0x49c   : > { %v9789_v25 = vadd.f32 %v9788_v10, %v9787_v31  ;;  %9967 = vmatpush3.bf16.msra.mxu0 %v10477_v23  ;;  %10005 = vmatpush3.bf16.msra.mxu1 %v10477_v23 }
 0x49d   : > { %v9726_v42 = vpop.f32.mrb[204].mxu0 }
 0x49e   : > { %v8289_v0 = vpack.c.bf16 %v9789_v25, %v9786_v39  ;;  %8258 = vrot.lane.b32.xlu0 %v8240_v57, %s11351_s13  ;;  %v9727_v47 = vpop.f32.mrb[205].mxu0  ;;  %v10478_v57 = vld [vmem:[%s15471_s4 + $0x10] sm:$0xff]  }
 0x49f   : > { %v8157_v5 = vpop.permute.xlu0 %8156  ;;  %v9728_v62 = vadd.f32 %v9727_v47, %v9726_v42  ;;  %v9729_v53 = vpop.f32.mrb[206].mxu0  ;;  %9968 = vmatprep.subr.bf16.mxu0 %v10478_v57  ;;  %9998 = vmatprep.subr.bf16.mxu1 %v10478_v57 }
 0x4a0   : > { %8181 = vst.msk [vmem:[#allocation2] sm:$0xff] %vm8180_vm2, %v8157_v5  ;;  %v9790_v32 = vpop.f32.mrb[204].mxu1  ;;  %v9730_v12 = vpop.f32.mrb[207].mxu0  ;;  %9969 = vmatpush3.bf16.msra.mxu0 %v10478_v57  ;;  %10006 = vmatpush3.bf16.msra.mxu1 %v10478_v57 }
 0x4a1   : > { %v9791_v44 = vpop.f32.mrb[205].mxu1  ;;  %v9731_v45 = vadd.f32 %v9730_v12, %v9729_v53  ;;  %v10479_v12 = vld [vmem:[%s15471_s4 + $0x18] sm:$0xff]  }
 0x4a2   : > { %8307 = vrot.lane.b32.xlu0 %v8289_v0, %s11352_s14  ;;  %v9792_v28 = vadd.f32 %v9791_v44, %v9790_v32  ;;  %v9793_v41 = vpop.f32.mrb[206].mxu1  ;;  %9970 = vmatprep.subr.bf16.mxu0 %v10479_v12 }
 0x4a3   : > { %v8206_v54 = vpop.permute.xlu0 %8205  ;;  %v9794_v18 = vpop.f32.mrb[207].mxu1  ;;  %v8241_v9 = vpack.c.bf16 %v9731_v45, %v9728_v62  ;;  %9999 = vmatprep.subr.bf16.mxu1 %v10479_v12 }
 0x4a4   : > { %8230 = vst.msk [vmem:[#allocation2] sm:$0xff] %vm8229_vm3, %v8206_v54  ;;  %v9795_v7 = vadd.f32 %v9794_v18, %v9793_v41  ;;  %9971 = vmatpush3.bf16.msra.mxu0 %v10479_v12  ;;  %10007 = vmatpush3.bf16.msra.mxu1 %v10479_v12 }
 0x4a5   : > { %v9732_v59 = vpop.f32.mrb[208].mxu0 }
 0x4a6   : > { %v8290_v63 = vpack.c.bf16 %v9795_v7, %v9792_v28  ;;  %8260 = vrot.lane.b32.xlu0 %v8241_v9, %s11351_s13  ;;  %v9733_v35 = vpop.f32.mrb[209].mxu0 }
 0x4a7   : > { %v9734_v37 = vadd.f32 %v9733_v35, %v9732_v59  ;;  %v9735_v13 = vpop.f32.mrb[210].mxu0 }
 0x4a8   : > { %v9796_v46 = vpop.f32.mrb[208].mxu1  ;;  %v9736_v60 = vpop.f32.mrb[211].mxu0 }
 0x4a9   : > { %v9797_v52 = vpop.f32.mrb[209].mxu1  ;;  %v9737_v51 = vadd.f32 %v9736_v60, %v9735_v13 }
 0x4aa   : > { %8309 = vrot.lane.b32.xlu0 %v8290_v63, %s11352_s14  ;;  %v9798_v16 = vadd.f32 %v9797_v52, %v9796_v46  ;;  %v9799_v48 = vpop.f32.mrb[210].mxu1  ;;  %v10480_v63 = vld [vmem:[%s15471_s4 + $0x20] sm:$0xff]  }
 0x4ab   : > { %v9800_v29 = vpop.f32.mrb[211].mxu1  ;;  %v8242_v3 = vpack.c.bf16 %v9737_v51, %v9734_v37  ;;  %9972 = vmatprep.subr.bf16.mxu0 %v10480_v63  ;;  %10000 = vmatprep.subr.bf16.mxu1 %v10480_v63 }
 0x4ac   : > { %v9801_v22 = vadd.f32 %v9800_v29, %v9799_v48  ;;  %9973 = vmatpush3.bf16.msra.mxu0 %v10480_v63  ;;  %10008 = vmatpush3.bf16.msra.mxu1 %v10480_v63 }
 0x4ad   : > { %8262 = vrot.lane.b32.xlu1 %v8242_v3, %s11351_s13  ;;  %v9738_v6 = vpop.f32.mrb[212].mxu0 }
 0x4ae   : > { %v8291_v49 = vpack.c.bf16 %v9801_v22, %v9798_v16  ;;  %v9739_v21 = vpop.f32.mrb[213].mxu0  ;;  %v10481_v16 = vld [vmem:[%s15471_s4 + $0x28] sm:$0xff]  }
 0x4af   : > { %v9740_v24 = vadd.f32 %v9739_v21, %v9738_v6  ;;  %v9741_v20 = vpop.f32.mrb[214].mxu0  ;;  %9974 = vmatprep.subr.bf16.mxu0 %v10481_v16  ;;  %10001 = vmatprep.subr.bf16.mxu1 %v10481_v16  ;;  %v10482_v21 = vld [vmem:[%s15471_s4 + $0x30] sm:$0xff]  }
 0x4b0   : > { %v8159_v15 = vpop.permute.xlu0 %8158  ;;  %v9742_v61 = vpop.f32.mrb[215].mxu0  ;;  %9975 = vmatpush3.bf16.msra.mxu0 %v10481_v16  ;;  %10009 = vmatpush3.bf16.msra.mxu1 %v10481_v16 }
 0x4b1   : > { %8182 = vst.msk [vmem:[#allocation2 + $0x8] sm:$0xff] %vm8180_vm2, %v8159_v15  ;;  %v9802_v34 = vpop.f32.mrb[212].mxu1  ;;  %v9743_v19 = vadd.f32 %v9742_v61, %v9741_v20  ;;  %8311 = vrot.lane.b32.xlu1 %v8291_v49, %s11352_s14  ;;  %9976 = vmatprep.subr.bf16.mxu0 %v10482_v21 }
 0x4b2   : > { %v9803_v36 = vpop.f32.mrb[213].mxu1  ;;  %10002 = vmatprep.subr.bf16.mxu1 %v10482_v21 }
 0x4b3   : > { %v9804_v11 = vadd.f32 %v9803_v36, %v9802_v34  ;;  %v9805_v30 = vpop.f32.mrb[214].mxu1  ;;  %v8243_v8 = vpack.c.bf16 %v9743_v19, %v9740_v24 }
 0x4b4   : > { %v8208_v17 = vpop.permute.xlu0 %8207  ;;  %v9806_v14 = vpop.f32.mrb[215].mxu1  ;;  %9977 = vmatpush3.bf16.msra.mxu0 %v10482_v21  ;;  %10010 = vmatpush3.bf16.msra.mxu1 %v10482_v21 }
 0x4b5   : > { %8231 = vst.msk [vmem:[#allocation2 + $0x8] sm:$0xff] %vm8229_vm3, %v8208_v17  ;;  %v9807_v33 = vadd.f32 %v9806_v14, %v9805_v30  ;;  %8264 = vrot.lane.b32.xlu1 %v8243_v8, %s11351_s13  ;;  %v9744_v43 = vpop.f32.mrb[216].mxu0  ;;  %v10483_v30 = vld [vmem:[%s15471_s4 + $0x38] sm:$0xff]  }
 0x4b6   : > { %v9745_v58 = vpop.f32.mrb[217].mxu0  ;;  %9978 = vmatprep.subr.bf16.mxu0 %v10483_v30  ;;  %10003 = vmatprep.subr.bf16.mxu1 %v10483_v30 }
 0x4b7   : > { %v8292_v50 = vpack.c.bf16 %v9807_v33, %v9804_v11  ;;  %v9746_v26 = vadd.f32 %v9745_v58, %v9744_v43  ;;  %v9747_v56 = vpop.f32.mrb[218].mxu0 }
 0x4b8   : > { %v9808_v2 = vpop.f32.mrb[216].mxu1  ;;  %v9748_v1 = vpop.f32.mrb[219].mxu0  ;;  %9979 = vmatpush3.bf16.msra.mxu0 %v10483_v30  ;;  %10011 = vmatpush3.bf16.msra.mxu1 %v10483_v30 }
 0x4b9   : > { %v9809_v40 = vpop.f32.mrb[217].mxu1  ;;  %v9749_v27 = vadd.f32 %v9748_v1, %v9747_v56  ;;  %8313 = vrot.lane.b32.xlu1 %v8292_v50, %s11352_s14 }
 0x4ba   : > { %v9810_v55 = vadd.f32 %v9809_v40, %v9808_v2  ;;  %v9811_v38 = vpop.f32.mrb[218].mxu1 }
 0x4bb   : > { %v9812_v39 = vpop.f32.mrb[219].mxu1  ;;  %v8244_v31 = vpack.c.bf16 %v9749_v27, %v9746_v26 }
 0x4bc   : > { %v9813_v10 = vadd.f32 %v9812_v39, %v9811_v38 }
 0x4bd   : > { %8266 = vrot.lane.b32.xlu1 %v8244_v31, %s11351_s13  ;;  %v9750_v0 = vpop.f32.mrb[220].mxu0 }
 0x4be   : > { %v8293_v25 = vpack.c.bf16 %v9813_v10, %v9810_v55  ;;  %v9751_v42 = vpop.f32.mrb[221].mxu0 }
 0x4bf   : > { %v9752_v47 = vadd.f32 %v9751_v42, %v9750_v0  ;;  %v9753_v62 = vpop.f32.mrb[222].mxu0 }
 0x4c0   : > { %v8161_v5 = vpop.permute.xlu0 %8160  ;;  %v9754_v53 = vpop.f32.mrb[223].mxu0 }
 0x4c1   : > { %8183 = vst.msk [vmem:[#allocation2 + $0x10] sm:$0xff] %vm8180_vm2, %v8161_v5  ;;  %v9814_v32 = vpop.f32.mrb[220].mxu1  ;;  %v9755_v44 = vadd.f32 %v9754_v53, %v9753_v62  ;;  %8315 = vrot.lane.b32.xlu1 %v8293_v25, %s11352_s14 }
 0x4c2   : > { %v9815_v45 = vpop.f32.mrb[221].mxu1 }
 0x4c3   : > { %v9816_v28 = vadd.f32 %v9815_v45, %v9814_v32  ;;  %v9817_v41 = vpop.f32.mrb[222].mxu1  ;;  %v8245_v54 = vpack.c.bf16 %v9755_v44, %v9752_v47 }
 0x4c4   : > { %v8210_v18 = vpop.permute.xlu0 %8209  ;;  %v9818_v9 = vpop.f32.mrb[223].mxu1 }
 0x4c5   : > { %8232 = vst.msk [vmem:[#allocation2 + $0x10] sm:$0xff] %vm8229_vm3, %v8210_v18  ;;  %v9819_v7 = vadd.f32 %v9818_v9, %v9817_v41  ;;  %8268 = vrot.lane.b32.xlu1 %v8245_v54, %s11351_s13  ;;  %v9836_v59 = vpop.f32.mrb[224].mxu0  ;;  %s9173_s13 = sshll.u32 %s11330_s24, 4 }
 0x4c6   : > { %v9837_v37 = vpop.f32.mrb[225].mxu0 }
 0x4c7   : > { %v8294_v35 = vpack.c.bf16 %v9819_v7, %v9816_v28  ;;  %v9838_v13 = vadd.f32 %v9837_v37, %v9836_v59  ;;  %v9839_v46 = vpop.f32.mrb[226].mxu0 }
 0x4c8   : > { %v9900_v60 = vpop.f32.mrb[224].mxu1  ;;  %v9840_v52 = vpop.f32.mrb[227].mxu0 }
 0x4c9   : > { %v9901_v51 = vpop.f32.mrb[225].mxu1  ;;  %v9841_v48 = vadd.f32 %v9840_v52, %v9839_v46  ;;  %8317 = vrot.lane.b32.xlu1 %v8294_v35, %s11352_s14  ;;  %s8642_s14 = sshll.u32 %s15387_s29, 4  ;;  %s15405_s14 = int_to_ptr.vmem [resolvable:$true] %s8642_s14 }
 0x4ca   : > { %v9902_v29 = vadd.f32 %v9901_v51, %v9900_v60  ;;  %v9903_v3 = vpop.f32.mrb[226].mxu1  ;;  %s11252_s17 = scalar_lea.vmem %s15405_s14, 2048 }
 0x4cb   : > { %v9904_v22 = vpop.f32.mrb[227].mxu1  ;;  %v8336_v49 = vpack.c.bf16 %v9841_v48, %v9838_v13  ;;  %p11253_p2 = scmp.ne.s32.totalorder %s15405_s14, %s11252_s17 }
 0x4cc   : > { %v9905_v6 = vadd.f32 %v9904_v22, %v9903_v3 }
 0x4cd   : > { %8352 = vrot.lane.b32.xlu0 %v8336_v49, %s11353_s18  ;;  %v9842_v15 = vpop.f32.mrb[228].mxu0  ;;  %p11254_p3 = pnand %p11253_p2, %p11453_p8 }
 0x4ce   : > { %v8385_v24 = vpack.c.bf16 %v9905_v6, %v9902_v29  ;;  %v9843_v20 = vpop.f32.mrb[229].mxu0  ;;  %v8163_v34 = vpop.permute.xlu0 %8162 }
 0x4cf   : > { %v9844_v61 = vadd.f32 %v9843_v20, %v9842_v15  ;;  %v9845_v19 = vpop.f32.mrb[230].mxu0  ;;  %8184 = vst.msk [vmem:[#allocation2 + $0x18] sm:$0xff] %vm8180_vm2, %v8163_v34  ;;  %p11255_p4 = pneg %p11254_p3 }
 0x4d0   : > { %v9846_v36 = vpop.f32.mrb[231].mxu0  ;;  %v9906_v11 = vpop.f32.mrb[228].mxu1 }
 0x4d1   : > { %v9847_v8 = vadd.f32 %v9846_v36, %v9845_v19  ;;  %8401 = vrot.lane.b32.xlu0 %v8385_v24, %s11354_s9  ;;  %v9907_v17 = vpop.f32.mrb[229].mxu1 }
 0x4d2   : > { %v9908_v14 = vadd.f32 %v9907_v17, %v9906_v11  ;;  %v9909_v33 = vpop.f32.mrb[230].mxu1  ;;  %v8212_v43 = vpop.permute.xlu0 %8211 }
 0x4d3   : > { %v8337_v4 = vpack.c.bf16 %v9847_v8, %v9844_v61  ;;  %v9910_v50 = vpop.f32.mrb[231].mxu1  ;;  %8233 = vst.msk [vmem:[#allocation2 + $0x18] sm:$0xff] %vm8229_vm3, %v8212_v43 }
 0x4d4   : > { %v9911_v58 = vadd.f32 %v9910_v50, %v9909_v33 }
 0x4d5   : > { %8354 = vrot.lane.b32.xlu0 %v8337_v4, %s11353_s18  ;;  %v9848_v26 = vpop.f32.mrb[232].mxu0 }
 0x4d6   : > { %v8386_v56 = vpack.c.bf16 %v9911_v58, %v9908_v14  ;;  %v9849_v2 = vpop.f32.mrb[233].mxu0 }
 0x4d7   : > { %v9850_v1 = vadd.f32 %v9849_v2, %v9848_v26  ;;  %v9851_v40 = vpop.f32.mrb[234].mxu0 }
 0x4d8   : > { %v9912_v23 = vpop.f32.mrb[232].mxu1  ;;  %v9852_v27 = vpop.f32.mrb[235].mxu0 }
 0x4d9   : > { %v9913_v55 = vpop.f32.mrb[233].mxu1  ;;  %v9853_v38 = vadd.f32 %v9852_v27, %v9851_v40  ;;  %8403 = vrot.lane.b32.xlu0 %v8386_v56, %s11354_s9 }
 0x4da   : > { %v9914_v39 = vadd.f32 %v9913_v55, %v9912_v23  ;;  %v9915_v31 = vpop.f32.mrb[234].mxu1 }
 0x4db   : > { %v9916_v10 = vpop.f32.mrb[235].mxu1  ;;  %v8338_v57 = vpack.c.bf16 %v9853_v38, %v9850_v1 }
 0x4dc   : > { %v9917_v25 = vadd.f32 %v9916_v10, %v9915_v31 }
 0x4dd   : > { %8356 = vrot.lane.b32.xlu0 %v8338_v57, %s11353_s18  ;;  %v9854_v42 = vpop.f32.mrb[236].mxu0 }
 0x4de   : > { %v8387_v0 = vpack.c.bf16 %v9917_v25, %v9914_v39  ;;  %v9855_v47 = vpop.f32.mrb[237].mxu0 }
 0x4df   : > { %v9856_v5 = vadd.f32 %v9855_v47, %v9854_v42  ;;  %v9857_v62 = vpop.f32.mrb[238].mxu0  ;;  %v8165_v53 = vpop.permute.xlu1 %8164 }
 0x4e0   : > { %8185 = vst.msk [vmem:[#allocation2 + $0x20] sm:$0xff] %vm8180_vm2, %v8165_v53  ;;  %v9858_v32 = vpop.f32.mrb[239].mxu0  ;;  %v9918_v12 = vpop.f32.mrb[236].mxu1 }
 0x4e1   : > { %v9859_v44 = vadd.f32 %v9858_v32, %v9857_v62  ;;  %8405 = vrot.lane.b32.xlu0 %v8387_v0, %s11354_s9  ;;  %v9919_v45 = vpop.f32.mrb[237].mxu1 }
 0x4e2   : > { %v9920_v28 = vadd.f32 %v9919_v45, %v9918_v12  ;;  %v9921_v41 = vpop.f32.mrb[238].mxu1 }
 0x4e3   : > { %v8339_v54 = vpack.c.bf16 %v9859_v44, %v9856_v5  ;;  %v8214_v18 = vpop.permute.xlu1 %8213  ;;  %v9922_v9 = vpop.f32.mrb[239].mxu1 }
 0x4e4   : > { %8234 = vst.msk [vmem:[#allocation2 + $0x20] sm:$0xff] %vm8229_vm3, %v8214_v18  ;;  %v9923_v7 = vadd.f32 %v9922_v9, %v9921_v41 }
 0x4e5   : > { %8358 = vrot.lane.b32.xlu0 %v8339_v54, %s11353_s18  ;;  %v9860_v63 = vpop.f32.mrb[240].mxu0 }
 0x4e6   : > { %v8388_v59 = vpack.c.bf16 %v9923_v7, %v9920_v28  ;;  %v9861_v35 = vpop.f32.mrb[241].mxu0 }
 0x4e7   : > { %v9862_v37 = vadd.f32 %v9861_v35, %v9860_v63  ;;  %v9863_v13 = vpop.f32.mrb[242].mxu0  ;;  %v8167_v46 = vpop.permute.xlu1 %8166 }
 0x4e8   : > { %8186 = vst.msk [vmem:[#allocation2 + $0x28] sm:$0xff] %vm8180_vm2, %v8167_v46  ;;  %v9864_v60 = vpop.f32.mrb[243].mxu0  ;;  %v9924_v52 = vpop.f32.mrb[240].mxu1 }
 0x4e9   : > { %v9865_v51 = vadd.f32 %v9864_v60, %v9863_v13  ;;  %8407 = vrot.lane.b32.xlu0 %v8388_v59, %s11354_s9  ;;  %v9925_v16 = vpop.f32.mrb[241].mxu1 }
 0x4ea   : > { %v9926_v48 = vadd.f32 %v9925_v16, %v9924_v52  ;;  %v9927_v29 = vpop.f32.mrb[242].mxu1 }
 0x4eb   : > { %v8340_v3 = vpack.c.bf16 %v9865_v51, %v9862_v37  ;;  %v8216_v22 = vpop.permute.xlu1 %8215  ;;  %v9928_v49 = vpop.f32.mrb[243].mxu1 }
 0x4ec   : > { %8235 = vst.msk [vmem:[#allocation2 + $0x28] sm:$0xff] %vm8229_vm3, %v8216_v22  ;;  %v9929_v6 = vadd.f32 %v9928_v49, %v9927_v29 }
 0x4ed   : > { %8360 = vrot.lane.b32.xlu1 %v8340_v3, %s11353_s18 }
 0x4ee   : > { %v9866_v21 = vpop.f32.mrb[244].mxu0  ;;  %v8389_v24 = vpack.c.bf16 %v9929_v6, %v9926_v48 }
 0x4ef   : > { %v9867_v15 = vpop.f32.mrb[245].mxu0  ;;  %v8169_v34 = vpop.permute.xlu1 %8168 }
 0x4f0   : > { %v9868_v20 = vadd.f32 %v9867_v15, %v9866_v21  ;;  %v9869_v61 = vpop.f32.mrb[246].mxu0  ;;  %8187 = vst.msk [vmem:[#allocation2 + $0x30] sm:$0xff] %vm8180_vm2, %v8169_v34  ;;  %v9930_v36 = vpop.f32.mrb[244].mxu1 }
 0x4f1   : > { %v9870_v19 = vpop.f32.mrb[247].mxu0  ;;  %8409 = vrot.lane.b32.xlu1 %v8389_v24, %s11354_s9  ;;  %v9931_v30 = vpop.f32.mrb[245].mxu1 }
 0x4f2   : > { %v9871_v11 = vadd.f32 %v9870_v19, %v9869_v61  ;;  %v9932_v8 = vadd.f32 %v9931_v30, %v9930_v36  ;;  %v9933_v17 = vpop.f32.mrb[246].mxu1 }
 0x4f3   : > { %v8218_v33 = vpop.permute.xlu1 %8217  ;;  %v9934_v4 = vpop.f32.mrb[247].mxu1 }
 0x4f4   : > { %v8341_v14 = vpack.c.bf16 %v9871_v11, %v9868_v20  ;;  %8236 = vst.msk [vmem:[#allocation2 + $0x30] sm:$0xff] %vm8229_vm3, %v8218_v33  ;;  %v9935_v43 = vadd.f32 %v9934_v4, %v9933_v17 }
 0x4f6   : > { %8362 = vrot.lane.b32.xlu1 %v8341_v14, %s11353_s18  ;;  %v9872_v50 = vpop.f32.mrb[248].mxu0  ;;  %v8390_v58 = vpack.c.bf16 %v9935_v43, %v9932_v8 }
 0x4f7   : > { %v9873_v26 = vpop.f32.mrb[249].mxu0  ;;  %v8171_v1 = vpop.permute.xlu1 %8170 }
 0x4f8   : > { %v9874_v56 = vadd.f32 %v9873_v26, %v9872_v50  ;;  %v9875_v2 = vpop.f32.mrb[250].mxu0  ;;  %8188 = vst.msk [vmem:[#allocation2 + $0x38] sm:$0xff] %vm8180_vm2, %v8171_v1  ;;  %v9936_v23 = vpop.f32.mrb[248].mxu1 }
 0x4f9   : > { %v9876_v40 = vpop.f32.mrb[251].mxu0  ;;  %v9937_v55 = vpop.f32.mrb[249].mxu1 }
 0x4fa   : > { %v9877_v27 = vadd.f32 %v9876_v40, %v9875_v2  ;;  %8411 = vrot.lane.b32.xlu1 %v8390_v58, %s11354_s9  ;;  %v9938_v38 = vadd.f32 %v9937_v55, %v9936_v23  ;;  %v9939_v39 = vpop.f32.mrb[250].mxu1  ;;  %v9163_v23 = vld [vmem:[%s15472_s5] ss:$0 sm:$0xff] }
 0x4fb   : > { %v8220_v10 = vpop.permute.xlu1 %8219  ;;  %v9940_v57 = vpop.f32.mrb[251].mxu1 }
 0x4fc   : > { %v8342_v31 = vpack.c.bf16 %v9877_v27, %v9874_v56  ;;  %8237 = vst.msk [vmem:[#allocation2 + $0x38] sm:$0xff] %vm8229_vm3, %v8220_v10  ;;  %v9941_v25 = vadd.f32 %v9940_v57, %v9939_v39 }
 0x4fe   : > { %8364 = vrot.lane.b32.xlu1 %v8342_v31, %s11353_s18  ;;  %v9878_v0 = vpop.f32.mrb[252].mxu0  ;;  %v8391_v42 = vpack.c.bf16 %v9941_v25, %v9938_v38 }
 0x4ff   : > { %v9879_v47 = vpop.f32.mrb[253].mxu0  ;;  %v8255_v62 = vpop.permute.xlu0 %8254 }
 0x500   : > { %v9880_v5 = vadd.f32 %v9879_v47, %v9878_v0  ;;  %v9881_v53 = vpop.f32.mrb[254].mxu0  ;;  %8279 = vst.msk [vmem:[#allocation2] sm:$0xff] %vm8278_vm4, %v8255_v62  ;;  %v9942_v12 = vpop.f32.mrb[252].mxu1 }
 0x501   : > { %v9882_v32 = vpop.f32.mrb[255].mxu0  ;;  %v9943_v45 = vpop.f32.mrb[253].mxu1 }
 0x502   : > { %v9883_v44 = vadd.f32 %v9882_v32, %v9881_v53  ;;  %8413 = vrot.lane.b32.xlu1 %v8391_v42, %s11354_s9  ;;  %v9944_v28 = vadd.f32 %v9943_v45, %v9942_v12  ;;  %v9945_v41 = vpop.f32.mrb[254].mxu1 }
 0x503   : > { %v8304_v18 = vpop.permute.xlu0 %8303  ;;  %v9946_v9 = vpop.f32.mrb[255].mxu1 }
 0x504   : > { %v8343_v54 = vpack.c.bf16 %v9883_v44, %v9880_v5  ;;  %8328 = vst.msk [vmem:[#allocation2] sm:$0xff] %vm8327_vm5, %v8304_v18  ;;  %v9947_v7 = vadd.f32 %v9946_v9, %v9945_v41 }
 0x506   : > { %8366 = vrot.lane.b32.xlu1 %v8343_v54, %s11353_s18  ;;  %v8392_v63 = vpack.c.bf16 %v9947_v7, %v9944_v28  ;;  %s8639_s18 = sadd.s32 %s9174_s30, %s9173_s13  ;;  %s11256_s13 = sshll.u32 %s11355_s19, 4  ;;  %s11257_s13 = int_to_ptr.vmem [resolvable:$false] %s11256_s13 }
 0x507   : > { %s9175_s20 = sshll.u32 %s8639_s18, 7  ;;  %s11258_s30 = scalar_lea.vmem %s11257_s13, 4096 }
 0x508   : > { %v8257_v59 = vpop.permute.xlu0 %8256  ;;  %p11259_p5 = scmp.lt.s32.totalorder %s15405_s14, %s11257_s13  ;;  %p11260_p6 = scmp.lt.s32.totalorder %s11258_s30, %s11252_s17 }
 0x509   : > { %8280 = vst.msk [vmem:[#allocation2 + $0x8] sm:$0xff] %vm8278_vm4, %v8257_v59 }
 0x50a   : > { %8415 = vrot.lane.b32.xlu1 %v8392_v63, %s11354_s9  ;;  %s15411_s9 = scalar_lea.hbm %s15473_s6, %s9175_s20  ;;  %p11261_p7 = por %p11260_p6, %p11259_p5 }
 0x50c   : > { %v8306_v35 = vpop.permute.xlu0 %8305  ;;  %p11262_p10 = pnand %p11261_p7, %p11255_p4 }
 0x50d   : > { %8329 = vst.msk [vmem:[#allocation2 + $0x8] sm:$0xff] %vm8327_vm5, %v8306_v35 }
 0x510   : > { %v8259_v37 = vpop.permute.xlu0 %8258 }
 0x511   : > { %8281 = vst.msk [vmem:[#allocation2 + $0x10] sm:$0xff] %vm8278_vm4, %v8259_v37 }
 0x514   : > { %v8308_v13 = vpop.permute.xlu0 %8307 }
 0x515   : > { %8330 = vst.msk [vmem:[#allocation2 + $0x10] sm:$0xff] %vm8327_vm5, %v8308_v13 }
 0x518   : > { %v8261_v46 = vpop.permute.xlu0 %8260 }
 0x519   : > { %8282 = vst.msk [vmem:[#allocation2 + $0x18] sm:$0xff] %vm8278_vm4, %v8261_v46 }
 0x51c   : > { %v8310_v60 = vpop.permute.xlu0 %8309 }
 0x51d   : > { %8331 = vst.msk [vmem:[#allocation2 + $0x18] sm:$0xff] %vm8327_vm5, %v8310_v60 }
 0x51f   : > { %v8263_v52 = vpop.permute.xlu1 %8262 }
 0x520   : > { %8283 = vst.msk [vmem:[#allocation2 + $0x20] sm:$0xff] %vm8278_vm4, %v8263_v52 }
 0x523   : > { %v8312_v51 = vpop.permute.xlu1 %8311 }
 0x524   : > { %8332 = vst.msk [vmem:[#allocation2 + $0x20] sm:$0xff] %vm8327_vm5, %v8312_v51 }
 0x527   : > { %v8265_v16 = vpop.permute.xlu1 %8264 }
 0x528   : > { %8284 = vst.msk [vmem:[#allocation2 + $0x28] sm:$0xff] %vm8278_vm4, %v8265_v16 }
 0x52b   : > { %v8314_v48 = vpop.permute.xlu1 %8313 }
 0x52c   : > { %8333 = vst.msk [vmem:[#allocation2 + $0x28] sm:$0xff] %vm8327_vm5, %v8314_v48 }
 0x52f   : > { %v8267_v29 = vpop.permute.xlu1 %8266 }
 0x530   : > { %8285 = vst.msk [vmem:[#allocation2 + $0x30] sm:$0xff] %vm8278_vm4, %v8267_v29 }
 0x533   : > { %v8316_v3 = vpop.permute.xlu1 %8315 }
 0x534   : > { %8334 = vst.msk [vmem:[#allocation2 + $0x30] sm:$0xff] %vm8327_vm5, %v8316_v3 }
 0x537   : > { %v8269_v22 = vpop.permute.xlu1 %8268 }
 0x538   : > { %8286 = vst.msk [vmem:[#allocation2 + $0x38] sm:$0xff] %vm8278_vm4, %v8269_v22 }
 0x53b   : > { %v8318_v49 = vpop.permute.xlu1 %8317 }
 0x53c   : > { %8335 = vst.msk [vmem:[#allocation2 + $0x38] sm:$0xff] %vm8327_vm5, %v8318_v49 }
 0x53f   : > { %v8353_v6 = vpop.permute.xlu0 %8352 }
 0x540   : > { %8377 = vst.msk [vmem:[#allocation2] sm:$0xff] %vm8376_vm6, %v8353_v6 }
 0x543   : > { %v8402_v21 = vpop.permute.xlu0 %8401 }
 0x544   : > { %8426 = vst.msk [vmem:[#allocation2] sm:$0xff] %vm8425_vm7, %v8402_v21 }
 0x547   : > { %v8355_v24 = vpop.permute.xlu0 %8354 }
 0x548   : > { %8378 = vst.msk [vmem:[#allocation2 + $0x8] sm:$0xff] %vm8376_vm6, %v8355_v24 }
 0x54b   : > { %v8404_v15 = vpop.permute.xlu0 %8403  ;;  %v8434_v20 = vld [vmem:[#allocation2] sm:$0xff] }
 0x54c   : > { %8427 = vst.msk [vmem:[#allocation2 + $0x8] sm:$0xff] %vm8425_vm7, %v8404_v15  ;;  %9980 = vmatprep.mubr.bf16.mxu0 %v8434_v20 }
 0x54f   : > { %v8357_v61 = vpop.permute.xlu0 %8356 }
 0x550   : > { %8379 = vst.msk [vmem:[#allocation2 + $0x10] sm:$0xff] %vm8376_vm6, %v8357_v61 }
 0x553   : > { %v8406_v34 = vpop.permute.xlu0 %8405  ;;  %v8435_v19 = vld [vmem:[#allocation2 + $0x8] sm:$0xff] }
 0x554   : > { %8428 = vst.msk [vmem:[#allocation2 + $0x10] sm:$0xff] %vm8425_vm7, %v8406_v34  ;;  %9981 = vmatmul.mubr.bf16.vlgmr.msra.gmra.mrb[0].mxu0 %v8435_v19 }
 0x557   : > { %v8359_v36 = vpop.permute.xlu0 %8358 }
 0x558   : > { %8380 = vst.msk [vmem:[#allocation2 + $0x18] sm:$0xff] %vm8376_vm6, %v8359_v36 }
 0x55b   : > { %v8408_v11 = vpop.permute.xlu0 %8407  ;;  %v8436_v30 = vld [vmem:[#allocation2 + $0x10] sm:$0xff] }
 0x55c   : > { %8429 = vst.msk [vmem:[#allocation2 + $0x18] sm:$0xff] %vm8425_vm7, %v8408_v11  ;;  %9984 = vmatprep.mubr.bf16.mxu0 %v8436_v30 }
 0x55f   : > { %v8361_v8 = vpop.permute.xlu1 %8360 }
 0x560   : > { %8381 = vst.msk [vmem:[#allocation2 + $0x20] sm:$0xff] %vm8376_vm6, %v8361_v8 }
 0x563   : > { %v8410_v17 = vpop.permute.xlu1 %8409  ;;  %v8437_v14 = vld [vmem:[#allocation2 + $0x18] sm:$0xff] }
 0x564   : > { %8430 = vst.msk [vmem:[#allocation2 + $0x20] sm:$0xff] %vm8425_vm7, %v8410_v17  ;;  %9985 = vmatmul.mubr.bf16.gmra.mrb[4].mxu0 %v8437_v14 }
 0x568   : > { %v8363_v33 = vpop.permute.xlu1 %8362 }
 0x569   : > { %8382 = vst.msk [vmem:[#allocation2 + $0x28] sm:$0xff] %vm8376_vm6, %v8363_v33 }
 0x56b   : > { %v8438_v43 = vld [vmem:[#allocation2 + $0x20] sm:$0xff] }
 0x56c   : > { %v8412_v4 = vpop.permute.xlu1 %8411  ;;  %9988 = vmatprep.mubr.bf16.mxu1 %v8438_v43 }
 0x56d   : > { %8431 = vst.msk [vmem:[#allocation2 + $0x28] sm:$0xff] %vm8425_vm7, %v8412_v4 }
 0x570   : > { %v8365_v50 = vpop.permute.xlu1 %8364 }
 0x571   : > { %8383 = vst.msk [vmem:[#allocation2 + $0x30] sm:$0xff] %vm8376_vm6, %v8365_v50 }
 0x574   : > { %v8414_v58 = vpop.permute.xlu1 %8413  ;;  %v8439_v26 = vld [vmem:[#allocation2 + $0x28] sm:$0xff] }
 0x575   : > { %8432 = vst.msk [vmem:[#allocation2 + $0x30] sm:$0xff] %vm8425_vm7, %v8414_v58  ;;  %9989 = vmatmul.mubr.bf16.vlgmr.msra.gmra.mrb[0].mxu1 %v8439_v26 }
 0x578   : > { %v8367_v56 = vpop.permute.xlu1 %8366 }
 0x579   : > { %8384 = vst.msk [vmem:[#allocation2 + $0x38] sm:$0xff] %vm8376_vm6, %v8367_v56 }
 0x57c   : > { %v8416_v2 = vpop.permute.xlu1 %8415  ;;  %v8440_v1 = vld [vmem:[#allocation2 + $0x30] sm:$0xff] }
 0x57d   : > { %8433 = vst.msk [vmem:[#allocation2 + $0x38] sm:$0xff] %vm8425_vm7, %v8416_v2  ;;  %9992 = vmatprep.mubr.bf16.mxu1 %v8440_v1 }
 0x584   : > { %v8441_v40 = vld [vmem:[#allocation2 + $0x38] sm:$0xff] }
 0x585   : > { %9993 = vmatmul.mubr.bf16.gmra.mrb[4].mxu1 %v8441_v40 }
 0x627   : > { %v9982_v27 = vpop.f32.mrb[0].mxu0 }
 0x628   : > { %v8556_v55 = vadd.f32 %v9982_v27, %v9163_v23  ;;  %v8547_v38 = vpop.f32.mrb[1].mxu0 }
 0x629   : > { %v8548_v39 = vadd.f32 %v9163_v23, %v8547_v38  ;;  %v9983_v31 = vpop.f32.mrb[2].mxu0 }
 0x62a   : > { %8612 = vst [vmem:[%s15387_s29 + $0x10] sm:$0xff] %v8556_v55  ;;  %v8559_v10 = vadd.f32 %v9983_v31, %v9163_v23  ;;  %v8550_v57 = vpop.f32.mrb[3].mxu0 }
 0x62b   : > { %8610 = vst [vmem:[%s15387_s29] sm:$0xff] %v8548_v39  ;;  %v8551_v25 = vadd.f32 %v9163_v23, %v8550_v57 }
 0x62c   : > { %8613 = vst [vmem:[%s15387_s29 + $0x18] sm:$0xff] %v8559_v10 }
 0x62d   : > { %8611 = vst [vmem:[%s15387_s29 + $0x8] sm:$0xff] %v8551_v25 }
 0x637   : > { %v9986_v0 = vpop.f32.mrb[4].mxu0 }
 0x638   : > { %v8572_v42 = vadd.f32 %v9986_v0, %v9163_v23  ;;  %v8563_v47 = vpop.f32.mrb[5].mxu0 }
 0x639   : > { %v8564_v5 = vadd.f32 %v9163_v23, %v8563_v47  ;;  %v9987_v62 = vpop.f32.mrb[6].mxu0 }
 0x63a   : > { %8616 = vst [vmem:[%s15387_s29 + $0x30] sm:$0xff] %v8572_v42  ;;  %v8575_v53 = vadd.f32 %v9987_v62, %v9163_v23  ;;  %v8566_v32 = vpop.f32.mrb[7].mxu0 }
 0x63b   : > { %8614 = vst [vmem:[%s15387_s29 + $0x20] sm:$0xff] %v8564_v5  ;;  %v8567_v12 = vadd.f32 %v9163_v23, %v8566_v32 }
 0x63c   : > { %8617 = vst [vmem:[%s15387_s29 + $0x38] sm:$0xff] %v8575_v53 }
 0x63d   : > { %8615 = vst [vmem:[%s15387_s29 + $0x28] sm:$0xff] %v8567_v12 }
 0x648   : > { %v9990_v44 = vpop.f32.mrb[0].mxu1 }
 0x649   : > { %v8588_v45 = vadd.f32 %v9990_v44, %v9163_v23  ;;  %v8579_v28 = vpop.f32.mrb[1].mxu1 }
 0x64a   : > { %v8580_v41 = vadd.f32 %v9163_v23, %v8579_v28  ;;  %v9991_v54 = vpop.f32.mrb[2].mxu1 }
 0x64b   : > { %8620 = vst [vmem:[%s15387_s29 + $0x50] sm:$0xff] %v8588_v45  ;;  %v8591_v18 = vadd.f32 %v9991_v54, %v9163_v23  ;;  %v8582_v9 = vpop.f32.mrb[3].mxu1 }
 0x64c   : > { %8618 = vst [vmem:[%s15387_s29 + $0x40] sm:$0xff] %v8580_v41  ;;  %v8583_v7 = vadd.f32 %v9163_v23, %v8582_v9 }
 0x64d   : > { %8621 = vst [vmem:[%s15387_s29 + $0x58] sm:$0xff] %v8591_v18 }
 0x64e   : > { %8619 = vst [vmem:[%s15387_s29 + $0x48] sm:$0xff] %v8583_v7 }
 0x658   : > { %v9994_v63 = vpop.f32.mrb[4].mxu1 }
 0x659   : > { %v8604_v59 = vadd.f32 %v9994_v63, %v9163_v23  ;;  %v8595_v35 = vpop.f32.mrb[5].mxu1 }
 0x65a   : > { %v8596_v37 = vadd.f32 %v9163_v23, %v8595_v35  ;;  %v9995_v13 = vpop.f32.mrb[6].mxu1 }
 0x65b   : > { %8624 = vst [vmem:[%s15387_s29 + $0x70] sm:$0xff] %v8604_v59  ;;  %v8607_v46 = vadd.f32 %v9995_v13, %v9163_v23  ;;  %v8598_v60 = vpop.f32.mrb[7].mxu1 }
 0x65c   : > { %8622 = vst [vmem:[%s15387_s29 + $0x60] sm:$0xff] %v8596_v37  ;;  %v8599_v52 = vadd.f32 %v9163_v23, %v8598_v60 }
 0x65d   : > { %8625 = vst [vmem:[%s15387_s29 + $0x78] sm:$0xff] %v8607_v46 }
 0x65e   : > { %8623 = vst [vmem:[%s15387_s29 + $0x68] sm:$0xff] %v8599_v52 }
 0x65f   : > { %11265 = shalt.err (!%p11262_p10)
}
 0x660   : > { %s11266_s29 = scalar_lea.hbm %s15411_s9, 2048  ;;  %s11270_s24 = scalar_lea.hbm %s15473_s6, 8192 }
 0x661   : > { %p11267_p11 = scmp.ne.s32.totalorder %s15411_s9, %s11266_s29  ;;  %p11271_p0 = scmp.lt.u32.totalorder %s15411_s9, %s15473_s6 }
 0x662   : > { %p11272_p1 = scmp.lt.u32.totalorder %s11270_s24, %s11266_s29  ;;  %p11274_p3 = scmp.lt.u32.totalorder %s11266_s29, %s15411_s9 }
 0x663   : > { %p11268_p12 = pnand %p11267_p11, %p11453_p8 }
 0x664   : > { %p11273_p2 = por %p11272_p1, %p11271_p0 }
 0x665   : > { %p11269_p13 = pneg %p11268_p12 }
 0x666   : > { %p11275_p4 = por %p11274_p3, %p11273_p2 }
 0x668   : > { %p11276_p5 = pnand %p11275_p4, %p11269_p13 }
 0x66a   : > { %11279 = shalt.err (!%p11276_p5)
}
 0x66b   : > { %s11356_s17 = smov 128   ;;  %s11357_s13 = smov 8  }
 0x66c   : > { %10076 = dma.vmem_to_hbm [thread:$0]  (%p11453_p8), %s15405_s14, 2048, %s15411_s9, %s8627_s10, %s11356_s17, %s11356_s17, %s11357_s13  }
 0x66d PF: > { %p10082_p6 = scmp.ge.s32.totalorder %s11346_s28, 2  ;;  %s8657_s30 = sand.u32 1, %s11318_s21  }
 0x66e   : > { %s8658_s29 = scalar_lea.sflag [#allocation5], %s8657_s30 }
 0x66f   : > { %p10079_p7 = pnand %p10082_p6, %p11457_p9 }
 0x671   : > { %11313 = dma.done.wait (!%p10079_p7), %s8658_s29, 2048  }
 0x672   : > { %11315 = vsyncadd (!%p10079_p7), %s8658_s29, 4294965248  ;;  %s19_s28 = sadd.s32 1, %s11346_s28   ;;  %s16981_s21 = smov %s11322_s22 }
 0x673   : > { %p16_p10 = scmp.ge.s32.totalorder %s19_s28, 6   ;;  %s16982_s22 = smov %s11326_s23 }
 0x674   : > { %s16983_s23 = smov %s11465_s16  ;;  %s16984_s24 = smov %s11338_s26 }
 0x675   : > { %s16985_s25 = smov %s11342_s27  ;;  %s16986_s26 = smov %s16989_s7 }
 0x676   : > { %s16987_s27 = smov %s16993_s8  ;;  %18 = sbr.rel (!%p16_p10) target bundleno = 5 (0x5), region = 134 }
 0x67d   :  { %8663 = vsyncpa [#allocation5], 1 }
 0x67e   :  { %8665 = vsyncpa [#allocation5 + $0x1], 1 }

</bundles_post_ra>
